<compile_context>
chip_gen: v6e
topology: v6e:2x2x1
jax: 0.10.0
libtpu: 0.0.40
codegen_flags: <defaults>
</compile_context>

<pallas_src>
import functools

import jax
import jax.numpy as jnp
from jax.experimental import pallas as pl
from jax.experimental.pallas import tpu as pltpu


# ----------------------------------------------------------------------------
# Kernel 1: conv-as-matmul + ReLU.  Single K step (K = C*k*k = 27), M-tiled.
#   out = relu(patches_bf16 @ w_conv_bf16), f32 MXU accumulate, bf16 output.
# ----------------------------------------------------------------------------
def _conv_matmul_relu_kernel(a_ref, b_ref, o_ref):
    r = jnp.dot(a_ref[...], b_ref[...], preferred_element_type=jnp.float32)
    o_ref[...] = jnp.maximum(r, 0.0).astype(o_ref.dtype)


def conv_matmul_relu(patches, w_mat, *, tm=256):
    """patches: (M, 27) bf16, w_mat: (27, OC) bf16 -> (M, OC) bf16."""
    M, K = patches.shape
    K2, OC = w_mat.shape
    assert K == K2
    assert M % tm == 0, "conv rows (N*16*16) must be a multiple of tm"
    return pl.pallas_call(
        _conv_matmul_relu_kernel,
        out_shape=jax.ShapeDtypeStruct((M, OC), jnp.bfloat16),
        grid_spec=pltpu.PrefetchScalarGridSpec(
            num_scalar_prefetch=0,
            grid=(M // tm,),
            in_specs=[
                pl.BlockSpec((tm, K), lambda i: (i, 0)),
                pl.BlockSpec((K, OC), lambda i: (0, 0)),
            ],
            out_specs=pl.BlockSpec((tm, OC), lambda i: (i, 0)),
        ),
        compiler_params=pltpu.CompilerParams(
            dimension_semantics=("parallel",)  # v7x: 2 TCs split the M tiles
        ),
    )(patches, w_mat)


# ----------------------------------------------------------------------------
# Kernel 2: w1 stream -> per-core partial pre-activations.
#   partial[c] = flat[:, K_range(c)] @ w1[K_range(c), :]   (f32 accumulate)
# grid = (num_cores, nk_per_core); leading axis is "parallel" so on v7x each
# TensorCore streams its own half of w1 through its own HBM path.
# ----------------------------------------------------------------------------
def _w1_stream_kernel(a_ref, w1_ref, o_ref, acc_ref, *, nk_per_core):
    k = pl.program_id(1)

    @pl.when(k == 0)
    def _():
        acc_ref[...] = jnp.zeros_like(acc_ref)

    acc_ref[...] += jnp.dot(
        a_ref[...], w1_ref[...], preferred_element_type=jnp.float32
    )

    @pl.when(k == nk_per_core - 1)
    def _():
        o_ref[...] = acc_ref[...][None, :, :]


def w1_stream_partials(flat, w1_mat, *, tk=26624, num_cores=2):
    """flat: (M, K) bf16, w1_mat: (K, H1) bf16 -> (num_cores, M, H1) f32.

    NOTE: the whole batch is one M block; for large N add an M-tile grid axis
    (marked "parallel") so the (M, tk) activation block and (M, H1) accumulator
    stay within VMEM.
    """
    M, K = flat.shape
    K2, H1 = w1_mat.shape
    assert K == K2
    # No silent full-K fallback (would be a ~55 MB VMEM block -> OOM).
    assert K % tk == 0, f"K={K} must be divisible by tk={tk}"
    nk = K // tk
    assert nk % num_cores == 0, f"nk={nk} must be divisible by num_cores={num_cores}"
    nk_per_core = nk // num_cores

    kernel = functools.partial(_w1_stream_kernel, nk_per_core=nk_per_core)

    def a_map(c, k):
        return (0, c * nk_per_core + k)

    def w_map(c, k):
        return (c * nk_per_core + k, 0)

    # VMEM footprint (tk=26624, bf16 w1): 2 x 26624 x 128 x 2B = 13 MiB for the
    # w1 double-buffer + ~0.3 MiB everything else.  vmem_limit_bytes is raised
    # to 32 MiB for headroom on v5e (16 MiB default, 128 MiB physical); it is
    # the default on v6e/v7x already.
    return pl.pallas_call(
        kernel,
        out_shape=jax.ShapeDtypeStruct((num_cores, M, H1), jnp.float32),
        grid_spec=pltpu.PrefetchScalarGridSpec(
            num_scalar_prefetch=0,
            grid=(num_cores, nk_per_core),
            in_specs=[
                pl.BlockSpec((M, tk), a_map),      # activations (bf16)
                pl.BlockSpec((tk, H1), w_map),     # w1 tile (bf16)
            ],
            out_specs=pl.BlockSpec((1, M, H1), lambda c, k: (c, 0, 0)),
            scratch_shapes=[pltpu.VMEM((M, H1), jnp.float32)],
        ),
        compiler_params=pltpu.CompilerParams(
            dimension_semantics=("parallel", "arbitrary"),
            vmem_limit_bytes=32 * 1024 * 1024,
        ),
    )(flat, w1_mat)


# ----------------------------------------------------------------------------
# Kernel 3: tiny MLP tail / combine.
#   h1  = relu(sum_c partial[c] + b1)
#   h2  = relu(h1 @ w2t + b2)
#   out = h2 @ w3t + b3
# ----------------------------------------------------------------------------
def _mlp_tail_kernel(p_ref, b1_ref, w2_ref, b2_ref, w3_ref, b3_ref, o_ref):
    h1 = jnp.maximum(jnp.sum(p_ref[...], axis=0) + b1_ref[...], 0.0)   # (M, 128)
    h2 = jnp.maximum(
        jnp.dot(h1, w2_ref[...], preferred_element_type=jnp.float32)
        + b2_ref[...],
        0.0,
    )                                                                   # (M, 64)
    logits = (
        jnp.dot(h2, w3_ref[...], preferred_element_type=jnp.float32)
        + b3_ref[...]
    )                                                                   # (M, 10)
    o_ref[...] = logits.astype(o_ref.dtype)


def mlp_tail(partials, b1, w2t, b2, w3t, b3):
    """partials: (NC, M, H1) f32, rest f32 -> (M, 10) f32."""
    NC, M, H1 = partials.shape
    H2 = w2t.shape[1]
    NO = w3t.shape[1]
    return pl.pallas_call(
        _mlp_tail_kernel,
        out_shape=jax.ShapeDtypeStruct((M, NO), jnp.float32),
        grid_spec=pltpu.PrefetchScalarGridSpec(
            num_scalar_prefetch=0,
            grid=(1,),
            in_specs=[
                pl.BlockSpec((NC, M, H1), lambda i: (0, 0, 0)),
                pl.BlockSpec((1, H1), lambda i: (0, 0)),
                pl.BlockSpec((H1, H2), lambda i: (0, 0)),
                pl.BlockSpec((1, H2), lambda i: (0, 0)),
                pl.BlockSpec((H2, NO), lambda i: (0, 0)),
                pl.BlockSpec((1, NO), lambda i: (0, 0)),
            ],
            out_specs=pl.BlockSpec((M, NO), lambda i: (0, 0)),
        ),
    )(partials, b1, w2t, b2, w3t, b3)


# ----------------------------------------------------------------------------
# Conv glue: im2col (stride 2, 3x3 kernel, padding 1), NCHW input (plain JAX).
# ----------------------------------------------------------------------------
def im2col_nchw(x, k=3, s=2, p=1):
    N, C, H, W = x.shape
    xp = jnp.pad(x, ((0, 0), (0, 0), (p, p), (p, p)))
    OH = (H + 2 * p - k) // s + 1
    OW = (W + 2 * p - k) // s + 1
    cols = []
    for kh in range(k):
        for kw in range(k):
            cols.append(xp[:, :, kh:kh + s * OH:s, kw:kw + s * OW:s])  # (N,C,OH,OW)
    cols = jnp.stack(cols, axis=0)                 # (k*k, N, C, OH, OW)
    cols = jnp.transpose(cols, (1, 3, 4, 2, 0))    # (N, OH, OW, C, k*k)
    return cols.reshape(N * OH * OW, C * k * k), OH, OW


# ----------------------------------------------------------------------------
# Parameter prep (done ONCE, outside the jitted forward).
#   * w_conv OIHW -> (27, OC) matmul layout, bf16.
#   * w1 rows permuted from NCHW-flatten order to NHWC-flatten order so the
#     conv output feeds it directly (no activation transpose), cast bf16.
# ----------------------------------------------------------------------------
def prepare_params(params, *, oh=16, ow=16):
    w_conv = params["w_conv"]            # (832, 3, 3, 3)  PyTorch OIHW
    w1, b1 = params["w1"], params["b1"]  # (128, 212992), (128,)
    w2, b2 = params["w2"], params["b2"]  # (64, 128),     (64,)
    w3, b3 = params["w3"], params["b3"]  # (10, 64),      (10,)

    oc = w_conv.shape[0]
    # w1[j, c*OH*OW + oh*OW + ow]  ->  w1_eff[j, oh*OW*OC + ow*OC + c]
    w1_eff = (
        w1.reshape(w1.shape[0], oc, oh, ow)
        .transpose(0, 2, 3, 1)
        .reshape(w1.shape[0], -1)
    )
    return {
        "w_conv_mat": w_conv.reshape(oc, -1).T.astype(jnp.bfloat16),  # (27, 832)
        "w1_mat": w1_eff.T.astype(jnp.bfloat16),                      # (K, 128) bf16
        "b1": b1[None, :].astype(jnp.float32),                        # (1, 128)
        "w2t": w2.T.astype(jnp.float32),                              # (128, 64)
        "b2": b2[None, :].astype(jnp.float32),                        # (1, 64)
        "w3t": w3.T.astype(jnp.float32),                              # (64, 10)
        "b3": b3[None, :].astype(jnp.float32),                        # (1, 10)
    }


# ----------------------------------------------------------------------------
# Full forward pass.
# ----------------------------------------------------------------------------
def neural_network_forward(x, prep):
    N = x.shape[0]
    OC = prep["w_conv_mat"].shape[1]

    # Conv2d(3 -> 832, k=3, s=2, p=1, bias=False) + ReLU via im2col + matmul.
    patches, OH, OW = im2col_nchw(x)                        # (N*16*16, 27)
    patches = patches.astype(jnp.bfloat16)
    conv = conv_matmul_relu(patches, prep["w_conv_mat"])    # (N*16*16, 832) bf16

    # Flatten in NHWC order; w1 was pre-permuted to match (== torch NCHW flatten).
    # (This reshape costs one small XLA relayout copy of the 1.7 MB conv
    #  activation because 832 is not a multiple of 128 -- accepted per review.)
    flat = conv.reshape(N, OH * OW * OC)                    # (N, 212992) bf16

    # Linear(212992->128): K-tiled bf16 stream, split across 2 cores on v7x.
    partials = w1_stream_partials(flat, prep["w1_mat"])     # (2, N, 128) f32

    # +b1, ReLU, Linear(128->64)+ReLU, Linear(64->10): tiny combine kernel.
    logits = mlp_tail(
        partials, prep["b1"], prep["w2t"], prep["b2"], prep["w3t"], prep["b3"]
    )
    return logits


def init_params(key):
    ks = jax.random.split(key, 7)
    scale = 0.01
    return {
        "w_conv": scale * jax.random.normal(ks[0], (64 * 13, 3, 3, 3), jnp.float32),
        "w1": scale * jax.random.normal(ks[1], (128, 16 * 16 * 64 * 13), jnp.float32),
        "b1": scale * jax.random.normal(ks[2], (128,), jnp.float32),
        "w2": scale * jax.random.normal(ks[3], (64, 128), jnp.float32),
        "b2": scale * jax.random.normal(ks[4], (64,), jnp.float32),
        "w3": scale * jax.random.normal(ks[5], (10, 64), jnp.float32),
        "b3": scale * jax.random.normal(ks[6], (10,), jnp.float32),
    }


if __name__ == "__main__":
    key = jax.random.PRNGKey(0)
    pkey, xkey = jax.random.split(key)
    params = init_params(pkey)
    prep = prepare_params(params)

    # Input must be (N, 3, 32, 32): the Linear(16*16*832, ...) layer pins the
    # conv output to 16x16, i.e. 32x32 input with stride 2.
    x = jax.random.normal(xkey, (2, 3, 32, 32), jnp.float32)

    logits = jax.jit(neural_network_forward)(x, prep)
    jax.block_until_ready(logits)
    assert logits.shape == (2, 10) and logits.dtype == jnp.float32
    print("KERNEL_OK")
</pallas_src>

<mosaic_0001>
module attributes {stable_mosaic.version = 11 : i64} {
  func.func @_conv_matmul_relu_kernel(%arg0: i32, %arg1: memref<256x27xbf16, #tpu.memory_space<vmem>>, %arg2: memref<27x832xbf16, #tpu.memory_space<vmem>>, %arg3: memref<256x832xbf16, #tpu.memory_space<vmem>>) attributes {dimension_semantics = [#tpu.dimension_semantics<parallel>], iteration_bounds = array<i64: 2>, scalar_prefetch = 0 : i64, scratch_operands = 0 : i64, tpu.core_type = #tpu.core_type<tc>, window_params = [{transform_indices = @transform_0, window_bounds = array<i64: 256, 27>}, {pipeline_mode = #tpu.pipeline_mode<synchronous>, transform_indices = @transform_1, window_bounds = array<i64: 27, 832>}, {transform_indices = @transform_2, window_bounds = array<i64: 256, 832>}]} {
    %c0 = arith.constant 0 : index
    %c0_0 = arith.constant 0 : index
    %0 = vector.load %arg1[%c0, %c0_0] : memref<256x27xbf16, #tpu.memory_space<vmem>>, vector<256x27xbf16>
    %c0_1 = arith.constant 0 : index
    %c0_2 = arith.constant 0 : index
    %1 = vector.load %arg2[%c0_1, %c0_2] : memref<27x832xbf16, #tpu.memory_space<vmem>>, vector<27x832xbf16>
    %cst = arith.constant dense<0.000000e+00> : vector<256x832xf32>
    %2 = tpu.matmul %0, %1, %cst {dimension_numbers = #tpu.dot_dimension_numbers<[1], [0], [0], [1], [0, 0, 1, 1], [], []>} : vector<256x27xbf16>, vector<27x832xbf16>, vector<256x832xf32> -> vector<256x832xf32>
    %cst_3 = arith.constant 0.000000e+00 : f32
    %3 = vector.broadcast %cst_3 : f32 to vector<256x832xf32>
    %4 = arith.maximumf %2, %3 : vector<256x832xf32>
    %5 = arith.truncf %4 : vector<256x832xf32> to vector<256x832xbf16>
    %c0_4 = arith.constant 0 : index
    %c0_5 = arith.constant 0 : index
    %6 = vector.load %arg3[%c0_4, %c0_5] : memref<256x832xbf16, #tpu.memory_space<vmem>>, vector<256x832xbf16>
    tpu.vector_store %arg3[%c0_4, %c0_5], %5 {strides = array<i32>} : memref<256x832xbf16, #tpu.memory_space<vmem>>, vector<256x832xbf16>,
    return
  }
  func.func @transform_0(%arg0: i32) -> (i32, i32) {
    %c0_i32 = arith.constant 0 : i32
    %c0_i32_0 = arith.constant 0 : i32
    return %arg0, %c0_i32 : i32, i32
  }
  func.func @transform_1(%arg0: i32) -> (i32, i32) {
    %c0_i32 = arith.constant 0 : i32
    %c0_i32_0 = arith.constant 0 : i32
    %c0_i32_1 = arith.constant 0 : i32
    return %c0_i32, %c0_i32_0 : i32, i32
  }
  func.func @transform_2(%arg0: i32) -> (i32, i32) {
    %c0_i32 = arith.constant 0 : i32
    %c0_i32_0 = arith.constant 0 : i32
    return %arg0, %c0_i32 : i32, i32
  }
}

module attributes {stable_mosaic.version = 11 : i64} {
  func.func @_w1_stream_kernel(%arg0: i32, %arg1: i32, %arg2: memref<2x26624xbf16, #tpu.memory_space<vmem>>, %arg3: memref<26624x128xbf16, #tpu.memory_space<vmem>>, %arg4: memref<1x2x128xf32, #tpu.memory_space<vmem>>, %arg5: memref<2x128xf32, #tpu.memory_space<vmem>>) attributes {dimension_semantics = [#tpu.dimension_semantics<parallel>, #tpu.dimension_semantics<arbitrary>], iteration_bounds = array<i64: 2, 4>, scalar_prefetch = 0 : i64, scratch_operands = 1 : i64, tpu.core_type = #tpu.core_type<tc>, window_params = [{transform_indices = @transform_0, window_bounds = array<i64: 2, 26624>}, {transform_indices = @transform_1, window_bounds = array<i64: 26624, 128>}, {transform_indices = @transform_2, window_bounds = array<i64: 1, 2, 128>}]} {
    %c0_i32 = arith.constant 0 : i32
    %0 = arith.cmpi eq, %arg1, %c0_i32 : i32
    %1 = arith.extui %0 : i1 to i32
    %c0_i32_0 = arith.constant 0 : i32
    %2 = arith.cmpi ne, %1, %c0_i32_0 : i32
    scf.if %2 {
      %cst_9 = arith.constant 0.000000e+00 : f32
      %12 = vector.broadcast %cst_9 : f32 to vector<2x128xf32>
      %c0_10 = arith.constant 0 : index
      %c0_11 = arith.constant 0 : index
      %13 = vector.load %arg5[%c0_10, %c0_11] : memref<2x128xf32, #tpu.memory_space<vmem>>, vector<2x128xf32>
      tpu.vector_store %arg5[%c0_10, %c0_11], %12 {strides = array<i32>} : memref<2x128xf32, #tpu.memory_space<vmem>>, vector<2x128xf32>,
    } else {
    }
    %c0 = arith.constant 0 : index
    %c0_1 = arith.constant 0 : index
    %3 = vector.load %arg5[%c0, %c0_1] : memref<2x128xf32, #tpu.memory_space<vmem>>, vector<2x128xf32>
    %c0_2 = arith.constant 0 : index
    %c0_3 = arith.constant 0 : index
    %4 = vector.load %arg2[%c0_2, %c0_3] : memref<2x26624xbf16, #tpu.memory_space<vmem>>, vector<2x26624xbf16>
    %c0_4 = arith.constant 0 : index
    %c0_5 = arith.constant 0 : index
    %5 = vector.load %arg3[%c0_4, %c0_5] : memref<26624x128xbf16, #tpu.memory_space<vmem>>, vector<26624x128xbf16>
    %cst = arith.constant dense<0.000000e+00> : vector<2x128xf32>
    %6 = tpu.matmul %4, %5, %cst {dimension_numbers = #tpu.dot_dimension_numbers<[1], [0], [0], [1], [0, 0, 1, 1], [], []>} : vector<2x26624xbf16>, vector<26624x128xbf16>, vector<2x128xf32> -> vector<2x128xf32>
    %7 = arith.addf %3, %6 : vector<2x128xf32>
    %c0_6 = arith.constant 0 : index
    %c0_7 = arith.constant 0 : index
    %8 = vector.load %arg5[%c0_6, %c0_7] : memref<2x128xf32, #tpu.memory_space<vmem>>, vector<2x128xf32>
    tpu.vector_store %arg5[%c0_6, %c0_7], %7 {strides = array<i32>} : memref<2x128xf32, #tpu.memory_space<vmem>>, vector<2x128xf32>,
    %c3_i32 = arith.constant 3 : i32
    %9 = arith.cmpi eq, %arg1, %c3_i32 : i32
    %10 = arith.extui %9 : i1 to i32
    %c0_i32_8 = arith.constant 0 : i32
    %11 = arith.cmpi ne, %10, %c0_i32_8 : i32
    scf.if %11 {
      %c0_9 = arith.constant 0 : index
      %c0_10 = arith.constant 0 : index
      %12 = vector.load %arg5[%c0_9, %c0_10] : memref<2x128xf32, #tpu.memory_space<vmem>>, vector<2x128xf32>
      %13 = vector.shape_cast %12 : vector<2x128xf32> to vector<1x2x128xf32>
      %c0_11 = arith.constant 0 : index
      %c0_12 = arith.constant 0 : index
      %c0_13 = arith.constant 0 : index
      %14 = vector.load %arg4[%c0_11, %c0_12, %c0_13] : memref<1x2x128xf32, #tpu.memory_space<vmem>>, vector<1x2x128xf32>
      tpu.vector_store %arg4[%c0_11, %c0_12, %c0_13], %13 {strides = array<i32>} : memref<1x2x128xf32, #tpu.memory_space<vmem>>, vector<1x2x128xf32>,
    } else {
    }
    return
  }
  func.func @transform_0(%arg0: i32, %arg1: i32) -> (i32, i32) {
    %c4_i32 = arith.constant 4 : i32
    %0 = arith.muli %arg0, %c4_i32 : i32
    %1 = arith.addi %0, %arg1 : i32
    %c0_i32 = arith.constant 0 : i32
    %c0_i32_0 = arith.constant 0 : i32
    return %c0_i32, %1 : i32, i32
  }
  func.func @transform_1(%arg0: i32, %arg1: i32) -> (i32, i32) {
    %c4_i32 = arith.constant 4 : i32
    %0 = arith.muli %arg0, %c4_i32 : i32
    %1 = arith.addi %0, %arg1 : i32
    %c0_i32 = arith.constant 0 : i32
    %c0_i32_0 = arith.constant 0 : i32
    return %1, %c0_i32 : i32, i32
  }
  func.func @transform_2(%arg0: i32, %arg1: i32) -> (i32, i32, i32) {
    %c0_i32 = arith.constant 0 : i32
    %c0_i32_0 = arith.constant 0 : i32
    %c0_i32_1 = arith.constant 0 : i32
    return %arg0, %c0_i32, %c0_i32_0 : i32, i32, i32
  }
}

module attributes {stable_mosaic.version = 11 : i64} {
  func.func @_mlp_tail_kernel(%arg0: i32, %arg1: memref<2x2x128xf32, #tpu.memory_space<vmem>>, %arg2: memref<1x128xf32, #tpu.memory_space<vmem>>, %arg3: memref<128x64xf32, #tpu.memory_space<vmem>>, %arg4: memref<1x64xf32, #tpu.memory_space<vmem>>, %arg5: memref<64x10xf32, #tpu.memory_space<vmem>>, %arg6: memref<1x10xf32, #tpu.memory_space<vmem>>, %arg7: memref<2x10xf32, #tpu.memory_space<vmem>>) attributes {dimension_semantics = [#tpu.dimension_semantics<arbitrary>], iteration_bounds = array<i64: 1>, scalar_prefetch = 0 : i64, scratch_operands = 0 : i64, tpu.core_type = #tpu.core_type<tc>, window_params = [{pipeline_mode = #tpu.pipeline_mode<synchronous>, transform_indices = @transform_0, window_bounds = array<i64: 2, 2, 128>}, {pipeline_mode = #tpu.pipeline_mode<synchronous>, transform_indices = @transform_1, window_bounds = array<i64: 1, 128>}, {pipeline_mode = #tpu.pipeline_mode<synchronous>, transform_indices = @transform_2, window_bounds = array<i64: 128, 64>}, {pipeline_mode = #tpu.pipeline_mode<synchronous>, transform_indices = @transform_3, window_bounds = array<i64: 1, 64>}, {pipeline_mode = #tpu.pipeline_mode<synchronous>, transform_indices = @transform_4, window_bounds = array<i64: 64, 10>}, {pipeline_mode = #tpu.pipeline_mode<synchronous>, transform_indices = @transform_5, window_bounds = array<i64: 1, 10>}, {pipeline_mode = #tpu.pipeline_mode<synchronous>, transform_indices = @transform_6, window_bounds = array<i64: 2, 10>}]} {
    %c0 = arith.constant 0 : index
    %c0_0 = arith.constant 0 : index
    %c0_1 = arith.constant 0 : index
    %0 = vector.load %arg1[%c0, %c0_0, %c0_1] : memref<2x2x128xf32, #tpu.memory_space<vmem>>, vector<2x2x128xf32>
    %cst = arith.constant dense<0.000000e+00> : vector<2x128xf32>
    %1 = vector.multi_reduction <add>, %0, %cst [0] : vector<2x2x128xf32> to vector<2x128xf32>
    %c0_2 = arith.constant 0 : index
    %c0_3 = arith.constant 0 : index
    %2 = vector.load %arg2[%c0_2, %c0_3] : memref<1x128xf32, #tpu.memory_space<vmem>>, vector<1x128xf32>
    %3 = vector.broadcast %2 : vector<1x128xf32> to vector<2x128xf32>
    %4 = arith.addf %1, %3 : vector<2x128xf32>
    %cst_4 = arith.constant 0.000000e+00 : f32
    %5 = vector.broadcast %cst_4 : f32 to vector<2x128xf32>
    %6 = arith.maximumf %4, %5 : vector<2x128xf32>
    %c0_5 = arith.constant 0 : index
    %c0_6 = arith.constant 0 : index
    %7 = vector.load %arg3[%c0_5, %c0_6] : memref<128x64xf32, #tpu.memory_space<vmem>>, vector<128x64xf32>
    %cst_7 = arith.constant dense<0.000000e+00> : vector<2x64xf32>
    %8 = tpu.matmul %6, %7, %cst_7 {dimension_numbers = #tpu.dot_dimension_numbers<[1], [0], [0], [1], [0, 0, 1, 1], [], []>} : vector<2x128xf32>, vector<128x64xf32>, vector<2x64xf32> -> vector<2x64xf32>
    %c0_8 = arith.constant 0 : index
    %c0_9 = arith.constant 0 : index
    %9 = vector.load %arg4[%c0_8, %c0_9] : memref<1x64xf32, #tpu.memory_space<vmem>>, vector<1x64xf32>
    %10 = vector.broadcast %9 : vector<1x64xf32> to vector<2x64xf32>
    %11 = arith.addf %8, %10 : vector<2x64xf32>
    %cst_10 = arith.constant 0.000000e+00 : f32
    %12 = vector.broadcast %cst_10 : f32 to vector<2x64xf32>
    %13 = arith.maximumf %11, %12 : vector<2x64xf32>
    %c0_11 = arith.constant 0 : index
    %c0_12 = arith.constant 0 : index
    %14 = vector.load %arg5[%c0_11, %c0_12] : memref<64x10xf32, #tpu.memory_space<vmem>>, vector<64x10xf32>
    %cst_13 = arith.constant dense<0.000000e+00> : vector<2x10xf32>
    %15 = tpu.matmul %13, %14, %cst_13 {dimension_numbers = #tpu.dot_dimension_numbers<[1], [0], [0], [1], [0, 0, 1, 1], [], []>} : vector<2x64xf32>, vector<64x10xf32>, vector<2x10xf32> -> vector<2x10xf32>
    %c0_14 = arith.constant 0 : index
    %c0_15 = arith.constant 0 : index
    %16 = vector.load %arg6[%c0_14, %c0_15] : memref<1x10xf32, #tpu.memory_space<vmem>>, vector<1x10xf32>
    %17 = vector.broadcast %16 : vector<1x10xf32> to vector<2x10xf32>
    %18 = arith.addf %15, %17 : vector<2x10xf32>
    %c0_16 = arith.constant 0 : index
    %c0_17 = arith.constant 0 : index
    %19 = vector.load %arg7[%c0_16, %c0_17] : memref<2x10xf32, #tpu.memory_space<vmem>>, vector<2x10xf32>
    tpu.vector_store %arg7[%c0_16, %c0_17], %18 {strides = array<i32>} : memref<2x10xf32, #tpu.memory_space<vmem>>, vector<2x10xf32>,
    return
  }
  func.func @transform_0(%arg0: i32) -> (i32, i32, i32) {
    %c0_i32 = arith.constant 0 : i32
    %c0_i32_0 = arith.constant 0 : i32
    %c0_i32_1 = arith.constant 0 : i32
    %c0_i32_2 = arith.constant 0 : i32
    return %c0_i32, %c0_i32_0, %c0_i32_1 : i32, i32, i32
  }
  func.func @transform_1(%arg0: i32) -> (i32, i32) {
    %c0_i32 = arith.constant 0 : i32
    %c0_i32_0 = arith.constant 0 : i32
    %c0_i32_1 = arith.constant 0 : i32
    return %c0_i32, %c0_i32_0 : i32, i32
  }
  func.func @transform_2(%arg0: i32) -> (i32, i32) {
    %c0_i32 = arith.constant 0 : i32
    %c0_i32_0 = arith.constant 0 : i32
    %c0_i32_1 = arith.constant 0 : i32
    return %c0_i32, %c0_i32_0 : i32, i32
  }
  func.func @transform_3(%arg0: i32) -> (i32, i32) {
    %c0_i32 = arith.constant 0 : i32
    %c0_i32_0 = arith.constant 0 : i32
    %c0_i32_1 = arith.constant 0 : i32
    return %c0_i32, %c0_i32_0 : i32, i32
  }
  func.func @transform_4(%arg0: i32) -> (i32, i32) {
    %c0_i32 = arith.constant 0 : i32
    %c0_i32_0 = arith.constant 0 : i32
    %c0_i32_1 = arith.constant 0 : i32
    return %c0_i32, %c0_i32_0 : i32, i32
  }
  func.func @transform_5(%arg0: i32) -> (i32, i32) {
    %c0_i32 = arith.constant 0 : i32
    %c0_i32_0 = arith.constant 0 : i32
    %c0_i32_1 = arith.constant 0 : i32
    return %c0_i32, %c0_i32_0 : i32, i32
  }
  func.func @transform_6(%arg0: i32) -> (i32, i32) {
    %c0_i32 = arith.constant 0 : i32
    %c0_i32_0 = arith.constant 0 : i32
    %c0_i32_1 = arith.constant 0 : i32
    return %c0_i32, %c0_i32_0 : i32, i32
  }
}

</mosaic_0001>

<bundles_post_ra>
// kernel: neural_network_forward.3
= control target key start
LH: loop header
LB: loop body
LE: loop exit
PB: predicated region body
PF: predicated region fallthrough
CT: control target
= control target key end

     0   :  { %7 = vsyncpa [#allocation3], 0  ;;  %s2838_s9 = smov 0   ;;  %s3268_s0 = inlined_call_operand.vmem [shape: bf16[512,27], index: 0, kind: input, shape index: {}]   ;;  %s3269_s1 = inlined_call_operand.hbm [shape: bf16[27,832], index: 1, kind: input, shape index: {}]   ;;  %s3270_s2 = inlined_call_operand.vmem [shape: bf16[512,832], index: 2, kind: output, shape index: {}]  }
   0x1 LB: > { %s2299_s10 = sadd.s32 4294967295, %s2816_s9   ;;  %p2301_p0 = scmp.ge.s32.totalorder %s2816_s9, 1  ;;  %s2816_s9 = sphi %s2838_s9, %s13_s9  }
   0x2   : > { %p91_p1 = scmp.lt.s32.totalorder %s2816_s9, 3  ;;  %s2818_s11 = smov [#allocation2]  }
   0x3   : > { %s103_s12 = sshll.u32 %s2818_s11, 4  ;;  %p2850_p3 = scmp.eq.s32.totalorder %s2299_s10, 0  ;;  %s104_s12 = int_to_ptr.vmem [resolvable:$true] %s103_s12 }
   0x4   : > { %p2846_p2 = pnand %p2301_p0, %p91_p1  ;;  %s2791_s15 = scalar_lea.vmem %s104_s12, 1792 }
   0x5   : > { %p2792_p7 = scmp.ne.s32.totalorder %s104_s12, %s2791_s15  ;;  %p2799_p10 = scmp.lt.s32.totalorder %s104_s12, %s104_s12 }
   0x6   : > { %p2725_p4 = pneg %p2846_p2  ;;  %p2800_p11 = scmp.lt.s32.totalorder %s2791_s15, %s2791_s15 }
   0x8   : > { %p2726_p5 = pnand %p2850_p3, %p2725_p4  ;;  %p2801_p12 = por %p2800_p11, %p2799_p10 }
   0xa   : > { %p2782_p6 = pneg %p2726_p5 }
   0xc   : > { %p2794_p8 = pnand %p2792_p7, %p2782_p6 }
   0xe   : > { %p2795_p9 = pneg %p2794_p8 }
  0x10   : > { %p2802_p13 = pnand %p2801_p12, %p2795_p9 }
  0x12   : > { %2805 = shalt.err (!%p2802_p13)
}
  0x13   : > { %s2819_s16 = smov 448   ;;  %s2820_s17 = smov 28  }
  0x14   : > { %2728 = dma.hbm_to_vmem [thread:$0]  (!%p2726_p5), %s3269_s1, 1792, %s104_s12, [#allocation3], %s2819_s16, %s2819_s16, %s2820_s17  }
  0x15   : > { %128 = sbr.rel (%p2846_p2) target bundleno = 461 (0x1cd), region = 28 }
  0x1a   : > { %2811 = dma.done.wait (%p2850_p3), [#allocation3], 1792  }
  0x1b   : > { %2813 = vsyncadd (%p2850_p3), [#allocation3], 4294965504  ;;  %vm407_vm0 = vcmask 1044480   ;;  %v2821_v0 = vmov 0   ;;  %s2306_s20 = sshll.u32 %s2299_s10, 5  ;;  %vm408_vm1 = vcmask 1045504  }
  0x1c   : > { %464 = vmatprep.mubr.bf16.mxu0 %v2821_v0  ;;  %584 = vmatprep.mubr.bf16.mxu1 %v2821_v0  ;;  %p152_p0 = scmp.lt.s32.totalorder %s2306_s20, 63  ;;  %v2822_v1 = vmov 65535   ;;  %v2744_v4 = vld [vmem:[#allocation2 + $0x3c] ss:$28 sps:$4 sm:$0x3f]   ;;  %vm358_vm2 = vcmask 220160  }
  0x1d   : > { %v409_v2 = vsel %vm407_vm0, 4294967295, %v2822_v1  ;;  %v2746_v5 = vld [vmem:[#allocation2 + $0x38] ss:$28 sps:$4 sm:$0x3f]   ;;  %v2747_v7 = vld [vmem:[#allocation2 + $0x4] ss:$28 sps:$4 sm:$0xff]  }
  0x1e   : > { %s3274_s20 = smov (!%p152_p0, %s2306_s20), 63  ;;  %v410_v3 = vsel %vm408_vm1, %v409_v2, 0  ;;  %v2749_v9 = vld [vmem:[#allocation2] ss:$28 sps:$4 sm:$0xff]   ;;  %v2764_v20 = vld [vmem:[#allocation2 + $0xc] ss:$28 sps:$4 sm:$0xff]  }
  0x1f   : > { %s2307_s21 = sshll.u32 %s3274_s20, 2  ;;  %v415_v6 = vand.u32 %v2744_v4, %v410_v3  ;;  %v412_v8 = vand.u32 %v2746_v5, %v410_v3  ;;  %v2752_v10 = vld [vmem:[#allocation2 + $0x40] ss:$28 sps:$4 sm:$0x3f]   ;;  %v2762_v21 = vld [vmem:[#allocation2 + $0x8] ss:$28 sps:$4 sm:$0xff]  }
  0x20   : > { %s2875_s24 = scalar_lea.vmem %s3268_s0, %s2307_s21  ;;  %v2754_v13 = vld [vmem:[#allocation2 + $0x44] ss:$28 sps:$4 sm:$0x3f]   ;;  %v2757_v15 = vld [vmem:[#allocation2 + $0x4c] ss:$28 sps:$4 sm:$0x3f]   ;;  %v418_v18 = vand.u32 %v2752_v10, %v410_v3 }
  0x21   : > { %444 = vmatprep.subr.bf16.mxu0 %v415_v6  ;;  %2716 = vmatprep.subr.bf16.mxu1 %v415_v6  ;;  %v2878_v11 = vld [vmem:[%s2875_s24] sm:$0xff]   ;;  %v421_v16 = vand.u32 %v2754_v13, %v410_v3  ;;  %v427_v17 = vand.u32 %v2757_v15, %v410_v3  ;;  %v2890_v22 = vld [vmem:[%s2875_s24 + $0x8] sm:$0xff]   ;;  %v2773_v27 = vld [vmem:[#allocation2 + $0x14] ss:$28 sps:$4 sm:$0xff]   ;;  %s2720_s25 = smul.u32 28, %s3274_s20  ;;  %vm2103_vm3 = vcmask 519168  }
  0x22   : > { %445 = vmatpush1.bf16.msra.mxu0 %v412_v8  ;;  %2718 = vmatpush1.bf16.msra.mxu1 %v412_v8  ;;  %v2881_v12 = vld [vmem:[%s2875_s24 + $0x60] sm:$0xff]   ;;  %v2893_v23 = vld [vmem:[%s2875_s24 + $0x68] sm:$0xff]   ;;  %v2902_v28 = vld [vmem:[%s2875_s24 + $0x10] sm:$0xff]  }
  0x23   : > { %446 = vmatprep.subr.bf16.mxu0 %v2747_v7  ;;  %2717 = vmatprep.subr.bf16.mxu1 %v2747_v7  ;;  %v2755_v14 = vld [vmem:[#allocation2 + $0x48] ss:$28 sps:$4 sm:$0x3f]   ;;  %v2768_v24 = vld [vmem:[#allocation2 + $0x50] ss:$28 sps:$4 sm:$0x3f]   ;;  %s3085_s28 = scalar_lea.vmem %s3270_s2, %s2720_s25 }
  0x24   : > { %v424_v19 = vand.u32 %v2755_v14, %v410_v3  ;;  %v430_v25 = vand.u32 %v2768_v24, %v410_v3  ;;  %v2771_v26 = vld [vmem:[#allocation2 + $0x10] ss:$28 sps:$4 sm:$0xff]   ;;  %v2914_v30 = vld [vmem:[%s2875_s24 + $0x18] sm:$0xff]   ;;  %v2926_v32 = vld [vmem:[%s2875_s24 + $0x20] sm:$0xff]  }
  0x25   : > { %v2905_v29 = vld [vmem:[%s2875_s24 + $0x70] sm:$0xff]   ;;  %v2917_v31 = vld [vmem:[%s2875_s24 + $0x78] sm:$0xff]   ;;  %v2935_v34 = vld [vmem:[%s2875_s24 + $0x28] sm:$0xff]  }
  0x26   : > { %447 = vmatpush1.bf16.msra.mxu0 %v2749_v9  ;;  %2719 = vmatpush1.bf16.msra.mxu1 %v2749_v9  ;;  %v2779_v33 = vld [vmem:[#allocation2 + $0x18] ss:$28 sps:$4 sm:$0xff]   ;;  %v2962_v37 = vld [vmem:[%s2875_s24 + $0x40] sm:$0xff]   ;;  %v2971_v38 = vld [vmem:[%s2875_s24 + $0x48] sm:$0xff]  }
  0x27   : > { %637 = vmatprep.subr.bf16.mxu1 %v421_v16  ;;  %830 = vmatprep.subr.bf16.mxu0 %v427_v17  ;;  %v2944_v35 = vld [vmem:[%s2875_s24 + $0x30] sm:$0xff]   ;;  %v2953_v36 = vld [vmem:[%s2875_s24 + $0x38] sm:$0xff]  }
  0x28   : > { %v2980_v39 = vld [vmem:[%s2875_s24 + $0x50] sm:$0xff]   ;;  %v2989_v40 = vld [vmem:[%s2875_s24 + $0x58] sm:$0xff]  }
  0x29   : > { %2340 = vmatmul.mubr.msk.bf16.vlgmr.msra.gmra.mxu0 %vm358_vm2, %v2878_v11  ;;  %2352 = vmatmul.mubr.msk.bf16.vlgmr.msra.gmra.mxu1 %vm358_vm2, %v2881_v12 }
  0x2a   : > { %638 = vmatpush1.bf16.msra.mxu1 %v418_v18  ;;  %831 = vmatpush1.bf16.msra.mxu0 %v424_v19 }
  0x2b   : > { %474 = vmatprep.mubr.bf16.mxu0 %v2821_v0  ;;  %594 = vmatprep.mubr.bf16.mxu1 %v2821_v0 }
  0x2c   : > { %639 = vmatprep.subr.bf16.mxu1 %v2764_v20  ;;  %832 = vmatprep.subr.bf16.mxu0 %v2773_v27 }
  0x2e   : > { %640 = vmatpush1.bf16.msra.mxu1 %v2762_v21  ;;  %833 = vmatpush1.bf16.msra.mxu0 %v2771_v26 }
  0x2f   : > { %2680 = vmatprep.subr.bf16.mxu1 %v430_v25 }
  0x31   : > { %2341 = vmatmul.mubr.msk.bf16.gmra.mxu0 %vm358_vm2, %v2890_v22  ;;  %2353 = vmatmul.mubr.msk.bf16.gmra.mxu1 %vm358_vm2, %v2893_v23 }
  0x32   : > { %484 = vmatprep.mubr.bf16.mxu0 %v2821_v0  ;;  %604 = vmatprep.mubr.bf16.mxu1 %v2821_v0 }
  0x39   : > { %2342 = vmatmul.mubr.msk.bf16.gmra.mxu0 %vm358_vm2, %v2902_v28  ;;  %2354 = vmatmul.mubr.msk.bf16.gmra.mxu1 %vm358_vm2, %v2905_v29 }
  0x3a   : > { %494 = vmatprep.mubr.bf16.mxu0 %v2821_v0  ;;  %614 = vmatprep.mubr.bf16.mxu1 %v2821_v0 }
  0x41   : > { %2343 = vmatmul.mubr.msk.bf16.gmra.mxu0 %vm358_vm2, %v2914_v30  ;;  %2355 = vmatmul.mubr.msk.bf16.gmra.mxu1 %vm358_vm2, %v2917_v31 }
  0x42   : > { %504 = vmatprep.mubr.bf16.mxu0 %v2821_v0  ;;  %657 = vmatprep.mubr.bf16.mxu1 %v2821_v0 }
  0x49   : > { %2344 = vmatmul.mubr.msk.bf16.gmra.mxu0 %vm358_vm2, %v2926_v32  ;;  %2356 = vmatmul.mubr.msk.bf16.vlgmr.msra.gmra.mxu1 %vm358_vm2, %v2878_v11 }
  0x4a   : > { %2681 = vmatpush3.bf16.msra.mxu1 %v430_v25  ;;  %514 = vmatprep.mubr.bf16.mxu0 %v2821_v0 }
  0x4b   : > { %667 = vmatprep.mubr.bf16.mxu1 %v2821_v0  ;;  %2682 = vmatprep.subr.bf16.mxu1 %v2779_v33 }
  0x4e   : > { %2683 = vmatpush3.bf16.msra.mxu1 %v2779_v33 }
  0x51   : > { %2345 = vmatmul.mubr.msk.bf16.gmra.mxu0 %vm358_vm2, %v2935_v34  ;;  %2357 = vmatmul.mubr.msk.bf16.gmra.mxu1 %vm358_vm2, %v2890_v22 }
  0x52   : > { %524 = vmatprep.mubr.bf16.mxu0 %v2821_v0  ;;  %677 = vmatprep.mubr.bf16.mxu1 %v2821_v0 }
  0x59   : > { %2346 = vmatmul.mubr.msk.bf16.gmra.mxu0 %vm358_vm2, %v2944_v35  ;;  %2358 = vmatmul.mubr.msk.bf16.gmra.mxu1 %vm358_vm2, %v2902_v28 }
  0x5a   : > { %534 = vmatprep.mubr.bf16.mxu0 %v2821_v0  ;;  %687 = vmatprep.mubr.bf16.mxu1 %v2821_v0 }
  0x61   : > { %2347 = vmatmul.mubr.msk.bf16.gmra.mxu0 %vm358_vm2, %v2953_v36  ;;  %2359 = vmatmul.mubr.msk.bf16.gmra.mxu1 %vm358_vm2, %v2914_v30 }
  0x62   : > { %544 = vmatprep.mubr.bf16.mxu0 %v2821_v0  ;;  %697 = vmatprep.mubr.bf16.mxu1 %v2821_v0 }
  0x69   : > { %2348 = vmatmul.mubr.msk.bf16.gmra.mxu0 %vm358_vm2, %v2962_v37  ;;  %2360 = vmatmul.mubr.msk.bf16.gmra.mxu1 %vm358_vm2, %v2926_v32 }
  0x6a   : > { %554 = vmatprep.mubr.bf16.mxu0 %v2821_v0  ;;  %707 = vmatprep.mubr.bf16.mxu1 %v2821_v0 }
  0x71   : > { %2349 = vmatmul.mubr.msk.bf16.gmra.mxu0 %vm358_vm2, %v2971_v38  ;;  %2361 = vmatmul.mubr.msk.bf16.gmra.mxu1 %vm358_vm2, %v2935_v34 }
  0x72   : > { %564 = vmatprep.mubr.bf16.mxu0 %v2821_v0  ;;  %717 = vmatprep.mubr.bf16.mxu1 %v2821_v0 }
  0x79   : > { %2350 = vmatmul.mubr.msk.bf16.gmra.mxu0 %vm358_vm2, %v2980_v39  ;;  %2362 = vmatmul.mubr.msk.bf16.gmra.mxu1 %vm358_vm2, %v2944_v35 }
  0x7a   : > { %574 = vmatprep.mubr.bf16.mxu0 %v2821_v0  ;;  %727 = vmatprep.mubr.bf16.mxu1 %v2821_v0 }
  0x81   : > { %2351 = vmatmul.mubr.msk.bf16.gmra.mxu0 %vm358_vm2, %v2989_v40  ;;  %2363 = vmatmul.mubr.msk.bf16.gmra.mxu1 %vm358_vm2, %v2953_v36 }
  0x82   : > { %737 = vmatprep.mubr.bf16.mxu1 %v2821_v0  ;;  %850 = vmatprep.mubr.bf16.mxu0 %v2821_v0 }
  0x89   : > { %2364 = vmatmul.mubr.msk.bf16.gmra.mxu1 %vm358_vm2, %v2962_v37  ;;  %2372 = vmatmul.mubr.msk.bf16.vlgmr.msra.gmra.mxu0 %vm358_vm2, %v2878_v11 }
  0x8a   : > { %747 = vmatprep.mubr.bf16.mxu1 %v2821_v0  ;;  %860 = vmatprep.mubr.bf16.mxu0 %v2821_v0 }
  0x91   : > { %2365 = vmatmul.mubr.msk.bf16.gmra.mxu1 %vm358_vm2, %v2971_v38  ;;  %2373 = vmatmul.mubr.msk.bf16.gmra.mxu0 %vm358_vm2, %v2890_v22 }
  0x92   : > { %757 = vmatprep.mubr.bf16.mxu1 %v2821_v0  ;;  %870 = vmatprep.mubr.bf16.mxu0 %v2821_v0 }
  0x99   : > { %2366 = vmatmul.mubr.msk.bf16.gmra.mxu1 %vm358_vm2, %v2980_v39  ;;  %2374 = vmatmul.mubr.msk.bf16.gmra.mxu0 %vm358_vm2, %v2902_v28 }
  0x9a   : > { %767 = vmatprep.mubr.bf16.mxu1 %v2821_v0  ;;  %880 = vmatprep.mubr.bf16.mxu0 %v2821_v0 }
  0xa1   : > { %2367 = vmatmul.mubr.msk.bf16.gmra.mxu1 %vm358_vm2, %v2989_v40  ;;  %2375 = vmatmul.mubr.msk.bf16.gmra.mxu0 %vm358_vm2, %v2914_v30 }
  0xa2   : > { %777 = vmatprep.mubr.bf16.mxu1 %v2821_v0  ;;  %890 = vmatprep.mubr.bf16.mxu0 %v2821_v0 }
  0xa9   : > { %2368 = vmatmul.mubr.msk.bf16.gmra.mxu1 %vm358_vm2, %v2881_v12  ;;  %2376 = vmatmul.mubr.msk.bf16.gmra.mxu0 %vm358_vm2, %v2926_v32 }
  0xaa   : > { %787 = vmatprep.mubr.bf16.mxu1 %v2821_v0  ;;  %900 = vmatprep.mubr.bf16.mxu0 %v2821_v0 }
  0xb1   : > { %2369 = vmatmul.mubr.msk.bf16.gmra.mxu1 %vm358_vm2, %v2893_v23  ;;  %2377 = vmatmul.mubr.msk.bf16.gmra.mxu0 %vm358_vm2, %v2935_v34 }
  0xb2   : > { %797 = vmatprep.mubr.bf16.mxu1 %v2821_v0  ;;  %910 = vmatprep.mubr.bf16.mxu0 %v2821_v0 }
  0xb9   : > { %2370 = vmatmul.mubr.msk.bf16.gmra.mxu1 %vm358_vm2, %v2905_v29  ;;  %2378 = vmatmul.mubr.msk.bf16.gmra.mxu0 %vm358_vm2, %v2944_v35 }
  0xba   : > { %807 = vmatprep.mubr.bf16.mxu1 %v2821_v0  ;;  %920 = vmatprep.mubr.bf16.mxu0 %v2821_v0 }
  0xc1   : > { %2371 = vmatmul.mubr.msk.bf16.gmra.mxu1 %vm358_vm2, %v2917_v31  ;;  %2379 = vmatmul.mubr.msk.bf16.gmra.mxu0 %vm358_vm2, %v2953_v36 }
  0xc2   : > { %930 = vmatprep.mubr.bf16.mxu0 %v2821_v0  ;;  %2684 = vmatprep.mubr.msk.bf16.mxu1 %vm358_vm2, %v2878_v11 }
  0xc9   : > { %2380 = vmatmul.mubr.msk.bf16.gmra.mxu0 %vm358_vm2, %v2962_v37  ;;  %2685 = vmatmul.mubr.msk.bf16.vlgmr.msra.gmra.mxu1 %vm358_vm2, %v2890_v22 }
  0xca   : > { %940 = vmatprep.mubr.bf16.mxu0 %v2821_v0  ;;  %2688 = vmatprep.mubr.msk.bf16.mxu1 %vm358_vm2, %v2902_v28 }
  0xd1   : > { %2381 = vmatmul.mubr.msk.bf16.gmra.mxu0 %vm358_vm2, %v2971_v38  ;;  %2689 = vmatmul.mubr.msk.bf16.gmra.mxu1 %vm358_vm2, %v2914_v30 }
  0xd2   : > { %950 = vmatprep.mubr.bf16.mxu0 %v2821_v0  ;;  %2692 = vmatprep.mubr.msk.bf16.mxu1 %vm358_vm2, %v2926_v32 }
  0xd9   : > { %2382 = vmatmul.mubr.msk.bf16.gmra.mxu0 %vm358_vm2, %v2980_v39  ;;  %2693 = vmatmul.mubr.msk.bf16.gmra.mxu1 %vm358_vm2, %v2935_v34 }
  0xda   : > { %960 = vmatprep.mubr.bf16.mxu0 %v2821_v0  ;;  %2696 = vmatprep.mubr.msk.bf16.mxu1 %vm358_vm2, %v2944_v35 }
  0xe1   : > { %2383 = vmatmul.mubr.msk.bf16.gmra.mxu0 %vm358_vm2, %v2989_v40  ;;  %2697 = vmatmul.mubr.msk.bf16.gmra.mxu1 %vm358_vm2, %v2953_v36 }
  0xe2   : > { %970 = vmatprep.mubr.bf16.mxu0 %v2821_v0  ;;  %2700 = vmatprep.mubr.msk.bf16.mxu1 %vm358_vm2, %v2962_v37 }
  0xe9   : > { %v466_v41 = vpop.f32.mrf.mxu0  ;;  %v586_v42 = vpop.f32.mrf.mxu1  ;;  %2384 = vmatmul.mubr.msk.bf16.gmra.mxu0 %vm358_vm2, %v2881_v12  ;;  %2701 = vmatmul.mubr.msk.bf16.gmra.mxu1 %vm358_vm2, %v2971_v38 }
  0xea   : > { %980 = vmatprep.mubr.bf16.mxu0 %v2821_v0  ;;  %2704 = vmatprep.mubr.msk.bf16.mxu1 %vm358_vm2, %v2980_v39  ;;  %v1172_v45 = vmax.f32 %v466_v41, 0.0  ;;  %v1340_v46 = vmax.f32 %v586_v42, 0.0 }
  0xeb   : > { %v468_v43 = vpop.f32.mrf.mxu0  ;;  %v588_v44 = vpop.f32.mrf.mxu1 }
  0xec   : > { %v1173_v47 = vmax.f32 %v468_v43, 0.0  ;;  %v1341_v48 = vmax.f32 %v588_v44, 0.0 }
  0xed   : > { %v470_v49 = vpop.f32.mrf.mxu0  ;;  %v590_v50 = vpop.f32.mrf.mxu1 }
  0xee   : > { %v2534_v51 = vpack.c.bf16 %v1173_v47, %v1172_v45  ;;  %v2630_v52 = vpack.c.bf16 %v1341_v48, %v1340_v46  ;;  %v1179_v55 = vmax.f32 %v470_v49, 0.0  ;;  %v1347_v56 = vmax.f32 %v590_v50, 0.0 }
  0xef   : > { %v472_v53 = vpop.f32.mrf.mxu0  ;;  %v592_v54 = vpop.f32.mrf.mxu1 }
  0xf0   : > { %2100 = vst [vmem:[%s3085_s28] sm:$0xff] %v2534_v51  ;;  %2197 = vst [vmem:[%s3085_s28 + $0x2a0] sm:$0xff] %v2630_v52  ;;  %v1180_v57 = vmax.f32 %v472_v53, 0.0  ;;  %v1348_v58 = vmax.f32 %v592_v54, 0.0 }
  0xf1   : > { %v476_v59 = vpop.f32.mrf.mxu0  ;;  %v596_v60 = vpop.f32.mrf.mxu1  ;;  %2385 = vmatmul.mubr.msk.bf16.gmra.mxu0 %vm358_vm2, %v2893_v23  ;;  %2705 = vmatmul.mubr.msk.bf16.gmra.mxu1 %vm358_vm2, %v2989_v40 }
  0xf2   : > { %v2538_v61 = vpack.c.bf16 %v1180_v57, %v1179_v55  ;;  %v2634_v62 = vpack.c.bf16 %v1348_v58, %v1347_v56  ;;  %990 = vmatprep.mubr.bf16.mxu0 %v2821_v0  ;;  %2708 = vmatprep.mubr.msk.bf16.mxu1 %vm358_vm2, %v2881_v12  ;;  %v1186_v2 = vmax.f32 %v476_v59, 0.0  ;;  %v1354_v3 = vmax.f32 %v596_v60, 0.0 }
  0xf3   : > { %v478_v63 = vpop.f32.mrf.mxu0  ;;  %v598_v1 = vpop.f32.mrf.mxu1 }
  0xf4   : > { %2105 = vst [vmem:[%s3085_s28 + $0x1c] sm:$0xff] %v2538_v61  ;;  %2201 = vst [vmem:[%s3085_s28 + $0x2bc] sm:$0xff] %v2634_v62  ;;  %v1187_v4 = vmax.f32 %v478_v63, 0.0  ;;  %v1355_v5 = vmax.f32 %v598_v1, 0.0 }
  0xf5   : > { %v480_v6 = vpop.f32.mrf.mxu0  ;;  %v600_v7 = vpop.f32.mrf.mxu1 }
  0xf6   : > { %v2542_v8 = vpack.c.bf16 %v1187_v4, %v1186_v2  ;;  %v2638_v9 = vpack.c.bf16 %v1355_v5, %v1354_v3  ;;  %v1193_v12 = vmax.f32 %v480_v6, 0.0  ;;  %v1361_v13 = vmax.f32 %v600_v7, 0.0 }
  0xf7   : > { %v482_v10 = vpop.f32.mrf.mxu0  ;;  %v602_v11 = vpop.f32.mrf.mxu1 }
  0xf8   : > { %2109 = vst [vmem:[%s3085_s28 + $0x38] sm:$0xff] %v2542_v8  ;;  %2205 = vst [vmem:[%s3085_s28 + $0x2d8] sm:$0xff] %v2638_v9  ;;  %v1194_v14 = vmax.f32 %v482_v10, 0.0  ;;  %v1362_v15 = vmax.f32 %v602_v11, 0.0 }
  0xf9   : > { %v486_v16 = vpop.f32.mrf.mxu0  ;;  %v606_v17 = vpop.f32.mrf.mxu1  ;;  %2386 = vmatmul.mubr.msk.bf16.gmra.mxu0 %vm358_vm2, %v2905_v29  ;;  %2709 = vmatmul.mubr.msk.bf16.gmra.mxu1 %vm358_vm2, %v2893_v23 }
  0xfa   : > { %v2546_v18 = vpack.c.bf16 %v1194_v14, %v1193_v12  ;;  %v2642_v19 = vpack.c.bf16 %v1362_v15, %v1361_v13  ;;  %1000 = vmatprep.mubr.bf16.mxu0 %v2821_v0  ;;  %2712 = vmatprep.mubr.msk.bf16.mxu1 %vm358_vm2, %v2905_v29  ;;  %v1200_v22 = vmax.f32 %v486_v16, 0.0  ;;  %v1368_v24 = vmax.f32 %v606_v17, 0.0 }
  0xfb   : > { %v488_v20 = vpop.f32.mrf.mxu0  ;;  %v608_v21 = vpop.f32.mrf.mxu1 }
  0xfc   : > { %2113 = vst [vmem:[%s3085_s28 + $0x54] sm:$0xff] %v2546_v18  ;;  %2209 = vst [vmem:[%s3085_s28 + $0x2f4] sm:$0xff] %v2642_v19  ;;  %v1201_v25 = vmax.f32 %v488_v20, 0.0  ;;  %v1369_v26 = vmax.f32 %v608_v21, 0.0 }
  0xfd   : > { %v490_v27 = vpop.f32.mrf.mxu0  ;;  %v610_v28 = vpop.f32.mrf.mxu1 }
  0xfe   : > { %v2550_v23 = vpack.c.bf16 %v1201_v25, %v1200_v22  ;;  %v2646_v30 = vpack.c.bf16 %v1369_v26, %v1368_v24  ;;  %v1207_v29 = vmax.f32 %v490_v27, 0.0  ;;  %v1375_v33 = vmax.f32 %v610_v28, 0.0 }
  0xff   : > { %v492_v32 = vpop.f32.mrf.mxu0  ;;  %v612_v0 = vpop.f32.mrf.mxu1 }
 0x100   : > { %2117 = vst [vmem:[%s3085_s28 + $0x70] sm:$0xff] %v2550_v23  ;;  %2213 = vst [vmem:[%s3085_s28 + $0x310] sm:$0xff] %v2646_v30  ;;  %v1208_v34 = vmax.f32 %v492_v32, 0.0  ;;  %v1376_v35 = vmax.f32 %v612_v0, 0.0 }
 0x101   : > { %v496_v36 = vpop.f32.mrf.mxu0  ;;  %v616_v37 = vpop.f32.mrf.mxu1  ;;  %2387 = vmatmul.mubr.msk.bf16.gmra.mxu0 %vm358_vm2, %v2917_v31  ;;  %2713 = vmatmul.mubr.msk.bf16.gmra.mxu1 %vm358_vm2, %v2917_v31 }
 0x102   : > { %v2554_v38 = vpack.c.bf16 %v1208_v34, %v1207_v29  ;;  %v2650_v39 = vpack.c.bf16 %v1376_v35, %v1375_v33  ;;  %v1214_v42 = vmax.f32 %v496_v36, 0.0  ;;  %v1382_v43 = vmax.f32 %v616_v37, 0.0 }
 0x103   : > { %v498_v40 = vpop.f32.mrf.mxu0  ;;  %v618_v41 = vpop.f32.mrf.mxu1 }
 0x104   : > { %2121 = vst [vmem:[%s3085_s28 + $0x8c] sm:$0xff] %v2554_v38  ;;  %2217 = vst [vmem:[%s3085_s28 + $0x32c] sm:$0xff] %v2650_v39  ;;  %v1215_v44 = vmax.f32 %v498_v40, 0.0  ;;  %v1383_v45 = vmax.f32 %v618_v41, 0.0 }
 0x105   : > { %v500_v46 = vpop.f32.mrf.mxu0  ;;  %v620_v47 = vpop.f32.mrf.mxu1 }
 0x106   : > { %v2558_v48 = vpack.c.bf16 %v1215_v44, %v1214_v42  ;;  %v2654_v49 = vpack.c.bf16 %v1383_v45, %v1382_v43  ;;  %v1221_v51 = vmax.f32 %v500_v46, 0.0  ;;  %v1389_v52 = vmax.f32 %v620_v47, 0.0 }
 0x107   : > { %v502_v50 = vpop.f32.mrf.mxu0  ;;  %v622_v31 = vpop.f32.mrf.mxu1 }
 0x108   : > { %2125 = vst [vmem:[%s3085_s28 + $0xa8] sm:$0xff] %v2558_v48  ;;  %2221 = vst [vmem:[%s3085_s28 + $0x348] sm:$0xff] %v2654_v49  ;;  %v1222_v53 = vmax.f32 %v502_v50, 0.0  ;;  %v1390_v54 = vmax.f32 %v622_v31, 0.0 }
 0x109   : > { %v506_v55 = vpop.f32.mrf.mxu0  ;;  %v659_v56 = vpop.f32.mrf.mxu1 }
 0x10a   : > { %v2562_v57 = vpack.c.bf16 %v1222_v53, %v1221_v51  ;;  %v2658_v58 = vpack.c.bf16 %v1390_v54, %v1389_v52  ;;  %v1228_v61 = vmax.f32 %v506_v55, 0.0  ;;  %v1174_v62 = vmax.f32 %v659_v56, 0.0 }
 0x10b   : > { %v508_v59 = vpop.f32.mrf.mxu0  ;;  %v661_v60 = vpop.f32.mrf.mxu1 }
 0x10c   : > { %2129 = vst [vmem:[%s3085_s28 + $0xc4] sm:$0xff] %v2562_v57  ;;  %2225 = vst [vmem:[%s3085_s28 + $0x364] sm:$0xff] %v2658_v58  ;;  %v1229_v63 = vmax.f32 %v508_v59, 0.0  ;;  %v1175_v1 = vmax.f32 %v661_v60, 0.0 }
 0x10d   : > { %v510_v2 = vpop.f32.mrf.mxu0  ;;  %v663_v3 = vpop.f32.mrf.mxu1 }
 0x10e   : > { %v2566_v4 = vpack.c.bf16 %v1229_v63, %v1228_v61  ;;  %v2535_v5 = vpack.c.bf16 %v1175_v1, %v1174_v62  ;;  %v1235_v8 = vmax.f32 %v510_v2, 0.0  ;;  %v1181_v9 = vmax.f32 %v663_v3, 0.0 }
 0x10f   : > { %v512_v6 = vpop.f32.mrf.mxu0  ;;  %v665_v7 = vpop.f32.mrf.mxu1 }
 0x110   : > { %2133 = vst [vmem:[%s3085_s28 + $0xe0] sm:$0xff] %v2566_v4  ;;  %2101 = vst [vmem:[%s3085_s28 + $0x8] sm:$0xff] %v2535_v5  ;;  %v1236_v10 = vmax.f32 %v512_v6, 0.0  ;;  %v1182_v11 = vmax.f32 %v665_v7, 0.0 }
 0x111   : > { %v516_v12 = vpop.f32.mrf.mxu0  ;;  %v669_v13 = vpop.f32.mrf.mxu1 }
 0x112   : > { %v2570_v14 = vpack.c.bf16 %v1236_v10, %v1235_v8  ;;  %v2539_v15 = vpack.c.bf16 %v1182_v11, %v1181_v9  ;;  %v1242_v18 = vmax.f32 %v516_v12, 0.0  ;;  %v1188_v19 = vmax.f32 %v669_v13, 0.0 }
 0x113   : > { %v518_v16 = vpop.f32.mrf.mxu0  ;;  %v671_v17 = vpop.f32.mrf.mxu1 }
 0x114   : > { %2137 = vst [vmem:[%s3085_s28 + $0xfc] sm:$0xff] %v2570_v14  ;;  %2106 = vst [vmem:[%s3085_s28 + $0x24] sm:$0xff] %v2539_v15  ;;  %v1243_v20 = vmax.f32 %v518_v16, 0.0  ;;  %v1189_v21 = vmax.f32 %v671_v17, 0.0 }
 0x115   : > { %v520_v22 = vpop.f32.mrf.mxu0  ;;  %v673_v24 = vpop.f32.mrf.mxu1 }
 0x116   : > { %v2574_v25 = vpack.c.bf16 %v1243_v20, %v1242_v18  ;;  %v2543_v26 = vpack.c.bf16 %v1189_v21, %v1188_v19  ;;  %v1249_v23 = vmax.f32 %v520_v22, 0.0  ;;  %v1195_v30 = vmax.f32 %v673_v24, 0.0 }
 0x117   : > { %v522_v27 = vpop.f32.mrf.mxu0  ;;  %v675_v28 = vpop.f32.mrf.mxu1 }
 0x118   : > { %2141 = vst [vmem:[%s3085_s28 + $0x118] sm:$0xff] %v2574_v25  ;;  %2110 = vst [vmem:[%s3085_s28 + $0x40] sm:$0xff] %v2543_v26  ;;  %v1250_v32 = vmax.f32 %v522_v27, 0.0  ;;  %v1196_v0 = vmax.f32 %v675_v28, 0.0 }
 0x119   : > { %v526_v29 = vpop.f32.mrf.mxu0  ;;  %v679_v33 = vpop.f32.mrf.mxu1 }
 0x11a   : > { %v2578_v34 = vpack.c.bf16 %v1250_v32, %v1249_v23  ;;  %v2547_v35 = vpack.c.bf16 %v1196_v0, %v1195_v30  ;;  %v1256_v38 = vmax.f32 %v526_v29, 0.0  ;;  %v1202_v39 = vmax.f32 %v679_v33, 0.0 }
 0x11b   : > { %v528_v36 = vpop.f32.mrf.mxu0  ;;  %v681_v37 = vpop.f32.mrf.mxu1 }
 0x11c   : > { %2145 = vst [vmem:[%s3085_s28 + $0x134] sm:$0xff] %v2578_v34  ;;  %2114 = vst [vmem:[%s3085_s28 + $0x5c] sm:$0xff] %v2547_v35  ;;  %v1257_v40 = vmax.f32 %v528_v36, 0.0  ;;  %v1203_v41 = vmax.f32 %v681_v37, 0.0 }
 0x11d   : > { %v530_v42 = vpop.f32.mrf.mxu0  ;;  %v683_v43 = vpop.f32.mrf.mxu1 }
 0x11e   : > { %v2582_v44 = vpack.c.bf16 %v1257_v40, %v1256_v38  ;;  %v2551_v45 = vpack.c.bf16 %v1203_v41, %v1202_v39  ;;  %v1263_v48 = vmax.f32 %v530_v42, 0.0  ;;  %v1209_v49 = vmax.f32 %v683_v43, 0.0 }
 0x11f   : > { %v532_v46 = vpop.f32.mrf.mxu0  ;;  %v685_v47 = vpop.f32.mrf.mxu1 }
 0x120   : > { %2149 = vst [vmem:[%s3085_s28 + $0x150] sm:$0xff] %v2582_v44  ;;  %2118 = vst [vmem:[%s3085_s28 + $0x78] sm:$0xff] %v2551_v45  ;;  %v1264_v50 = vmax.f32 %v532_v46, 0.0  ;;  %v1210_v31 = vmax.f32 %v685_v47, 0.0 }
 0x121   : > { %v536_v51 = vpop.f32.mrf.mxu0  ;;  %v689_v52 = vpop.f32.mrf.mxu1 }
 0x122   : > { %v2586_v53 = vpack.c.bf16 %v1264_v50, %v1263_v48  ;;  %v2555_v54 = vpack.c.bf16 %v1210_v31, %v1209_v49  ;;  %v1270_v57 = vmax.f32 %v536_v51, 0.0  ;;  %v1216_v58 = vmax.f32 %v689_v52, 0.0 }
 0x123   : > { %v538_v55 = vpop.f32.mrf.mxu0  ;;  %v691_v56 = vpop.f32.mrf.mxu1 }
 0x124   : > { %2153 = vst [vmem:[%s3085_s28 + $0x16c] sm:$0xff] %v2586_v53  ;;  %2122 = vst [vmem:[%s3085_s28 + $0x94] sm:$0xff] %v2555_v54  ;;  %v1271_v59 = vmax.f32 %v538_v55, 0.0  ;;  %v1217_v60 = vmax.f32 %v691_v56, 0.0 }
 0x125   : > { %v540_v61 = vpop.f32.mrf.mxu0  ;;  %v693_v62 = vpop.f32.mrf.mxu1 }
 0x126   : > { %v2590_v63 = vpack.c.bf16 %v1271_v59, %v1270_v57  ;;  %v2559_v1 = vpack.c.bf16 %v1217_v60, %v1216_v58  ;;  %v1277_v4 = vmax.f32 %v540_v61, 0.0  ;;  %v1223_v5 = vmax.f32 %v693_v62, 0.0 }
 0x127   : > { %v542_v2 = vpop.f32.mrf.mxu0  ;;  %v695_v3 = vpop.f32.mrf.mxu1 }
 0x128   : > { %2157 = vst [vmem:[%s3085_s28 + $0x188] sm:$0xff] %v2590_v63  ;;  %2126 = vst [vmem:[%s3085_s28 + $0xb0] sm:$0xff] %v2559_v1  ;;  %v1278_v6 = vmax.f32 %v542_v2, 0.0  ;;  %v1224_v7 = vmax.f32 %v695_v3, 0.0 }
 0x129   : > { %v546_v8 = vpop.f32.mrf.mxu0  ;;  %v699_v9 = vpop.f32.mrf.mxu1 }
 0x12a   : > { %v2594_v10 = vpack.c.bf16 %v1278_v6, %v1277_v4  ;;  %v2563_v11 = vpack.c.bf16 %v1224_v7, %v1223_v5  ;;  %v1284_v14 = vmax.f32 %v546_v8, 0.0  ;;  %v1230_v15 = vmax.f32 %v699_v9, 0.0 }
 0x12b   : > { %v548_v12 = vpop.f32.mrf.mxu0  ;;  %v701_v13 = vpop.f32.mrf.mxu1 }
 0x12c   : > { %2161 = vst [vmem:[%s3085_s28 + $0x1a4] sm:$0xff] %v2594_v10  ;;  %2130 = vst [vmem:[%s3085_s28 + $0xcc] sm:$0xff] %v2563_v11  ;;  %v1285_v16 = vmax.f32 %v548_v12, 0.0  ;;  %v1231_v17 = vmax.f32 %v701_v13, 0.0 }
 0x12d   : > { %v550_v18 = vpop.f32.mrf.mxu0  ;;  %v703_v19 = vpop.f32.mrf.mxu1 }
 0x12e   : > { %v2598_v20 = vpack.c.bf16 %v1285_v16, %v1284_v14  ;;  %v2567_v21 = vpack.c.bf16 %v1231_v17, %v1230_v15  ;;  %v1291_v25 = vmax.f32 %v550_v18, 0.0  ;;  %v1237_v26 = vmax.f32 %v703_v19, 0.0 }
 0x12f   : > { %v552_v22 = vpop.f32.mrf.mxu0  ;;  %v705_v24 = vpop.f32.mrf.mxu1 }
 0x130   : > { %2165 = vst [vmem:[%s3085_s28 + $0x1c0] sm:$0xff] %v2598_v20  ;;  %2134 = vst [vmem:[%s3085_s28 + $0xe8] sm:$0xff] %v2567_v21  ;;  %v1292_v27 = vmax.f32 %v552_v22, 0.0  ;;  %v1238_v28 = vmax.f32 %v705_v24, 0.0 }
 0x131   : > { %v556_v23 = vpop.f32.mrf.mxu0  ;;  %v709_v30 = vpop.f32.mrf.mxu1 }
 0x132   : > { %v2602_v32 = vpack.c.bf16 %v1292_v27, %v1291_v25  ;;  %v2571_v0 = vpack.c.bf16 %v1238_v28, %v1237_v26  ;;  %v1298_v34 = vmax.f32 %v556_v23, 0.0  ;;  %v1244_v35 = vmax.f32 %v709_v30, 0.0 }
 0x133   : > { %v558_v29 = vpop.f32.mrf.mxu0  ;;  %v711_v33 = vpop.f32.mrf.mxu1 }
 0x134   : > { %2169 = vst [vmem:[%s3085_s28 + $0x1dc] sm:$0xff] %v2602_v32  ;;  %2138 = vst [vmem:[%s3085_s28 + $0x104] sm:$0xff] %v2571_v0  ;;  %v1299_v36 = vmax.f32 %v558_v29, 0.0  ;;  %v1245_v37 = vmax.f32 %v711_v33, 0.0 }
 0x135   : > { %v560_v38 = vpop.f32.mrf.mxu0  ;;  %v713_v39 = vpop.f32.mrf.mxu1 }
 0x136   : > { %v2606_v40 = vpack.c.bf16 %v1299_v36, %v1298_v34  ;;  %v2575_v41 = vpack.c.bf16 %v1245_v37, %v1244_v35  ;;  %v1305_v44 = vmax.f32 %v560_v38, 0.0  ;;  %v1251_v45 = vmax.f32 %v713_v39, 0.0 }
 0x137   : > { %v562_v42 = vpop.f32.mrf.mxu0  ;;  %v715_v43 = vpop.f32.mrf.mxu1 }
 0x138   : > { %2173 = vst [vmem:[%s3085_s28 + $0x1f8] sm:$0xff] %v2606_v40  ;;  %2142 = vst [vmem:[%s3085_s28 + $0x120] sm:$0xff] %v2575_v41  ;;  %v1306_v46 = vmax.f32 %v562_v42, 0.0  ;;  %v1252_v47 = vmax.f32 %v715_v43, 0.0 }
 0x139   : > { %v566_v48 = vpop.f32.mrf.mxu0  ;;  %v719_v49 = vpop.f32.mrf.mxu1 }
 0x13a   : > { %v2610_v50 = vpack.c.bf16 %v1306_v46, %v1305_v44  ;;  %v2579_v31 = vpack.c.bf16 %v1252_v47, %v1251_v45  ;;  %v1312_v53 = vmax.f32 %v566_v48, 0.0  ;;  %v1258_v54 = vmax.f32 %v719_v49, 0.0 }
 0x13b   : > { %v568_v51 = vpop.f32.mrf.mxu0  ;;  %v721_v52 = vpop.f32.mrf.mxu1 }
 0x13c   : > { %2177 = vst [vmem:[%s3085_s28 + $0x214] sm:$0xff] %v2610_v50  ;;  %2146 = vst [vmem:[%s3085_s28 + $0x13c] sm:$0xff] %v2579_v31  ;;  %v1313_v55 = vmax.f32 %v568_v51, 0.0  ;;  %v1259_v56 = vmax.f32 %v721_v52, 0.0 }
 0x13d   : > { %v570_v57 = vpop.f32.mrf.mxu0  ;;  %v723_v58 = vpop.f32.mrf.mxu1 }
 0x13e   : > { %v2614_v59 = vpack.c.bf16 %v1313_v55, %v1312_v53  ;;  %v2583_v60 = vpack.c.bf16 %v1259_v56, %v1258_v54  ;;  %v1319_v63 = vmax.f32 %v570_v57, 0.0  ;;  %v1265_v1 = vmax.f32 %v723_v58, 0.0 }
 0x13f   : > { %v572_v61 = vpop.f32.mrf.mxu0  ;;  %v725_v62 = vpop.f32.mrf.mxu1 }
 0x140   : > { %2181 = vst [vmem:[%s3085_s28 + $0x230] sm:$0xff] %v2614_v59  ;;  %2150 = vst [vmem:[%s3085_s28 + $0x158] sm:$0xff] %v2583_v60  ;;  %v1320_v2 = vmax.f32 %v572_v61, 0.0  ;;  %v1266_v3 = vmax.f32 %v725_v62, 0.0 }
 0x141   : > { %v576_v4 = vpop.f32.mrf.mxu0  ;;  %v729_v5 = vpop.f32.mrf.mxu1 }
 0x142   : > { %v2618_v6 = vpack.c.bf16 %v1320_v2, %v1319_v63  ;;  %v2587_v7 = vpack.c.bf16 %v1266_v3, %v1265_v1  ;;  %v1326_v10 = vmax.f32 %v576_v4, 0.0  ;;  %v1272_v11 = vmax.f32 %v729_v5, 0.0 }
 0x143   : > { %v578_v8 = vpop.f32.mrf.mxu0  ;;  %v731_v9 = vpop.f32.mrf.mxu1 }
 0x144   : > { %2185 = vst [vmem:[%s3085_s28 + $0x24c] sm:$0xff] %v2618_v6  ;;  %2154 = vst [vmem:[%s3085_s28 + $0x174] sm:$0xff] %v2587_v7  ;;  %v1327_v12 = vmax.f32 %v578_v8, 0.0  ;;  %v1273_v13 = vmax.f32 %v731_v9, 0.0 }
 0x145   : > { %v580_v14 = vpop.f32.mrf.mxu0  ;;  %v733_v15 = vpop.f32.mrf.mxu1 }
 0x146   : > { %v2622_v16 = vpack.c.bf16 %v1327_v12, %v1326_v10  ;;  %v2591_v17 = vpack.c.bf16 %v1273_v13, %v1272_v11  ;;  %v1333_v20 = vmax.f32 %v580_v14, 0.0  ;;  %v1279_v21 = vmax.f32 %v733_v15, 0.0 }
 0x147   : > { %v582_v18 = vpop.f32.mrf.mxu0  ;;  %v735_v19 = vpop.f32.mrf.mxu1 }
 0x148   : > { %2189 = vst [vmem:[%s3085_s28 + $0x268] sm:$0xff] %v2622_v16  ;;  %2158 = vst [vmem:[%s3085_s28 + $0x190] sm:$0xff] %v2591_v17  ;;  %v1334_v22 = vmax.f32 %v582_v18, 0.0  ;;  %v1280_v24 = vmax.f32 %v735_v19, 0.0 }
 0x149   : > { %v739_v25 = vpop.f32.mrf.mxu1  ;;  %v852_v26 = vpop.f32.mrf.mxu0 }
 0x14a   : > { %v2626_v27 = vpack.c.bf16 %v1334_v22, %v1333_v20  ;;  %v2595_v28 = vpack.c.bf16 %v1280_v24, %v1279_v21  ;;  %v1286_v32 = vmax.f32 %v739_v25, 0.0  ;;  %v1176_v0 = vmax.f32 %v852_v26, 0.0 }
 0x14b   : > { %v741_v23 = vpop.f32.mrf.mxu1  ;;  %v854_v30 = vpop.f32.mrf.mxu0 }
 0x14c   : > { %2193 = vst [vmem:[%s3085_s28 + $0x284] sm:$0xff] %v2626_v27  ;;  %2162 = vst [vmem:[%s3085_s28 + $0x1ac] sm:$0xff] %v2595_v28  ;;  %v1287_v29 = vmax.f32 %v741_v23, 0.0  ;;  %v1177_v33 = vmax.f32 %v854_v30, 0.0 }
 0x14d   : > { %v743_v34 = vpop.f32.mrf.mxu1  ;;  %v856_v35 = vpop.f32.mrf.mxu0 }
 0x14e   : > { %v2599_v36 = vpack.c.bf16 %v1287_v29, %v1286_v32  ;;  %v2536_v37 = vpack.c.bf16 %v1177_v33, %v1176_v0  ;;  %v1293_v40 = vmax.f32 %v743_v34, 0.0  ;;  %v1183_v41 = vmax.f32 %v856_v35, 0.0 }
 0x14f   : > { %v745_v38 = vpop.f32.mrf.mxu1  ;;  %v858_v39 = vpop.f32.mrf.mxu0 }
 0x150   : > { %2166 = vst [vmem:[%s3085_s28 + $0x1c8] sm:$0xff] %v2599_v36  ;;  %2102 = vst [vmem:[%s3085_s28 + $0x10] sm:$0xff] %v2536_v37  ;;  %v1294_v42 = vmax.f32 %v745_v38, 0.0  ;;  %v1184_v43 = vmax.f32 %v858_v39, 0.0 }
 0x151   : > { %v749_v44 = vpop.f32.mrf.mxu1  ;;  %v862_v45 = vpop.f32.mrf.mxu0 }
 0x152   : > { %v2603_v46 = vpack.c.bf16 %v1294_v42, %v1293_v40  ;;  %v2540_v47 = vpack.c.bf16 %v1184_v43, %v1183_v41  ;;  %v1300_v50 = vmax.f32 %v749_v44, 0.0  ;;  %v1190_v31 = vmax.f32 %v862_v45, 0.0 }
 0x153   : > { %v751_v48 = vpop.f32.mrf.mxu1  ;;  %v864_v49 = vpop.f32.mrf.mxu0 }
 0x154   : > { %2170 = vst [vmem:[%s3085_s28 + $0x1e4] sm:$0xff] %v2603_v46  ;;  %2107 = vst [vmem:[%s3085_s28 + $0x2c] sm:$0xff] %v2540_v47  ;;  %v1301_v51 = vmax.f32 %v751_v48, 0.0  ;;  %v1191_v52 = vmax.f32 %v864_v49, 0.0 }
 0x155   : > { %v753_v53 = vpop.f32.mrf.mxu1  ;;  %v866_v54 = vpop.f32.mrf.mxu0 }
 0x156   : > { %v2607_v55 = vpack.c.bf16 %v1301_v51, %v1300_v50  ;;  %v2544_v56 = vpack.c.bf16 %v1191_v52, %v1190_v31  ;;  %v1307_v59 = vmax.f32 %v753_v53, 0.0  ;;  %v1197_v60 = vmax.f32 %v866_v54, 0.0 }
 0x157   : > { %v755_v57 = vpop.f32.mrf.mxu1  ;;  %v868_v58 = vpop.f32.mrf.mxu0 }
 0x158   : > { %2174 = vst [vmem:[%s3085_s28 + $0x200] sm:$0xff] %v2607_v55  ;;  %2111 = vst [vmem:[%s3085_s28 + $0x48] sm:$0xff] %v2544_v56  ;;  %v1308_v61 = vmax.f32 %v755_v57, 0.0  ;;  %v1198_v62 = vmax.f32 %v868_v58, 0.0 }
 0x159   : > { %v759_v63 = vpop.f32.mrf.mxu1  ;;  %v872_v1 = vpop.f32.mrf.mxu0 }
 0x15a   : > { %v2611_v2 = vpack.c.bf16 %v1308_v61, %v1307_v59  ;;  %v2548_v3 = vpack.c.bf16 %v1198_v62, %v1197_v60  ;;  %v1314_v6 = vmax.f32 %v759_v63, 0.0  ;;  %v1204_v7 = vmax.f32 %v872_v1, 0.0 }
 0x15b   : > { %v761_v4 = vpop.f32.mrf.mxu1  ;;  %v874_v5 = vpop.f32.mrf.mxu0 }
 0x15c   : > { %2178 = vst [vmem:[%s3085_s28 + $0x21c] sm:$0xff] %v2611_v2  ;;  %2115 = vst [vmem:[%s3085_s28 + $0x64] sm:$0xff] %v2548_v3  ;;  %v1315_v8 = vmax.f32 %v761_v4, 0.0  ;;  %v1205_v9 = vmax.f32 %v874_v5, 0.0 }
 0x15d   : > { %v763_v10 = vpop.f32.mrf.mxu1  ;;  %v876_v11 = vpop.f32.mrf.mxu0 }
 0x15e   : > { %v2615_v12 = vpack.c.bf16 %v1315_v8, %v1314_v6  ;;  %v2552_v13 = vpack.c.bf16 %v1205_v9, %v1204_v7  ;;  %v1321_v16 = vmax.f32 %v763_v10, 0.0  ;;  %v1211_v17 = vmax.f32 %v876_v11, 0.0 }
 0x15f   : > { %v765_v14 = vpop.f32.mrf.mxu1  ;;  %v878_v15 = vpop.f32.mrf.mxu0 }
 0x160   : > { %2182 = vst [vmem:[%s3085_s28 + $0x238] sm:$0xff] %v2615_v12  ;;  %2119 = vst [vmem:[%s3085_s28 + $0x80] sm:$0xff] %v2552_v13  ;;  %v1322_v18 = vmax.f32 %v765_v14, 0.0  ;;  %v1212_v19 = vmax.f32 %v878_v15, 0.0 }
 0x161   : > { %v769_v20 = vpop.f32.mrf.mxu1  ;;  %v882_v21 = vpop.f32.mrf.mxu0 }
 0x162   : > { %v2619_v22 = vpack.c.bf16 %v1322_v18, %v1321_v16  ;;  %v2556_v24 = vpack.c.bf16 %v1212_v19, %v1211_v17  ;;  %v1328_v27 = vmax.f32 %v769_v20, 0.0  ;;  %v1218_v28 = vmax.f32 %v882_v21, 0.0 }
 0x163   : > { %v771_v25 = vpop.f32.mrf.mxu1  ;;  %v884_v26 = vpop.f32.mrf.mxu0 }
 0x164   : > { %2186 = vst [vmem:[%s3085_s28 + $0x254] sm:$0xff] %v2619_v22  ;;  %2123 = vst [vmem:[%s3085_s28 + $0x9c] sm:$0xff] %v2556_v24  ;;  %v1329_v23 = vmax.f32 %v771_v25, 0.0  ;;  %v1219_v30 = vmax.f32 %v884_v26, 0.0 }
 0x165   : > { %v773_v32 = vpop.f32.mrf.mxu1  ;;  %v886_v0 = vpop.f32.mrf.mxu0 }
 0x166   : > { %v2623_v29 = vpack.c.bf16 %v1329_v23, %v1328_v27  ;;  %v2560_v33 = vpack.c.bf16 %v1219_v30, %v1218_v28  ;;  %v1335_v36 = vmax.f32 %v773_v32, 0.0  ;;  %v1225_v37 = vmax.f32 %v886_v0, 0.0 }
 0x167   : > { %v775_v34 = vpop.f32.mrf.mxu1  ;;  %v888_v35 = vpop.f32.mrf.mxu0 }
 0x168   : > { %2190 = vst [vmem:[%s3085_s28 + $0x270] sm:$0xff] %v2623_v29  ;;  %2127 = vst [vmem:[%s3085_s28 + $0xb8] sm:$0xff] %v2560_v33  ;;  %v1336_v38 = vmax.f32 %v775_v34, 0.0  ;;  %v1226_v39 = vmax.f32 %v888_v35, 0.0 }
 0x169   : > { %v779_v40 = vpop.f32.mrf.mxu1  ;;  %v892_v41 = vpop.f32.mrf.mxu0 }
 0x16a   : > { %v2627_v42 = vpack.c.bf16 %v1336_v38, %v1335_v36  ;;  %v2564_v43 = vpack.c.bf16 %v1226_v39, %v1225_v37  ;;  %v1342_v46 = vmax.f32 %v779_v40, 0.0  ;;  %v1232_v47 = vmax.f32 %v892_v41, 0.0 }
 0x16b   : > { %v781_v44 = vpop.f32.mrf.mxu1  ;;  %v894_v45 = vpop.f32.mrf.mxu0 }
 0x16c   : > { %2194 = vst [vmem:[%s3085_s28 + $0x28c] sm:$0xff] %v2627_v42  ;;  %2131 = vst [vmem:[%s3085_s28 + $0xd4] sm:$0xff] %v2564_v43  ;;  %v1343_v48 = vmax.f32 %v781_v44, 0.0  ;;  %v1233_v49 = vmax.f32 %v894_v45, 0.0 }
 0x16d   : > { %v783_v50 = vpop.f32.mrf.mxu1  ;;  %v896_v31 = vpop.f32.mrf.mxu0 }
 0x16e   : > { %v2631_v51 = vpack.c.bf16 %v1343_v48, %v1342_v46  ;;  %v2568_v52 = vpack.c.bf16 %v1233_v49, %v1232_v47  ;;  %v1349_v55 = vmax.f32 %v783_v50, 0.0  ;;  %v1239_v56 = vmax.f32 %v896_v31, 0.0 }
 0x16f   : > { %v785_v53 = vpop.f32.mrf.mxu1  ;;  %v898_v54 = vpop.f32.mrf.mxu0 }
 0x170   : > { %2198 = vst [vmem:[%s3085_s28 + $0x2a8] sm:$0xff] %v2631_v51  ;;  %2135 = vst [vmem:[%s3085_s28 + $0xf0] sm:$0xff] %v2568_v52  ;;  %v1350_v57 = vmax.f32 %v785_v53, 0.0  ;;  %v1240_v58 = vmax.f32 %v898_v54, 0.0 }
 0x171   : > { %v789_v59 = vpop.f32.mrf.mxu1  ;;  %v902_v60 = vpop.f32.mrf.mxu0 }
 0x172   : > { %v2635_v61 = vpack.c.bf16 %v1350_v57, %v1349_v55  ;;  %v2572_v62 = vpack.c.bf16 %v1240_v58, %v1239_v56  ;;  %v1356_v2 = vmax.f32 %v789_v59, 0.0  ;;  %v1246_v3 = vmax.f32 %v902_v60, 0.0 }
 0x173   : > { %v791_v63 = vpop.f32.mrf.mxu1  ;;  %v904_v1 = vpop.f32.mrf.mxu0 }
 0x174   : > { %2202 = vst [vmem:[%s3085_s28 + $0x2c4] sm:$0xff] %v2635_v61  ;;  %2139 = vst [vmem:[%s3085_s28 + $0x10c] sm:$0xff] %v2572_v62  ;;  %v1357_v4 = vmax.f32 %v791_v63, 0.0  ;;  %v1247_v5 = vmax.f32 %v904_v1, 0.0 }
 0x175   : > { %v793_v6 = vpop.f32.mrf.mxu1  ;;  %v906_v7 = vpop.f32.mrf.mxu0 }
 0x176   : > { %v2639_v8 = vpack.c.bf16 %v1357_v4, %v1356_v2  ;;  %v2576_v9 = vpack.c.bf16 %v1247_v5, %v1246_v3  ;;  %v1363_v12 = vmax.f32 %v793_v6, 0.0  ;;  %v1253_v13 = vmax.f32 %v906_v7, 0.0 }
 0x177   : > { %v795_v10 = vpop.f32.mrf.mxu1  ;;  %v908_v11 = vpop.f32.mrf.mxu0 }
 0x178   : > { %2206 = vst [vmem:[%s3085_s28 + $0x2e0] sm:$0xff] %v2639_v8  ;;  %2143 = vst [vmem:[%s3085_s28 + $0x128] sm:$0xff] %v2576_v9  ;;  %v1364_v14 = vmax.f32 %v795_v10, 0.0  ;;  %v1254_v15 = vmax.f32 %v908_v11, 0.0 }
 0x179   : > { %v799_v16 = vpop.f32.mrf.mxu1  ;;  %v912_v17 = vpop.f32.mrf.mxu0 }
 0x17a   : > { %v2643_v18 = vpack.c.bf16 %v1364_v14, %v1363_v12  ;;  %v2580_v19 = vpack.c.bf16 %v1254_v15, %v1253_v13  ;;  %v1370_v22 = vmax.f32 %v799_v16, 0.0  ;;  %v1260_v24 = vmax.f32 %v912_v17, 0.0 }
 0x17b   : > { %v801_v20 = vpop.f32.mrf.mxu1  ;;  %v914_v21 = vpop.f32.mrf.mxu0 }
 0x17c   : > { %2210 = vst [vmem:[%s3085_s28 + $0x2fc] sm:$0xff] %v2643_v18  ;;  %2147 = vst [vmem:[%s3085_s28 + $0x144] sm:$0xff] %v2580_v19  ;;  %v1371_v25 = vmax.f32 %v801_v20, 0.0  ;;  %v1261_v26 = vmax.f32 %v914_v21, 0.0 }
 0x17d   : > { %v803_v27 = vpop.f32.mrf.mxu1  ;;  %v916_v28 = vpop.f32.mrf.mxu0 }
 0x17e   : > { %v2647_v23 = vpack.c.bf16 %v1371_v25, %v1370_v22  ;;  %v2584_v30 = vpack.c.bf16 %v1261_v26, %v1260_v24  ;;  %v1377_v29 = vmax.f32 %v803_v27, 0.0  ;;  %v1267_v33 = vmax.f32 %v916_v28, 0.0 }
 0x17f   : > { %v805_v32 = vpop.f32.mrf.mxu1  ;;  %v918_v0 = vpop.f32.mrf.mxu0 }
 0x180   : > { %2214 = vst [vmem:[%s3085_s28 + $0x318] sm:$0xff] %v2647_v23  ;;  %2151 = vst [vmem:[%s3085_s28 + $0x160] sm:$0xff] %v2584_v30  ;;  %v1378_v34 = vmax.f32 %v805_v32, 0.0  ;;  %v1268_v35 = vmax.f32 %v918_v0, 0.0 }
 0x181   : > { %v809_v36 = vpop.f32.mrf.mxu1  ;;  %v922_v37 = vpop.f32.mrf.mxu0 }
 0x182   : > { %v2651_v38 = vpack.c.bf16 %v1378_v34, %v1377_v29  ;;  %v2588_v39 = vpack.c.bf16 %v1268_v35, %v1267_v33  ;;  %v1384_v42 = vmax.f32 %v809_v36, 0.0  ;;  %v1274_v43 = vmax.f32 %v922_v37, 0.0 }
 0x183   : > { %v811_v40 = vpop.f32.mrf.mxu1  ;;  %v924_v41 = vpop.f32.mrf.mxu0 }
 0x184   : > { %2218 = vst [vmem:[%s3085_s28 + $0x334] sm:$0xff] %v2651_v38  ;;  %2155 = vst [vmem:[%s3085_s28 + $0x17c] sm:$0xff] %v2588_v39  ;;  %v1385_v44 = vmax.f32 %v811_v40, 0.0  ;;  %v1275_v45 = vmax.f32 %v924_v41, 0.0 }
 0x185   : > { %v813_v46 = vpop.f32.mrf.mxu1  ;;  %v926_v47 = vpop.f32.mrf.mxu0 }
 0x186   : > { %v2655_v48 = vpack.c.bf16 %v1385_v44, %v1384_v42  ;;  %v2592_v49 = vpack.c.bf16 %v1275_v45, %v1274_v43  ;;  %v1391_v51 = vmax.f32 %v813_v46, 0.0  ;;  %v1281_v52 = vmax.f32 %v926_v47, 0.0 }
 0x187   : > { %v815_v50 = vpop.f32.mrf.mxu1  ;;  %v928_v31 = vpop.f32.mrf.mxu0 }
 0x188   : > { %2222 = vst [vmem:[%s3085_s28 + $0x350] sm:$0xff] %v2655_v48  ;;  %2159 = vst [vmem:[%s3085_s28 + $0x198] sm:$0xff] %v2592_v49  ;;  %v1392_v53 = vmax.f32 %v815_v50, 0.0  ;;  %v1282_v54 = vmax.f32 %v928_v31, 0.0 }
 0x189   : > { %v932_v55 = vpop.f32.mrf.mxu0  ;;  %v2686_v56 = vpop.f32.mrf.mxu1 }
 0x18a   : > { %v2659_v57 = vpack.c.bf16 %v1392_v53, %v1391_v51  ;;  %v2596_v58 = vpack.c.bf16 %v1282_v54, %v1281_v52  ;;  %v1192_v59 = vmax.f32 %v2686_v56, 0.0  ;;  %v1288_v62 = vmax.f32 %v932_v55, 0.0 }
 0x18b   : > { %v934_v60 = vpop.f32.mrf.mxu0  ;;  %v1045_v61 = vpop.f32.mrf.mxu1 }
 0x18c   : > { %2226 = vst [vmem:[%s3085_s28 + $0x36c] sm:$0xff] %v2659_v57  ;;  %2163 = vst [vmem:[%s3085_s28 + $0x1b4] sm:$0xff] %v2596_v58  ;;  %v2545_v63 = vpack.c.bf16 %v1192_v59, %v1192_v59  ;;  %v1289_v1 = vmax.f32 %v934_v60, 0.0  ;;  %v1178_v2 = vmax.f32 %v1045_v61, 0.0 }
 0x18d   : > { %v936_v3 = vpop.f32.mrf.mxu0  ;;  %v2687_v4 = vpop.f32.mrf.mxu1 }
 0x18e   : > { %2112 = vst.msk [vmem:[%s3085_s28 + $0x50] sm:$0xf] %vm2103_vm3, %v2545_v63  ;;  %v2600_v5 = vpack.c.bf16 %v1289_v1, %v1288_v62  ;;  %v2537_v6 = vpack.c.bf16 %v1178_v2, %v1178_v2  ;;  %v1199_v7 = vmax.f32 %v2687_v4, 0.0  ;;  %v1295_v10 = vmax.f32 %v936_v3, 0.0 }
 0x18f   : > { %v938_v8 = vpop.f32.mrf.mxu0  ;;  %v1048_v9 = vpop.f32.mrf.mxu1 }
 0x190   : > { %2167 = vst [vmem:[%s3085_s28 + $0x1d0] sm:$0xff] %v2600_v5  ;;  %2104 = vst.msk [vmem:[%s3085_s28 + $0x18] sm:$0xf] %vm2103_vm3, %v2537_v6  ;;  %v2549_v11 = vpack.c.bf16 %v1199_v7, %v1199_v7  ;;  %v1296_v12 = vmax.f32 %v938_v8, 0.0  ;;  %v1185_v13 = vmax.f32 %v1048_v9, 0.0 }
 0x191   : > { %v942_v14 = vpop.f32.mrf.mxu0  ;;  %v2690_v15 = vpop.f32.mrf.mxu1 }
 0x192   : > { %2116 = vst.msk [vmem:[%s3085_s28 + $0x6c] sm:$0xf] %vm2103_vm3, %v2549_v11  ;;  %v2604_v16 = vpack.c.bf16 %v1296_v12, %v1295_v10  ;;  %v2541_v17 = vpack.c.bf16 %v1185_v13, %v1185_v13  ;;  %v1220_v18 = vmax.f32 %v2690_v15, 0.0  ;;  %v1302_v21 = vmax.f32 %v942_v14, 0.0 }
 0x193   : > { %v944_v19 = vpop.f32.mrf.mxu0  ;;  %v1061_v20 = vpop.f32.mrf.mxu1 }
 0x194   : > { %2171 = vst [vmem:[%s3085_s28 + $0x1ec] sm:$0xff] %v2604_v16  ;;  %2108 = vst.msk [vmem:[%s3085_s28 + $0x34] sm:$0xf] %vm2103_vm3, %v2541_v17  ;;  %v2561_v22 = vpack.c.bf16 %v1220_v18, %v1220_v18  ;;  %v1303_v24 = vmax.f32 %v944_v19, 0.0  ;;  %v1206_v25 = vmax.f32 %v1061_v20, 0.0 }
 0x195   : > { %v946_v26 = vpop.f32.mrf.mxu0  ;;  %v2691_v27 = vpop.f32.mrf.mxu1 }
 0x196   : > { %2128 = vst.msk [vmem:[%s3085_s28 + $0xc0] sm:$0xf] %vm2103_vm3, %v2561_v22  ;;  %v2608_v28 = vpack.c.bf16 %v1303_v24, %v1302_v21  ;;  %v2553_v23 = vpack.c.bf16 %v1206_v25, %v1206_v25  ;;  %v1227_v30 = vmax.f32 %v2691_v27, 0.0  ;;  %v1309_v29 = vmax.f32 %v946_v26, 0.0 }
 0x197   : > { %v948_v32 = vpop.f32.mrf.mxu0  ;;  %v1064_v0 = vpop.f32.mrf.mxu1 }
 0x198   : > { %2175 = vst [vmem:[%s3085_s28 + $0x208] sm:$0xff] %v2608_v28  ;;  %2120 = vst.msk [vmem:[%s3085_s28 + $0x88] sm:$0xf] %vm2103_vm3, %v2553_v23  ;;  %v2565_v33 = vpack.c.bf16 %v1227_v30, %v1227_v30  ;;  %v1310_v34 = vmax.f32 %v948_v32, 0.0  ;;  %v1213_v35 = vmax.f32 %v1064_v0, 0.0 }
 0x199   : > { %v952_v36 = vpop.f32.mrf.mxu0  ;;  %v2694_v37 = vpop.f32.mrf.mxu1 }
 0x19a   : > { %2132 = vst.msk [vmem:[%s3085_s28 + $0xdc] sm:$0xf] %vm2103_vm3, %v2565_v33  ;;  %v2612_v38 = vpack.c.bf16 %v1310_v34, %v1309_v29  ;;  %v2557_v39 = vpack.c.bf16 %v1213_v35, %v1213_v35  ;;  %v1248_v40 = vmax.f32 %v2694_v37, 0.0  ;;  %v1316_v43 = vmax.f32 %v952_v36, 0.0 }
 0x19b   : > { %v954_v41 = vpop.f32.mrf.mxu0  ;;  %v1077_v42 = vpop.f32.mrf.mxu1 }
 0x19c   : > { %2179 = vst [vmem:[%s3085_s28 + $0x224] sm:$0xff] %v2612_v38  ;;  %2124 = vst.msk [vmem:[%s3085_s28 + $0xa4] sm:$0xf] %vm2103_vm3, %v2557_v39  ;;  %v2577_v44 = vpack.c.bf16 %v1248_v40, %v1248_v40  ;;  %v1317_v45 = vmax.f32 %v954_v41, 0.0  ;;  %v1234_v46 = vmax.f32 %v1077_v42, 0.0 }
 0x19d   : > { %v956_v47 = vpop.f32.mrf.mxu0  ;;  %v2695_v48 = vpop.f32.mrf.mxu1 }
 0x19e   : > { %2144 = vst.msk [vmem:[%s3085_s28 + $0x130] sm:$0xf] %vm2103_vm3, %v2577_v44  ;;  %v2616_v49 = vpack.c.bf16 %v1317_v45, %v1316_v43  ;;  %v2569_v50 = vpack.c.bf16 %v1234_v46, %v1234_v46  ;;  %v1255_v31 = vmax.f32 %v2695_v48, 0.0  ;;  %v1323_v53 = vmax.f32 %v956_v47, 0.0 }
 0x19f   : > { %v958_v51 = vpop.f32.mrf.mxu0  ;;  %v1080_v52 = vpop.f32.mrf.mxu1 }
 0x1a0   : > { %2183 = vst [vmem:[%s3085_s28 + $0x240] sm:$0xff] %v2616_v49  ;;  %2136 = vst.msk [vmem:[%s3085_s28 + $0xf8] sm:$0xf] %vm2103_vm3, %v2569_v50  ;;  %v2581_v54 = vpack.c.bf16 %v1255_v31, %v1255_v31  ;;  %v1324_v55 = vmax.f32 %v958_v51, 0.0  ;;  %v1241_v56 = vmax.f32 %v1080_v52, 0.0 }
 0x1a1   : > { %v962_v57 = vpop.f32.mrf.mxu0  ;;  %v2698_v58 = vpop.f32.mrf.mxu1 }
 0x1a2   : > { %2148 = vst.msk [vmem:[%s3085_s28 + $0x14c] sm:$0xf] %vm2103_vm3, %v2581_v54  ;;  %v2620_v59 = vpack.c.bf16 %v1324_v55, %v1323_v53  ;;  %v2573_v60 = vpack.c.bf16 %v1241_v56, %v1241_v56  ;;  %v1276_v61 = vmax.f32 %v2698_v58, 0.0  ;;  %v1330_v1 = vmax.f32 %v962_v57, 0.0 }
 0x1a3   : > { %v964_v62 = vpop.f32.mrf.mxu0  ;;  %v1093_v63 = vpop.f32.mrf.mxu1 }
 0x1a4   : > { %2187 = vst [vmem:[%s3085_s28 + $0x25c] sm:$0xff] %v2620_v59  ;;  %2140 = vst.msk [vmem:[%s3085_s28 + $0x114] sm:$0xf] %vm2103_vm3, %v2573_v60  ;;  %v2593_v2 = vpack.c.bf16 %v1276_v61, %v1276_v61  ;;  %v1331_v3 = vmax.f32 %v964_v62, 0.0  ;;  %v1262_v4 = vmax.f32 %v1093_v63, 0.0 }
 0x1a5   : > { %v966_v5 = vpop.f32.mrf.mxu0  ;;  %v2699_v6 = vpop.f32.mrf.mxu1 }
 0x1a6   : > { %2160 = vst.msk [vmem:[%s3085_s28 + $0x1a0] sm:$0xf] %vm2103_vm3, %v2593_v2  ;;  %v2624_v7 = vpack.c.bf16 %v1331_v3, %v1330_v1  ;;  %v2585_v8 = vpack.c.bf16 %v1262_v4, %v1262_v4  ;;  %v1283_v9 = vmax.f32 %v2699_v6, 0.0  ;;  %v1337_v12 = vmax.f32 %v966_v5, 0.0 }
 0x1a7   : > { %v968_v10 = vpop.f32.mrf.mxu0  ;;  %v1096_v11 = vpop.f32.mrf.mxu1 }
 0x1a8   : > { %2191 = vst [vmem:[%s3085_s28 + $0x278] sm:$0xff] %v2624_v7  ;;  %2152 = vst.msk [vmem:[%s3085_s28 + $0x168] sm:$0xf] %vm2103_vm3, %v2585_v8  ;;  %v2597_v13 = vpack.c.bf16 %v1283_v9, %v1283_v9  ;;  %v1338_v14 = vmax.f32 %v968_v10, 0.0  ;;  %v1269_v15 = vmax.f32 %v1096_v11, 0.0 }
 0x1a9   : > { %v972_v16 = vpop.f32.mrf.mxu0  ;;  %v2702_v17 = vpop.f32.mrf.mxu1 }
 0x1aa   : > { %2164 = vst.msk [vmem:[%s3085_s28 + $0x1bc] sm:$0xf] %vm2103_vm3, %v2597_v13  ;;  %v2628_v18 = vpack.c.bf16 %v1338_v14, %v1337_v12  ;;  %v2589_v19 = vpack.c.bf16 %v1269_v15, %v1269_v15  ;;  %v1304_v20 = vmax.f32 %v2702_v17, 0.0  ;;  %v1344_v24 = vmax.f32 %v972_v16, 0.0 }
 0x1ab   : > { %v974_v21 = vpop.f32.mrf.mxu0  ;;  %v1109_v22 = vpop.f32.mrf.mxu1 }
 0x1ac   : > { %2195 = vst [vmem:[%s3085_s28 + $0x294] sm:$0xff] %v2628_v18  ;;  %2156 = vst.msk [vmem:[%s3085_s28 + $0x184] sm:$0xf] %vm2103_vm3, %v2589_v19  ;;  %v2609_v25 = vpack.c.bf16 %v1304_v20, %v1304_v20  ;;  %v1345_v26 = vmax.f32 %v974_v21, 0.0  ;;  %v1290_v27 = vmax.f32 %v1109_v22, 0.0 }
 0x1ad   : > { %v976_v28 = vpop.f32.mrf.mxu0  ;;  %v2703_v23 = vpop.f32.mrf.mxu1 }
 0x1ae   : > { %2176 = vst.msk [vmem:[%s3085_s28 + $0x210] sm:$0xf] %vm2103_vm3, %v2609_v25  ;;  %v2632_v30 = vpack.c.bf16 %v1345_v26, %v1344_v24  ;;  %v2601_v32 = vpack.c.bf16 %v1290_v27, %v1290_v27  ;;  %v1311_v0 = vmax.f32 %v2703_v23, 0.0  ;;  %v1351_v34 = vmax.f32 %v976_v28, 0.0 }
 0x1af   : > { %v978_v29 = vpop.f32.mrf.mxu0  ;;  %v1112_v33 = vpop.f32.mrf.mxu1 }
 0x1b0   : > { %2199 = vst [vmem:[%s3085_s28 + $0x2b0] sm:$0xff] %v2632_v30  ;;  %2168 = vst.msk [vmem:[%s3085_s28 + $0x1d8] sm:$0xf] %vm2103_vm3, %v2601_v32  ;;  %v2613_v35 = vpack.c.bf16 %v1311_v0, %v1311_v0  ;;  %v1352_v36 = vmax.f32 %v978_v29, 0.0  ;;  %v1297_v37 = vmax.f32 %v1112_v33, 0.0 }
 0x1b1   : > { %v982_v38 = vpop.f32.mrf.mxu0  ;;  %v2706_v39 = vpop.f32.mrf.mxu1 }
 0x1b2   : > { %2180 = vst.msk [vmem:[%s3085_s28 + $0x22c] sm:$0xf] %vm2103_vm3, %v2613_v35  ;;  %v2636_v40 = vpack.c.bf16 %v1352_v36, %v1351_v34  ;;  %v2605_v41 = vpack.c.bf16 %v1297_v37, %v1297_v37  ;;  %v1332_v42 = vmax.f32 %v2706_v39, 0.0  ;;  %v1358_v45 = vmax.f32 %v982_v38, 0.0 }
 0x1b3   : > { %v984_v43 = vpop.f32.mrf.mxu0  ;;  %v1125_v44 = vpop.f32.mrf.mxu1 }
 0x1b4   : > { %2203 = vst [vmem:[%s3085_s28 + $0x2cc] sm:$0xff] %v2636_v40  ;;  %2172 = vst.msk [vmem:[%s3085_s28 + $0x1f4] sm:$0xf] %vm2103_vm3, %v2605_v41  ;;  %v2625_v46 = vpack.c.bf16 %v1332_v42, %v1332_v42  ;;  %v1359_v47 = vmax.f32 %v984_v43, 0.0  ;;  %v1318_v48 = vmax.f32 %v1125_v44, 0.0 }
 0x1b5   : > { %v986_v49 = vpop.f32.mrf.mxu0  ;;  %v2707_v50 = vpop.f32.mrf.mxu1 }
 0x1b6   : > { %2192 = vst.msk [vmem:[%s3085_s28 + $0x280] sm:$0xf] %vm2103_vm3, %v2625_v46  ;;  %v2640_v31 = vpack.c.bf16 %v1359_v47, %v1358_v45  ;;  %v2617_v51 = vpack.c.bf16 %v1318_v48, %v1318_v48  ;;  %v1339_v52 = vmax.f32 %v2707_v50, 0.0  ;;  %v1365_v55 = vmax.f32 %v986_v49, 0.0 }
 0x1b7   : > { %v988_v53 = vpop.f32.mrf.mxu0  ;;  %v1128_v54 = vpop.f32.mrf.mxu1 }
 0x1b8   : > { %2207 = vst [vmem:[%s3085_s28 + $0x2e8] sm:$0xff] %v2640_v31  ;;  %2184 = vst.msk [vmem:[%s3085_s28 + $0x248] sm:$0xf] %vm2103_vm3, %v2617_v51  ;;  %v2629_v56 = vpack.c.bf16 %v1339_v52, %v1339_v52  ;;  %v1366_v57 = vmax.f32 %v988_v53, 0.0  ;;  %v1325_v58 = vmax.f32 %v1128_v54, 0.0 }
 0x1b9   : > { %v992_v59 = vpop.f32.mrf.mxu0  ;;  %v2710_v60 = vpop.f32.mrf.mxu1 }
 0x1ba   : > { %2196 = vst.msk [vmem:[%s3085_s28 + $0x29c] sm:$0xf] %vm2103_vm3, %v2629_v56  ;;  %v2644_v61 = vpack.c.bf16 %v1366_v57, %v1365_v55  ;;  %v2621_v62 = vpack.c.bf16 %v1325_v58, %v1325_v58  ;;  %v1360_v63 = vmax.f32 %v2710_v60, 0.0  ;;  %v1372_v3 = vmax.f32 %v992_v59, 0.0 }
 0x1bb   : > { %v994_v1 = vpop.f32.mrf.mxu0  ;;  %v1141_v2 = vpop.f32.mrf.mxu1 }
 0x1bc   : > { %2211 = vst [vmem:[%s3085_s28 + $0x304] sm:$0xff] %v2644_v61  ;;  %2188 = vst.msk [vmem:[%s3085_s28 + $0x264] sm:$0xf] %vm2103_vm3, %v2621_v62  ;;  %v2641_v4 = vpack.c.bf16 %v1360_v63, %v1360_v63  ;;  %v1373_v5 = vmax.f32 %v994_v1, 0.0  ;;  %v1346_v6 = vmax.f32 %v1141_v2, 0.0 }
 0x1bd   : > { %v996_v7 = vpop.f32.mrf.mxu0  ;;  %v2711_v8 = vpop.f32.mrf.mxu1 }
 0x1be   : > { %2208 = vst.msk [vmem:[%s3085_s28 + $0x2f0] sm:$0xf] %vm2103_vm3, %v2641_v4  ;;  %v2648_v9 = vpack.c.bf16 %v1373_v5, %v1372_v3  ;;  %v2633_v10 = vpack.c.bf16 %v1346_v6, %v1346_v6  ;;  %v1367_v11 = vmax.f32 %v2711_v8, 0.0  ;;  %v1379_v14 = vmax.f32 %v996_v7, 0.0 }
 0x1bf   : > { %v998_v12 = vpop.f32.mrf.mxu0  ;;  %v1144_v13 = vpop.f32.mrf.mxu1 }
 0x1c0   : > { %2215 = vst [vmem:[%s3085_s28 + $0x320] sm:$0xff] %v2648_v9  ;;  %2200 = vst.msk [vmem:[%s3085_s28 + $0x2b8] sm:$0xf] %vm2103_vm3, %v2633_v10  ;;  %v2645_v15 = vpack.c.bf16 %v1367_v11, %v1367_v11  ;;  %v1380_v16 = vmax.f32 %v998_v12, 0.0  ;;  %v1353_v17 = vmax.f32 %v1144_v13, 0.0 }
 0x1c1   : > { %v1002_v18 = vpop.f32.mrf.mxu0  ;;  %v2714_v19 = vpop.f32.mrf.mxu1 }
 0x1c2   : > { %2212 = vst.msk [vmem:[%s3085_s28 + $0x30c] sm:$0xf] %vm2103_vm3, %v2645_v15  ;;  %v2652_v20 = vpack.c.bf16 %v1380_v16, %v1379_v14  ;;  %v2637_v21 = vpack.c.bf16 %v1353_v17, %v1353_v17  ;;  %v1388_v22 = vmax.f32 %v2714_v19, 0.0  ;;  %v1386_v26 = vmax.f32 %v1002_v18, 0.0 }
 0x1c3   : > { %v1004_v24 = vpop.f32.mrf.mxu0  ;;  %v1157_v25 = vpop.f32.mrf.mxu1 }
 0x1c4   : > { %2219 = vst [vmem:[%s3085_s28 + $0x33c] sm:$0xff] %v2652_v20  ;;  %2204 = vst.msk [vmem:[%s3085_s28 + $0x2d4] sm:$0xf] %vm2103_vm3, %v2637_v21  ;;  %v2657_v27 = vpack.c.bf16 %v1388_v22, %v1388_v22  ;;  %v1387_v28 = vmax.f32 %v1004_v24, 0.0  ;;  %v1374_v23 = vmax.f32 %v1157_v25, 0.0 }
 0x1c5   : > { %v1006_v30 = vpop.f32.mrf.mxu0  ;;  %v2715_v32 = vpop.f32.mrf.mxu1 }
 0x1c6   : > { %2224 = vst.msk [vmem:[%s3085_s28 + $0x360] sm:$0xf] %vm2103_vm3, %v2657_v27  ;;  %v2656_v0 = vpack.c.bf16 %v1387_v28, %v1386_v26  ;;  %v2649_v29 = vpack.c.bf16 %v1374_v23, %v1374_v23  ;;  %v1395_v33 = vmax.f32 %v2715_v32, 0.0  ;;  %v1393_v36 = vmax.f32 %v1006_v30, 0.0 }
 0x1c7   : > { %v1008_v34 = vpop.f32.mrf.mxu0  ;;  %v1160_v35 = vpop.f32.mrf.mxu1 }
 0x1c8   : > { %2223 = vst [vmem:[%s3085_s28 + $0x358] sm:$0xff] %v2656_v0  ;;  %2216 = vst.msk [vmem:[%s3085_s28 + $0x328] sm:$0xf] %vm2103_vm3, %v2649_v29  ;;  %v2661_v37 = vpack.c.bf16 %v1395_v33, %v1395_v33  ;;  %v1394_v38 = vmax.f32 %v1008_v34, 0.0  ;;  %v1381_v39 = vmax.f32 %v1160_v35, 0.0 }
 0x1ca   : > { %2228 = vst.msk [vmem:[%s3085_s28 + $0x37c] sm:$0xf] %vm2103_vm3, %v2661_v37  ;;  %v2660_v40 = vpack.c.bf16 %v1394_v38, %v1393_v36  ;;  %v2653_v41 = vpack.c.bf16 %v1381_v39, %v1381_v39 }
 0x1cc   : > { %2227 = vst [vmem:[%s3085_s28 + $0x374] sm:$0xff] %v2660_v40  ;;  %2220 = vst.msk [vmem:[%s3085_s28 + $0x344] sm:$0xf] %vm2103_vm3, %v2653_v41 }
 0x1cd PF: > { %s13_s9 = sadd.s32 1, %s2816_s9  }
 0x1ce   : > { %p10_p1 = scmp.ge.s32.totalorder %s13_s9, 4  }
 0x1d0   :  { %12 = sbr.rel (!%p10_p1) target bundleno = 1 (0x1), region = 63 }
 0x1d5   :  { %2253 = vsyncpa [#allocation3], 1 }
 0x1d6   :  { %2255 = vsyncpa [#allocation3 + $0x1], 1 }

// kernel: neural_network_forward.5
= control target key start
LH: loop header
LB: loop body
LE: loop exit
PB: predicated region body
PF: predicated region fallthrough
CT: control target
= control target key end

     0   :  { %v347_v1 = vmov 0.0   ;;  %vm348_vm0 = vmmov 0   ;;  %s501_s0 = inlined_call_operand.vmem [shape: f32[2,2,128], index: 0, kind: input, shape index: {}]   ;;  %s502_s1 = inlined_call_operand.vmem [shape: f32[1,128], index: 1, kind: input, shape index: {}]   ;;  %s503_s2 = inlined_call_operand.vmem [shape: f32[128,64], index: 2, kind: input, shape index: {}]   ;;  %s504_s3 = inlined_call_operand.vmem [shape: f32[1,64], index: 3, kind: input, shape index: {}]   ;;  %s505_s4 = inlined_call_operand.vmem [shape: f32[64,10], index: 4, kind: input, shape index: {}]   ;;  %s506_s5 = inlined_call_operand.vmem [shape: f32[1,10], index: 5, kind: input, shape index: {}]   ;;  %s507_s6 = inlined_call_operand.hbm [shape: f32[2,10], index: 6, kind: output, shape index: {}]  }
   0x1   :  { %v54_v0 = vld [vmem:[%s503_s2 + $0x78] sm:$0xff]  ;;  %268 = vmatprep.subr.mxu0 %v347_v1  ;;  %v53_v2 = vld [vmem:[%s503_s2 + $0x70] sm:$0xff]  ;;  %300 = vmatprep.mubr.msk.f32.mxu0 %vm348_vm0, %v347_v1  ;;  %v52_v3 = vld [vmem:[%s503_s2 + $0x68] sm:$0xff] }
   0x2   :  { %269 = vmatpush3.msra.mxu0 %v54_v0  ;;  %303 = vmatprep.subr.mxu1 %v347_v1  ;;  %v51_v4 = vld [vmem:[%s503_s2 + $0x60] sm:$0xff]  ;;  %v140_v5 = vld [vmem:[%s505_s4 + $0x38] sm:$0xff]  ;;  %v139_v6 = vld [vmem:[%s505_s4 + $0x30] sm:$0xff] }
   0x3   :  { %270 = vmatprep.subr.mxu0 %v347_v1  ;;  %319 = vmatprep.mubr.msk.f32.mxu1 %vm348_vm0, %v347_v1  ;;  %v50_v7 = vld [vmem:[%s503_s2 + $0x58] sm:$0xff]  ;;  %v138_v8 = vld [vmem:[%s505_s4 + $0x28] sm:$0xff] }
   0x4   :  { %271 = vmatpush3.msra.mxu0 %v53_v2  ;;  %304 = vmatpush3.msra.mxu1 %v140_v5 }
   0x5   :  { %272 = vmatprep.subr.mxu0 %v347_v1  ;;  %305 = vmatprep.subr.mxu1 %v347_v1 }
   0x6   :  { %273 = vmatpush3.msra.mxu0 %v52_v3 }
   0x7   :  { %274 = vmatprep.subr.mxu0 %v347_v1 }
   0x8   :  { %275 = vmatpush3.msra.mxu0 %v51_v4 }
   0x9   :  { %11 = vsyncpa [#allocation3], 0  ;;  %276 = vmatprep.subr.mxu0 %v347_v1  ;;  %v49_v9 = vld [vmem:[%s503_s2 + $0x50] sm:$0xff]  ;;  %306 = vmatpush3.msra.mxu1 %v139_v6  ;;  %v137_v10 = vld [vmem:[%s505_s4 + $0x20] sm:$0xff]  ;;  %vm26_vm1 = vcmask 1041408   ;;  %vm148_vm2 = vcmask 523264  }
   0xa   :  { %277 = vmatpush3.msra.mxu0 %v50_v7  ;;  %307 = vmatprep.subr.mxu1 %v347_v1  ;;  %v48_v11 = vld [vmem:[%s503_s2 + $0x48] sm:$0xff]  ;;  %v136_v12 = vld [vmem:[%s505_s4 + $0x18] sm:$0xff]  ;;  %v47_v13 = vld [vmem:[%s503_s2 + $0x40] sm:$0xff]  ;;  %s349_s28 = smov [#allocation2]   ;;  %vm222_vm3 = vcmask 74752  }
   0xb   :  { %278 = vmatprep.subr.mxu0 %v347_v1  ;;  %308 = vmatpush3.msra.mxu1 %v138_v8  ;;  %v46_v14 = vld [vmem:[%s503_s2 + $0x38] sm:$0xff]  ;;  %v24_v15 = vld [vmem:[%s501_s0] sm:$0x3]  ;;  %v25_v16 = vld [vmem:[%s501_s0 + $0x2] sm:$0x3]  ;;  %s230_s29 = sshll.u32 %s349_s28, 4  ;;  %s231_s29 = int_to_ptr.vmem [resolvable:$true] %s230_s29 }
   0xc   :  { %279 = vmatpush3.msra.mxu0 %v49_v9  ;;  %309 = vmatprep.subr.mxu1 %v347_v1  ;;  %v45_v17 = vld [vmem:[%s503_s2 + $0x30] sm:$0xff]  ;;  %v27_v18 = vsel %vm26_vm1, %v24_v15, 0.0  ;;  %v28_v19 = vsel %vm26_vm1, %v25_v16, 0.0  ;;  %v44_v20 = vld [vmem:[%s503_s2 + $0x28] sm:$0xff]  ;;  %v43_v21 = vld [vmem:[%s503_s2 + $0x20] sm:$0xff]  ;;  %p330_p1 = scmp.lt.s32.totalorder %s231_s29, %s231_s29 }
   0xd   :  { %280 = vmatprep.subr.mxu0 %v347_v1  ;;  %310 = vmatpush3.msra.mxu1 %v137_v10  ;;  %v29_v22 = vadd.f32 %v28_v19, %v27_v18  ;;  %v238_v23 = vld [vmem:[%s502_s1] ss:$0 sm:$0xff]  ;;  %v42_v24 = vld [vmem:[%s503_s2 + $0x18] sm:$0xff]  ;;  %v41_v25 = vld [vmem:[%s503_s2 + $0x10] sm:$0xff] }
   0xe   :  { %281 = vmatpush3.msra.mxu0 %v48_v11  ;;  %311 = vmatprep.subr.mxu1 %v347_v1  ;;  %v40_v27 = vld [vmem:[%s503_s2 + $0x8] sm:$0xff]  ;;  %v39_v28 = vld [vmem:[%s503_s2] sm:$0xff]  ;;  %v135_v30 = vld [vmem:[%s505_s4 + $0x10] sm:$0xff] }
   0xf   :  { %282 = vmatprep.subr.mxu0 %v347_v1  ;;  %312 = vmatpush3.msra.mxu1 %v136_v12  ;;  %v37_v26 = vadd.f32 %v238_v23, %v29_v22  ;;  %v134_v31 = vld [vmem:[%s505_s4 + $0x8] sm:$0xff]  ;;  %v133_v32 = vld [vmem:[%s505_s4] sm:$0xff]  ;;  %s325_s4 = scalar_lea.vmem %s231_s29, 32 }
  0x10   :  { %283 = vmatpush3.msra.mxu0 %v47_v13  ;;  %313 = vmatprep.subr.mxu1 %v347_v1  ;;  %v239_v33 = vld [vmem:[%s504_s3] ss:$0 sm:$0xff]  ;;  %p326_p0 = scmp.ne.s32.totalorder %s231_s29, %s325_s4  ;;  %p331_p2 = scmp.lt.s32.totalorder %s325_s4, %s325_s4 }
  0x11   :  { %284 = vmatprep.subr.mxu0 %v347_v1  ;;  %v38_v29 = vmax.f32 %v37_v26, 0.0  ;;  %314 = vmatpush3.msra.mxu1 %v135_v30  ;;  %v240_v38 = vld [vmem:[%s506_s5] ss:$0 sm:$0xff] }
  0x12   :  { %285 = vmatpush3.msra.mxu0 %v46_v14  ;;  %315 = vmatprep.subr.mxu1 %v347_v1  ;;  %p332_p3 = por %p331_p2, %p330_p1 }
  0x13   :  { %286 = vmatprep.subr.mxu0 %v347_v1  ;;  %316 = vmatpush3.msra.mxu1 %v134_v31 }
  0x14   :  { %287 = vmatpush3.msra.mxu0 %v45_v17  ;;  %317 = vmatprep.subr.mxu1 %v347_v1  ;;  %p333_p4 = pnand %p332_p3, %p326_p0 }
  0x15   :  { %288 = vmatprep.subr.mxu0 %v347_v1  ;;  %318 = vmatpush3.msra.mxu1 %v133_v32 }
  0x16   :  { %289 = vmatpush3.msra.mxu0 %v44_v20 }
  0x17   :  { %290 = vmatprep.subr.mxu0 %v347_v1 }
  0x18   :  { %291 = vmatpush3.msra.mxu0 %v43_v21 }
  0x19   :  { %292 = vmatprep.subr.mxu0 %v347_v1 }
  0x1a   :  { %293 = vmatpush3.msra.mxu0 %v42_v24 }
  0x1b   :  { %294 = vmatprep.subr.mxu0 %v347_v1 }
  0x1c   :  { %295 = vmatpush3.msra.mxu0 %v41_v25 }
  0x1d   :  { %296 = vmatprep.subr.mxu0 %v347_v1 }
  0x1e   :  { %297 = vmatpush3.msra.mxu0 %v40_v27 }
  0x1f   :  { %298 = vmatprep.subr.mxu0 %v347_v1 }
  0x20   :  { %299 = vmatpush3.msra.mxu0 %v39_v28 }
  0x21   :  { %301 = vmatmul.mubr.f32.vlgmr.msra.gmra.mxu0 %v38_v29 }
  0xe1   :  { %v128_v34 = vpop.f32.mrf.mxu0 }
  0xe2   :  { %v129_v35 = vadd.f32 %v239_v33, %v128_v34 }
  0xe3   :  { %v302_v36 = vpop.f32.mrf.mxu0 }
  0xe4   :  { %v132_v37 = vmax.f32 %v129_v35, 0.0 }
  0xe6   :  { %320 = vmatmul.mubr.msk.f32.vlgmr.msra.gmra.mxu1 %vm148_vm2, %v132_v37 }
 0x1a6   :  { %v218_v39 = vpop.f32.mrf.mxu1 }
 0x1a7   :  { %v219_v40 = vadd.f32 %v240_v38, %v218_v39 }
 0x1a8   :  { %v321_v41 = vpop.f32.mrf.mxu1 }
 0x1a9   :  { %223 = vst.msk [vmem:[#allocation2] sm:$0x3] %vm222_vm3, %v219_v40 }
 0x1aa   :  { %336 = shalt.err (!%p333_p4)
}
 0x1ab   :  { %233 = dma.vmem_to_hbm [thread:$0]  %s231_s29, 32, %s507_s6, [#allocation3]  }
 0x1ac   :  { %345 = dma.done.wait [#allocation3], 32  }
 0x1ad   :  { %346 = vsyncadd [#allocation3], 4294967264 }
 0x1ae   :  { %237 = vsyncpa [#allocation3], 1 }

// kernel: neural_network_forward.4
= control target key start
LH: loop header
LB: loop body
LE: loop exit
PB: predicated region body
PF: predicated region fallthrough
CT: control target
= control target key end

     0   :  { %7 = vsyncpa [#allocation4], 0  ;;  %s27412_s0 = inlined_call_operand.vmem [shape: bf16[2,212992], index: 0, kind: input, shape index: {}]   ;;  %s27413_s1 = inlined_call_operand.hbm [shape: bf16[212992,128], index: 1, kind: input, shape index: {}]   ;;  %s27414_s2 = inlined_call_operand.vmem [shape: f32[2,2,128], index: 2, kind: output, shape index: {}]  }
   0x1   :  { %9 = vsyncpa [#allocation4 + $0x1], 0  ;;  %s25177_s9 = smov 0   ;;  %s25179_s10 = smov 0  }
   0x2   :  { %s25181_s11 = smov 0   ;;  %s25183_s12 = smov 0  }
   0x3   :  { %s25185_s13 = smov 0   ;;  %s25187_s14 = smov 0  }
   0x4   :  { %s25189_s15 = smov 0   ;;  %s25191_s16 = smov 0  }
   0x5 LB: > { %s19324_s17 = sadd.s32 4294967295, %s25155_s16   ;;  %s24_s18 = sadd.s32 1, %s25147_s14  ;;  %s25155_s16 = sphi %s25191_s16, %s15_s16   ;;  %s25151_s15 = sphi %s25189_s15, %s27423_s15   ;;  %s25147_s14 = sphi %s25187_s14, %s27422_s14   ;;  %s25143_s13 = sphi %s25185_s13, %s27421_s13   ;;  %s25139_s12 = sphi %s25183_s12, %s27420_s12   ;;  %s25135_s11 = sphi %s25181_s11, %s27419_s11   ;;  %s25131_s10 = sphi %s25179_s10, %s27418_s10   ;;  %s25127_s9 = sphi %s25177_s9, %s27417_s9  }
   0x6   : > { %p25_p0 = scmp.ge.s32.totalorder %s24_s18, 4  ;;  %s27_s19 = sadd.s32 1, %s25151_s15 }
   0x7   : > { %s19328_s20 = sshll.u32 %s25151_s15, 2  ;;  %s68_s21 = sadd.s32 1, %s25135_s11 }
   0x8   : > { %s27425_s18 = smov (%p25_p0, %s24_s18), 0  ;;  %s27427_s19 = smov (!%p25_p0, %s27_s19), %s25151_s15 }
   0x9   : > { %s62_s22 = sadd.s32 %s25147_s14, %s19328_s20  ;;  %p75_p1 = scmp.ne.s32.totalorder %s25135_s11, %s25131_s10 }
   0xa   : > { %p29_p2 = scmp.ge.s32.totalorder %s27427_s19, 2  ;;  %p76_p3 = scmp.eq.s32.totalorder %s25155_s16, 0 }
   0xb   : > { %p81_p4 = scmp.ne.s32.totalorder %s25131_s10, %s25127_s9  ;;  %p82_p5 = scmp.eq.s32.totalorder %s19324_s17, 0 }
   0xc   : > { %s27429_s19 = smov (%p29_p2, %s27427_s19), 0  ;;  %p77_p6 = por %p76_p3, %p75_p1 }
   0xd   : > { %p25230_p7 = por %p82_p5, %p81_p4  ;;  %s19329_s24 = sshll.u32 %s27429_s19, 2 }
   0xe   : > { %s64_s25 = sadd.s32 %s19329_s24, %s27425_s18  ;;  %p23302_p8 = scmp.lt.s32.totalorder %s25155_s16, 8 }
   0xf   : > { %s65_s26 = ssub.s32 %s62_s22, %s64_s25  ;;  %s143_s27 = sand.u32 1, %s25135_s11  }
  0x10   : > { %p66_p9 = scmp.eq.s32.totalorder %s65_s26, 0  ;;  %s23294_s28 = smul.u32 13312, %s143_s27 }
  0x11   : > { %p25238_p10 = pnand %p23302_p8, %p77_p6  ;;  %s21005_s3 = smul.u32 212992, %s62_s22 }
  0x12   : > { %s25243_s30 = scalar_select %p66_p9, %s25135_s11, %s68_s21  }
  0x13   : > { %s147_s4 = scalar_lea.vmem [#allocation3], %s23294_s28  ;;  %s155_s8 = scalar_lea.hbm %s27413_s1, %s21005_s3 }
  0x14   : > { %s156_s5 = sshll.u32 %s147_s4, 4  ;;  %s144_s9 = scalar_lea.sflag [#allocation4], %s143_s27  ;;  %s157_s5 = int_to_ptr.vmem [resolvable:$true] %s156_s5 }
  0x15   : > { %p25063_p11 = pneg %p25238_p10  ;;  %s25074_s17 = scalar_lea.vmem %s157_s5, 212992 }
  0x16   : > { %p25075_p12 = scmp.ne.s32.totalorder %s157_s5, %s25074_s17  ;;  %s25157_s20 = smov [#allocation3]  }
  0x17   : > { %s25079_s24 = sshll.u32 %s25157_s20, 4  ;;  %s25080_s24 = int_to_ptr.vmem [resolvable:$false] %s25079_s24 }
  0x18   : > { %p25077_p13 = pnand %p25075_p12, %p25063_p11  ;;  %s25081_s21 = scalar_lea.vmem %s25080_s24, 425984 }
  0x19   : > { %p25082_p1 = scmp.lt.s32.totalorder %s157_s5, %s25080_s24  ;;  %p25083_p2 = scmp.lt.s32.totalorder %s25081_s21, %s25074_s17 }
  0x1a   : > { %p25078_p0 = pneg %p25077_p13 }
  0x1b   : > { %p25084_p3 = por %p25083_p2, %p25082_p1 }
  0x1d   : > { %p25085_p4 = pnand %p25084_p3, %p25078_p0 }
  0x1f   : > { %25088 = shalt.err (!%p25085_p4)
}
  0x20   : > { %s25158_s22 = smov 64   ;;  %s25159_s25 = smov 4  }
  0x21   : > { %23301 = dma.hbm_to_vmem [thread:$0]  (!%p25238_p10), %s155_s8, 212992, %s157_s5, %s144_s9, %s25158_s22, %s25158_s22, %s25159_s25  }
  0x22   : > { %p19334_p5 = scmp.ge.s32.totalorder %s25155_s16, 1  ;;  %p164_p6 = scmp.lt.s32.totalorder %s25155_s16, 9 }
  0x24   : > { %p165_p8 = pnand %p19334_p5, %p164_p6 }
  0x25   : > { %s170_s26 = sand.u32 (!%p165_p8), 1, %s25131_s10  }
  0x26   : > { %168 = sbr.rel (%p165_p8) target bundleno = 1932 (0x78c), region = 28  ;;  %s171_s28 = scalar_lea.sflag (!%p165_p8), [#allocation4], %s170_s26 }
  0x27   : > { %s23295_s27 = smul.u32 (!%p165_p8), 13312, %s170_s26 }
  0x29   : > { %s25255_s3 = scalar_lea.vmem (!%p165_p8), [#allocation3], %s23295_s27 }
  0x2b   : > { %25122 = dma.done.wait (%p25230_p7), %s171_s28, 212992  }
  0x2c   : > { %25124 = vsyncadd (%p25230_p7), %s171_s28, 4294754304  ;;  %s19335_s29 = sshll.u32 %s25143_s13, 2  ;;  %p212_p9 = scmp.lt.s32.totalorder %s25143_s13, 1 }
  0x2d   : > { %s201_s4 = sadd.s32 %s25139_s12, %s19335_s29  ;;  %p19337_p7 = scmp.ne.s32.totalorder %s25139_s12, 0 }
  0x2e   : > { %s202_s5 = smul.u32 208, %s201_s4  ;;  %s27431_s13 = smov (!%p212_p9, %s25143_s13), 1 }
  0x2f   : > { %s19336_s6 = sshll.u32 %s27431_s13, 1  ;;  %220 = sbr.rel (%p19337_p7) target bundleno = 54 (0x36), region = 36 }
  0x30   : > { %p203_p10 = scmp.lt.s32.totalorder %s202_s5, 1663  ;;  %s25268_s9 = scalar_lea.vmem %s27414_s2, %s19336_s6 }
  0x32   : > { %s27433_s5 = smov (!%p203_p10, %s202_s5), 1663 }
  0x33   : > { %s25273_s20 = scalar_lea.vmem %s27412_s0, %s27433_s5 }
  0x34   : > { %v25160_v0 = vmov 0.0  }
  0x35   : > { %221 = vst [vmem:[#allocation2] sm:$0x3] %v25160_v0 }
  0x36 PF: > { %v23371_v1 = vld [vmem:[%s25255_s3 + $0x78] sm:$0xff]   ;;  %v23375_v5 = vld [vmem:[%s25255_s3 + $0x70] sm:$0xff]   ;;  %v23379_v9 = vld [vmem:[%s25255_s3 + $0x68] sm:$0xff]   ;;  %v3607_v29 = vlaneseq  ;;  %v25161_v37 = vmov 1966171168   ;;  %p21002_p11 = scmp.ne.s32.totalorder %s25139_s12, 3 }
  0x37   : > { %v23372_v2 = vld [vmem:[%s25255_s3 + $0xf8] sm:$0xff]   ;;  %21006 = vmatprep.subr.bf16.mxu0 %v23371_v1  ;;  %v23376_v6 = vld [vmem:[%s25255_s3 + $0xf0] sm:$0xff]   ;;  %v23380_v10 = vld [vmem:[%s25255_s3 + $0xe8] sm:$0xff]   ;;  %v3605_v38 = vunpack.c.l.s4 %v25161_v37 }
  0x38   : > { %v23373_v3 = vld [vmem:[%s25255_s3 + $0x38] sm:$0xff]   ;;  %21028 = vmatprep.subr.bf16.mxu1 %v23372_v2  ;;  %v23377_v7 = vld [vmem:[%s25255_s3 + $0x30] sm:$0xff]   ;;  %v23381_v11 = vld [vmem:[%s25255_s3 + $0x28] sm:$0xff]   ;;  %v3608_v34 = vshrl.u32 %v3607_v29, 7 }
  0x39   : > { %v23374_v4 = vld [vmem:[%s25255_s3 + $0xb8] sm:$0xff]   ;;  %21007 = vmatpush3.bf16.msra.mxu0 %v23373_v3  ;;  %v23378_v8 = vld [vmem:[%s25255_s3 + $0xb0] sm:$0xff]   ;;  %v23382_v12 = vld [vmem:[%s25255_s3 + $0xa8] sm:$0xff]   ;;  %v3606_v41 = vunpack.c.0.s8 %v3605_v38 }
  0x3a   : > { %21029 = vmatpush3.bf16.msra.mxu1 %v23374_v4  ;;  %21008 = vmatprep.subr.bf16.mxu0 %v23375_v5  ;;  %v23383_v13 = vld [vmem:[%s25255_s3 + $0x60] sm:$0xff]   ;;  %v23387_v17 = vld [vmem:[%s25255_s3 + $0x58] sm:$0xff]   ;;  %v23391_v21 = vld [vmem:[%s25255_s3 + $0x50] sm:$0xff]  }
  0x3b   : > { %21030 = vmatprep.subr.bf16.mxu1 %v23376_v6  ;;  %v23384_v14 = vld [vmem:[%s25255_s3 + $0xe0] sm:$0xff]   ;;  %v23388_v18 = vld [vmem:[%s25255_s3 + $0xd8] sm:$0xff]   ;;  %v23392_v22 = vld [vmem:[%s25255_s3 + $0xd0] sm:$0xff]   ;;  %v25311_v42 = vsub.s32 %v3606_v41, %v3608_v34 }
  0x3c   : > { %v23385_v15 = vld [vmem:[%s25255_s3 + $0x20] sm:$0xff]   ;;  %v23389_v19 = vld [vmem:[%s25255_s3 + $0x18] sm:$0xff]   ;;  %v23393_v23 = vld [vmem:[%s25255_s3 + $0x10] sm:$0xff]  }
  0x3d   : > { %21009 = vmatpush3.bf16.msra.mxu0 %v23377_v7  ;;  %v23386_v16 = vld [vmem:[%s25255_s3 + $0xa0] sm:$0xff]   ;;  %v23390_v20 = vld [vmem:[%s25255_s3 + $0x98] sm:$0xff]   ;;  %v23394_v24 = vld [vmem:[%s25255_s3 + $0x90] sm:$0xff]  }
  0x3e   : > { %21031 = vmatpush3.bf16.msra.mxu1 %v23378_v8  ;;  %21010 = vmatprep.subr.bf16.mxu0 %v23379_v9  ;;  %v23395_v25 = vld [vmem:[%s25255_s3 + $0x48] sm:$0xff]   ;;  %v23399_v30 = vld [vmem:[%s25255_s3 + $0x40] sm:$0xff]   ;;  %v23404_v36 = vld [vmem:[%s25255_s3 + $0x178] sm:$0xff]  }
  0x3f   : > { %21032 = vmatprep.subr.bf16.mxu1 %v23380_v10  ;;  %v23396_v26 = vld [vmem:[%s25255_s3 + $0xc8] sm:$0xff]   ;;  %v23400_v31 = vld [vmem:[%s25255_s3 + $0xc0] sm:$0xff]   ;;  %v23405_v39 = vld [vmem:[%s25255_s3 + $0x1f8] sm:$0xff]  }
  0x40   : > { %v23397_v27 = vld [vmem:[%s25255_s3 + $0x8] sm:$0xff]   ;;  %v23401_v32 = vld [vmem:[%s25255_s3] sm:$0xff]   ;;  %v23406_v48 = vld [vmem:[%s25255_s3 + $0x138] sm:$0xff]  }
  0x41   : > { %21011 = vmatpush3.bf16.msra.mxu0 %v23381_v11  ;;  %v23398_v28 = vld [vmem:[%s25255_s3 + $0x88] sm:$0xff]   ;;  %v23402_v33 = vld [vmem:[%s25255_s3 + $0x80] sm:$0xff]   ;;  %v23407_v50 = vld [vmem:[%s25255_s3 + $0x1b8] sm:$0xff]  }
  0x42   : > { %21033 = vmatpush3.bf16.msra.mxu1 %v23382_v12  ;;  %21012 = vmatprep.subr.bf16.mxu0 %v23383_v13  ;;  %v223_v35 = vld [vmem:[%s25273_s20] sm:$0xff]  ;;  %v23408_v53 = vld [vmem:[%s25255_s3 + $0x170] sm:$0xff]   ;;  %v23412_v59 = vld [vmem:[%s25255_s3 + $0x168] sm:$0xff]  }
  0x43   : > { %21034 = vmatprep.subr.bf16.mxu1 %v23384_v14  ;;  %v3603_v40 = vcombine.high %v223_v35, %v223_v35  ;;  %v3610_v43 = vrot.slane %v223_v35, %v25311_v42  ;;  %v23409_v55 = vld [vmem:[%s25255_s3 + $0x1f0] sm:$0xff]   ;;  %v23413_v60 = vld [vmem:[%s25255_s3 + $0x1e8] sm:$0xff]   ;;  %v23416_v63 = vld [vmem:[%s25255_s3 + $0x160] sm:$0xff]  }
  0x44   : > { %v23410_v56 = vld [vmem:[%s25255_s3 + $0x130] sm:$0xff]   ;;  %v23414_v61 = vld [vmem:[%s25255_s3 + $0x128] sm:$0xff]   ;;  %v23417_v0 = vld [vmem:[%s25255_s3 + $0x1e0] sm:$0xff]  }
  0x45   : > { %21013 = vmatpush3.bf16.msra.mxu0 %v23385_v15  ;;  %v25315_v44 = vrot.slane %v3603_v40, %v25311_v42  ;;  %v3618_v45 = vcombine.high %v3610_v43, %v3610_v43  ;;  %v3626_v46 = vrot.slane %v3610_v43, %v25311_v42  ;;  %v23411_v58 = vld [vmem:[%s25255_s3 + $0x1b0] sm:$0xff]   ;;  %v23415_v62 = vld [vmem:[%s25255_s3 + $0x1a8] sm:$0xff]   ;;  %v23418_v1 = vld [vmem:[%s25255_s3 + $0x120] sm:$0xff]  }
  0x46   : > { %21035 = vmatpush3.bf16.msra.mxu1 %v23386_v16  ;;  %21014 = vmatprep.subr.bf16.mxu0 %v23387_v17  ;;  %v23419_v2 = vld [vmem:[%s25255_s3 + $0x1a0] sm:$0xff]   ;;  %v23420_v3 = vld [vmem:[%s25255_s3 + $0x158] sm:$0xff]   ;;  %v23424_v7 = vld [vmem:[%s25255_s3 + $0x150] sm:$0xff]  }
  0x47   : > { %21036 = vmatprep.subr.bf16.mxu1 %v23388_v18  ;;  %v3619_v47 = vcombine.high %v25315_v44, %v25315_v44  ;;  %v3640_v49 = vrot.slane %v3618_v45, %v25311_v42  ;;  %v3648_v52 = vcombine.high %v3626_v46, %v3626_v46  ;;  %v23421_v4 = vld [vmem:[%s25255_s3 + $0x1d8] sm:$0xff]   ;;  %v23425_v8 = vld [vmem:[%s25255_s3 + $0x1d0] sm:$0xff]   ;;  %v23428_v11 = vld [vmem:[%s25255_s3 + $0x148] sm:$0xff]  }
  0x48   : > { %v23422_v5 = vld [vmem:[%s25255_s3 + $0x118] sm:$0xff]   ;;  %v23426_v9 = vld [vmem:[%s25255_s3 + $0x110] sm:$0xff]   ;;  %v23429_v12 = vld [vmem:[%s25255_s3 + $0x1c8] sm:$0xff]  }
  0x49   : > { %21015 = vmatpush3.bf16.msra.mxu0 %v23389_v19  ;;  %v3647_v51 = vrot.slane %v3619_v47, %v25311_v42  ;;  %15101 = vmatprep.mubr.bf16.mxu0 %v3640_v49  ;;  %v3650_v54 = vcombine.high %v3640_v49, %v3640_v49  ;;  %v23423_v6 = vld [vmem:[%s25255_s3 + $0x198] sm:$0xff]   ;;  %v23427_v10 = vld [vmem:[%s25255_s3 + $0x190] sm:$0xff]   ;;  %v23430_v13 = vld [vmem:[%s25255_s3 + $0x108] sm:$0xff]   ;;  %v3633_v19 = vrot.slane %v25315_v44, %v25311_v42 }
  0x4a   : > { %21037 = vmatpush3.bf16.msra.mxu1 %v23390_v20  ;;  %21016 = vmatprep.subr.bf16.mxu0 %v23391_v21  ;;  %v23431_v14 = vld [vmem:[%s25255_s3 + $0x188] sm:$0xff]   ;;  %v23432_v15 = vld [vmem:[%s25255_s3 + $0x140] sm:$0xff]   ;;  %v23436_v20 = vld [vmem:[%s25255_s3 + $0x278] sm:$0xff]  }
  0x4b   : > { %21038 = vmatprep.subr.bf16.mxu1 %v23392_v22  ;;  %v3651_v57 = vcombine.high %v3647_v51, %v3647_v51  ;;  %15141 = vmatprep.mubr.bf16.mxu1 %v3650_v54  ;;  %v23433_v16 = vld [vmem:[%s25255_s3 + $0x1c0] sm:$0xff]   ;;  %v23437_v21 = vld [vmem:[%s25255_s3 + $0x2f8] sm:$0xff]   ;;  %v23444_v29 = vld [vmem:[%s25255_s3 + $0x268] sm:$0xff]  }
  0x4c   : > { %v23434_v17 = vld [vmem:[%s25255_s3 + $0x100] sm:$0xff]   ;;  %v23438_v22 = vld [vmem:[%s25255_s3 + $0x238] sm:$0xff]   ;;  %v23456_v41 = vld [vmem:[%s25255_s3 + $0x250] sm:$0xff]  }
  0x4d   : > { %21017 = vmatpush3.bf16.msra.mxu0 %v23393_v23  ;;  %v23435_v18 = vld [vmem:[%s25255_s3 + $0x180] sm:$0xff]   ;;  %v23439_v23 = vld [vmem:[%s25255_s3 + $0x2b8] sm:$0xff]   ;;  %v23457_v43 = vld [vmem:[%s25255_s3 + $0x2d0] sm:$0xff]  }
  0x4e   : > { %21039 = vmatpush3.bf16.msra.mxu1 %v23394_v24  ;;  %21018 = vmatprep.subr.bf16.mxu0 %v23395_v25  ;;  %v3649_v24 = vcombine.high %v3633_v19, %v3633_v19  ;;  %v23440_v25 = vld [vmem:[%s25255_s3 + $0x270] sm:$0xff]   ;;  %v23449_v34 = vld [vmem:[%s25255_s3 + $0x2e0] sm:$0xff]   ;;  %v23452_v37 = vld [vmem:[%s25255_s3 + $0x258] sm:$0xff]  }
  0x4f   : > { %21040 = vmatprep.subr.bf16.mxu1 %v23396_v26  ;;  %v23441_v26 = vld [vmem:[%s25255_s3 + $0x2f0] sm:$0xff]   ;;  %v23450_v35 = vld [vmem:[%s25255_s3 + $0x220] sm:$0xff]   ;;  %v23453_v38 = vld [vmem:[%s25255_s3 + $0x2d8] sm:$0xff]  }
  0x50   : > { %v23455_v40 = vld [vmem:[%s25255_s3 + $0x298] sm:$0xff]   ;;  %v23458_v44 = vld [vmem:[%s25255_s3 + $0x210] sm:$0xff]   ;;  %v224_v47 = vld [vmem:[%s25273_s20 + $0x8] sm:$0xff] }
  0x51   : > { %21019 = vmatpush3.bf16.msra.mxu0 %v23397_v27  ;;  %v23442_v27 = vld [vmem:[%s25255_s3 + $0x230] sm:$0xff]   ;;  %v3659_v49 = vrot.slane %v224_v47, %v25311_v42 }
  0x52   : > { %21041 = vmatpush3.bf16.msra.mxu1 %v23398_v28  ;;  %21020 = vmatprep.subr.bf16.mxu0 %v23399_v30  ;;  %v23443_v28 = vld [vmem:[%s25255_s3 + $0x2b0] sm:$0xff]   ;;  %v23445_v30 = vld [vmem:[%s25255_s3 + $0x2e8] sm:$0xff]  }
  0x53   : > { %21042 = vmatprep.subr.bf16.mxu1 %v23400_v31  ;;  %v23446_v31 = vld [vmem:[%s25255_s3 + $0x228] sm:$0xff]   ;;  %v23459_v45 = vld [vmem:[%s25255_s3 + $0x290] sm:$0xff]  }
  0x55   : > { %21021 = vmatpush3.bf16.msra.mxu0 %v23401_v32  ;;  %v23447_v32 = vld [vmem:[%s25255_s3 + $0x2a8] sm:$0xff]  }
  0x56   : > { %21043 = vmatpush3.bf16.msra.mxu1 %v23402_v33  ;;  %21050 = vmatprep.subr.bf16.mxu0 %v23404_v36  ;;  %v23448_v33 = vld [vmem:[%s25255_s3 + $0x260] sm:$0xff]  }
  0x57   : > { %21072 = vmatprep.subr.bf16.mxu1 %v23405_v39  ;;  %v23451_v36 = vld [vmem:[%s25255_s3 + $0x2a0] sm:$0xff]   ;;  %v23454_v39 = vld [vmem:[%s25255_s3 + $0x218] sm:$0xff]  }
  0x58   : > { %15102 = vmatmul.mubr.bf16.vlgmr.msra.gmra.mxu0 %v3626_v46  ;;  %v23460_v46 = vld [vmem:[%s25255_s3 + $0x248] sm:$0xff]  }
  0x59   : > { %21051 = vmatpush3.bf16.msra.mxu0 %v23406_v48  ;;  %15142 = vmatmul.mubr.bf16.vlgmr.msra.gmra.mxu1 %v3648_v52  ;;  %v23461_v48 = vld [vmem:[%s25255_s3 + $0x2c8] sm:$0xff]  }
  0x5a   : > { %21052 = vmatprep.subr.bf16.mxu0 %v23408_v53  ;;  %21073 = vmatpush3.bf16.msra.mxu1 %v23407_v50  ;;  %v3652_v50 = vcombine.high %v224_v47, %v224_v47  ;;  %v23463_v52 = vld [vmem:[%s25255_s3 + $0x288] sm:$0xff]   ;;  %v3667_v53 = vcombine.high %v3659_v49, %v3659_v49 }
  0x5b   : > { %15181 = vmatprep.mubr.bf16.mxu0 %v3647_v51  ;;  %21074 = vmatprep.subr.bf16.mxu1 %v23409_v55  ;;  %v23462_v51 = vld [vmem:[%s25255_s3 + $0x208] sm:$0xff]   ;;  %v23464_v55 = vld [vmem:[%s25255_s3 + $0x240] sm:$0xff]  }
  0x5c   : > { %15221 = vmatprep.mubr.bf16.mxu1 %v3651_v57  ;;  %v25385_v54 = vrot.slane %v3652_v50, %v25311_v42  ;;  %v3689_v57 = vrot.slane %v3667_v53, %v25311_v42  ;;  %v23511_v47 = vld [vmem:[%s25255_s3 + $0x428] sm:$0xff]   ;;  %v23514_v50 = vld [vmem:[%s25255_s3 + $0x4e0] sm:$0xff]   ;;  %v23517_v53 = vld [vmem:[%s25255_s3 + $0x458] sm:$0xff]  }
  0x5d   : > { %21053 = vmatpush3.bf16.msra.mxu0 %v23410_v56  ;;  %v23465_v56 = vld [vmem:[%s25255_s3 + $0x2c0] sm:$0xff]  }
  0x5e   : > { %21054 = vmatprep.subr.bf16.mxu0 %v23412_v59  ;;  %21075 = vmatpush3.bf16.msra.mxu1 %v23411_v58  ;;  %v3668_v58 = vcombine.high %v25385_v54, %v25385_v54  ;;  %v23466_v59 = vld [vmem:[%s25255_s3 + $0x200] sm:$0xff]  }
  0x5f   : > { %21076 = vmatprep.subr.bf16.mxu1 %v23413_v60  ;;  %v23467_v60 = vld [vmem:[%s25255_s3 + $0x280] sm:$0xff]  }
  0x61   : > { %21055 = vmatpush3.bf16.msra.mxu0 %v23414_v61  ;;  %v3699_v61 = vcombine.high %v3689_v57, %v3689_v57 }
  0x62   : > { %21056 = vmatprep.subr.bf16.mxu0 %v23416_v63  ;;  %21077 = vmatpush3.bf16.msra.mxu1 %v23415_v62  ;;  %v3675_v62 = vrot.slane %v3659_v49, %v25311_v42  ;;  %v23468_v63 = vld [vmem:[%s25255_s3 + $0x378] sm:$0xff]   ;;  %v23513_v49 = vld [vmem:[%s25255_s3 + $0x460] sm:$0xff]  }
  0x63   : > { %21078 = vmatprep.subr.bf16.mxu1 %v23417_v0  ;;  %v23469_v0 = vld [vmem:[%s25255_s3 + $0x3f8] sm:$0xff]  }
  0x65   : > { %21057 = vmatpush3.bf16.msra.mxu0 %v23418_v1  ;;  %v3696_v1 = vrot.slane %v3668_v58, %v25311_v42  ;;  %v23522_v58 = vld [vmem:[%s25255_s3 + $0x4d0] sm:$0xff]  }
  0x66   : > { %21058 = vmatprep.subr.bf16.mxu0 %v23420_v3  ;;  %21079 = vmatpush3.bf16.msra.mxu1 %v23419_v2  ;;  %v23470_v2 = vld [vmem:[%s25255_s3 + $0x338] sm:$0xff]  }
  0x67   : > { %21080 = vmatprep.subr.bf16.mxu1 %v23421_v4  ;;  %v23471_v3 = vld [vmem:[%s25255_s3 + $0x3b8] sm:$0xff]   ;;  %v3697_v4 = vcombine.high %v3675_v62, %v3675_v62 }
  0x69   : > { %21059 = vmatpush3.bf16.msra.mxu0 %v23422_v5  ;;  %v23472_v5 = vld [vmem:[%s25255_s3 + $0x370] sm:$0xff]  }
  0x6a   : > { %21060 = vmatprep.subr.bf16.mxu0 %v23424_v7  ;;  %21081 = vmatpush3.bf16.msra.mxu1 %v23423_v6  ;;  %v23473_v6 = vld [vmem:[%s25255_s3 + $0x3f0] sm:$0xff]   ;;  %v3700_v7 = vcombine.high %v3696_v1, %v3696_v1 }
  0x6b   : > { %21082 = vmatprep.subr.bf16.mxu1 %v23425_v8  ;;  %v23474_v8 = vld [vmem:[%s25255_s3 + $0x330] sm:$0xff]  }
  0x6d   : > { %21061 = vmatpush3.bf16.msra.mxu0 %v23426_v9  ;;  %v23475_v9 = vld [vmem:[%s25255_s3 + $0x3b0] sm:$0xff]  }
  0x6e   : > { %21062 = vmatprep.subr.bf16.mxu0 %v23428_v11  ;;  %21083 = vmatpush3.bf16.msra.mxu1 %v23427_v10  ;;  %v23476_v10 = vld [vmem:[%s25255_s3 + $0x368] sm:$0xff]  }
  0x6f   : > { %21084 = vmatprep.subr.bf16.mxu1 %v23429_v12  ;;  %v23477_v11 = vld [vmem:[%s25255_s3 + $0x3e8] sm:$0xff]  }
  0x70   : > { %v23478_v12 = vld [vmem:[%s25255_s3 + $0x328] sm:$0xff]  }
  0x71   : > { %21063 = vmatpush3.bf16.msra.mxu0 %v23430_v13  ;;  %v23479_v13 = vld [vmem:[%s25255_s3 + $0x3a8] sm:$0xff]  }
  0x72   : > { %21064 = vmatprep.subr.bf16.mxu0 %v23432_v15  ;;  %21085 = vmatpush3.bf16.msra.mxu1 %v23431_v14  ;;  %v23480_v14 = vld [vmem:[%s25255_s3 + $0x360] sm:$0xff]  }
  0x73   : > { %21086 = vmatprep.subr.bf16.mxu1 %v23433_v16  ;;  %v23481_v15 = vld [vmem:[%s25255_s3 + $0x3e0] sm:$0xff]  }
  0x74   : > { %v23482_v16 = vld [vmem:[%s25255_s3 + $0x320] sm:$0xff]  }
  0x75   : > { %21065 = vmatpush3.bf16.msra.mxu0 %v23434_v17  ;;  %v23483_v17 = vld [vmem:[%s25255_s3 + $0x3a0] sm:$0xff]  }
  0x76   : > { %21094 = vmatprep.subr.bf16.mxu0 %v23436_v20  ;;  %21087 = vmatpush3.bf16.msra.mxu1 %v23435_v18  ;;  %v23484_v18 = vld [vmem:[%s25255_s3 + $0x358] sm:$0xff]  }
  0x77   : > { %21116 = vmatprep.subr.bf16.mxu1 %v23437_v21  ;;  %v23486_v20 = vld [vmem:[%s25255_s3 + $0x318] sm:$0xff]  }
  0x78   : > { %15182 = vmatmul.mubr.bf16.vlgmr.msra.gmra.mxu0 %v3633_v19  ;;  %v23485_v19 = vld [vmem:[%s25255_s3 + $0x3d8] sm:$0xff]  }
  0x79   : > { %21095 = vmatpush3.bf16.msra.mxu0 %v23438_v22  ;;  %15222 = vmatmul.mubr.bf16.vlgmr.msra.gmra.mxu1 %v3649_v24  ;;  %v23487_v21 = vld [vmem:[%s25255_s3 + $0x398] sm:$0xff]   ;;  %v23488_v22 = vld [vmem:[%s25255_s3 + $0x350] sm:$0xff]  }
  0x7a   : > { %21096 = vmatprep.subr.bf16.mxu0 %v23440_v25  ;;  %21117 = vmatpush3.bf16.msra.mxu1 %v23439_v23  ;;  %v23489_v23 = vld [vmem:[%s25255_s3 + $0x3d0] sm:$0xff]  }
  0x7b   : > { %21118 = vmatprep.subr.bf16.mxu1 %v23441_v26  ;;  %15261 = vmatprep.mubr.bf16.mxu0 %v3689_v57  ;;  %v23490_v24 = vld [vmem:[%s25255_s3 + $0x310] sm:$0xff]   ;;  %v23492_v26 = vld [vmem:[%s25255_s3 + $0x348] sm:$0xff]  }
  0x7c   : > { %15301 = vmatprep.mubr.bf16.mxu1 %v3699_v61  ;;  %v23491_v25 = vld [vmem:[%s25255_s3 + $0x390] sm:$0xff]   ;;  %v23525_v61 = vld [vmem:[%s25255_s3 + $0x448] sm:$0xff]  }
  0x7d   : > { %21097 = vmatpush3.bf16.msra.mxu0 %v23442_v27  ;;  %v23493_v27 = vld [vmem:[%s25255_s3 + $0x3c8] sm:$0xff]   ;;  %v23521_v57 = vld [vmem:[%s25255_s3 + $0x450] sm:$0xff]  }
  0x7e   : > { %21098 = vmatprep.subr.bf16.mxu0 %v23444_v29  ;;  %21119 = vmatpush3.bf16.msra.mxu1 %v23443_v28  ;;  %v23494_v28 = vld [vmem:[%s25255_s3 + $0x308] sm:$0xff]  }
  0x7f   : > { %21120 = vmatprep.subr.bf16.mxu1 %v23445_v30  ;;  %v23495_v29 = vld [vmem:[%s25255_s3 + $0x388] sm:$0xff]   ;;  %v23496_v30 = vld [vmem:[%s25255_s3 + $0x340] sm:$0xff]  }
  0x81   : > { %21099 = vmatpush3.bf16.msra.mxu0 %v23446_v31  ;;  %v23497_v31 = vld [vmem:[%s25255_s3 + $0x3c0] sm:$0xff]  }
  0x82   : > { %21100 = vmatprep.subr.bf16.mxu0 %v23448_v33  ;;  %21121 = vmatpush3.bf16.msra.mxu1 %v23447_v32  ;;  %v23498_v32 = vld [vmem:[%s25255_s3 + $0x300] sm:$0xff]  }
  0x83   : > { %21122 = vmatprep.subr.bf16.mxu1 %v23449_v34  ;;  %v23499_v33 = vld [vmem:[%s25255_s3 + $0x380] sm:$0xff]   ;;  %v3682_v34 = vrot.slane %v25385_v54, %v25311_v42  ;;  %v23518_v54 = vld [vmem:[%s25255_s3 + $0x4d8] sm:$0xff]  }
  0x85   : > { %21101 = vmatpush3.bf16.msra.mxu0 %v23450_v35  ;;  %v23501_v35 = vld [vmem:[%s25255_s3 + $0x478] sm:$0xff]  }
  0x86   : > { %21102 = vmatprep.subr.bf16.mxu0 %v23452_v37  ;;  %21123 = vmatpush3.bf16.msra.mxu1 %v23451_v36  ;;  %v23502_v36 = vld [vmem:[%s25255_s3 + $0x4f8] sm:$0xff]  }
  0x87   : > { %21124 = vmatprep.subr.bf16.mxu1 %v23453_v38  ;;  %v23503_v37 = vld [vmem:[%s25255_s3 + $0x438] sm:$0xff]  }
  0x88   : > { %v23504_v38 = vld [vmem:[%s25255_s3 + $0x4b8] sm:$0xff]  }
  0x89   : > { %21103 = vmatpush3.bf16.msra.mxu0 %v23454_v39  ;;  %v3698_v39 = vcombine.high %v3682_v34, %v3682_v34 }
  0x8a   : > { %21104 = vmatprep.subr.bf16.mxu0 %v23456_v41  ;;  %21125 = vmatpush3.bf16.msra.mxu1 %v23455_v40  ;;  %v23505_v40 = vld [vmem:[%s25255_s3 + $0x470] sm:$0xff]  }
  0x8b   : > { %21126 = vmatprep.subr.bf16.mxu1 %v23457_v43  ;;  %v23506_v41 = vld [vmem:[%s25255_s3 + $0x4f0] sm:$0xff]  }
  0x8c   : > { %v23507_v43 = vld [vmem:[%s25255_s3 + $0x430] sm:$0xff]  }
  0x8d   : > { %21105 = vmatpush3.bf16.msra.mxu0 %v23458_v44  ;;  %v23508_v44 = vld [vmem:[%s25255_s3 + $0x4b0] sm:$0xff]  }
  0x8e   : > { %21106 = vmatprep.subr.bf16.mxu0 %v23460_v46  ;;  %21127 = vmatpush3.bf16.msra.mxu1 %v23459_v45  ;;  %v23509_v45 = vld [vmem:[%s25255_s3 + $0x468] sm:$0xff]  }
  0x8f   : > { %21128 = vmatprep.subr.bf16.mxu1 %v23461_v48  ;;  %v23510_v46 = vld [vmem:[%s25255_s3 + $0x4e8] sm:$0xff]  }
  0x90   : > { %v23512_v48 = vld [vmem:[%s25255_s3 + $0x4a8] sm:$0xff]  }
  0x91   : > { %21107 = vmatpush3.bf16.msra.mxu0 %v23462_v51  ;;  %v23515_v51 = vld [vmem:[%s25255_s3 + $0x420] sm:$0xff]  }
  0x92   : > { %21108 = vmatprep.subr.bf16.mxu0 %v23464_v55  ;;  %21129 = vmatpush3.bf16.msra.mxu1 %v23463_v52  ;;  %v23516_v52 = vld [vmem:[%s25255_s3 + $0x4a0] sm:$0xff]   ;;  %v23519_v55 = vld [vmem:[%s25255_s3 + $0x418] sm:$0xff]  }
  0x93   : > { %21130 = vmatprep.subr.bf16.mxu1 %v23465_v56  ;;  %v23520_v56 = vld [vmem:[%s25255_s3 + $0x498] sm:$0xff]  }
  0x95   : > { %21109 = vmatpush3.bf16.msra.mxu0 %v23466_v59  ;;  %v23523_v59 = vld [vmem:[%s25255_s3 + $0x410] sm:$0xff]  }
  0x96   : > { %21138 = vmatprep.subr.bf16.mxu0 %v23468_v63  ;;  %21131 = vmatpush3.bf16.msra.mxu1 %v23467_v60  ;;  %v23524_v60 = vld [vmem:[%s25255_s3 + $0x490] sm:$0xff]   ;;  %v23526_v63 = vld [vmem:[%s25255_s3 + $0x4c8] sm:$0xff]  }
  0x97   : > { %21160 = vmatprep.subr.bf16.mxu1 %v23469_v0 }
  0x98   : > { %15262 = vmatmul.mubr.bf16.vlgmr.msra.gmra.mxu0 %v3675_v62  ;;  %v225_v62 = vld [vmem:[%s25273_s20 + $0x10] sm:$0xff] }
  0x99   : > { %21139 = vmatpush3.bf16.msra.mxu0 %v23470_v2  ;;  %15341 = vmatprep.mubr.bf16.mxu0 %v3696_v1  ;;  %v3708_v0 = vrot.slane %v225_v62, %v25311_v42  ;;  %v3701_v1 = vcombine.high %v225_v62, %v225_v62  ;;  %v23527_v2 = vld [vmem:[%s25255_s3 + $0x408] sm:$0xff]  }
  0x9a   : > { %15302 = vmatmul.mubr.bf16.vlgmr.msra.gmra.mxu1 %v3697_v4  ;;  %21140 = vmatprep.subr.bf16.mxu0 %v23472_v5  ;;  %v23576_v62 = vld [vmem:[%s25255_s3 + $0x628] sm:$0xff]  }
  0x9b   : > { %21161 = vmatpush3.bf16.msra.mxu1 %v23471_v3  ;;  %15381 = vmatprep.mubr.bf16.mxu1 %v3700_v7  ;;  %v23528_v3 = vld [vmem:[%s25255_s3 + $0x488] sm:$0xff]   ;;  %v3716_v4 = vcombine.high %v3708_v0, %v3708_v0  ;;  %v25461_v5 = vrot.slane %v3701_v1, %v25311_v42  ;;  %v23530_v7 = vld [vmem:[%s25255_s3 + $0x4c0] sm:$0xff]  }
  0x9c   : > { %21162 = vmatprep.subr.bf16.mxu1 %v23473_v6  ;;  %v23529_v6 = vld [vmem:[%s25255_s3 + $0x440] sm:$0xff]  }
  0x9d   : > { %21141 = vmatpush3.bf16.msra.mxu0 %v23474_v8  ;;  %v3738_v8 = vrot.slane %v3716_v4, %v25311_v42  ;;  %v23579_v1 = vld [vmem:[%s25255_s3 + $0x6e0] sm:$0xff]   ;;  %v23582_v4 = vld [vmem:[%s25255_s3 + $0x658] sm:$0xff]  }
  0x9e   : > { %21142 = vmatprep.subr.bf16.mxu0 %v23476_v10  ;;  %v23531_v10 = vld [vmem:[%s25255_s3 + $0x400] sm:$0xff]  }
  0x9f   : > { %21163 = vmatpush3.bf16.msra.mxu1 %v23475_v9  ;;  %v3717_v9 = vcombine.high %v25461_v5, %v25461_v5 }
  0xa0   : > { %21164 = vmatprep.subr.bf16.mxu1 %v23477_v11  ;;  %v23532_v11 = vld [vmem:[%s25255_s3 + $0x480] sm:$0xff]  }
  0xa1   : > { %21143 = vmatpush3.bf16.msra.mxu0 %v23478_v12  ;;  %v3748_v12 = vcombine.high %v3738_v8, %v3738_v8 }
  0xa2   : > { %21144 = vmatprep.subr.bf16.mxu0 %v23480_v14  ;;  %v23533_v14 = vld [vmem:[%s25255_s3 + $0x578] sm:$0xff]  }
  0xa3   : > { %21165 = vmatpush3.bf16.msra.mxu1 %v23479_v13  ;;  %v3724_v13 = vrot.slane %v3708_v0, %v25311_v42  ;;  %v23578_v0 = vld [vmem:[%s25255_s3 + $0x660] sm:$0xff]  }
  0xa4   : > { %21166 = vmatprep.subr.bf16.mxu1 %v23481_v15  ;;  %v23534_v15 = vld [vmem:[%s25255_s3 + $0x5f8] sm:$0xff]  }
  0xa5   : > { %21145 = vmatpush3.bf16.msra.mxu0 %v23482_v16  ;;  %v3745_v16 = vrot.slane %v3717_v9, %v25311_v42  ;;  %v23587_v9 = vld [vmem:[%s25255_s3 + $0x6d0] sm:$0xff]  }
  0xa6   : > { %21146 = vmatprep.subr.bf16.mxu0 %v23484_v18  ;;  %v23536_v18 = vld [vmem:[%s25255_s3 + $0x5b8] sm:$0xff]  }
  0xa7   : > { %21167 = vmatpush3.bf16.msra.mxu1 %v23483_v17  ;;  %v23535_v17 = vld [vmem:[%s25255_s3 + $0x538] sm:$0xff]  }
  0xa8   : > { %21168 = vmatprep.subr.bf16.mxu1 %v23485_v19  ;;  %v3746_v19 = vcombine.high %v3724_v13, %v3724_v13 }
  0xa9   : > { %21147 = vmatpush3.bf16.msra.mxu0 %v23486_v20  ;;  %v23537_v20 = vld [vmem:[%s25255_s3 + $0x570] sm:$0xff]  }
  0xaa   : > { %21148 = vmatprep.subr.bf16.mxu0 %v23488_v22  ;;  %v3749_v22 = vcombine.high %v3745_v16, %v3745_v16 }
  0xab   : > { %21169 = vmatpush3.bf16.msra.mxu1 %v23487_v21  ;;  %v23538_v21 = vld [vmem:[%s25255_s3 + $0x5f0] sm:$0xff]  }
  0xac   : > { %21170 = vmatprep.subr.bf16.mxu1 %v23489_v23  ;;  %v23539_v23 = vld [vmem:[%s25255_s3 + $0x530] sm:$0xff]  }
  0xad   : > { %21149 = vmatpush3.bf16.msra.mxu0 %v23490_v24  ;;  %v23540_v24 = vld [vmem:[%s25255_s3 + $0x5b0] sm:$0xff]  }
  0xae   : > { %21150 = vmatprep.subr.bf16.mxu0 %v23492_v26  ;;  %v23542_v26 = vld [vmem:[%s25255_s3 + $0x5e8] sm:$0xff]  }
  0xaf   : > { %21171 = vmatpush3.bf16.msra.mxu1 %v23491_v25  ;;  %v23541_v25 = vld [vmem:[%s25255_s3 + $0x568] sm:$0xff]  }
  0xb0   : > { %21172 = vmatprep.subr.bf16.mxu1 %v23493_v27  ;;  %v23543_v27 = vld [vmem:[%s25255_s3 + $0x528] sm:$0xff]  }
  0xb1   : > { %21151 = vmatpush3.bf16.msra.mxu0 %v23494_v28  ;;  %v23544_v28 = vld [vmem:[%s25255_s3 + $0x5a8] sm:$0xff]  }
  0xb2   : > { %21152 = vmatprep.subr.bf16.mxu0 %v23496_v30  ;;  %v23546_v30 = vld [vmem:[%s25255_s3 + $0x5e0] sm:$0xff]  }
  0xb3   : > { %21173 = vmatpush3.bf16.msra.mxu1 %v23495_v29  ;;  %v23545_v29 = vld [vmem:[%s25255_s3 + $0x560] sm:$0xff]  }
  0xb4   : > { %21174 = vmatprep.subr.bf16.mxu1 %v23497_v31  ;;  %v23547_v31 = vld [vmem:[%s25255_s3 + $0x520] sm:$0xff]  }
  0xb5   : > { %21153 = vmatpush3.bf16.msra.mxu0 %v23498_v32  ;;  %v23548_v32 = vld [vmem:[%s25255_s3 + $0x5a0] sm:$0xff]  }
  0xb6   : > { %21182 = vmatprep.subr.bf16.mxu0 %v23501_v35  ;;  %v23551_v35 = vld [vmem:[%s25255_s3 + $0x518] sm:$0xff]  }
  0xb7   : > { %21175 = vmatpush3.bf16.msra.mxu1 %v23499_v33  ;;  %v23549_v33 = vld [vmem:[%s25255_s3 + $0x558] sm:$0xff]  }
  0xb8   : > { %15342 = vmatmul.mubr.bf16.vlgmr.msra.gmra.mxu0 %v3682_v34  ;;  %21204 = vmatprep.subr.bf16.mxu1 %v23502_v36  ;;  %v23550_v34 = vld [vmem:[%s25255_s3 + $0x5d8] sm:$0xff]  }
  0xb9   : > { %21183 = vmatpush3.bf16.msra.mxu0 %v23503_v37  ;;  %15421 = vmatprep.mubr.bf16.mxu0 %v3738_v8  ;;  %v23552_v36 = vld [vmem:[%s25255_s3 + $0x598] sm:$0xff]   ;;  %v23553_v37 = vld [vmem:[%s25255_s3 + $0x550] sm:$0xff]  }
  0xba   : > { %15382 = vmatmul.mubr.bf16.vlgmr.msra.gmra.mxu1 %v3698_v39  ;;  %21184 = vmatprep.subr.bf16.mxu0 %v23505_v40  ;;  %v23555_v39 = vld [vmem:[%s25255_s3 + $0x510] sm:$0xff]  }
  0xbb   : > { %21205 = vmatpush3.bf16.msra.mxu1 %v23504_v38  ;;  %15461 = vmatprep.mubr.bf16.mxu1 %v3748_v12  ;;  %v23554_v38 = vld [vmem:[%s25255_s3 + $0x5d0] sm:$0xff]   ;;  %v23590_v12 = vld [vmem:[%s25255_s3 + $0x648] sm:$0xff]  }
  0xbc   : > { %21206 = vmatprep.subr.bf16.mxu1 %v23506_v41  ;;  %v23556_v40 = vld [vmem:[%s25255_s3 + $0x590] sm:$0xff]   ;;  %v23557_v41 = vld [vmem:[%s25255_s3 + $0x548] sm:$0xff]  }
  0xbd   : > { %21185 = vmatpush3.bf16.msra.mxu0 %v23507_v43  ;;  %v23558_v43 = vld [vmem:[%s25255_s3 + $0x5c8] sm:$0xff]   ;;  %v23586_v8 = vld [vmem:[%s25255_s3 + $0x650] sm:$0xff]  }
  0xbe   : > { %21186 = vmatprep.subr.bf16.mxu0 %v23509_v45  ;;  %v23560_v45 = vld [vmem:[%s25255_s3 + $0x588] sm:$0xff]  }
  0xbf   : > { %21207 = vmatpush3.bf16.msra.mxu1 %v23508_v44  ;;  %v23559_v44 = vld [vmem:[%s25255_s3 + $0x508] sm:$0xff]  }
  0xc0   : > { %21208 = vmatprep.subr.bf16.mxu1 %v23510_v46  ;;  %v23561_v46 = vld [vmem:[%s25255_s3 + $0x540] sm:$0xff]  }
  0xc1   : > { %21187 = vmatpush3.bf16.msra.mxu0 %v23511_v47  ;;  %v23562_v47 = vld [vmem:[%s25255_s3 + $0x5c0] sm:$0xff]  }
  0xc2   : > { %21188 = vmatprep.subr.bf16.mxu0 %v23513_v49  ;;  %v23564_v49 = vld [vmem:[%s25255_s3 + $0x580] sm:$0xff]  }
  0xc3   : > { %21209 = vmatpush3.bf16.msra.mxu1 %v23512_v48  ;;  %v23563_v48 = vld [vmem:[%s25255_s3 + $0x500] sm:$0xff]  }
  0xc4   : > { %21210 = vmatprep.subr.bf16.mxu1 %v23514_v50  ;;  %v3731_v50 = vrot.slane %v25461_v5, %v25311_v42  ;;  %v23583_v5 = vld [vmem:[%s25255_s3 + $0x6d8] sm:$0xff]  }
  0xc5   : > { %21189 = vmatpush3.bf16.msra.mxu0 %v23515_v51  ;;  %v23566_v51 = vld [vmem:[%s25255_s3 + $0x678] sm:$0xff]  }
  0xc6   : > { %21190 = vmatprep.subr.bf16.mxu0 %v23517_v53  ;;  %v23568_v53 = vld [vmem:[%s25255_s3 + $0x638] sm:$0xff]  }
  0xc7   : > { %21211 = vmatpush3.bf16.msra.mxu1 %v23516_v52  ;;  %v23567_v52 = vld [vmem:[%s25255_s3 + $0x6f8] sm:$0xff]  }
  0xc8   : > { %21212 = vmatprep.subr.bf16.mxu1 %v23518_v54  ;;  %v23569_v54 = vld [vmem:[%s25255_s3 + $0x6b8] sm:$0xff]  }
  0xc9   : > { %21191 = vmatpush3.bf16.msra.mxu0 %v23519_v55  ;;  %v3747_v55 = vcombine.high %v3731_v50, %v3731_v50 }
  0xca   : > { %21192 = vmatprep.subr.bf16.mxu0 %v23521_v57  ;;  %v23571_v57 = vld [vmem:[%s25255_s3 + $0x6f0] sm:$0xff]  }
  0xcb   : > { %21213 = vmatpush3.bf16.msra.mxu1 %v23520_v56  ;;  %v23570_v56 = vld [vmem:[%s25255_s3 + $0x670] sm:$0xff]  }
  0xcc   : > { %21214 = vmatprep.subr.bf16.mxu1 %v23522_v58  ;;  %v23572_v58 = vld [vmem:[%s25255_s3 + $0x630] sm:$0xff]  }
  0xcd   : > { %21193 = vmatpush3.bf16.msra.mxu0 %v23523_v59  ;;  %v23573_v59 = vld [vmem:[%s25255_s3 + $0x6b0] sm:$0xff]  }
  0xce   : > { %21194 = vmatprep.subr.bf16.mxu0 %v23525_v61  ;;  %v23575_v61 = vld [vmem:[%s25255_s3 + $0x6e8] sm:$0xff]  }
  0xcf   : > { %21215 = vmatpush3.bf16.msra.mxu1 %v23524_v60  ;;  %v23574_v60 = vld [vmem:[%s25255_s3 + $0x668] sm:$0xff]  }
  0xd0   : > { %21216 = vmatprep.subr.bf16.mxu1 %v23526_v63  ;;  %v23577_v63 = vld [vmem:[%s25255_s3 + $0x6a8] sm:$0xff]  }
  0xd1   : > { %21195 = vmatpush3.bf16.msra.mxu0 %v23527_v2  ;;  %v23580_v2 = vld [vmem:[%s25255_s3 + $0x620] sm:$0xff]  }
  0xd2   : > { %21196 = vmatprep.subr.bf16.mxu0 %v23529_v6  ;;  %v23584_v6 = vld [vmem:[%s25255_s3 + $0x618] sm:$0xff]  }
  0xd3   : > { %21217 = vmatpush3.bf16.msra.mxu1 %v23528_v3  ;;  %v23581_v3 = vld [vmem:[%s25255_s3 + $0x6a0] sm:$0xff]  }
  0xd4   : > { %21218 = vmatprep.subr.bf16.mxu1 %v23530_v7  ;;  %v23585_v7 = vld [vmem:[%s25255_s3 + $0x698] sm:$0xff]  }
  0xd5   : > { %21197 = vmatpush3.bf16.msra.mxu0 %v23531_v10  ;;  %v23588_v10 = vld [vmem:[%s25255_s3 + $0x610] sm:$0xff]  }
  0xd6   : > { %21226 = vmatprep.subr.bf16.mxu0 %v23533_v14  ;;  %v226_v14 = vld [vmem:[%s25273_s20 + $0x18] sm:$0xff] }
  0xd7   : > { %21219 = vmatpush3.bf16.msra.mxu1 %v23532_v11  ;;  %v23589_v11 = vld [vmem:[%s25255_s3 + $0x690] sm:$0xff]  }
  0xd8   : > { %15422 = vmatmul.mubr.bf16.vlgmr.msra.gmra.mxu0 %v3724_v13  ;;  %21248 = vmatprep.subr.bf16.mxu1 %v23534_v15  ;;  %v23591_v13 = vld [vmem:[%s25255_s3 + $0x6c8] sm:$0xff]  }
  0xd9   : > { %21227 = vmatpush3.bf16.msra.mxu0 %v23535_v17  ;;  %15501 = vmatprep.mubr.bf16.mxu0 %v3745_v16  ;;  %v23592_v15 = vld [vmem:[%s25255_s3 + $0x608] sm:$0xff]   ;;  %v3757_v16 = vrot.slane %v226_v14, %v25311_v42  ;;  %v3750_v17 = vcombine.high %v226_v14, %v226_v14  ;;  %v23632_v14 = vld [vmem:[%s25255_s3 + $0x8f8] sm:$0xff]  }
  0xda   : > { %15462 = vmatmul.mubr.bf16.vlgmr.msra.gmra.mxu1 %v3746_v19  ;;  %21228 = vmatprep.subr.bf16.mxu0 %v23537_v20  ;;  %v23594_v19 = vld [vmem:[%s25255_s3 + $0x640] sm:$0xff]  }
  0xdb   : > { %21249 = vmatpush3.bf16.msra.mxu1 %v23536_v18  ;;  %15541 = vmatprep.mubr.bf16.mxu1 %v3749_v22  ;;  %v23593_v18 = vld [vmem:[%s25255_s3 + $0x688] sm:$0xff]   ;;  %v3765_v20 = vcombine.high %v3757_v16, %v3757_v16  ;;  %v23595_v22 = vld [vmem:[%s25255_s3 + $0x6c0] sm:$0xff]  }
  0xdc   : > { %21250 = vmatprep.subr.bf16.mxu1 %v23538_v21  ;;  %v25538_v21 = vrot.slane %v3750_v17, %v25311_v42 }
  0xdd   : > { %21229 = vmatpush3.bf16.msra.mxu0 %v23539_v23  ;;  %v23596_v23 = vld [vmem:[%s25255_s3 + $0x600] sm:$0xff]  }
  0xde   : > { %21230 = vmatprep.subr.bf16.mxu0 %v23541_v25  ;;  %v3766_v25 = vcombine.high %v25538_v21, %v25538_v21 }
  0xdf   : > { %21251 = vmatpush3.bf16.msra.mxu1 %v23540_v24  ;;  %v3787_v24 = vrot.slane %v3765_v20, %v25311_v42 }
  0xe0   : > { %21252 = vmatprep.subr.bf16.mxu1 %v23542_v26  ;;  %v23597_v26 = vld [vmem:[%s25255_s3 + $0x680] sm:$0xff]  }
  0xe1   : > { %21231 = vmatpush3.bf16.msra.mxu0 %v23543_v27  ;;  %v3797_v27 = vcombine.high %v3787_v24, %v3787_v24 }
  0xe2   : > { %21232 = vmatprep.subr.bf16.mxu0 %v23545_v29  ;;  %v23598_v29 = vld [vmem:[%s25255_s3 + $0x778] sm:$0xff]  }
  0xe3   : > { %21253 = vmatpush3.bf16.msra.mxu1 %v23544_v28  ;;  %v3773_v28 = vrot.slane %v3757_v16, %v25311_v42  ;;  %v23634_v16 = vld [vmem:[%s25255_s3 + $0x8b8] sm:$0xff]  }
  0xe4   : > { %21254 = vmatprep.subr.bf16.mxu1 %v23546_v30  ;;  %v23599_v30 = vld [vmem:[%s25255_s3 + $0x7f8] sm:$0xff]  }
  0xe5   : > { %21233 = vmatpush3.bf16.msra.mxu0 %v23547_v31  ;;  %v3794_v31 = vrot.slane %v3766_v25, %v25311_v42  ;;  %v23639_v25 = vld [vmem:[%s25255_s3 + $0x868] sm:$0xff]  }
  0xe6   : > { %21234 = vmatprep.subr.bf16.mxu0 %v23549_v33  ;;  %v23601_v33 = vld [vmem:[%s25255_s3 + $0x7b8] sm:$0xff]  }
  0xe7   : > { %21255 = vmatpush3.bf16.msra.mxu1 %v23548_v32  ;;  %v23600_v32 = vld [vmem:[%s25255_s3 + $0x738] sm:$0xff]  }
  0xe8   : > { %21256 = vmatprep.subr.bf16.mxu1 %v23550_v34  ;;  %v3795_v34 = vcombine.high %v3773_v28, %v3773_v28 }
  0xe9   : > { %21235 = vmatpush3.bf16.msra.mxu0 %v23551_v35  ;;  %v23602_v35 = vld [vmem:[%s25255_s3 + $0x770] sm:$0xff]  }
  0xea   : > { %21236 = vmatprep.subr.bf16.mxu0 %v23553_v37  ;;  %v3798_v37 = vcombine.high %v3794_v31, %v3794_v31 }
  0xeb   : > { %21257 = vmatpush3.bf16.msra.mxu1 %v23552_v36  ;;  %v23603_v36 = vld [vmem:[%s25255_s3 + $0x7f0] sm:$0xff]  }
  0xec   : > { %21258 = vmatprep.subr.bf16.mxu1 %v23554_v38 }
  0xed   : > { %21237 = vmatpush3.bf16.msra.mxu0 %v23555_v39  ;;  %v23604_v39 = vld [vmem:[%s25255_s3 + $0x730] sm:$0xff]  }
  0xee   : > { %21238 = vmatprep.subr.bf16.mxu0 %v23557_v41 }
  0xef   : > { %21259 = vmatpush3.bf16.msra.mxu1 %v23556_v40  ;;  %v23605_v40 = vld [vmem:[%s25255_s3 + $0x7b0] sm:$0xff]  }
  0xf0   : > { %21260 = vmatprep.subr.bf16.mxu1 %v23558_v43 }
  0xf1   : > { %21239 = vmatpush3.bf16.msra.mxu0 %v23559_v44  ;;  %v23606_v44 = vld [vmem:[%s25255_s3 + $0x768] sm:$0xff]  }
  0xf2   : > { %21240 = vmatprep.subr.bf16.mxu0 %v23561_v46  ;;  %v23607_v46 = vld [vmem:[%s25255_s3 + $0x7e8] sm:$0xff]  }
  0xf3   : > { %21261 = vmatpush3.bf16.msra.mxu1 %v23560_v45 }
  0xf4   : > { %21262 = vmatprep.subr.bf16.mxu1 %v23562_v47 }
  0xf5   : > { %21241 = vmatpush3.bf16.msra.mxu0 %v23563_v48 }
  0xf6   : > { %21270 = vmatprep.subr.bf16.mxu0 %v23566_v51  ;;  %v23609_v51 = vld [vmem:[%s25255_s3 + $0x7a8] sm:$0xff]  }
  0xf7   : > { %21263 = vmatpush3.bf16.msra.mxu1 %v23564_v49  ;;  %v23608_v49 = vld [vmem:[%s25255_s3 + $0x728] sm:$0xff]  }
  0xf8   : > { %15502 = vmatmul.mubr.bf16.vlgmr.msra.gmra.mxu0 %v3731_v50  ;;  %21292 = vmatprep.subr.bf16.mxu1 %v23567_v52 }
  0xf9   : > { %21271 = vmatpush3.bf16.msra.mxu0 %v23568_v53  ;;  %15581 = vmatprep.mubr.bf16.mxu0 %v3787_v24 }
  0xfa   : > { %15542 = vmatmul.mubr.bf16.vlgmr.msra.gmra.mxu1 %v3747_v55  ;;  %21272 = vmatprep.subr.bf16.mxu0 %v23570_v56  ;;  %v23611_v56 = vld [vmem:[%s25255_s3 + $0x7e0] sm:$0xff]  }
  0xfb   : > { %21293 = vmatpush3.bf16.msra.mxu1 %v23569_v54  ;;  %15621 = vmatprep.mubr.bf16.mxu1 %v3797_v27  ;;  %v23610_v54 = vld [vmem:[%s25255_s3 + $0x760] sm:$0xff]   ;;  %v23640_v27 = vld [vmem:[%s25255_s3 + $0x8e8] sm:$0xff]  }
  0xfc   : > { %21294 = vmatprep.subr.bf16.mxu1 %v23571_v57 }
  0xfd   : > { %21273 = vmatpush3.bf16.msra.mxu0 %v23572_v58  ;;  %v23612_v58 = vld [vmem:[%s25255_s3 + $0x720] sm:$0xff]  }
  0xfe   : > { %21274 = vmatprep.subr.bf16.mxu0 %v23574_v60  ;;  %v23614_v60 = vld [vmem:[%s25255_s3 + $0x758] sm:$0xff]  }
  0xff   : > { %21295 = vmatpush3.bf16.msra.mxu1 %v23573_v59  ;;  %v23613_v59 = vld [vmem:[%s25255_s3 + $0x7a0] sm:$0xff]  }
 0x100   : > { %21296 = vmatprep.subr.bf16.mxu1 %v23575_v61  ;;  %v23615_v61 = vld [vmem:[%s25255_s3 + $0x7d8] sm:$0xff]  }
 0x101   : > { %21275 = vmatpush3.bf16.msra.mxu0 %v23576_v62  ;;  %v23616_v62 = vld [vmem:[%s25255_s3 + $0x718] sm:$0xff]  }
 0x102   : > { %21276 = vmatprep.subr.bf16.mxu0 %v23578_v0  ;;  %v23618_v0 = vld [vmem:[%s25255_s3 + $0x750] sm:$0xff]  }
 0x103   : > { %21297 = vmatpush3.bf16.msra.mxu1 %v23577_v63  ;;  %v23617_v63 = vld [vmem:[%s25255_s3 + $0x798] sm:$0xff]  }
 0x104   : > { %21298 = vmatprep.subr.bf16.mxu1 %v23579_v1  ;;  %v23619_v1 = vld [vmem:[%s25255_s3 + $0x7d0] sm:$0xff]  }
 0x105   : > { %21277 = vmatpush3.bf16.msra.mxu0 %v23580_v2  ;;  %v23620_v2 = vld [vmem:[%s25255_s3 + $0x710] sm:$0xff]  }
 0x106   : > { %21278 = vmatprep.subr.bf16.mxu0 %v23582_v4  ;;  %v23622_v4 = vld [vmem:[%s25255_s3 + $0x748] sm:$0xff]  }
 0x107   : > { %21299 = vmatpush3.bf16.msra.mxu1 %v23581_v3  ;;  %v23621_v3 = vld [vmem:[%s25255_s3 + $0x790] sm:$0xff]  }
 0x108   : > { %21300 = vmatprep.subr.bf16.mxu1 %v23583_v5  ;;  %v23623_v5 = vld [vmem:[%s25255_s3 + $0x7c8] sm:$0xff]  }
 0x109   : > { %21279 = vmatpush3.bf16.msra.mxu0 %v23584_v6  ;;  %v23624_v6 = vld [vmem:[%s25255_s3 + $0x708] sm:$0xff]  }
 0x10a   : > { %21280 = vmatprep.subr.bf16.mxu0 %v23586_v8  ;;  %v23626_v8 = vld [vmem:[%s25255_s3 + $0x740] sm:$0xff]  }
 0x10b   : > { %21301 = vmatpush3.bf16.msra.mxu1 %v23585_v7  ;;  %v23625_v7 = vld [vmem:[%s25255_s3 + $0x788] sm:$0xff]  }
 0x10c   : > { %21302 = vmatprep.subr.bf16.mxu1 %v23587_v9  ;;  %v23627_v9 = vld [vmem:[%s25255_s3 + $0x7c0] sm:$0xff]  }
 0x10d   : > { %21281 = vmatpush3.bf16.msra.mxu0 %v23588_v10  ;;  %v23628_v10 = vld [vmem:[%s25255_s3 + $0x700] sm:$0xff]  }
 0x10e   : > { %21282 = vmatprep.subr.bf16.mxu0 %v23590_v12  ;;  %v3780_v12 = vrot.slane %v25538_v21, %v25311_v42  ;;  %v23637_v21 = vld [vmem:[%s25255_s3 + $0x830] sm:$0xff]  }
 0x10f   : > { %21303 = vmatpush3.bf16.msra.mxu1 %v23589_v11  ;;  %v23629_v11 = vld [vmem:[%s25255_s3 + $0x780] sm:$0xff]  }
 0x110   : > { %21304 = vmatprep.subr.bf16.mxu1 %v23591_v13  ;;  %v23631_v13 = vld [vmem:[%s25255_s3 + $0x878] sm:$0xff]   ;;  %v3796_v17 = vcombine.high %v3780_v12, %v3780_v12 }
 0x111   : > { %21283 = vmatpush3.bf16.msra.mxu0 %v23592_v15  ;;  %v23633_v15 = vld [vmem:[%s25255_s3 + $0x838] sm:$0xff]  }
 0x112   : > { %21284 = vmatprep.subr.bf16.mxu0 %v23594_v19  ;;  %v23636_v19 = vld [vmem:[%s25255_s3 + $0x8f0] sm:$0xff]  }
 0x113   : > { %21305 = vmatpush3.bf16.msra.mxu1 %v23593_v18  ;;  %v23635_v18 = vld [vmem:[%s25255_s3 + $0x870] sm:$0xff]  }
 0x114   : > { %21306 = vmatprep.subr.bf16.mxu1 %v23595_v22  ;;  %v23638_v22 = vld [vmem:[%s25255_s3 + $0x8b0] sm:$0xff]  }
 0x115   : > { %21285 = vmatpush3.bf16.msra.mxu0 %v23596_v23 }
 0x116   : > { %21314 = vmatprep.subr.bf16.mxu0 %v23598_v29 }
 0x117   : > { %21307 = vmatpush3.bf16.msra.mxu1 %v23597_v26 }
 0x118   : > { %v21022_v38 = vpop.f32.mrf.mxu0  ;;  %15582 = vmatmul.mubr.bf16.vlgmr.msra.gmra.mxu0 %v3773_v28  ;;  %21336 = vmatprep.subr.bf16.mxu1 %v23599_v30  ;;  %v23641_v30 = vld [vmem:[%s25255_s3 + $0x828] sm:$0xff]  }
 0x119   : > { %21315 = vmatpush3.bf16.msra.mxu0 %v23600_v32  ;;  %15661 = vmatprep.mubr.bf16.mxu0 %v3794_v31  ;;  %v21044_v41 = vpop.f32.mrf.mxu1 }
 0x11a   : > { %15622 = vmatmul.mubr.bf16.vlgmr.msra.gmra.mxu1 %v3795_v34  ;;  %v21023_v43 = vpop.f32.mrf.mxu0  ;;  %21316 = vmatprep.subr.bf16.mxu0 %v23602_v35 }
 0x11b   : > { %21337 = vmatpush3.bf16.msra.mxu1 %v23601_v33  ;;  %v21024_v45 = vadd.f32 %v21023_v43, %v21022_v38  ;;  %15701 = vmatprep.mubr.bf16.mxu1 %v3798_v37  ;;  %v21045_v47 = vpop.f32.mrf.mxu1  ;;  %v23642_v33 = vld [vmem:[%s25255_s3 + $0x8a8] sm:$0xff]   ;;  %v23644_v38 = vld [vmem:[%s25255_s3 + $0x8e0] sm:$0xff]   ;;  %v23647_v43 = vld [vmem:[%s25255_s3 + $0x858] sm:$0xff]  }
 0x11c   : > { %v21025_v48 = vpop.f32.mrf.mxu0  ;;  %21338 = vmatprep.subr.bf16.mxu1 %v23603_v36  ;;  %v21046_v50 = vadd.f32 %v21045_v47, %v21044_v41  ;;  %v23643_v36 = vld [vmem:[%s25255_s3 + $0x860] sm:$0xff]   ;;  %v23651_v47 = vld [vmem:[%s25255_s3 + $0x850] sm:$0xff]  }
 0x11d   : > { %21317 = vmatpush3.bf16.msra.mxu0 %v23604_v39  ;;  %v21047_v52 = vpop.f32.mrf.mxu1  ;;  %v23646_v41 = vld [vmem:[%s25255_s3 + $0x8a0] sm:$0xff]   ;;  %v23652_v48 = vld [vmem:[%s25255_s3 + $0x8d0] sm:$0xff]  }
 0x11e   : > { %v21026_v53 = vpop.f32.mrf.mxu0  ;;  %21318 = vmatprep.subr.bf16.mxu0 %v23606_v44  ;;  %v25561_v55 = vadd.f32 %v21046_v50, %v21024_v45  ;;  %v23648_v44 = vld [vmem:[%s25255_s3 + $0x8d8] sm:$0xff]   ;;  %v23654_v50 = vld [vmem:[%s25255_s3 + $0x890] sm:$0xff]   ;;  %v23656_v52 = vld [vmem:[%s25255_s3 + $0x8c8] sm:$0xff]  }
 0x11f   : > { %21339 = vmatpush3.bf16.msra.mxu1 %v23605_v40  ;;  %v21048_v57 = vpop.f32.mrf.mxu1  ;;  %v23645_v40 = vld [vmem:[%s25255_s3 + $0x820] sm:$0xff]   ;;  %v23649_v45 = vld [vmem:[%s25255_s3 + $0x818] sm:$0xff]  }
 0x120   : > { %21340 = vmatprep.subr.bf16.mxu1 %v23607_v46  ;;  %v23650_v46 = vld [vmem:[%s25255_s3 + $0x898] sm:$0xff]   ;;  %v23658_v57 = vld [vmem:[%s25255_s3 + $0x888] sm:$0xff]  }
 0x121   : > { %21319 = vmatpush3.bf16.msra.mxu0 %v23608_v49  ;;  %v23653_v49 = vld [vmem:[%s25255_s3 + $0x810] sm:$0xff]   ;;  %v227_v53 = vld [vmem:[%s25273_s20 + $0x20] sm:$0xff] }
 0x122   : > { %21320 = vmatprep.subr.bf16.mxu0 %v23610_v54  ;;  %v23657_v54 = vld [vmem:[%s25255_s3 + $0x808] sm:$0xff]  }
 0x123   : > { %21341 = vmatpush3.bf16.msra.mxu1 %v23609_v51  ;;  %v23655_v51 = vld [vmem:[%s25255_s3 + $0x848] sm:$0xff]  }
 0x124   : > { %21342 = vmatprep.subr.bf16.mxu1 %v23611_v56  ;;  %v3799_v56 = vcombine.high %v227_v53, %v227_v53 }
 0x125   : > { %21321 = vmatpush3.bf16.msra.mxu0 %v23612_v58  ;;  %v23659_v58 = vld [vmem:[%s25255_s3 + $0x840] sm:$0xff]  }
 0x126   : > { %21322 = vmatprep.subr.bf16.mxu0 %v23614_v60  ;;  %v25619_v60 = vrot.slane %v3799_v56, %v25311_v42  ;;  %v23699_v56 = vld [vmem:[%s25255_s3 + $0xab8] sm:$0xff]  }
 0x127   : > { %21343 = vmatpush3.bf16.msra.mxu1 %v23613_v59 }
 0x128   : > { %21344 = vmatprep.subr.bf16.mxu1 %v23615_v61  ;;  %v23660_v61 = vld [vmem:[%s25255_s3 + $0x8c0] sm:$0xff]  }
 0x129   : > { %21323 = vmatpush3.bf16.msra.mxu0 %v23616_v62  ;;  %v23661_v62 = vld [vmem:[%s25255_s3 + $0x800] sm:$0xff]  }
 0x12a   : > { %21324 = vmatprep.subr.bf16.mxu0 %v23618_v0  ;;  %v3815_v0 = vcombine.high %v25619_v60, %v25619_v60 }
 0x12b   : > { %21345 = vmatpush3.bf16.msra.mxu1 %v23617_v63 }
 0x12c   : > { %21346 = vmatprep.subr.bf16.mxu1 %v23619_v1  ;;  %v23662_v1 = vld [vmem:[%s25255_s3 + $0x880] sm:$0xff]  }
 0x12d   : > { %21325 = vmatpush3.bf16.msra.mxu0 %v23620_v2 }
 0x12e   : > { %21326 = vmatprep.subr.bf16.mxu0 %v23622_v4  ;;  %v23663_v4 = vld [vmem:[%s25255_s3 + $0x978] sm:$0xff]  }
 0x12f   : > { %21347 = vmatpush3.bf16.msra.mxu1 %v23621_v3 }
 0x130   : > { %21348 = vmatprep.subr.bf16.mxu1 %v23623_v5  ;;  %v23664_v5 = vld [vmem:[%s25255_s3 + $0x9f8] sm:$0xff]  }
 0x131   : > { %21327 = vmatpush3.bf16.msra.mxu0 %v23624_v6  ;;  %v3843_v6 = vrot.slane %v3815_v0, %v25311_v42 }
 0x132   : > { %21328 = vmatprep.subr.bf16.mxu0 %v23626_v8  ;;  %v23666_v8 = vld [vmem:[%s25255_s3 + $0x9b8] sm:$0xff]  }
 0x133   : > { %21349 = vmatpush3.bf16.msra.mxu1 %v23625_v7  ;;  %v23665_v7 = vld [vmem:[%s25255_s3 + $0x938] sm:$0xff]  }
 0x134   : > { %21350 = vmatprep.subr.bf16.mxu1 %v23627_v9 }
 0x135   : > { %21329 = vmatpush3.bf16.msra.mxu0 %v23628_v10  ;;  %v23667_v10 = vld [vmem:[%s25255_s3 + $0x970] sm:$0xff]  }
 0x136   : > { %21358 = vmatprep.subr.bf16.mxu0 %v23631_v13 }
 0x137   : > { %21351 = vmatpush3.bf16.msra.mxu1 %v23629_v11  ;;  %v23668_v11 = vld [vmem:[%s25255_s3 + $0x9f0] sm:$0xff]  }
 0x138   : > { %v21066_v20 = vpop.f32.mrf.mxu0  ;;  %15662 = vmatmul.mubr.bf16.vlgmr.msra.gmra.mxu0 %v3780_v12  ;;  %21380 = vmatprep.subr.bf16.mxu1 %v23632_v14  ;;  %v3847_v12 = vcombine.high %v3843_v6, %v3843_v6  ;;  %v23669_v14 = vld [vmem:[%s25255_s3 + $0x930] sm:$0xff]  }
 0x139   : > { %21359 = vmatpush3.bf16.msra.mxu0 %v23633_v15  ;;  %v21088_v23 = vpop.f32.mrf.mxu1  ;;  %v23670_v15 = vld [vmem:[%s25255_s3 + $0x9b0] sm:$0xff]  }
 0x13a   : > { %15702 = vmatmul.mubr.bf16.vlgmr.msra.gmra.mxu1 %v3796_v17  ;;  %v21067_v24 = vpop.f32.mrf.mxu0  ;;  %21360 = vmatprep.subr.bf16.mxu0 %v23635_v18  ;;  %v23671_v18 = vld [vmem:[%s25255_s3 + $0x968] sm:$0xff]  }
 0x13b   : > { %21381 = vmatpush3.bf16.msra.mxu1 %v23634_v16  ;;  %v21068_v26 = vadd.f32 %v21067_v24, %v21066_v20  ;;  %v21089_v28 = vpop.f32.mrf.mxu1  ;;  %v23672_v20 = vld [vmem:[%s25255_s3 + $0x9e8] sm:$0xff]  }
 0x13c   : > { %v21069_v29 = vpop.f32.mrf.mxu0  ;;  %21382 = vmatprep.subr.bf16.mxu1 %v23636_v19  ;;  %v21090_v32 = vadd.f32 %v21089_v28, %v21088_v23  ;;  %v23673_v23 = vld [vmem:[%s25255_s3 + $0x928] sm:$0xff]  }
 0x13d   : > { %v15184_v31 = vadd.f32 %v21068_v26, %v25561_v55  ;;  %21361 = vmatpush3.bf16.msra.mxu0 %v23637_v21  ;;  %v21091_v34 = vpop.f32.mrf.mxu1  ;;  %v3806_v55 = vrot.slane %v227_v53, %v25311_v42  ;;  %v23674_v26 = vld [vmem:[%s25255_s3 + $0x9a8] sm:$0xff]   ;;  %v23675_v29 = vld [vmem:[%s25255_s3 + $0x960] sm:$0xff]   ;;  %v23696_v53 = vld [vmem:[%s25255_s3 + $0xa78] sm:$0xff]  }
 0x13e   : > { %v21070_v35 = vpop.f32.mrf.mxu0  ;;  %21362 = vmatprep.subr.bf16.mxu0 %v23639_v25  ;;  %v23678_v34 = vld [vmem:[%s25255_s3 + $0x9a0] sm:$0xff]  }
 0x13f   : > { %v25598_v37 = vadd.f32 %v21090_v32, %v15184_v31  ;;  %21383 = vmatpush3.bf16.msra.mxu1 %v23638_v22  ;;  %v21092_v39 = vpop.f32.mrf.mxu1  ;;  %v3814_v59 = vcombine.high %v3806_v55, %v3806_v55  ;;  %v3822_v3 = vrot.slane %v3806_v55, %v25311_v42  ;;  %v23676_v31 = vld [vmem:[%s25255_s3 + $0x9e0] sm:$0xff]   ;;  %v23679_v35 = vld [vmem:[%s25255_s3 + $0x958] sm:$0xff]  }
 0x140   : > { %21384 = vmatprep.subr.bf16.mxu1 %v23640_v27  ;;  %v23683_v39 = vld [vmem:[%s25255_s3 + $0x950] sm:$0xff]   ;;  %v23698_v55 = vld [vmem:[%s25255_s3 + $0xa38] sm:$0xff]  }
 0x141   : > { %21363 = vmatpush3.bf16.msra.mxu0 %v23641_v30  ;;  %v3836_v63 = vrot.slane %v3814_v59, %v25311_v42  ;;  %v3844_v9 = vcombine.high %v3822_v3, %v3822_v3  ;;  %v23701_v59 = vld [vmem:[%s25255_s3 + $0xaf0] sm:$0xff]  }
 0x142   : > { %21364 = vmatprep.subr.bf16.mxu0 %v23643_v36  ;;  %v23680_v36 = vld [vmem:[%s25255_s3 + $0x9d8] sm:$0xff]  }
 0x143   : > { %21385 = vmatpush3.bf16.msra.mxu1 %v23642_v33  ;;  %15741 = vmatprep.mubr.bf16.mxu0 %v3836_v63  ;;  %v3846_v2 = vcombine.high %v3836_v63, %v3836_v63  ;;  %v23677_v33 = vld [vmem:[%s25255_s3 + $0x920] sm:$0xff]  }
 0x144   : > { %21386 = vmatprep.subr.bf16.mxu1 %v23644_v38  ;;  %v23682_v38 = vld [vmem:[%s25255_s3 + $0x998] sm:$0xff]  }
 0x145   : > { %21365 = vmatpush3.bf16.msra.mxu0 %v23645_v40  ;;  %15781 = vmatprep.mubr.bf16.mxu1 %v3846_v2  ;;  %v23684_v40 = vld [vmem:[%s25255_s3 + $0x9d0] sm:$0xff]  }
 0x146   : > { %21366 = vmatprep.subr.bf16.mxu0 %v23647_v43  ;;  %v23686_v43 = vld [vmem:[%s25255_s3 + $0x990] sm:$0xff]  }
 0x147   : > { %21387 = vmatpush3.bf16.msra.mxu1 %v23646_v41  ;;  %v23685_v41 = vld [vmem:[%s25255_s3 + $0x910] sm:$0xff]  }
 0x148   : > { %21388 = vmatprep.subr.bf16.mxu1 %v23648_v44  ;;  %v23687_v44 = vld [vmem:[%s25255_s3 + $0x948] sm:$0xff]  }
 0x149   : > { %21367 = vmatpush3.bf16.msra.mxu0 %v23649_v45  ;;  %v23688_v45 = vld [vmem:[%s25255_s3 + $0x9c8] sm:$0xff]  }
 0x14a   : > { %21368 = vmatprep.subr.bf16.mxu0 %v23651_v47  ;;  %v23690_v47 = vld [vmem:[%s25255_s3 + $0x988] sm:$0xff]  }
 0x14b   : > { %21389 = vmatpush3.bf16.msra.mxu1 %v23650_v46  ;;  %v23689_v46 = vld [vmem:[%s25255_s3 + $0x908] sm:$0xff]  }
 0x14c   : > { %21390 = vmatprep.subr.bf16.mxu1 %v23652_v48  ;;  %v23691_v48 = vld [vmem:[%s25255_s3 + $0x940] sm:$0xff]  }
 0x14d   : > { %21369 = vmatpush3.bf16.msra.mxu0 %v23653_v49  ;;  %v23692_v49 = vld [vmem:[%s25255_s3 + $0x9c0] sm:$0xff]  }
 0x14e   : > { %21370 = vmatprep.subr.bf16.mxu0 %v23655_v51  ;;  %v23694_v51 = vld [vmem:[%s25255_s3 + $0x980] sm:$0xff]  }
 0x14f   : > { %21391 = vmatpush3.bf16.msra.mxu1 %v23654_v50  ;;  %v23693_v50 = vld [vmem:[%s25255_s3 + $0x900] sm:$0xff]  }
 0x150   : > { %21392 = vmatprep.subr.bf16.mxu1 %v23656_v52  ;;  %v3829_v52 = vrot.slane %v25619_v60, %v25311_v42  ;;  %v23702_v60 = vld [vmem:[%s25255_s3 + $0xa30] sm:$0xff]  }
 0x151   : > { %21371 = vmatpush3.bf16.msra.mxu0 %v23657_v54  ;;  %v23697_v54 = vld [vmem:[%s25255_s3 + $0xaf8] sm:$0xff]  }
 0x152   : > { %21372 = vmatprep.subr.bf16.mxu0 %v23659_v58  ;;  %v23700_v58 = vld [vmem:[%s25255_s3 + $0xa70] sm:$0xff]  }
 0x153   : > { %21393 = vmatpush3.bf16.msra.mxu1 %v23658_v57  ;;  %v3845_v57 = vcombine.high %v3829_v52, %v3829_v52 }
 0x154   : > { %21394 = vmatprep.subr.bf16.mxu1 %v23660_v61 }
 0x155   : > { %21373 = vmatpush3.bf16.msra.mxu0 %v23661_v62  ;;  %v23703_v62 = vld [vmem:[%s25255_s3 + $0xab0] sm:$0xff]  }
 0x156   : > { %21402 = vmatprep.subr.bf16.mxu0 %v23663_v4 }
 0x157   : > { %21395 = vmatpush3.bf16.msra.mxu1 %v23662_v1  ;;  %v23704_v1 = vld [vmem:[%s25255_s3 + $0xa68] sm:$0xff]  }
 0x158   : > { %v21110_v13 = vpop.f32.mrf.mxu0  ;;  %15742 = vmatmul.mubr.bf16.vlgmr.msra.gmra.mxu0 %v3822_v3  ;;  %21424 = vmatprep.subr.bf16.mxu1 %v23664_v5  ;;  %v23705_v3 = vld [vmem:[%s25255_s3 + $0xae8] sm:$0xff]  }
 0x159   : > { %21403 = vmatpush3.bf16.msra.mxu0 %v23665_v7  ;;  %15821 = vmatprep.mubr.bf16.mxu0 %v3843_v6  ;;  %v23706_v6 = vld [vmem:[%s25255_s3 + $0xa28] sm:$0xff]  }
 0x15a   : > { %v21132_v16 = vpop.f32.mrf.mxu1  ;;  %15782 = vmatmul.mubr.bf16.vlgmr.msra.gmra.mxu1 %v3844_v9  ;;  %v21111_v17 = vpop.f32.mrf.mxu0  ;;  %21404 = vmatprep.subr.bf16.mxu0 %v23667_v10  ;;  %v23707_v9 = vld [vmem:[%s25255_s3 + $0xaa8] sm:$0xff]  }
 0x15b   : > { %21425 = vmatpush3.bf16.msra.mxu1 %v23666_v8  ;;  %v21112_v19 = vadd.f32 %v21111_v17, %v21110_v13  ;;  %15861 = vmatprep.mubr.bf16.mxu1 %v3847_v12  ;;  %v23708_v12 = vld [vmem:[%s25255_s3 + $0xa60] sm:$0xff]  }
 0x15c   : > { %v21133_v21 = vpop.f32.mrf.mxu1  ;;  %v21113_v22 = vpop.f32.mrf.mxu0  ;;  %21426 = vmatprep.subr.bf16.mxu1 %v23668_v11  ;;  %v23711_v17 = vld [vmem:[%s25255_s3 + $0xaa0] sm:$0xff]  }
 0x15d   : > { %v15264_v24 = vadd.f32 %v21112_v19, %v25598_v37  ;;  %v21134_v25 = vadd.f32 %v21133_v21, %v21132_v16  ;;  %21405 = vmatpush3.bf16.msra.mxu0 %v23669_v14  ;;  %v23681_v37 = vld [vmem:[%s25255_s3 + $0x918] sm:$0xff]   ;;  %v23709_v14 = vld [vmem:[%s25255_s3 + $0xae0] sm:$0xff]   ;;  %v23716_v22 = vld [vmem:[%s25255_s3 + $0xa50] sm:$0xff]  }
 0x15e   : > { %v21135_v27 = vpop.f32.mrf.mxu1  ;;  %v21114_v28 = vpop.f32.mrf.mxu0  ;;  %21406 = vmatprep.subr.bf16.mxu0 %v23671_v18  ;;  %v23710_v16 = vld [vmem:[%s25255_s3 + $0xa20] sm:$0xff]   ;;  %v23712_v18 = vld [vmem:[%s25255_s3 + $0xa58] sm:$0xff]  }
 0x15f   : > { %v25643_v30 = vadd.f32 %v21134_v25, %v15264_v24  ;;  %21427 = vmatpush3.bf16.msra.mxu1 %v23670_v15  ;;  %v23713_v19 = vld [vmem:[%s25255_s3 + $0xad8] sm:$0xff]   ;;  %v23718_v24 = vld [vmem:[%s25255_s3 + $0xa10] sm:$0xff]   ;;  %v23721_v27 = vld [vmem:[%s25255_s3 + $0xac8] sm:$0xff]  }
 0x160   : > { %v21136_v32 = vpop.f32.mrf.mxu1  ;;  %21428 = vmatprep.subr.bf16.mxu1 %v23672_v20  ;;  %v23714_v20 = vld [vmem:[%s25255_s3 + $0xa18] sm:$0xff]   ;;  %v23719_v25 = vld [vmem:[%s25255_s3 + $0xa90] sm:$0xff]   ;;  %v228_v28 = vld [vmem:[%s25273_s20 + $0x28] sm:$0xff] }
 0x161   : > { %21407 = vmatpush3.bf16.msra.mxu0 %v23673_v23  ;;  %v23715_v21 = vld [vmem:[%s25255_s3 + $0xa98] sm:$0xff]   ;;  %v23717_v23 = vld [vmem:[%s25255_s3 + $0xad0] sm:$0xff]   ;;  %v23723_v32 = vld [vmem:[%s25255_s3 + $0xa88] sm:$0xff]  }
 0x162   : > { %21408 = vmatprep.subr.bf16.mxu0 %v23675_v29  ;;  %v23722_v29 = vld [vmem:[%s25255_s3 + $0xa08] sm:$0xff]  }
 0x163   : > { %21429 = vmatpush3.bf16.msra.mxu1 %v23674_v26  ;;  %v23720_v26 = vld [vmem:[%s25255_s3 + $0xa48] sm:$0xff]  }
 0x164   : > { %21430 = vmatprep.subr.bf16.mxu1 %v23676_v31  ;;  %v3848_v31 = vcombine.high %v228_v28, %v228_v28 }
 0x165   : > { %21409 = vmatpush3.bf16.msra.mxu0 %v23677_v33  ;;  %v23724_v33 = vld [vmem:[%s25255_s3 + $0xa40] sm:$0xff]  }
 0x166   : > { %21410 = vmatprep.subr.bf16.mxu0 %v23679_v35  ;;  %v25701_v35 = vrot.slane %v3848_v31, %v25311_v42  ;;  %v23764_v31 = vld [vmem:[%s25255_s3 + $0xcb8] sm:$0xff]  }
 0x167   : > { %21431 = vmatpush3.bf16.msra.mxu1 %v23678_v34 }
 0x168   : > { %21432 = vmatprep.subr.bf16.mxu1 %v23680_v36  ;;  %v23725_v36 = vld [vmem:[%s25255_s3 + $0xac0] sm:$0xff]  }
 0x169   : > { %21411 = vmatpush3.bf16.msra.mxu0 %v23681_v37  ;;  %v23726_v37 = vld [vmem:[%s25255_s3 + $0xa00] sm:$0xff]  }
 0x16a   : > { %21412 = vmatprep.subr.bf16.mxu0 %v23683_v39  ;;  %v3864_v39 = vcombine.high %v25701_v35, %v25701_v35 }
 0x16b   : > { %21433 = vmatpush3.bf16.msra.mxu1 %v23682_v38 }
 0x16c   : > { %21434 = vmatprep.subr.bf16.mxu1 %v23684_v40  ;;  %v23727_v40 = vld [vmem:[%s25255_s3 + $0xa80] sm:$0xff]  }
 0x16d   : > { %21413 = vmatpush3.bf16.msra.mxu0 %v23685_v41 }
 0x16e   : > { %21414 = vmatprep.subr.bf16.mxu0 %v23687_v44  ;;  %v23728_v44 = vld [vmem:[%s25255_s3 + $0xb78] sm:$0xff]  }
 0x16f   : > { %21435 = vmatpush3.bf16.msra.mxu1 %v23686_v43 }
 0x170   : > { %21436 = vmatprep.subr.bf16.mxu1 %v23688_v45  ;;  %v23729_v45 = vld [vmem:[%s25255_s3 + $0xbf8] sm:$0xff]  }
 0x171   : > { %21415 = vmatpush3.bf16.msra.mxu0 %v23689_v46  ;;  %v3892_v46 = vrot.slane %v3864_v39, %v25311_v42 }
 0x172   : > { %21416 = vmatprep.subr.bf16.mxu0 %v23691_v48  ;;  %v23731_v48 = vld [vmem:[%s25255_s3 + $0xbb8] sm:$0xff]  }
 0x173   : > { %21437 = vmatpush3.bf16.msra.mxu1 %v23690_v47  ;;  %v23730_v47 = vld [vmem:[%s25255_s3 + $0xb38] sm:$0xff]  }
 0x174   : > { %21438 = vmatprep.subr.bf16.mxu1 %v23692_v49 }
 0x175   : > { %21417 = vmatpush3.bf16.msra.mxu0 %v23693_v50  ;;  %v23732_v50 = vld [vmem:[%s25255_s3 + $0xb70] sm:$0xff]  }
 0x176   : > { %21446 = vmatprep.subr.bf16.mxu0 %v23696_v53 }
 0x177   : > { %21439 = vmatpush3.bf16.msra.mxu1 %v23694_v51  ;;  %v23733_v51 = vld [vmem:[%s25255_s3 + $0xbf0] sm:$0xff]  }
 0x178   : > { %v21154_v61 = vpop.f32.mrf.mxu0  ;;  %15822 = vmatmul.mubr.bf16.vlgmr.msra.gmra.mxu0 %v3829_v52  ;;  %21468 = vmatprep.subr.bf16.mxu1 %v23697_v54  ;;  %v3896_v52 = vcombine.high %v3892_v46, %v3892_v46  ;;  %v23734_v54 = vld [vmem:[%s25255_s3 + $0xb30] sm:$0xff]  }
 0x179   : > { %21447 = vmatpush3.bf16.msra.mxu0 %v23698_v55  ;;  %v23735_v55 = vld [vmem:[%s25255_s3 + $0xbb0] sm:$0xff]  }
 0x17a   : > { %v21176_v63 = vpop.f32.mrf.mxu1  ;;  %15862 = vmatmul.mubr.bf16.vlgmr.msra.gmra.mxu1 %v3845_v57  ;;  %v21155_v0 = vpop.f32.mrf.mxu0  ;;  %21448 = vmatprep.subr.bf16.mxu0 %v23700_v58  ;;  %v23736_v58 = vld [vmem:[%s25255_s3 + $0xb68] sm:$0xff]  }
 0x17b   : > { %21469 = vmatpush3.bf16.msra.mxu1 %v23699_v56  ;;  %v21156_v2 = vadd.f32 %v21155_v0, %v21154_v61  ;;  %v23737_v61 = vld [vmem:[%s25255_s3 + $0xbe8] sm:$0xff]  }
 0x17c   : > { %v21177_v4 = vpop.f32.mrf.mxu1  ;;  %v21157_v5 = vpop.f32.mrf.mxu0  ;;  %21470 = vmatprep.subr.bf16.mxu1 %v23701_v59 }
 0x17d   : > { %v15344_v7 = vadd.f32 %v21156_v2, %v25643_v30  ;;  %v21178_v8 = vadd.f32 %v21177_v4, %v21176_v63  ;;  %21449 = vmatpush3.bf16.msra.mxu0 %v23702_v60  ;;  %v3855_v30 = vrot.slane %v228_v28, %v25311_v42  ;;  %v23738_v63 = vld [vmem:[%s25255_s3 + $0xb28] sm:$0xff]   ;;  %v23740_v5 = vld [vmem:[%s25255_s3 + $0xb60] sm:$0xff]   ;;  %v23761_v28 = vld [vmem:[%s25255_s3 + $0xc78] sm:$0xff]  }
 0x17e   : > { %v21179_v10 = vpop.f32.mrf.mxu1  ;;  %v21158_v11 = vpop.f32.mrf.mxu0  ;;  %21450 = vmatprep.subr.bf16.mxu0 %v23704_v1  ;;  %v23739_v2 = vld [vmem:[%s25255_s3 + $0xba8] sm:$0xff]  }
 0x17f   : > { %v25680_v13 = vadd.f32 %v21178_v8, %v15344_v7  ;;  %21471 = vmatpush3.bf16.msra.mxu1 %v23703_v62  ;;  %v3863_v34 = vcombine.high %v3855_v30, %v3855_v30  ;;  %v3871_v43 = vrot.slane %v3855_v30, %v25311_v42  ;;  %v23741_v7 = vld [vmem:[%s25255_s3 + $0xbe0] sm:$0xff]   ;;  %v23744_v11 = vld [vmem:[%s25255_s3 + $0xb58] sm:$0xff]  }
 0x180   : > { %v21180_v15 = vpop.f32.mrf.mxu1  ;;  %21472 = vmatprep.subr.bf16.mxu1 %v23705_v3  ;;  %v23743_v10 = vld [vmem:[%s25255_s3 + $0xba0] sm:$0xff]   ;;  %v23763_v30 = vld [vmem:[%s25255_s3 + $0xc38] sm:$0xff]  }
 0x181   : > { %21451 = vmatpush3.bf16.msra.mxu0 %v23706_v6  ;;  %v3885_v38 = vrot.slane %v3863_v34, %v25311_v42  ;;  %v3893_v49 = vcombine.high %v3871_v43, %v3871_v43  ;;  %v23748_v15 = vld [vmem:[%s25255_s3 + $0xb50] sm:$0xff]  }
 0x182   : > { %21452 = vmatprep.subr.bf16.mxu0 %v23708_v12  ;;  %v23745_v12 = vld [vmem:[%s25255_s3 + $0xbd8] sm:$0xff]   ;;  %v23766_v34 = vld [vmem:[%s25255_s3 + $0xcf0] sm:$0xff]  }
 0x183   : > { %21473 = vmatpush3.bf16.msra.mxu1 %v23707_v9  ;;  %15901 = vmatprep.mubr.bf16.mxu0 %v3885_v38  ;;  %v3895_v41 = vcombine.high %v3885_v38, %v3885_v38  ;;  %v23742_v9 = vld [vmem:[%s25255_s3 + $0xb20] sm:$0xff]  }
 0x184   : > { %21474 = vmatprep.subr.bf16.mxu1 %v23709_v14  ;;  %v23747_v14 = vld [vmem:[%s25255_s3 + $0xb98] sm:$0xff]  }
 0x185   : > { %21453 = vmatpush3.bf16.msra.mxu0 %v23710_v16  ;;  %15941 = vmatprep.mubr.bf16.mxu1 %v3895_v41  ;;  %v23749_v16 = vld [vmem:[%s25255_s3 + $0xbd0] sm:$0xff]  }
 0x186   : > { %21454 = vmatprep.subr.bf16.mxu0 %v23712_v18  ;;  %v23751_v18 = vld [vmem:[%s25255_s3 + $0xb90] sm:$0xff]  }
 0x187   : > { %21475 = vmatpush3.bf16.msra.mxu1 %v23711_v17  ;;  %v23750_v17 = vld [vmem:[%s25255_s3 + $0xb10] sm:$0xff]  }
 0x188   : > { %21476 = vmatprep.subr.bf16.mxu1 %v23713_v19  ;;  %v23752_v19 = vld [vmem:[%s25255_s3 + $0xb48] sm:$0xff]  }
 0x189   : > { %21455 = vmatpush3.bf16.msra.mxu0 %v23714_v20  ;;  %v23753_v20 = vld [vmem:[%s25255_s3 + $0xbc8] sm:$0xff]  }
 0x18a   : > { %21456 = vmatprep.subr.bf16.mxu0 %v23716_v22  ;;  %v23755_v22 = vld [vmem:[%s25255_s3 + $0xb88] sm:$0xff]  }
 0x18b   : > { %21477 = vmatpush3.bf16.msra.mxu1 %v23715_v21  ;;  %v23754_v21 = vld [vmem:[%s25255_s3 + $0xb08] sm:$0xff]  }
 0x18c   : > { %21478 = vmatprep.subr.bf16.mxu1 %v23717_v23  ;;  %v23756_v23 = vld [vmem:[%s25255_s3 + $0xb40] sm:$0xff]  }
 0x18d   : > { %21457 = vmatpush3.bf16.msra.mxu0 %v23718_v24  ;;  %v23757_v24 = vld [vmem:[%s25255_s3 + $0xbc0] sm:$0xff]  }
 0x18e   : > { %21458 = vmatprep.subr.bf16.mxu0 %v23720_v26  ;;  %v23759_v26 = vld [vmem:[%s25255_s3 + $0xb80] sm:$0xff]  }
 0x18f   : > { %21479 = vmatpush3.bf16.msra.mxu1 %v23719_v25  ;;  %v23758_v25 = vld [vmem:[%s25255_s3 + $0xb00] sm:$0xff]  }
 0x190   : > { %21480 = vmatprep.subr.bf16.mxu1 %v23721_v27  ;;  %v3878_v27 = vrot.slane %v25701_v35, %v25311_v42  ;;  %v23767_v35 = vld [vmem:[%s25255_s3 + $0xc30] sm:$0xff]  }
 0x191   : > { %21459 = vmatpush3.bf16.msra.mxu0 %v23722_v29  ;;  %v23762_v29 = vld [vmem:[%s25255_s3 + $0xcf8] sm:$0xff]  }
 0x192   : > { %21460 = vmatprep.subr.bf16.mxu0 %v23724_v33  ;;  %v23765_v33 = vld [vmem:[%s25255_s3 + $0xc70] sm:$0xff]  }
 0x193   : > { %21481 = vmatpush3.bf16.msra.mxu1 %v23723_v32  ;;  %v3894_v32 = vcombine.high %v3878_v27, %v3878_v27 }
 0x194   : > { %21482 = vmatprep.subr.bf16.mxu1 %v23725_v36 }
 0x195   : > { %21461 = vmatpush3.bf16.msra.mxu0 %v23726_v37  ;;  %v23768_v37 = vld [vmem:[%s25255_s3 + $0xcb0] sm:$0xff]  }
 0x196   : > { %21490 = vmatprep.subr.bf16.mxu0 %v23728_v44 }
 0x197   : > { %21483 = vmatpush3.bf16.msra.mxu1 %v23727_v40  ;;  %v23769_v40 = vld [vmem:[%s25255_s3 + $0xc68] sm:$0xff]  }
 0x198   : > { %v21198_v53 = vpop.f32.mrf.mxu0  ;;  %15902 = vmatmul.mubr.bf16.vlgmr.msra.gmra.mxu0 %v3871_v43  ;;  %21512 = vmatprep.subr.bf16.mxu1 %v23729_v45  ;;  %v23770_v43 = vld [vmem:[%s25255_s3 + $0xce8] sm:$0xff]  }
 0x199   : > { %21491 = vmatpush3.bf16.msra.mxu0 %v23730_v47  ;;  %15981 = vmatprep.mubr.bf16.mxu0 %v3892_v46  ;;  %v23771_v46 = vld [vmem:[%s25255_s3 + $0xc28] sm:$0xff]  }
 0x19a   : > { %v21220_v56 = vpop.f32.mrf.mxu1  ;;  %15942 = vmatmul.mubr.bf16.vlgmr.msra.gmra.mxu1 %v3893_v49  ;;  %v21199_v57 = vpop.f32.mrf.mxu0  ;;  %21492 = vmatprep.subr.bf16.mxu0 %v23732_v50  ;;  %v23772_v49 = vld [vmem:[%s25255_s3 + $0xca8] sm:$0xff]  }
 0x19b   : > { %21513 = vmatpush3.bf16.msra.mxu1 %v23731_v48  ;;  %v21200_v59 = vadd.f32 %v21199_v57, %v21198_v53  ;;  %16021 = vmatprep.mubr.bf16.mxu1 %v3896_v52  ;;  %v23773_v52 = vld [vmem:[%s25255_s3 + $0xc60] sm:$0xff]  }
 0x19c   : > { %v21221_v60 = vpop.f32.mrf.mxu1  ;;  %v21201_v62 = vpop.f32.mrf.mxu0  ;;  %21514 = vmatprep.subr.bf16.mxu1 %v23733_v51  ;;  %v23776_v57 = vld [vmem:[%s25255_s3 + $0xca0] sm:$0xff]  }
 0x19d   : > { %v15424_v0 = vadd.f32 %v21200_v59, %v25680_v13  ;;  %v21222_v1 = vadd.f32 %v21221_v60, %v21220_v56  ;;  %21493 = vmatpush3.bf16.msra.mxu0 %v23734_v54  ;;  %v23746_v13 = vld [vmem:[%s25255_s3 + $0xb18] sm:$0xff]   ;;  %v23774_v54 = vld [vmem:[%s25255_s3 + $0xce0] sm:$0xff]   ;;  %v23781_v62 = vld [vmem:[%s25255_s3 + $0xc50] sm:$0xff]  }
 0x19e   : > { %v21223_v3 = vpop.f32.mrf.mxu1  ;;  %v21202_v4 = vpop.f32.mrf.mxu0  ;;  %21494 = vmatprep.subr.bf16.mxu0 %v23736_v58  ;;  %v23775_v56 = vld [vmem:[%s25255_s3 + $0xc20] sm:$0xff]   ;;  %v23777_v58 = vld [vmem:[%s25255_s3 + $0xc58] sm:$0xff]  }
 0x19f   : > { %v25725_v6 = vadd.f32 %v21222_v1, %v15424_v0  ;;  %21515 = vmatpush3.bf16.msra.mxu1 %v23735_v55  ;;  %v23778_v59 = vld [vmem:[%s25255_s3 + $0xcd8] sm:$0xff]   ;;  %v23783_v0 = vld [vmem:[%s25255_s3 + $0xc10] sm:$0xff]   ;;  %v23786_v3 = vld [vmem:[%s25255_s3 + $0xcc8] sm:$0xff]  }
 0x1a0   : > { %v21224_v8 = vpop.f32.mrf.mxu1  ;;  %21516 = vmatprep.subr.bf16.mxu1 %v23737_v61  ;;  %v23779_v61 = vld [vmem:[%s25255_s3 + $0xc18] sm:$0xff]   ;;  %v23784_v1 = vld [vmem:[%s25255_s3 + $0xc90] sm:$0xff]   ;;  %v23787_v4 = vld [vmem:[%s25255_s3 + $0xc08] sm:$0xff]  }
 0x1a1   : > { %21495 = vmatpush3.bf16.msra.mxu0 %v23738_v63  ;;  %v23780_v60 = vld [vmem:[%s25255_s3 + $0xc98] sm:$0xff]   ;;  %v23782_v63 = vld [vmem:[%s25255_s3 + $0xcd0] sm:$0xff]  }
 0x1a2   : > { %21496 = vmatprep.subr.bf16.mxu0 %v23740_v5  ;;  %v229_v5 = vld [vmem:[%s25273_s20 + $0x30] sm:$0xff] }
 0x1a3   : > { %21517 = vmatpush3.bf16.msra.mxu1 %v23739_v2  ;;  %v23785_v2 = vld [vmem:[%s25255_s3 + $0xc48] sm:$0xff]   ;;  %v3897_v8 = vcombine.high %v229_v5, %v229_v5 }
 0x1a4   : > { %21518 = vmatprep.subr.bf16.mxu1 %v23741_v7  ;;  %v3904_v7 = vrot.slane %v229_v5, %v25311_v42  ;;  %v23827_v5 = vld [vmem:[%s25255_s3 + $0xef8] sm:$0xff]  }
 0x1a5   : > { %21497 = vmatpush3.bf16.msra.mxu0 %v23742_v9  ;;  %v23789_v9 = vld [vmem:[%s25255_s3 + $0xc40] sm:$0xff]  }
 0x1a6   : > { %21498 = vmatprep.subr.bf16.mxu0 %v23744_v11  ;;  %v3912_v11 = vcombine.high %v3904_v7, %v3904_v7 }
 0x1a7   : > { %21519 = vmatpush3.bf16.msra.mxu1 %v23743_v10  ;;  %v23790_v10 = vld [vmem:[%s25255_s3 + $0xcc0] sm:$0xff]  }
 0x1a8   : > { %21520 = vmatprep.subr.bf16.mxu1 %v23745_v12  ;;  %v25784_v12 = vrot.slane %v3897_v8, %v25311_v42 }
 0x1a9   : > { %21499 = vmatpush3.bf16.msra.mxu0 %v23746_v13  ;;  %v23791_v13 = vld [vmem:[%s25255_s3 + $0xc00] sm:$0xff]  }
 0x1aa   : > { %21500 = vmatprep.subr.bf16.mxu0 %v23748_v15  ;;  %v3934_v15 = vrot.slane %v3912_v11, %v25311_v42 }
 0x1ab   : > { %21521 = vmatpush3.bf16.msra.mxu1 %v23747_v14  ;;  %v23792_v14 = vld [vmem:[%s25255_s3 + $0xc80] sm:$0xff]  }
 0x1ac   : > { %21522 = vmatprep.subr.bf16.mxu1 %v23749_v16  ;;  %v3913_v16 = vcombine.high %v25784_v12, %v25784_v12 }
 0x1ad   : > { %21501 = vmatpush3.bf16.msra.mxu0 %v23750_v17  ;;  %v3920_v17 = vrot.slane %v3904_v7, %v25311_v42  ;;  %v23829_v7 = vld [vmem:[%s25255_s3 + $0xeb8] sm:$0xff]  }
 0x1ae   : > { %21502 = vmatprep.subr.bf16.mxu0 %v23752_v19  ;;  %v3944_v19 = vcombine.high %v3934_v15, %v3934_v15 }
 0x1af   : > { %21523 = vmatpush3.bf16.msra.mxu1 %v23751_v18  ;;  %v23793_v18 = vld [vmem:[%s25255_s3 + $0xd78] sm:$0xff]  }
 0x1b0   : > { %21524 = vmatprep.subr.bf16.mxu1 %v23753_v20  ;;  %v23794_v20 = vld [vmem:[%s25255_s3 + $0xdf8] sm:$0xff]  }
 0x1b1   : > { %21503 = vmatpush3.bf16.msra.mxu0 %v23754_v21  ;;  %v3941_v21 = vrot.slane %v3913_v16, %v25311_v42  ;;  %v23834_v16 = vld [vmem:[%s25255_s3 + $0xe68] sm:$0xff]  }
 0x1b2   : > { %21504 = vmatprep.subr.bf16.mxu0 %v23756_v23  ;;  %v23796_v23 = vld [vmem:[%s25255_s3 + $0xdb8] sm:$0xff]  }
 0x1b3   : > { %21525 = vmatpush3.bf16.msra.mxu1 %v23755_v22  ;;  %v23795_v22 = vld [vmem:[%s25255_s3 + $0xd38] sm:$0xff]  }
 0x1b4   : > { %21526 = vmatprep.subr.bf16.mxu1 %v23757_v24  ;;  %v3942_v24 = vcombine.high %v3920_v17, %v3920_v17 }
 0x1b5   : > { %21505 = vmatpush3.bf16.msra.mxu0 %v23758_v25  ;;  %v23797_v25 = vld [vmem:[%s25255_s3 + $0xd70] sm:$0xff]  }
 0x1b6   : > { %21534 = vmatprep.subr.bf16.mxu0 %v23761_v28 }
 0x1b7   : > { %21527 = vmatpush3.bf16.msra.mxu1 %v23759_v26  ;;  %v23798_v26 = vld [vmem:[%s25255_s3 + $0xdf0] sm:$0xff]  }
 0x1b8   : > { %v21242_v36 = vpop.f32.mrf.mxu0  ;;  %15982 = vmatmul.mubr.bf16.vlgmr.msra.gmra.mxu0 %v3878_v27  ;;  %21556 = vmatprep.subr.bf16.mxu1 %v23762_v29  ;;  %v3945_v27 = vcombine.high %v3941_v21, %v3941_v21  ;;  %v23799_v29 = vld [vmem:[%s25255_s3 + $0xd30] sm:$0xff]  }
 0x1b9   : > { %21535 = vmatpush3.bf16.msra.mxu0 %v23763_v30  ;;  %16061 = vmatprep.mubr.bf16.mxu0 %v3934_v15  ;;  %v23800_v30 = vld [vmem:[%s25255_s3 + $0xdb0] sm:$0xff]  }
 0x1ba   : > { %v21264_v38 = vpop.f32.mrf.mxu1  ;;  %16022 = vmatmul.mubr.bf16.vlgmr.msra.gmra.mxu1 %v3894_v32  ;;  %v21243_v39 = vpop.f32.mrf.mxu0  ;;  %21536 = vmatprep.subr.bf16.mxu0 %v23765_v33  ;;  %v23801_v33 = vld [vmem:[%s25255_s3 + $0xd68] sm:$0xff]  }
 0x1bb   : > { %21557 = vmatpush3.bf16.msra.mxu1 %v23764_v31  ;;  %v21244_v41 = vadd.f32 %v21243_v39, %v21242_v36  ;;  %16101 = vmatprep.mubr.bf16.mxu1 %v3944_v19  ;;  %v23802_v36 = vld [vmem:[%s25255_s3 + $0xde8] sm:$0xff]  }
 0x1bc   : > { %v21265_v44 = vpop.f32.mrf.mxu1  ;;  %v21245_v45 = vpop.f32.mrf.mxu0  ;;  %21558 = vmatprep.subr.bf16.mxu1 %v23766_v34 }
 0x1bd   : > { %v15504_v47 = vadd.f32 %v21244_v41, %v25725_v6  ;;  %v21266_v48 = vadd.f32 %v21265_v44, %v21264_v38  ;;  %21537 = vmatpush3.bf16.msra.mxu0 %v23767_v35  ;;  %v23788_v6 = vld [vmem:[%s25255_s3 + $0xc88] sm:$0xff]   ;;  %v23805_v45 = vld [vmem:[%s25255_s3 + $0xd60] sm:$0xff]  }
 0x1be   : > { %v21267_v50 = vpop.f32.mrf.mxu1  ;;  %v21246_v51 = vpop.f32.mrf.mxu0  ;;  %21538 = vmatprep.subr.bf16.mxu0 %v23769_v40  ;;  %v23803_v38 = vld [vmem:[%s25255_s3 + $0xd28] sm:$0xff]  }
 0x1bf   : > { %v25762_v53 = vadd.f32 %v21266_v48, %v15504_v47  ;;  %21559 = vmatpush3.bf16.msra.mxu1 %v23768_v37  ;;  %v23804_v41 = vld [vmem:[%s25255_s3 + $0xda8] sm:$0xff]   ;;  %v23806_v47 = vld [vmem:[%s25255_s3 + $0xde0] sm:$0xff]   ;;  %v23809_v51 = vld [vmem:[%s25255_s3 + $0xd58] sm:$0xff]  }
 0x1c0   : > { %v21268_v55 = vpop.f32.mrf.mxu1  ;;  %21560 = vmatprep.subr.bf16.mxu1 %v23770_v43  ;;  %v23808_v50 = vld [vmem:[%s25255_s3 + $0xda0] sm:$0xff]  }
 0x1c1   : > { %21539 = vmatpush3.bf16.msra.mxu0 %v23771_v46  ;;  %v23813_v55 = vld [vmem:[%s25255_s3 + $0xd50] sm:$0xff]  }
 0x1c2   : > { %21540 = vmatprep.subr.bf16.mxu0 %v23773_v52  ;;  %v23810_v52 = vld [vmem:[%s25255_s3 + $0xdd8] sm:$0xff]  }
 0x1c3   : > { %21561 = vmatpush3.bf16.msra.mxu1 %v23772_v49  ;;  %v23807_v49 = vld [vmem:[%s25255_s3 + $0xd20] sm:$0xff]  }
 0x1c4   : > { %21562 = vmatprep.subr.bf16.mxu1 %v23774_v54  ;;  %v23812_v54 = vld [vmem:[%s25255_s3 + $0xd98] sm:$0xff]  }
 0x1c5   : > { %21541 = vmatpush3.bf16.msra.mxu0 %v23775_v56  ;;  %v23814_v56 = vld [vmem:[%s25255_s3 + $0xdd0] sm:$0xff]  }
 0x1c6   : > { %21542 = vmatprep.subr.bf16.mxu0 %v23777_v58  ;;  %v23816_v58 = vld [vmem:[%s25255_s3 + $0xd90] sm:$0xff]  }
 0x1c7   : > { %21563 = vmatpush3.bf16.msra.mxu1 %v23776_v57  ;;  %v23815_v57 = vld [vmem:[%s25255_s3 + $0xd10] sm:$0xff]  }
 0x1c8   : > { %21564 = vmatprep.subr.bf16.mxu1 %v23778_v59  ;;  %v23817_v59 = vld [vmem:[%s25255_s3 + $0xd48] sm:$0xff]  }
 0x1c9   : > { %21543 = vmatpush3.bf16.msra.mxu0 %v23779_v61  ;;  %v23818_v61 = vld [vmem:[%s25255_s3 + $0xdc8] sm:$0xff]  }
 0x1ca   : > { %21544 = vmatprep.subr.bf16.mxu0 %v23781_v62  ;;  %v23820_v62 = vld [vmem:[%s25255_s3 + $0xd88] sm:$0xff]  }
 0x1cb   : > { %21565 = vmatpush3.bf16.msra.mxu1 %v23780_v60  ;;  %v23819_v60 = vld [vmem:[%s25255_s3 + $0xd08] sm:$0xff]  }
 0x1cc   : > { %21566 = vmatprep.subr.bf16.mxu1 %v23782_v63  ;;  %v23821_v63 = vld [vmem:[%s25255_s3 + $0xd40] sm:$0xff]  }
 0x1cd   : > { %21545 = vmatpush3.bf16.msra.mxu0 %v23783_v0  ;;  %v23822_v0 = vld [vmem:[%s25255_s3 + $0xdc0] sm:$0xff]  }
 0x1ce   : > { %21546 = vmatprep.subr.bf16.mxu0 %v23785_v2  ;;  %v23824_v2 = vld [vmem:[%s25255_s3 + $0xd80] sm:$0xff]  }
 0x1cf   : > { %21567 = vmatpush3.bf16.msra.mxu1 %v23784_v1  ;;  %v23823_v1 = vld [vmem:[%s25255_s3 + $0xd00] sm:$0xff]  }
 0x1d0   : > { %21568 = vmatprep.subr.bf16.mxu1 %v23786_v3  ;;  %v3927_v3 = vrot.slane %v25784_v12, %v25311_v42  ;;  %v23832_v12 = vld [vmem:[%s25255_s3 + $0xe30] sm:$0xff]  }
 0x1d1   : > { %21547 = vmatpush3.bf16.msra.mxu0 %v23787_v4  ;;  %v23826_v4 = vld [vmem:[%s25255_s3 + $0xe78] sm:$0xff]  }
 0x1d2   : > { %21548 = vmatprep.subr.bf16.mxu0 %v23789_v9  ;;  %v3943_v8 = vcombine.high %v3927_v3, %v3927_v3  ;;  %v23830_v9 = vld [vmem:[%s25255_s3 + $0xe70] sm:$0xff]  }
 0x1d3   : > { %21569 = vmatpush3.bf16.msra.mxu1 %v23788_v6  ;;  %v23828_v6 = vld [vmem:[%s25255_s3 + $0xe38] sm:$0xff]  }
 0x1d4   : > { %21570 = vmatprep.subr.bf16.mxu1 %v23790_v10  ;;  %v23831_v10 = vld [vmem:[%s25255_s3 + $0xef0] sm:$0xff]  }
 0x1d5   : > { %21549 = vmatpush3.bf16.msra.mxu0 %v23791_v13  ;;  %v23833_v13 = vld [vmem:[%s25255_s3 + $0xeb0] sm:$0xff]  }
 0x1d6   : > { %21578 = vmatprep.subr.bf16.mxu0 %v23793_v18  ;;  %v23835_v18 = vld [vmem:[%s25255_s3 + $0xee8] sm:$0xff]  }
 0x1d7   : > { %21571 = vmatpush3.bf16.msra.mxu1 %v23792_v14 }
 0x1d8   : > { %v21286_v28 = vpop.f32.mrf.mxu0  ;;  %16062 = vmatmul.mubr.bf16.vlgmr.msra.gmra.mxu0 %v3920_v17  ;;  %21600 = vmatprep.subr.bf16.mxu1 %v23794_v20 }
 0x1d9   : > { %21579 = vmatpush3.bf16.msra.mxu0 %v23795_v22  ;;  %16141 = vmatprep.mubr.bf16.mxu0 %v3941_v21  ;;  %v23836_v21 = vld [vmem:[%s25255_s3 + $0xe28] sm:$0xff]  }
 0x1da   : > { %v21308_v31 = vpop.f32.mrf.mxu1  ;;  %16102 = vmatmul.mubr.bf16.vlgmr.msra.gmra.mxu1 %v3942_v24  ;;  %v21287_v32 = vpop.f32.mrf.mxu0  ;;  %21580 = vmatprep.subr.bf16.mxu0 %v23797_v25  ;;  %v23837_v24 = vld [vmem:[%s25255_s3 + $0xea8] sm:$0xff]  }
 0x1db   : > { %21601 = vmatpush3.bf16.msra.mxu1 %v23796_v23  ;;  %v21288_v34 = vadd.f32 %v21287_v32, %v21286_v28  ;;  %16181 = vmatprep.mubr.bf16.mxu1 %v3945_v27  ;;  %v23838_v27 = vld [vmem:[%s25255_s3 + $0xe60] sm:$0xff]  }
 0x1dc   : > { %v21309_v35 = vpop.f32.mrf.mxu1  ;;  %v21289_v37 = vpop.f32.mrf.mxu0  ;;  %21602 = vmatprep.subr.bf16.mxu1 %v23798_v26  ;;  %v23841_v32 = vld [vmem:[%s25255_s3 + $0xea0] sm:$0xff]  }
 0x1dd   : > { %v15584_v39 = vadd.f32 %v21288_v34, %v25762_v53  ;;  %v21310_v40 = vadd.f32 %v21309_v35, %v21308_v31  ;;  %21581 = vmatpush3.bf16.msra.mxu0 %v23799_v29  ;;  %v23811_v53 = vld [vmem:[%s25255_s3 + $0xd18] sm:$0xff]   ;;  %v23839_v29 = vld [vmem:[%s25255_s3 + $0xee0] sm:$0xff]   ;;  %v23846_v37 = vld [vmem:[%s25255_s3 + $0xe50] sm:$0xff]  }
 0x1de   : > { %v21311_v43 = vpop.f32.mrf.mxu1  ;;  %v21290_v44 = vpop.f32.mrf.mxu0  ;;  %21582 = vmatprep.subr.bf16.mxu0 %v23801_v33  ;;  %v23840_v31 = vld [vmem:[%s25255_s3 + $0xe20] sm:$0xff]   ;;  %v23842_v33 = vld [vmem:[%s25255_s3 + $0xe58] sm:$0xff]  }
 0x1df   : > { %v25807_v46 = vadd.f32 %v21310_v40, %v15584_v39  ;;  %21603 = vmatpush3.bf16.msra.mxu1 %v23800_v30  ;;  %v23843_v34 = vld [vmem:[%s25255_s3 + $0xed8] sm:$0xff]   ;;  %v23848_v39 = vld [vmem:[%s25255_s3 + $0xe10] sm:$0xff]   ;;  %v23851_v43 = vld [vmem:[%s25255_s3 + $0xec8] sm:$0xff]  }
 0x1e0   : > { %v21312_v48 = vpop.f32.mrf.mxu1  ;;  %21604 = vmatprep.subr.bf16.mxu1 %v23802_v36  ;;  %v23844_v36 = vld [vmem:[%s25255_s3 + $0xe18] sm:$0xff]   ;;  %v23849_v40 = vld [vmem:[%s25255_s3 + $0xe90] sm:$0xff]   ;;  %v23852_v44 = vld [vmem:[%s25255_s3 + $0xe08] sm:$0xff]  }
 0x1e1   : > { %21583 = vmatpush3.bf16.msra.mxu0 %v23803_v38  ;;  %v23845_v35 = vld [vmem:[%s25255_s3 + $0xe98] sm:$0xff]   ;;  %v23847_v38 = vld [vmem:[%s25255_s3 + $0xed0] sm:$0xff]  }
 0x1e2   : > { %21584 = vmatprep.subr.bf16.mxu0 %v23805_v45  ;;  %v230_v45 = vld [vmem:[%s25273_s20 + $0x38] sm:$0xff] }
 0x1e3   : > { %21605 = vmatpush3.bf16.msra.mxu1 %v23804_v41  ;;  %v23850_v41 = vld [vmem:[%s25255_s3 + $0xe48] sm:$0xff]   ;;  %v3946_v48 = vcombine.high %v230_v45, %v230_v45 }
 0x1e4   : > { %21606 = vmatprep.subr.bf16.mxu1 %v23806_v47  ;;  %v3953_v47 = vrot.slane %v230_v45, %v25311_v42  ;;  %v23892_v45 = vld [vmem:[%s25255_s3 + $0x10f8] sm:$0xff]  }
 0x1e5   : > { %21585 = vmatpush3.bf16.msra.mxu0 %v23807_v49  ;;  %v23854_v49 = vld [vmem:[%s25255_s3 + $0xe40] sm:$0xff]  }
 0x1e6   : > { %21586 = vmatprep.subr.bf16.mxu0 %v23809_v51  ;;  %v3961_v51 = vcombine.high %v3953_v47, %v3953_v47 }
 0x1e7   : > { %21607 = vmatpush3.bf16.msra.mxu1 %v23808_v50  ;;  %v23855_v50 = vld [vmem:[%s25255_s3 + $0xec0] sm:$0xff]  }
 0x1e8   : > { %21608 = vmatprep.subr.bf16.mxu1 %v23810_v52  ;;  %v25866_v52 = vrot.slane %v3946_v48, %v25311_v42 }
 0x1e9   : > { %21587 = vmatpush3.bf16.msra.mxu0 %v23811_v53  ;;  %v23856_v53 = vld [vmem:[%s25255_s3 + $0xe00] sm:$0xff]  }
 0x1ea   : > { %21588 = vmatprep.subr.bf16.mxu0 %v23813_v55  ;;  %v3983_v55 = vrot.slane %v3961_v51, %v25311_v42 }
 0x1eb   : > { %21609 = vmatpush3.bf16.msra.mxu1 %v23812_v54  ;;  %v23857_v54 = vld [vmem:[%s25255_s3 + $0xe80] sm:$0xff]  }
 0x1ec   : > { %21610 = vmatprep.subr.bf16.mxu1 %v23814_v56  ;;  %v3962_v56 = vcombine.high %v25866_v52, %v25866_v52 }
 0x1ed   : > { %21589 = vmatpush3.bf16.msra.mxu0 %v23815_v57  ;;  %v3969_v57 = vrot.slane %v3953_v47, %v25311_v42  ;;  %v23894_v47 = vld [vmem:[%s25255_s3 + $0x10b8] sm:$0xff]  }
 0x1ee   : > { %21590 = vmatprep.subr.bf16.mxu0 %v23817_v59  ;;  %v3993_v59 = vcombine.high %v3983_v55, %v3983_v55 }
 0x1ef   : > { %21611 = vmatpush3.bf16.msra.mxu1 %v23816_v58  ;;  %v23858_v58 = vld [vmem:[%s25255_s3 + $0xf78] sm:$0xff]  }
 0x1f0   : > { %21612 = vmatprep.subr.bf16.mxu1 %v23818_v61  ;;  %v23859_v61 = vld [vmem:[%s25255_s3 + $0xff8] sm:$0xff]  }
 0x1f1   : > { %21591 = vmatpush3.bf16.msra.mxu0 %v23819_v60  ;;  %v3990_v60 = vrot.slane %v3962_v56, %v25311_v42  ;;  %v23899_v56 = vld [vmem:[%s25255_s3 + $0x1068] sm:$0xff]  }
 0x1f2   : > { %21592 = vmatprep.subr.bf16.mxu0 %v23821_v63  ;;  %v23861_v63 = vld [vmem:[%s25255_s3 + $0xfb8] sm:$0xff]  }
 0x1f3   : > { %21613 = vmatpush3.bf16.msra.mxu1 %v23820_v62  ;;  %v23860_v62 = vld [vmem:[%s25255_s3 + $0xf38] sm:$0xff]  }
 0x1f4   : > { %21614 = vmatprep.subr.bf16.mxu1 %v23822_v0  ;;  %v3991_v0 = vcombine.high %v3969_v57, %v3969_v57 }
 0x1f5   : > { %21593 = vmatpush3.bf16.msra.mxu0 %v23823_v1  ;;  %v23862_v1 = vld [vmem:[%s25255_s3 + $0xf70] sm:$0xff]  }
 0x1f6   : > { %21622 = vmatprep.subr.bf16.mxu0 %v23826_v4 }
 0x1f7   : > { %21615 = vmatpush3.bf16.msra.mxu1 %v23824_v2  ;;  %v23863_v2 = vld [vmem:[%s25255_s3 + $0xff0] sm:$0xff]  }
 0x1f8   : > { %v21330_v11 = vpop.f32.mrf.mxu0  ;;  %16142 = vmatmul.mubr.bf16.vlgmr.msra.gmra.mxu0 %v3927_v3  ;;  %21644 = vmatprep.subr.bf16.mxu1 %v23827_v5  ;;  %v3994_v3 = vcombine.high %v3990_v60, %v3990_v60  ;;  %v23864_v5 = vld [vmem:[%s25255_s3 + $0xf30] sm:$0xff]  }
 0x1f9   : > { %21623 = vmatpush3.bf16.msra.mxu0 %v23828_v6  ;;  %16221 = vmatprep.mubr.bf16.mxu0 %v3983_v55  ;;  %v23865_v6 = vld [vmem:[%s25255_s3 + $0xfb0] sm:$0xff]  }
 0x1fa   : > { %v21352_v14 = vpop.f32.mrf.mxu1  ;;  %16182 = vmatmul.mubr.bf16.vlgmr.msra.gmra.mxu1 %v3943_v8  ;;  %v21331_v15 = vpop.f32.mrf.mxu0  ;;  %21624 = vmatprep.subr.bf16.mxu0 %v23830_v9  ;;  %v23866_v9 = vld [vmem:[%s25255_s3 + $0xf68] sm:$0xff]  }
 0x1fb   : > { %21645 = vmatpush3.bf16.msra.mxu1 %v23829_v7  ;;  %v21332_v17 = vadd.f32 %v21331_v15, %v21330_v11  ;;  %16261 = vmatprep.mubr.bf16.mxu1 %v3993_v59  ;;  %v23867_v11 = vld [vmem:[%s25255_s3 + $0xfe8] sm:$0xff]  }
 0x1fc   : > { %v21353_v19 = vpop.f32.mrf.mxu1  ;;  %v21333_v20 = vpop.f32.mrf.mxu0  ;;  %21646 = vmatprep.subr.bf16.mxu1 %v23831_v10 }
 0x1fd   : > { %v15664_v22 = vadd.f32 %v21332_v17, %v25807_v46  ;;  %v21354_v23 = vadd.f32 %v21353_v19, %v21352_v14  ;;  %21625 = vmatpush3.bf16.msra.mxu0 %v23832_v12  ;;  %v23853_v46 = vld [vmem:[%s25255_s3 + $0xe88] sm:$0xff]   ;;  %v23870_v20 = vld [vmem:[%s25255_s3 + $0xf60] sm:$0xff]  }
 0x1fe   : > { %v21355_v25 = vpop.f32.mrf.mxu1  ;;  %v21334_v26 = vpop.f32.mrf.mxu0  ;;  %21626 = vmatprep.subr.bf16.mxu0 %v23834_v16  ;;  %v23868_v14 = vld [vmem:[%s25255_s3 + $0xf28] sm:$0xff]  }
 0x1ff   : > { %v25844_v28 = vadd.f32 %v21354_v23, %v15664_v22  ;;  %21647 = vmatpush3.bf16.msra.mxu1 %v23833_v13  ;;  %v23869_v17 = vld [vmem:[%s25255_s3 + $0xfa8] sm:$0xff]   ;;  %v23871_v22 = vld [vmem:[%s25255_s3 + $0xfe0] sm:$0xff]   ;;  %v23874_v26 = vld [vmem:[%s25255_s3 + $0xf58] sm:$0xff]  }
 0x200   : > { %v21356_v30 = vpop.f32.mrf.mxu1  ;;  %21648 = vmatprep.subr.bf16.mxu1 %v23835_v18  ;;  %v23873_v25 = vld [vmem:[%s25255_s3 + $0xfa0] sm:$0xff]  }
 0x201   : > { %21627 = vmatpush3.bf16.msra.mxu0 %v23836_v21  ;;  %v23878_v30 = vld [vmem:[%s25255_s3 + $0xf50] sm:$0xff]  }
 0x202   : > { %21628 = vmatprep.subr.bf16.mxu0 %v23838_v27  ;;  %v23875_v27 = vld [vmem:[%s25255_s3 + $0xfd8] sm:$0xff]  }
 0x203   : > { %21649 = vmatpush3.bf16.msra.mxu1 %v23837_v24  ;;  %v23872_v24 = vld [vmem:[%s25255_s3 + $0xf20] sm:$0xff]  }
 0x204   : > { %21650 = vmatprep.subr.bf16.mxu1 %v23839_v29  ;;  %v23877_v29 = vld [vmem:[%s25255_s3 + $0xf98] sm:$0xff]  }
 0x205   : > { %21629 = vmatpush3.bf16.msra.mxu0 %v23840_v31  ;;  %v23879_v31 = vld [vmem:[%s25255_s3 + $0xfd0] sm:$0xff]  }
 0x206   : > { %21630 = vmatprep.subr.bf16.mxu0 %v23842_v33  ;;  %v23881_v33 = vld [vmem:[%s25255_s3 + $0xf90] sm:$0xff]  }
 0x207   : > { %21651 = vmatpush3.bf16.msra.mxu1 %v23841_v32  ;;  %v23880_v32 = vld [vmem:[%s25255_s3 + $0xf10] sm:$0xff]  }
 0x208   : > { %21652 = vmatprep.subr.bf16.mxu1 %v23843_v34  ;;  %v23882_v34 = vld [vmem:[%s25255_s3 + $0xf48] sm:$0xff]  }
 0x209   : > { %21631 = vmatpush3.bf16.msra.mxu0 %v23844_v36  ;;  %v23883_v36 = vld [vmem:[%s25255_s3 + $0xfc8] sm:$0xff]  }
 0x20a   : > { %21632 = vmatprep.subr.bf16.mxu0 %v23846_v37  ;;  %v23885_v37 = vld [vmem:[%s25255_s3 + $0xf88] sm:$0xff]  }
 0x20b   : > { %21653 = vmatpush3.bf16.msra.mxu1 %v23845_v35  ;;  %v23884_v35 = vld [vmem:[%s25255_s3 + $0xf08] sm:$0xff]  }
 0x20c   : > { %21654 = vmatprep.subr.bf16.mxu1 %v23847_v38  ;;  %v23886_v38 = vld [vmem:[%s25255_s3 + $0xf40] sm:$0xff]  }
 0x20d   : > { %21633 = vmatpush3.bf16.msra.mxu0 %v23848_v39  ;;  %v23887_v39 = vld [vmem:[%s25255_s3 + $0xfc0] sm:$0xff]  }
 0x20e   : > { %21634 = vmatprep.subr.bf16.mxu0 %v23850_v41  ;;  %v23889_v41 = vld [vmem:[%s25255_s3 + $0xf80] sm:$0xff]  }
 0x20f   : > { %21655 = vmatpush3.bf16.msra.mxu1 %v23849_v40  ;;  %v23888_v40 = vld [vmem:[%s25255_s3 + $0xf00] sm:$0xff]  }
 0x210   : > { %21656 = vmatprep.subr.bf16.mxu1 %v23851_v43  ;;  %v3976_v43 = vrot.slane %v25866_v52, %v25311_v42  ;;  %v23897_v52 = vld [vmem:[%s25255_s3 + $0x1030] sm:$0xff]  }
 0x211   : > { %21635 = vmatpush3.bf16.msra.mxu0 %v23852_v44  ;;  %v23891_v44 = vld [vmem:[%s25255_s3 + $0x1078] sm:$0xff]  }
 0x212   : > { %21636 = vmatprep.subr.bf16.mxu0 %v23854_v49  ;;  %v3992_v48 = vcombine.high %v3976_v43, %v3976_v43  ;;  %v23895_v49 = vld [vmem:[%s25255_s3 + $0x1070] sm:$0xff]  }
 0x213   : > { %21657 = vmatpush3.bf16.msra.mxu1 %v23853_v46  ;;  %v23893_v46 = vld [vmem:[%s25255_s3 + $0x1038] sm:$0xff]  }
 0x214   : > { %21658 = vmatprep.subr.bf16.mxu1 %v23855_v50  ;;  %v23896_v50 = vld [vmem:[%s25255_s3 + $0x10f0] sm:$0xff]  }
 0x215   : > { %21637 = vmatpush3.bf16.msra.mxu0 %v23856_v53  ;;  %v23898_v53 = vld [vmem:[%s25255_s3 + $0x10b0] sm:$0xff]  }
 0x216   : > { %21666 = vmatprep.subr.bf16.mxu0 %v23858_v58  ;;  %v23900_v58 = vld [vmem:[%s25255_s3 + $0x10e8] sm:$0xff]  }
 0x217   : > { %21659 = vmatpush3.bf16.msra.mxu1 %v23857_v54 }
 0x218   : > { %v21374_v4 = vpop.f32.mrf.mxu0  ;;  %16222 = vmatmul.mubr.bf16.vlgmr.msra.gmra.mxu0 %v3969_v57  ;;  %21688 = vmatprep.subr.bf16.mxu1 %v23859_v61 }
 0x219   : > { %21667 = vmatpush3.bf16.msra.mxu0 %v23860_v62  ;;  %16301 = vmatprep.mubr.bf16.mxu0 %v3990_v60  ;;  %v23901_v60 = vld [vmem:[%s25255_s3 + $0x1028] sm:$0xff]  }
 0x21a   : > { %v21396_v7 = vpop.f32.mrf.mxu1  ;;  %16262 = vmatmul.mubr.bf16.vlgmr.msra.gmra.mxu1 %v3991_v0  ;;  %v21375_v8 = vpop.f32.mrf.mxu0  ;;  %21668 = vmatprep.subr.bf16.mxu0 %v23862_v1  ;;  %v23902_v0 = vld [vmem:[%s25255_s3 + $0x10a8] sm:$0xff]  }
 0x21b   : > { %21689 = vmatpush3.bf16.msra.mxu1 %v23861_v63  ;;  %v21376_v10 = vadd.f32 %v21375_v8, %v21374_v4  ;;  %16341 = vmatprep.mubr.bf16.mxu1 %v3994_v3  ;;  %v23903_v3 = vld [vmem:[%s25255_s3 + $0x1060] sm:$0xff]  }
 0x21c   : > { %v21397_v12 = vpop.f32.mrf.mxu1  ;;  %v21377_v13 = vpop.f32.mrf.mxu0  ;;  %21690 = vmatprep.subr.bf16.mxu1 %v23863_v2  ;;  %v23906_v8 = vld [vmem:[%s25255_s3 + $0x10a0] sm:$0xff]  }
 0x21d   : > { %v15744_v15 = vadd.f32 %v21376_v10, %v25844_v28  ;;  %v21398_v16 = vadd.f32 %v21397_v12, %v21396_v7  ;;  %21669 = vmatpush3.bf16.msra.mxu0 %v23864_v5  ;;  %v23876_v28 = vld [vmem:[%s25255_s3 + $0xf18] sm:$0xff]   ;;  %v23904_v5 = vld [vmem:[%s25255_s3 + $0x10e0] sm:$0xff]   ;;  %v23911_v13 = vld [vmem:[%s25255_s3 + $0x1050] sm:$0xff]  }
 0x21e   : > { %v21399_v18 = vpop.f32.mrf.mxu1  ;;  %v21378_v19 = vpop.f32.mrf.mxu0  ;;  %21670 = vmatprep.subr.bf16.mxu0 %v23866_v9  ;;  %v23905_v7 = vld [vmem:[%s25255_s3 + $0x1020] sm:$0xff]   ;;  %v23907_v9 = vld [vmem:[%s25255_s3 + $0x1058] sm:$0xff]  }
 0x21f   : > { %v25889_v21 = vadd.f32 %v21398_v16, %v15744_v15  ;;  %21691 = vmatpush3.bf16.msra.mxu1 %v23865_v6  ;;  %v23908_v10 = vld [vmem:[%s25255_s3 + $0x10d8] sm:$0xff]   ;;  %v23913_v15 = vld [vmem:[%s25255_s3 + $0x1010] sm:$0xff]   ;;  %v23916_v18 = vld [vmem:[%s25255_s3 + $0x10c8] sm:$0xff]  }
 0x220   : > { %v21400_v23 = vpop.f32.mrf.mxu1  ;;  %21692 = vmatprep.subr.bf16.mxu1 %v23867_v11  ;;  %v23909_v11 = vld [vmem:[%s25255_s3 + $0x1018] sm:$0xff]   ;;  %v23914_v16 = vld [vmem:[%s25255_s3 + $0x1090] sm:$0xff]   ;;  %v23917_v19 = vld [vmem:[%s25255_s3 + $0x1008] sm:$0xff]  }
 0x221   : > { %21671 = vmatpush3.bf16.msra.mxu0 %v23868_v14  ;;  %v23910_v12 = vld [vmem:[%s25255_s3 + $0x1098] sm:$0xff]   ;;  %v23912_v14 = vld [vmem:[%s25255_s3 + $0x10d0] sm:$0xff]  }
 0x222   : > { %21672 = vmatprep.subr.bf16.mxu0 %v23870_v20  ;;  %v231_v20 = vld [vmem:[%s25273_s20 + $0x40] sm:$0xff] }
 0x223   : > { %21693 = vmatpush3.bf16.msra.mxu1 %v23869_v17  ;;  %v23915_v17 = vld [vmem:[%s25255_s3 + $0x1048] sm:$0xff]   ;;  %v3995_v23 = vcombine.high %v231_v20, %v231_v20 }
 0x224   : > { %21694 = vmatprep.subr.bf16.mxu1 %v23871_v22  ;;  %v4002_v22 = vrot.slane %v231_v20, %v25311_v42  ;;  %v23957_v20 = vld [vmem:[%s25255_s3 + $0x12f8] sm:$0xff]  }
 0x225   : > { %21673 = vmatpush3.bf16.msra.mxu0 %v23872_v24  ;;  %v23919_v24 = vld [vmem:[%s25255_s3 + $0x1040] sm:$0xff]  }
 0x226   : > { %21674 = vmatprep.subr.bf16.mxu0 %v23874_v26  ;;  %v4010_v26 = vcombine.high %v4002_v22, %v4002_v22 }
 0x227   : > { %21695 = vmatpush3.bf16.msra.mxu1 %v23873_v25  ;;  %v23920_v25 = vld [vmem:[%s25255_s3 + $0x10c0] sm:$0xff]  }
 0x228   : > { %21696 = vmatprep.subr.bf16.mxu1 %v23875_v27  ;;  %v25948_v27 = vrot.slane %v3995_v23, %v25311_v42 }
 0x229   : > { %21675 = vmatpush3.bf16.msra.mxu0 %v23876_v28  ;;  %v23921_v28 = vld [vmem:[%s25255_s3 + $0x1000] sm:$0xff]  }
 0x22a   : > { %21676 = vmatprep.subr.bf16.mxu0 %v23878_v30  ;;  %v4032_v30 = vrot.slane %v4010_v26, %v25311_v42 }
 0x22b   : > { %21697 = vmatpush3.bf16.msra.mxu1 %v23877_v29  ;;  %v23922_v29 = vld [vmem:[%s25255_s3 + $0x1080] sm:$0xff]  }
 0x22c   : > { %21698 = vmatprep.subr.bf16.mxu1 %v23879_v31  ;;  %v4011_v31 = vcombine.high %v25948_v27, %v25948_v27 }
 0x22d   : > { %21677 = vmatpush3.bf16.msra.mxu0 %v23880_v32  ;;  %v4018_v32 = vrot.slane %v4002_v22, %v25311_v42  ;;  %v23959_v22 = vld [vmem:[%s25255_s3 + $0x12b8] sm:$0xff]  }
 0x22e   : > { %21678 = vmatprep.subr.bf16.mxu0 %v23882_v34  ;;  %v4042_v34 = vcombine.high %v4032_v30, %v4032_v30 }
 0x22f   : > { %21699 = vmatpush3.bf16.msra.mxu1 %v23881_v33  ;;  %v23923_v33 = vld [vmem:[%s25255_s3 + $0x1178] sm:$0xff]  }
 0x230   : > { %21700 = vmatprep.subr.bf16.mxu1 %v23883_v36  ;;  %v23924_v36 = vld [vmem:[%s25255_s3 + $0x11f8] sm:$0xff]  }
 0x231   : > { %21679 = vmatpush3.bf16.msra.mxu0 %v23884_v35  ;;  %v4039_v35 = vrot.slane %v4011_v31, %v25311_v42  ;;  %v23964_v31 = vld [vmem:[%s25255_s3 + $0x1268] sm:$0xff]  }
 0x232   : > { %21680 = vmatprep.subr.bf16.mxu0 %v23886_v38  ;;  %v23926_v38 = vld [vmem:[%s25255_s3 + $0x11b8] sm:$0xff]  }
 0x233   : > { %21701 = vmatpush3.bf16.msra.mxu1 %v23885_v37  ;;  %v23925_v37 = vld [vmem:[%s25255_s3 + $0x1138] sm:$0xff]  }
 0x234   : > { %21702 = vmatprep.subr.bf16.mxu1 %v23887_v39  ;;  %v4040_v39 = vcombine.high %v4018_v32, %v4018_v32 }
 0x235   : > { %21681 = vmatpush3.bf16.msra.mxu0 %v23888_v40  ;;  %v23927_v40 = vld [vmem:[%s25255_s3 + $0x1170] sm:$0xff]  }
 0x236   : > { %21710 = vmatprep.subr.bf16.mxu0 %v23891_v44 }
 0x237   : > { %21703 = vmatpush3.bf16.msra.mxu1 %v23889_v41  ;;  %v23928_v41 = vld [vmem:[%s25255_s3 + $0x11f0] sm:$0xff]  }
 0x238   : > { %v21418_v51 = vpop.f32.mrf.mxu0  ;;  %16302 = vmatmul.mubr.bf16.vlgmr.msra.gmra.mxu0 %v3976_v43  ;;  %21732 = vmatprep.subr.bf16.mxu1 %v23892_v45  ;;  %v4043_v43 = vcombine.high %v4039_v35, %v4039_v35  ;;  %v23929_v45 = vld [vmem:[%s25255_s3 + $0x1130] sm:$0xff]  }
 0x239   : > { %21711 = vmatpush3.bf16.msra.mxu0 %v23893_v46  ;;  %16381 = vmatprep.mubr.bf16.mxu0 %v4032_v30  ;;  %v23930_v46 = vld [vmem:[%s25255_s3 + $0x11b0] sm:$0xff]  }
 0x23a   : > { %v21440_v54 = vpop.f32.mrf.mxu1  ;;  %16342 = vmatmul.mubr.bf16.vlgmr.msra.gmra.mxu1 %v3992_v48  ;;  %v21419_v55 = vpop.f32.mrf.mxu0  ;;  %21712 = vmatprep.subr.bf16.mxu0 %v23895_v49  ;;  %v23931_v49 = vld [vmem:[%s25255_s3 + $0x1168] sm:$0xff]  }
 0x23b   : > { %21733 = vmatpush3.bf16.msra.mxu1 %v23894_v47  ;;  %v21420_v57 = vadd.f32 %v21419_v55, %v21418_v51  ;;  %16421 = vmatprep.mubr.bf16.mxu1 %v4042_v34  ;;  %v23932_v51 = vld [vmem:[%s25255_s3 + $0x11e8] sm:$0xff]  }
 0x23c   : > { %v21441_v59 = vpop.f32.mrf.mxu1  ;;  %v21421_v61 = vpop.f32.mrf.mxu0  ;;  %21734 = vmatprep.subr.bf16.mxu1 %v23896_v50 }
 0x23d   : > { %v15824_v62 = vadd.f32 %v21420_v57, %v25889_v21  ;;  %v21442_v63 = vadd.f32 %v21441_v59, %v21440_v54  ;;  %21713 = vmatpush3.bf16.msra.mxu0 %v23897_v52  ;;  %v23918_v21 = vld [vmem:[%s25255_s3 + $0x1088] sm:$0xff]   ;;  %v23935_v61 = vld [vmem:[%s25255_s3 + $0x1160] sm:$0xff]  }
 0x23e   : > { %v21443_v1 = vpop.f32.mrf.mxu1  ;;  %v21422_v2 = vpop.f32.mrf.mxu0  ;;  %21714 = vmatprep.subr.bf16.mxu0 %v23899_v56  ;;  %v23933_v54 = vld [vmem:[%s25255_s3 + $0x1128] sm:$0xff]  }
 0x23f   : > { %v25926_v4 = vadd.f32 %v21442_v63, %v15824_v62  ;;  %21735 = vmatpush3.bf16.msra.mxu1 %v23898_v53  ;;  %v23934_v57 = vld [vmem:[%s25255_s3 + $0x11a8] sm:$0xff]   ;;  %v23936_v62 = vld [vmem:[%s25255_s3 + $0x11e0] sm:$0xff]   ;;  %v23939_v2 = vld [vmem:[%s25255_s3 + $0x1158] sm:$0xff]  }
 0x240   : > { %v21444_v6 = vpop.f32.mrf.mxu1  ;;  %21736 = vmatprep.subr.bf16.mxu1 %v23900_v58  ;;  %v23938_v1 = vld [vmem:[%s25255_s3 + $0x11a0] sm:$0xff]  }
 0x241   : > { %21715 = vmatpush3.bf16.msra.mxu0 %v23901_v60  ;;  %v23943_v6 = vld [vmem:[%s25255_s3 + $0x1150] sm:$0xff]  }
 0x242   : > { %21716 = vmatprep.subr.bf16.mxu0 %v23903_v3  ;;  %v23940_v3 = vld [vmem:[%s25255_s3 + $0x11d8] sm:$0xff]  }
 0x243   : > { %21737 = vmatpush3.bf16.msra.mxu1 %v23902_v0  ;;  %v23937_v0 = vld [vmem:[%s25255_s3 + $0x1120] sm:$0xff]  }
 0x244   : > { %21738 = vmatprep.subr.bf16.mxu1 %v23904_v5  ;;  %v23942_v5 = vld [vmem:[%s25255_s3 + $0x1198] sm:$0xff]  }
 0x245   : > { %21717 = vmatpush3.bf16.msra.mxu0 %v23905_v7  ;;  %v23944_v7 = vld [vmem:[%s25255_s3 + $0x11d0] sm:$0xff]  }
 0x246   : > { %21718 = vmatprep.subr.bf16.mxu0 %v23907_v9  ;;  %v23946_v9 = vld [vmem:[%s25255_s3 + $0x1190] sm:$0xff]  }
 0x247   : > { %21739 = vmatpush3.bf16.msra.mxu1 %v23906_v8  ;;  %v23945_v8 = vld [vmem:[%s25255_s3 + $0x1110] sm:$0xff]  }
 0x248   : > { %21740 = vmatprep.subr.bf16.mxu1 %v23908_v10  ;;  %v23947_v10 = vld [vmem:[%s25255_s3 + $0x1148] sm:$0xff]  }
 0x249   : > { %21719 = vmatpush3.bf16.msra.mxu0 %v23909_v11  ;;  %v23948_v11 = vld [vmem:[%s25255_s3 + $0x11c8] sm:$0xff]  }
 0x24a   : > { %21720 = vmatprep.subr.bf16.mxu0 %v23911_v13  ;;  %v23950_v13 = vld [vmem:[%s25255_s3 + $0x1188] sm:$0xff]  }
 0x24b   : > { %21741 = vmatpush3.bf16.msra.mxu1 %v23910_v12  ;;  %v23949_v12 = vld [vmem:[%s25255_s3 + $0x1108] sm:$0xff]  }
 0x24c   : > { %21742 = vmatprep.subr.bf16.mxu1 %v23912_v14  ;;  %v23951_v14 = vld [vmem:[%s25255_s3 + $0x1140] sm:$0xff]  }
 0x24d   : > { %21721 = vmatpush3.bf16.msra.mxu0 %v23913_v15  ;;  %v23952_v15 = vld [vmem:[%s25255_s3 + $0x11c0] sm:$0xff]  }
 0x24e   : > { %21722 = vmatprep.subr.bf16.mxu0 %v23915_v17  ;;  %v23954_v17 = vld [vmem:[%s25255_s3 + $0x1180] sm:$0xff]  }
 0x24f   : > { %21743 = vmatpush3.bf16.msra.mxu1 %v23914_v16  ;;  %v23953_v16 = vld [vmem:[%s25255_s3 + $0x1100] sm:$0xff]  }
 0x250   : > { %21744 = vmatprep.subr.bf16.mxu1 %v23916_v18  ;;  %v4025_v18 = vrot.slane %v25948_v27, %v25311_v42  ;;  %v23962_v27 = vld [vmem:[%s25255_s3 + $0x1230] sm:$0xff]  }
 0x251   : > { %21723 = vmatpush3.bf16.msra.mxu0 %v23917_v19  ;;  %v23956_v19 = vld [vmem:[%s25255_s3 + $0x1278] sm:$0xff]  }
 0x252   : > { %21724 = vmatprep.subr.bf16.mxu0 %v23919_v24  ;;  %v4041_v23 = vcombine.high %v4025_v18, %v4025_v18  ;;  %v23960_v24 = vld [vmem:[%s25255_s3 + $0x1270] sm:$0xff]  }
 0x253   : > { %21745 = vmatpush3.bf16.msra.mxu1 %v23918_v21  ;;  %v23958_v21 = vld [vmem:[%s25255_s3 + $0x1238] sm:$0xff]  }
 0x254   : > { %21746 = vmatprep.subr.bf16.mxu1 %v23920_v25  ;;  %v23961_v25 = vld [vmem:[%s25255_s3 + $0x12f0] sm:$0xff]  }
 0x255   : > { %21725 = vmatpush3.bf16.msra.mxu0 %v23921_v28  ;;  %v23963_v28 = vld [vmem:[%s25255_s3 + $0x12b0] sm:$0xff]  }
 0x256   : > { %21754 = vmatprep.subr.bf16.mxu0 %v23923_v33  ;;  %v23965_v33 = vld [vmem:[%s25255_s3 + $0x12e8] sm:$0xff]  }
 0x257   : > { %21747 = vmatpush3.bf16.msra.mxu1 %v23922_v29 }
 0x258   : > { %v21462_v44 = vpop.f32.mrf.mxu0  ;;  %16382 = vmatmul.mubr.bf16.vlgmr.msra.gmra.mxu0 %v4018_v32  ;;  %21776 = vmatprep.subr.bf16.mxu1 %v23924_v36 }
 0x259   : > { %21755 = vmatpush3.bf16.msra.mxu0 %v23925_v37  ;;  %16461 = vmatprep.mubr.bf16.mxu0 %v4039_v35  ;;  %v23966_v35 = vld [vmem:[%s25255_s3 + $0x1228] sm:$0xff]  }
 0x25a   : > { %v21484_v47 = vpop.f32.mrf.mxu1  ;;  %16422 = vmatmul.mubr.bf16.vlgmr.msra.gmra.mxu1 %v4040_v39  ;;  %v21463_v48 = vpop.f32.mrf.mxu0  ;;  %21756 = vmatprep.subr.bf16.mxu0 %v23927_v40  ;;  %v23967_v39 = vld [vmem:[%s25255_s3 + $0x12a8] sm:$0xff]  }
 0x25b   : > { %21777 = vmatpush3.bf16.msra.mxu1 %v23926_v38  ;;  %v21464_v50 = vadd.f32 %v21463_v48, %v21462_v44  ;;  %16501 = vmatprep.mubr.bf16.mxu1 %v4043_v43  ;;  %v23968_v43 = vld [vmem:[%s25255_s3 + $0x1260] sm:$0xff]  }
 0x25c   : > { %v21485_v52 = vpop.f32.mrf.mxu1  ;;  %v21465_v53 = vpop.f32.mrf.mxu0  ;;  %21778 = vmatprep.subr.bf16.mxu1 %v23928_v41  ;;  %v23971_v48 = vld [vmem:[%s25255_s3 + $0x12a0] sm:$0xff]  }
 0x25d   : > { %v15904_v55 = vadd.f32 %v21464_v50, %v25926_v4  ;;  %v21486_v56 = vadd.f32 %v21485_v52, %v21484_v47  ;;  %21757 = vmatpush3.bf16.msra.mxu0 %v23929_v45  ;;  %v23941_v4 = vld [vmem:[%s25255_s3 + $0x1118] sm:$0xff]   ;;  %v23969_v45 = vld [vmem:[%s25255_s3 + $0x12e0] sm:$0xff]   ;;  %v23976_v53 = vld [vmem:[%s25255_s3 + $0x1250] sm:$0xff]  }
 0x25e   : > { %v21487_v58 = vpop.f32.mrf.mxu1  ;;  %v21466_v59 = vpop.f32.mrf.mxu0  ;;  %21758 = vmatprep.subr.bf16.mxu0 %v23931_v49  ;;  %v23970_v47 = vld [vmem:[%s25255_s3 + $0x1220] sm:$0xff]   ;;  %v23972_v49 = vld [vmem:[%s25255_s3 + $0x1258] sm:$0xff]  }
 0x25f   : > { %v25971_v60 = vadd.f32 %v21486_v56, %v15904_v55  ;;  %21779 = vmatpush3.bf16.msra.mxu1 %v23930_v46  ;;  %v23973_v50 = vld [vmem:[%s25255_s3 + $0x12d8] sm:$0xff]   ;;  %v23978_v55 = vld [vmem:[%s25255_s3 + $0x1210] sm:$0xff]   ;;  %v23981_v58 = vld [vmem:[%s25255_s3 + $0x12c8] sm:$0xff]  }
 0x260   : > { %v21488_v63 = vpop.f32.mrf.mxu1  ;;  %21780 = vmatprep.subr.bf16.mxu1 %v23932_v51  ;;  %v23974_v51 = vld [vmem:[%s25255_s3 + $0x1218] sm:$0xff]   ;;  %v23979_v56 = vld [vmem:[%s25255_s3 + $0x1290] sm:$0xff]   ;;  %v23982_v59 = vld [vmem:[%s25255_s3 + $0x1208] sm:$0xff]  }
 0x261   : > { %21759 = vmatpush3.bf16.msra.mxu0 %v23933_v54  ;;  %v23975_v52 = vld [vmem:[%s25255_s3 + $0x1298] sm:$0xff]   ;;  %v23977_v54 = vld [vmem:[%s25255_s3 + $0x12d0] sm:$0xff]  }
 0x262   : > { %21760 = vmatprep.subr.bf16.mxu0 %v23935_v61  ;;  %v23983_v61 = vld [vmem:[%s25255_s3 + $0x1288] sm:$0xff]  }
 0x263   : > { %21781 = vmatpush3.bf16.msra.mxu1 %v23934_v57  ;;  %v23980_v57 = vld [vmem:[%s25255_s3 + $0x1248] sm:$0xff]  }
 0x264   : > { %21782 = vmatprep.subr.bf16.mxu1 %v23936_v62  ;;  %v23984_v62 = vld [vmem:[%s25255_s3 + $0x1240] sm:$0xff]  }
 0x265   : > { %21761 = vmatpush3.bf16.msra.mxu0 %v23937_v0 }
 0x266   : > { %21762 = vmatprep.subr.bf16.mxu0 %v23939_v2  ;;  %v23986_v2 = vld [vmem:[%s25255_s3 + $0x1200] sm:$0xff]  }
 0x267   : > { %21783 = vmatpush3.bf16.msra.mxu1 %v23938_v1  ;;  %v23985_v1 = vld [vmem:[%s25255_s3 + $0x12c0] sm:$0xff]  }
 0x268   : > { %21784 = vmatprep.subr.bf16.mxu1 %v23940_v3 }
 0x269   : > { %21763 = vmatpush3.bf16.msra.mxu0 %v23941_v4 }
 0x26a   : > { %21764 = vmatprep.subr.bf16.mxu0 %v23943_v6 }
 0x26b   : > { %21785 = vmatpush3.bf16.msra.mxu1 %v23942_v5  ;;  %v23987_v5 = vld [vmem:[%s25255_s3 + $0x1280] sm:$0xff]  }
 0x26c   : > { %21786 = vmatprep.subr.bf16.mxu1 %v23944_v7 }
 0x26d   : > { %21765 = vmatpush3.bf16.msra.mxu0 %v23945_v8  ;;  %v23988_v8 = vld [vmem:[%s25255_s3 + $0x1378] sm:$0xff]  }
 0x26e   : > { %21766 = vmatprep.subr.bf16.mxu0 %v23947_v10  ;;  %v23989_v10 = vld [vmem:[%s25255_s3 + $0x13f8] sm:$0xff]  }
 0x26f   : > { %21787 = vmatpush3.bf16.msra.mxu1 %v23946_v9 }
 0x270   : > { %21788 = vmatprep.subr.bf16.mxu1 %v23948_v11 }
 0x271   : > { %21767 = vmatpush3.bf16.msra.mxu0 %v23949_v12  ;;  %v23990_v12 = vld [vmem:[%s25255_s3 + $0x1338] sm:$0xff]  }
 0x272   : > { %21768 = vmatprep.subr.bf16.mxu0 %v23951_v14  ;;  %v23991_v14 = vld [vmem:[%s25255_s3 + $0x13b8] sm:$0xff]  }
 0x273   : > { %21789 = vmatpush3.bf16.msra.mxu1 %v23950_v13 }
 0x274   : > { %21790 = vmatprep.subr.bf16.mxu1 %v23952_v15 }
 0x275   : > { %21769 = vmatpush3.bf16.msra.mxu0 %v23953_v16  ;;  %v23992_v16 = vld [vmem:[%s25255_s3 + $0x1370] sm:$0xff]  }
 0x276   : > { %21798 = vmatprep.subr.bf16.mxu0 %v23956_v19 }
 0x277   : > { %21791 = vmatpush3.bf16.msra.mxu1 %v23954_v17  ;;  %v23993_v17 = vld [vmem:[%s25255_s3 + $0x13f0] sm:$0xff]  }
 0x278   : > { %v21506_v26 = vpop.f32.mrf.mxu0  ;;  %16462 = vmatmul.mubr.bf16.vlgmr.msra.gmra.mxu0 %v4025_v18  ;;  %21820 = vmatprep.subr.bf16.mxu1 %v23957_v20  ;;  %v23994_v20 = vld [vmem:[%s25255_s3 + $0x1330] sm:$0xff]  }
 0x279   : > { %21799 = vmatpush3.bf16.msra.mxu0 %v23958_v21  ;;  %v23995_v21 = vld [vmem:[%s25255_s3 + $0x13b0] sm:$0xff]  }
 0x27a   : > { %v21528_v29 = vpop.f32.mrf.mxu1  ;;  %16502 = vmatmul.mubr.bf16.vlgmr.msra.gmra.mxu1 %v4041_v23  ;;  %v21507_v30 = vpop.f32.mrf.mxu0  ;;  %21800 = vmatprep.subr.bf16.mxu0 %v23960_v24  ;;  %v23996_v24 = vld [vmem:[%s25255_s3 + $0x1368] sm:$0xff]  }
 0x27b   : > { %21821 = vmatpush3.bf16.msra.mxu1 %v23959_v22  ;;  %v21508_v32 = vadd.f32 %v21507_v30, %v21506_v26  ;;  %v23997_v26 = vld [vmem:[%s25255_s3 + $0x13e8] sm:$0xff]  }
 0x27c   : > { %v21529_v34 = vpop.f32.mrf.mxu1  ;;  %v21509_v36 = vpop.f32.mrf.mxu0  ;;  %21822 = vmatprep.subr.bf16.mxu1 %v23961_v25 }
 0x27d   : > { %v15984_v37 = vadd.f32 %v21508_v32, %v25971_v60  ;;  %v21530_v38 = vadd.f32 %v21529_v34, %v21528_v29  ;;  %21801 = vmatpush3.bf16.msra.mxu0 %v23962_v27  ;;  %v232_v60 = vld [vmem:[%s25273_s20 + $0x48] sm:$0xff] }
 0x27e   : > { %v21531_v40 = vpop.f32.mrf.mxu1  ;;  %v21510_v41 = vpop.f32.mrf.mxu0  ;;  %21802 = vmatprep.subr.bf16.mxu0 %v23964_v31  ;;  %v4051_v63 = vrot.slane %v232_v60, %v25311_v42  ;;  %v4044_v0 = vcombine.high %v232_v60, %v232_v60  ;;  %v23998_v29 = vld [vmem:[%s25255_s3 + $0x1328] sm:$0xff]   ;;  %v24000_v36 = vld [vmem:[%s25255_s3 + $0x1360] sm:$0xff]   ;;  %v24023_v60 = vld [vmem:[%s25255_s3 + $0x1438] sm:$0xff]  }
 0x27f   : > { %v26008_v44 = vadd.f32 %v21530_v38, %v15984_v37  ;;  %21823 = vmatpush3.bf16.msra.mxu1 %v23963_v28  ;;  %v23999_v32 = vld [vmem:[%s25255_s3 + $0x13a8] sm:$0xff]   ;;  %v24001_v37 = vld [vmem:[%s25255_s3 + $0x13e0] sm:$0xff]   ;;  %v24004_v41 = vld [vmem:[%s25255_s3 + $0x1358] sm:$0xff]  }
 0x280   : > { %v21532_v46 = vpop.f32.mrf.mxu1  ;;  %21824 = vmatprep.subr.bf16.mxu1 %v23965_v33  ;;  %v4059_v3 = vcombine.high %v4051_v63, %v4051_v63  ;;  %v26031_v4 = vrot.slane %v4044_v0, %v25311_v42  ;;  %v4067_v7 = vrot.slane %v4051_v63, %v25311_v42  ;;  %v24003_v40 = vld [vmem:[%s25255_s3 + $0x13a0] sm:$0xff]   ;;  %v24025_v0 = vld [vmem:[%s25255_s3 + $0x1470] sm:$0xff]  }
 0x281   : > { %21803 = vmatpush3.bf16.msra.mxu0 %v23966_v35  ;;  %v24008_v46 = vld [vmem:[%s25255_s3 + $0x1350] sm:$0xff]  }
 0x282   : > { %21804 = vmatprep.subr.bf16.mxu0 %v23968_v43  ;;  %v4081_v6 = vrot.slane %v4059_v3, %v25311_v42  ;;  %v4060_v9 = vcombine.high %v26031_v4, %v26031_v4  ;;  %v4089_v15 = vcombine.high %v4067_v7, %v4067_v7  ;;  %v24005_v43 = vld [vmem:[%s25255_s3 + $0x13d8] sm:$0xff]   ;;  %v24027_v3 = vld [vmem:[%s25255_s3 + $0x1430] sm:$0xff]  }
 0x283   : > { %21825 = vmatpush3.bf16.msra.mxu1 %v23967_v39  ;;  %v24002_v39 = vld [vmem:[%s25255_s3 + $0x1320] sm:$0xff]  }
 0x284   : > { %21826 = vmatprep.subr.bf16.mxu1 %v23969_v45  ;;  %16541 = vmatprep.mubr.bf16.mxu0 %v4081_v6  ;;  %v4091_v11 = vcombine.high %v4081_v6, %v4081_v6  ;;  %v4088_v13 = vrot.slane %v4060_v9, %v25311_v42  ;;  %v24007_v45 = vld [vmem:[%s25255_s3 + $0x1398] sm:$0xff]   ;;  %v24030_v9 = vld [vmem:[%s25255_s3 + $0x14e8] sm:$0xff]  }
 0x285   : > { %21805 = vmatpush3.bf16.msra.mxu0 %v23970_v47  ;;  %v24009_v47 = vld [vmem:[%s25255_s3 + $0x13d0] sm:$0xff]  }
 0x286   : > { %21806 = vmatprep.subr.bf16.mxu0 %v23972_v49  ;;  %16581 = vmatprep.mubr.bf16.mxu1 %v4091_v11  ;;  %v4092_v18 = vcombine.high %v4088_v13, %v4088_v13  ;;  %v24011_v49 = vld [vmem:[%s25255_s3 + $0x1390] sm:$0xff]  }
 0x287   : > { %21827 = vmatpush3.bf16.msra.mxu1 %v23971_v48  ;;  %v24010_v48 = vld [vmem:[%s25255_s3 + $0x1310] sm:$0xff]  }
 0x288   : > { %21828 = vmatprep.subr.bf16.mxu1 %v23973_v50  ;;  %v24012_v50 = vld [vmem:[%s25255_s3 + $0x1348] sm:$0xff]  }
 0x289   : > { %21807 = vmatpush3.bf16.msra.mxu0 %v23974_v51  ;;  %v24013_v51 = vld [vmem:[%s25255_s3 + $0x13c8] sm:$0xff]  }
 0x28a   : > { %21808 = vmatprep.subr.bf16.mxu0 %v23976_v53  ;;  %v24015_v53 = vld [vmem:[%s25255_s3 + $0x1388] sm:$0xff]  }
 0x28b   : > { %21829 = vmatpush3.bf16.msra.mxu1 %v23975_v52  ;;  %v24014_v52 = vld [vmem:[%s25255_s3 + $0x1308] sm:$0xff]  }
 0x28c   : > { %21830 = vmatprep.subr.bf16.mxu1 %v23977_v54  ;;  %v24016_v54 = vld [vmem:[%s25255_s3 + $0x1340] sm:$0xff]  }
 0x28d   : > { %21809 = vmatpush3.bf16.msra.mxu0 %v23978_v55  ;;  %v24017_v55 = vld [vmem:[%s25255_s3 + $0x13c0] sm:$0xff]  }
 0x28e   : > { %21810 = vmatprep.subr.bf16.mxu0 %v23980_v57  ;;  %v24019_v57 = vld [vmem:[%s25255_s3 + $0x1380] sm:$0xff]  }
 0x28f   : > { %21831 = vmatpush3.bf16.msra.mxu1 %v23979_v56  ;;  %v24018_v56 = vld [vmem:[%s25255_s3 + $0x1300] sm:$0xff]  }
 0x290   : > { %21832 = vmatprep.subr.bf16.mxu1 %v23981_v58  ;;  %v4074_v58 = vrot.slane %v26031_v4, %v25311_v42  ;;  %v24028_v4 = vld [vmem:[%s25255_s3 + $0x14b0] sm:$0xff]  }
 0x291   : > { %21811 = vmatpush3.bf16.msra.mxu0 %v23982_v59  ;;  %v24021_v59 = vld [vmem:[%s25255_s3 + $0x1478] sm:$0xff]  }
 0x292   : > { %21812 = vmatprep.subr.bf16.mxu0 %v23984_v62  ;;  %v24024_v62 = vld [vmem:[%s25255_s3 + $0x14b8] sm:$0xff]   ;;  %v4090_v63 = vcombine.high %v4074_v58, %v4074_v58 }
 0x293   : > { %21833 = vmatpush3.bf16.msra.mxu1 %v23983_v61  ;;  %v24022_v61 = vld [vmem:[%s25255_s3 + $0x14f8] sm:$0xff]  }
 0x294   : > { %21834 = vmatprep.subr.bf16.mxu1 %v23985_v1  ;;  %v24026_v1 = vld [vmem:[%s25255_s3 + $0x14f0] sm:$0xff]  }
 0x295   : > { %21813 = vmatpush3.bf16.msra.mxu0 %v23986_v2 }
 0x296   : > { %21842 = vmatprep.subr.bf16.mxu0 %v23988_v8 }
 0x297   : > { %21835 = vmatpush3.bf16.msra.mxu1 %v23987_v5 }
 0x298   : > { %v21550_v19 = vpop.f32.mrf.mxu0  ;;  %16542 = vmatmul.mubr.bf16.vlgmr.msra.gmra.mxu0 %v4067_v7  ;;  %21864 = vmatprep.subr.bf16.mxu1 %v23989_v10  ;;  %v24029_v7 = vld [vmem:[%s25255_s3 + $0x1468] sm:$0xff]  }
 0x299   : > { %21843 = vmatpush3.bf16.msra.mxu0 %v23990_v12  ;;  %16621 = vmatprep.mubr.bf16.mxu0 %v4088_v13  ;;  %v24031_v12 = vld [vmem:[%s25255_s3 + $0x1428] sm:$0xff]  }
 0x29a   : > { %v21572_v22 = vpop.f32.mrf.mxu1  ;;  %16582 = vmatmul.mubr.bf16.vlgmr.msra.gmra.mxu1 %v4089_v15  ;;  %v21551_v23 = vpop.f32.mrf.mxu0  ;;  %21844 = vmatprep.subr.bf16.mxu0 %v23992_v16  ;;  %v24032_v15 = vld [vmem:[%s25255_s3 + $0x14a8] sm:$0xff]  }
 0x29b   : > { %21865 = vmatpush3.bf16.msra.mxu1 %v23991_v14  ;;  %v21552_v25 = vadd.f32 %v21551_v23, %v21550_v19  ;;  %16661 = vmatprep.mubr.bf16.mxu1 %v4092_v18  ;;  %v24033_v18 = vld [vmem:[%s25255_s3 + $0x1460] sm:$0xff]  }
 0x29c   : > { %v21573_v27 = vpop.f32.mrf.mxu1  ;;  %v21553_v28 = vpop.f32.mrf.mxu0  ;;  %21866 = vmatprep.subr.bf16.mxu1 %v23993_v17  ;;  %v24036_v23 = vld [vmem:[%s25255_s3 + $0x14a0] sm:$0xff]  }
 0x29d   : > { %v16064_v30 = vadd.f32 %v21552_v25, %v26008_v44  ;;  %v21574_v31 = vadd.f32 %v21573_v27, %v21572_v22  ;;  %21845 = vmatpush3.bf16.msra.mxu0 %v23994_v20  ;;  %v24006_v44 = vld [vmem:[%s25255_s3 + $0x1318] sm:$0xff]   ;;  %v24034_v20 = vld [vmem:[%s25255_s3 + $0x14e0] sm:$0xff]   ;;  %v24041_v28 = vld [vmem:[%s25255_s3 + $0x1450] sm:$0xff]  }
 0x29e   : > { %v21575_v33 = vpop.f32.mrf.mxu1  ;;  %v21554_v34 = vpop.f32.mrf.mxu0  ;;  %21846 = vmatprep.subr.bf16.mxu0 %v23996_v24  ;;  %v24035_v22 = vld [vmem:[%s25255_s3 + $0x1420] sm:$0xff]   ;;  %v24037_v24 = vld [vmem:[%s25255_s3 + $0x1458] sm:$0xff]  }
 0x29f   : > { %v26053_v35 = vadd.f32 %v21574_v31, %v16064_v30  ;;  %21867 = vmatpush3.bf16.msra.mxu1 %v23995_v21  ;;  %v24038_v25 = vld [vmem:[%s25255_s3 + $0x14d8] sm:$0xff]   ;;  %v24043_v30 = vld [vmem:[%s25255_s3 + $0x1410] sm:$0xff]   ;;  %v24046_v33 = vld [vmem:[%s25255_s3 + $0x14c8] sm:$0xff]  }
 0x2a0   : > { %v21576_v38 = vpop.f32.mrf.mxu1  ;;  %21868 = vmatprep.subr.bf16.mxu1 %v23997_v26  ;;  %v24039_v26 = vld [vmem:[%s25255_s3 + $0x1418] sm:$0xff]   ;;  %v24044_v31 = vld [vmem:[%s25255_s3 + $0x1490] sm:$0xff]   ;;  %v24047_v34 = vld [vmem:[%s25255_s3 + $0x1408] sm:$0xff]  }
 0x2a1   : > { %21847 = vmatpush3.bf16.msra.mxu0 %v23998_v29  ;;  %v24040_v27 = vld [vmem:[%s25255_s3 + $0x1498] sm:$0xff]   ;;  %v24042_v29 = vld [vmem:[%s25255_s3 + $0x14d0] sm:$0xff]  }
 0x2a2   : > { %21848 = vmatprep.subr.bf16.mxu0 %v24000_v36  ;;  %v24048_v36 = vld [vmem:[%s25255_s3 + $0x1488] sm:$0xff]  }
 0x2a3   : > { %21869 = vmatpush3.bf16.msra.mxu1 %v23999_v32  ;;  %v24045_v32 = vld [vmem:[%s25255_s3 + $0x1448] sm:$0xff]  }
 0x2a4   : > { %21870 = vmatprep.subr.bf16.mxu1 %v24001_v37  ;;  %v24049_v37 = vld [vmem:[%s25255_s3 + $0x1440] sm:$0xff]  }
 0x2a5   : > { %21849 = vmatpush3.bf16.msra.mxu0 %v24002_v39 }
 0x2a6   : > { %21850 = vmatprep.subr.bf16.mxu0 %v24004_v41  ;;  %v24051_v41 = vld [vmem:[%s25255_s3 + $0x1400] sm:$0xff]  }
 0x2a7   : > { %21871 = vmatpush3.bf16.msra.mxu1 %v24003_v40  ;;  %v24050_v40 = vld [vmem:[%s25255_s3 + $0x14c0] sm:$0xff]  }
 0x2a8   : > { %21872 = vmatprep.subr.bf16.mxu1 %v24005_v43 }
 0x2a9   : > { %21851 = vmatpush3.bf16.msra.mxu0 %v24006_v44 }
 0x2aa   : > { %21852 = vmatprep.subr.bf16.mxu0 %v24008_v46 }
 0x2ab   : > { %21873 = vmatpush3.bf16.msra.mxu1 %v24007_v45  ;;  %v24052_v45 = vld [vmem:[%s25255_s3 + $0x1480] sm:$0xff]  }
 0x2ac   : > { %21874 = vmatprep.subr.bf16.mxu1 %v24009_v47 }
 0x2ad   : > { %21853 = vmatpush3.bf16.msra.mxu0 %v24010_v48  ;;  %v24053_v48 = vld [vmem:[%s25255_s3 + $0x1578] sm:$0xff]  }
 0x2ae   : > { %21854 = vmatprep.subr.bf16.mxu0 %v24012_v50  ;;  %v24054_v50 = vld [vmem:[%s25255_s3 + $0x15f8] sm:$0xff]  }
 0x2af   : > { %21875 = vmatpush3.bf16.msra.mxu1 %v24011_v49 }
 0x2b0   : > { %21876 = vmatprep.subr.bf16.mxu1 %v24013_v51 }
 0x2b1   : > { %21855 = vmatpush3.bf16.msra.mxu0 %v24014_v52  ;;  %v24055_v52 = vld [vmem:[%s25255_s3 + $0x1538] sm:$0xff]  }
 0x2b2   : > { %21856 = vmatprep.subr.bf16.mxu0 %v24016_v54  ;;  %v24056_v54 = vld [vmem:[%s25255_s3 + $0x15b8] sm:$0xff]  }
 0x2b3   : > { %21877 = vmatpush3.bf16.msra.mxu1 %v24015_v53 }
 0x2b4   : > { %21878 = vmatprep.subr.bf16.mxu1 %v24017_v55 }
 0x2b5   : > { %21857 = vmatpush3.bf16.msra.mxu0 %v24018_v56  ;;  %v24057_v56 = vld [vmem:[%s25255_s3 + $0x1570] sm:$0xff]  }
 0x2b6   : > { %21886 = vmatprep.subr.bf16.mxu0 %v24021_v59 }
 0x2b7   : > { %21879 = vmatpush3.bf16.msra.mxu1 %v24019_v57  ;;  %v24058_v57 = vld [vmem:[%s25255_s3 + $0x15f0] sm:$0xff]  }
 0x2b8   : > { %v21594_v2 = vpop.f32.mrf.mxu0  ;;  %16622 = vmatmul.mubr.bf16.vlgmr.msra.gmra.mxu0 %v4074_v58  ;;  %21908 = vmatprep.subr.bf16.mxu1 %v24022_v61  ;;  %v24059_v61 = vld [vmem:[%s25255_s3 + $0x1530] sm:$0xff]  }
 0x2b9   : > { %21887 = vmatpush3.bf16.msra.mxu0 %v24023_v60  ;;  %v24060_v60 = vld [vmem:[%s25255_s3 + $0x15b0] sm:$0xff]  }
 0x2ba   : > { %v21616_v5 = vpop.f32.mrf.mxu1  ;;  %16662 = vmatmul.mubr.bf16.vlgmr.msra.gmra.mxu1 %v4090_v63  ;;  %v21595_v6 = vpop.f32.mrf.mxu0  ;;  %21888 = vmatprep.subr.bf16.mxu0 %v24025_v0  ;;  %v24061_v0 = vld [vmem:[%s25255_s3 + $0x1568] sm:$0xff]  }
 0x2bb   : > { %21909 = vmatpush3.bf16.msra.mxu1 %v24024_v62  ;;  %v21596_v8 = vadd.f32 %v21595_v6, %v21594_v2  ;;  %v24062_v2 = vld [vmem:[%s25255_s3 + $0x15e8] sm:$0xff]  }
 0x2bc   : > { %v21617_v10 = vpop.f32.mrf.mxu1  ;;  %v21597_v11 = vpop.f32.mrf.mxu0  ;;  %21910 = vmatprep.subr.bf16.mxu1 %v24026_v1 }
 0x2bd   : > { %v16144_v13 = vadd.f32 %v21596_v8, %v26053_v35  ;;  %v21618_v14 = vadd.f32 %v21617_v10, %v21616_v5  ;;  %21889 = vmatpush3.bf16.msra.mxu0 %v24027_v3  ;;  %v233_v35 = vld [vmem:[%s25273_s20 + $0x50] sm:$0xff]  ;;  %v24065_v11 = vld [vmem:[%s25255_s3 + $0x1560] sm:$0xff]  }
 0x2be   : > { %v21619_v16 = vpop.f32.mrf.mxu1  ;;  %v21598_v17 = vpop.f32.mrf.mxu0  ;;  %21890 = vmatprep.subr.bf16.mxu0 %v24029_v7  ;;  %v4100_v38 = vrot.slane %v233_v35, %v25311_v42  ;;  %v4093_v39 = vcombine.high %v233_v35, %v233_v35  ;;  %v24063_v5 = vld [vmem:[%s25255_s3 + $0x1528] sm:$0xff]   ;;  %v24088_v35 = vld [vmem:[%s25255_s3 + $0x1638] sm:$0xff]  }
 0x2bf   : > { %v26090_v19 = vadd.f32 %v21618_v14, %v16144_v13  ;;  %21911 = vmatpush3.bf16.msra.mxu1 %v24028_v4  ;;  %v24064_v8 = vld [vmem:[%s25255_s3 + $0x15a8] sm:$0xff]   ;;  %v24066_v13 = vld [vmem:[%s25255_s3 + $0x15e0] sm:$0xff]   ;;  %v24069_v17 = vld [vmem:[%s25255_s3 + $0x1558] sm:$0xff]  }
 0x2c0   : > { %v21620_v21 = vpop.f32.mrf.mxu1  ;;  %21912 = vmatprep.subr.bf16.mxu1 %v24030_v9  ;;  %v4108_v43 = vcombine.high %v4100_v38, %v4100_v38  ;;  %v26113_v44 = vrot.slane %v4093_v39, %v25311_v42  ;;  %v4116_v47 = vrot.slane %v4100_v38, %v25311_v42  ;;  %v24068_v16 = vld [vmem:[%s25255_s3 + $0x15a0] sm:$0xff]   ;;  %v24090_v39 = vld [vmem:[%s25255_s3 + $0x1670] sm:$0xff]  }
 0x2c1   : > { %21891 = vmatpush3.bf16.msra.mxu0 %v24031_v12  ;;  %v24073_v21 = vld [vmem:[%s25255_s3 + $0x1550] sm:$0xff]  }
 0x2c2   : > { %21892 = vmatprep.subr.bf16.mxu0 %v24033_v18  ;;  %v4130_v46 = vrot.slane %v4108_v43, %v25311_v42  ;;  %v4109_v49 = vcombine.high %v26113_v44, %v26113_v44  ;;  %v4138_v55 = vcombine.high %v4116_v47, %v4116_v47  ;;  %v24070_v18 = vld [vmem:[%s25255_s3 + $0x15d8] sm:$0xff]   ;;  %v24092_v43 = vld [vmem:[%s25255_s3 + $0x1630] sm:$0xff]  }
 0x2c3   : > { %21913 = vmatpush3.bf16.msra.mxu1 %v24032_v15  ;;  %v24067_v15 = vld [vmem:[%s25255_s3 + $0x1520] sm:$0xff]  }
 0x2c4   : > { %21914 = vmatprep.subr.bf16.mxu1 %v24034_v20  ;;  %16701 = vmatprep.mubr.bf16.mxu0 %v4130_v46  ;;  %v4140_v51 = vcombine.high %v4130_v46, %v4130_v46  ;;  %v4137_v53 = vrot.slane %v4109_v49, %v25311_v42  ;;  %v24072_v20 = vld [vmem:[%s25255_s3 + $0x1598] sm:$0xff]   ;;  %v24095_v49 = vld [vmem:[%s25255_s3 + $0x16e8] sm:$0xff]  }
 0x2c5   : > { %21893 = vmatpush3.bf16.msra.mxu0 %v24035_v22  ;;  %v24074_v22 = vld [vmem:[%s25255_s3 + $0x15d0] sm:$0xff]  }
 0x2c6   : > { %21894 = vmatprep.subr.bf16.mxu0 %v24037_v24  ;;  %16741 = vmatprep.mubr.bf16.mxu1 %v4140_v51  ;;  %v4141_v58 = vcombine.high %v4137_v53, %v4137_v53  ;;  %v24076_v24 = vld [vmem:[%s25255_s3 + $0x1590] sm:$0xff]  }
 0x2c7   : > { %21915 = vmatpush3.bf16.msra.mxu1 %v24036_v23  ;;  %v24075_v23 = vld [vmem:[%s25255_s3 + $0x1510] sm:$0xff]  }
 0x2c8   : > { %21916 = vmatprep.subr.bf16.mxu1 %v24038_v25  ;;  %v24077_v25 = vld [vmem:[%s25255_s3 + $0x1548] sm:$0xff]  }
 0x2c9   : > { %21895 = vmatpush3.bf16.msra.mxu0 %v24039_v26  ;;  %v24078_v26 = vld [vmem:[%s25255_s3 + $0x15c8] sm:$0xff]  }
 0x2ca   : > { %21896 = vmatprep.subr.bf16.mxu0 %v24041_v28  ;;  %v24080_v28 = vld [vmem:[%s25255_s3 + $0x1588] sm:$0xff]  }
 0x2cb   : > { %21917 = vmatpush3.bf16.msra.mxu1 %v24040_v27  ;;  %v24079_v27 = vld [vmem:[%s25255_s3 + $0x1508] sm:$0xff]  }
 0x2cc   : > { %21918 = vmatprep.subr.bf16.mxu1 %v24042_v29  ;;  %v24081_v29 = vld [vmem:[%s25255_s3 + $0x1540] sm:$0xff]  }
 0x2cd   : > { %21897 = vmatpush3.bf16.msra.mxu0 %v24043_v30  ;;  %v24082_v30 = vld [vmem:[%s25255_s3 + $0x15c0] sm:$0xff]  }
 0x2ce   : > { %21898 = vmatprep.subr.bf16.mxu0 %v24045_v32  ;;  %v24084_v32 = vld [vmem:[%s25255_s3 + $0x1580] sm:$0xff]  }
 0x2cf   : > { %21919 = vmatpush3.bf16.msra.mxu1 %v24044_v31  ;;  %v24083_v31 = vld [vmem:[%s25255_s3 + $0x1500] sm:$0xff]  }
 0x2d0   : > { %21920 = vmatprep.subr.bf16.mxu1 %v24046_v33  ;;  %v4123_v33 = vrot.slane %v26113_v44, %v25311_v42  ;;  %v24093_v44 = vld [vmem:[%s25255_s3 + $0x16b0] sm:$0xff]  }
 0x2d1   : > { %21899 = vmatpush3.bf16.msra.mxu0 %v24047_v34  ;;  %v24086_v34 = vld [vmem:[%s25255_s3 + $0x1678] sm:$0xff]  }
 0x2d2   : > { %21900 = vmatprep.subr.bf16.mxu0 %v24049_v37  ;;  %v24089_v37 = vld [vmem:[%s25255_s3 + $0x16b8] sm:$0xff]   ;;  %v4139_v38 = vcombine.high %v4123_v33, %v4123_v33 }
 0x2d3   : > { %21921 = vmatpush3.bf16.msra.mxu1 %v24048_v36  ;;  %v24087_v36 = vld [vmem:[%s25255_s3 + $0x16f8] sm:$0xff]  }
 0x2d4   : > { %21922 = vmatprep.subr.bf16.mxu1 %v24050_v40  ;;  %v24091_v40 = vld [vmem:[%s25255_s3 + $0x16f0] sm:$0xff]  }
 0x2d5   : > { %21901 = vmatpush3.bf16.msra.mxu0 %v24051_v41 }
 0x2d6   : > { %21930 = vmatprep.subr.bf16.mxu0 %v24053_v48 }
 0x2d7   : > { %21923 = vmatpush3.bf16.msra.mxu1 %v24052_v45 }
 0x2d8   : > { %v21638_v59 = vpop.f32.mrf.mxu0  ;;  %16702 = vmatmul.mubr.bf16.vlgmr.msra.gmra.mxu0 %v4116_v47  ;;  %21952 = vmatprep.subr.bf16.mxu1 %v24054_v50  ;;  %v24094_v47 = vld [vmem:[%s25255_s3 + $0x1668] sm:$0xff]  }
 0x2d9   : > { %21931 = vmatpush3.bf16.msra.mxu0 %v24055_v52  ;;  %16781 = vmatprep.mubr.bf16.mxu0 %v4137_v53  ;;  %v24096_v52 = vld [vmem:[%s25255_s3 + $0x1628] sm:$0xff]  }
 0x2da   : > { %v21660_v62 = vpop.f32.mrf.mxu1  ;;  %16742 = vmatmul.mubr.bf16.vlgmr.msra.gmra.mxu1 %v4138_v55  ;;  %v21639_v63 = vpop.f32.mrf.mxu0  ;;  %21932 = vmatprep.subr.bf16.mxu0 %v24057_v56  ;;  %v24097_v55 = vld [vmem:[%s25255_s3 + $0x16a8] sm:$0xff]  }
 0x2db   : > { %21953 = vmatpush3.bf16.msra.mxu1 %v24056_v54  ;;  %v21640_v1 = vadd.f32 %v21639_v63, %v21638_v59  ;;  %16821 = vmatprep.mubr.bf16.mxu1 %v4141_v58  ;;  %v24098_v58 = vld [vmem:[%s25255_s3 + $0x1660] sm:$0xff]  }
 0x2dc   : > { %v21661_v3 = vpop.f32.mrf.mxu1  ;;  %v21641_v4 = vpop.f32.mrf.mxu0  ;;  %21954 = vmatprep.subr.bf16.mxu1 %v24058_v57  ;;  %v24101_v63 = vld [vmem:[%s25255_s3 + $0x16a0] sm:$0xff]  }
 0x2dd   : > { %v16224_v6 = vadd.f32 %v21640_v1, %v26090_v19  ;;  %v21662_v7 = vadd.f32 %v21661_v3, %v21660_v62  ;;  %21933 = vmatpush3.bf16.msra.mxu0 %v24059_v61  ;;  %v24071_v19 = vld [vmem:[%s25255_s3 + $0x1518] sm:$0xff]   ;;  %v24099_v61 = vld [vmem:[%s25255_s3 + $0x16e0] sm:$0xff]   ;;  %v24106_v4 = vld [vmem:[%s25255_s3 + $0x1650] sm:$0xff]  }
 0x2de   : > { %v21663_v9 = vpop.f32.mrf.mxu1  ;;  %v21642_v10 = vpop.f32.mrf.mxu0  ;;  %21934 = vmatprep.subr.bf16.mxu0 %v24061_v0  ;;  %v24100_v62 = vld [vmem:[%s25255_s3 + $0x1620] sm:$0xff]   ;;  %v24102_v0 = vld [vmem:[%s25255_s3 + $0x1658] sm:$0xff]  }
 0x2df   : > { %v26135_v12 = vadd.f32 %v21662_v7, %v16224_v6  ;;  %21955 = vmatpush3.bf16.msra.mxu1 %v24060_v60  ;;  %v24103_v1 = vld [vmem:[%s25255_s3 + $0x16d8] sm:$0xff]   ;;  %v24108_v6 = vld [vmem:[%s25255_s3 + $0x1610] sm:$0xff]   ;;  %v24111_v9 = vld [vmem:[%s25255_s3 + $0x16c8] sm:$0xff]  }
 0x2e0   : > { %v21664_v14 = vpop.f32.mrf.mxu1  ;;  %21956 = vmatprep.subr.bf16.mxu1 %v24062_v2  ;;  %v24104_v2 = vld [vmem:[%s25255_s3 + $0x1618] sm:$0xff]   ;;  %v24109_v7 = vld [vmem:[%s25255_s3 + $0x1690] sm:$0xff]   ;;  %v24112_v10 = vld [vmem:[%s25255_s3 + $0x1608] sm:$0xff]  }
 0x2e1   : > { %21935 = vmatpush3.bf16.msra.mxu0 %v24063_v5  ;;  %v24105_v3 = vld [vmem:[%s25255_s3 + $0x1698] sm:$0xff]   ;;  %v24107_v5 = vld [vmem:[%s25255_s3 + $0x16d0] sm:$0xff]  }
 0x2e2   : > { %21936 = vmatprep.subr.bf16.mxu0 %v24065_v11  ;;  %v24113_v11 = vld [vmem:[%s25255_s3 + $0x1688] sm:$0xff]  }
 0x2e3   : > { %21957 = vmatpush3.bf16.msra.mxu1 %v24064_v8  ;;  %v24110_v8 = vld [vmem:[%s25255_s3 + $0x1648] sm:$0xff]  }
 0x2e4   : > { %21958 = vmatprep.subr.bf16.mxu1 %v24066_v13  ;;  %v24114_v13 = vld [vmem:[%s25255_s3 + $0x1640] sm:$0xff]  }
 0x2e5   : > { %21937 = vmatpush3.bf16.msra.mxu0 %v24067_v15 }
 0x2e6   : > { %21938 = vmatprep.subr.bf16.mxu0 %v24069_v17  ;;  %v24116_v17 = vld [vmem:[%s25255_s3 + $0x1600] sm:$0xff]  }
 0x2e7   : > { %21959 = vmatpush3.bf16.msra.mxu1 %v24068_v16  ;;  %v24115_v16 = vld [vmem:[%s25255_s3 + $0x16c0] sm:$0xff]  }
 0x2e8   : > { %21960 = vmatprep.subr.bf16.mxu1 %v24070_v18 }
 0x2e9   : > { %21939 = vmatpush3.bf16.msra.mxu0 %v24071_v19 }
 0x2ea   : > { %21940 = vmatprep.subr.bf16.mxu0 %v24073_v21 }
 0x2eb   : > { %21961 = vmatpush3.bf16.msra.mxu1 %v24072_v20  ;;  %v24117_v20 = vld [vmem:[%s25255_s3 + $0x1680] sm:$0xff]  }
 0x2ec   : > { %21962 = vmatprep.subr.bf16.mxu1 %v24074_v22 }
 0x2ed   : > { %21941 = vmatpush3.bf16.msra.mxu0 %v24075_v23  ;;  %v24118_v23 = vld [vmem:[%s25255_s3 + $0x1778] sm:$0xff]  }
 0x2ee   : > { %21942 = vmatprep.subr.bf16.mxu0 %v24077_v25  ;;  %v24119_v25 = vld [vmem:[%s25255_s3 + $0x17f8] sm:$0xff]  }
 0x2ef   : > { %21963 = vmatpush3.bf16.msra.mxu1 %v24076_v24 }
 0x2f0   : > { %21964 = vmatprep.subr.bf16.mxu1 %v24078_v26 }
 0x2f1   : > { %21943 = vmatpush3.bf16.msra.mxu0 %v24079_v27  ;;  %v24120_v27 = vld [vmem:[%s25255_s3 + $0x1738] sm:$0xff]  }
 0x2f2   : > { %21944 = vmatprep.subr.bf16.mxu0 %v24081_v29  ;;  %v24121_v29 = vld [vmem:[%s25255_s3 + $0x17b8] sm:$0xff]  }
 0x2f3   : > { %21965 = vmatpush3.bf16.msra.mxu1 %v24080_v28 }
 0x2f4   : > { %21966 = vmatprep.subr.bf16.mxu1 %v24082_v30 }
 0x2f5   : > { %21945 = vmatpush3.bf16.msra.mxu0 %v24083_v31  ;;  %v24122_v31 = vld [vmem:[%s25255_s3 + $0x1770] sm:$0xff]  }
 0x2f6   : > { %21974 = vmatprep.subr.bf16.mxu0 %v24086_v34 }
 0x2f7   : > { %21967 = vmatpush3.bf16.msra.mxu1 %v24084_v32  ;;  %v24123_v32 = vld [vmem:[%s25255_s3 + $0x17f0] sm:$0xff]  }
 0x2f8   : > { %v21682_v41 = vpop.f32.mrf.mxu0  ;;  %16782 = vmatmul.mubr.bf16.vlgmr.msra.gmra.mxu0 %v4123_v33  ;;  %21996 = vmatprep.subr.bf16.mxu1 %v24087_v36  ;;  %v24124_v36 = vld [vmem:[%s25255_s3 + $0x1730] sm:$0xff]  }
 0x2f9   : > { %21975 = vmatpush3.bf16.msra.mxu0 %v24088_v35  ;;  %v24125_v35 = vld [vmem:[%s25255_s3 + $0x17b0] sm:$0xff]  }
 0x2fa   : > { %v21704_v45 = vpop.f32.mrf.mxu1  ;;  %16822 = vmatmul.mubr.bf16.vlgmr.msra.gmra.mxu1 %v4139_v38  ;;  %v21683_v46 = vpop.f32.mrf.mxu0  ;;  %21976 = vmatprep.subr.bf16.mxu0 %v24090_v39  ;;  %v24126_v39 = vld [vmem:[%s25255_s3 + $0x1768] sm:$0xff]  }
 0x2fb   : > { %21997 = vmatpush3.bf16.msra.mxu1 %v24089_v37  ;;  %v21684_v48 = vadd.f32 %v21683_v46, %v21682_v41  ;;  %v24127_v41 = vld [vmem:[%s25255_s3 + $0x17e8] sm:$0xff]  }
 0x2fc   : > { %v21705_v50 = vpop.f32.mrf.mxu1  ;;  %v21685_v51 = vpop.f32.mrf.mxu0  ;;  %21998 = vmatprep.subr.bf16.mxu1 %v24091_v40 }
 0x2fd   : > { %v16304_v53 = vadd.f32 %v21684_v48, %v26135_v12  ;;  %v21706_v54 = vadd.f32 %v21705_v50, %v21704_v45  ;;  %21977 = vmatpush3.bf16.msra.mxu0 %v24092_v43  ;;  %v234_v12 = vld [vmem:[%s25273_s20 + $0x58] sm:$0xff]  ;;  %v24128_v45 = vld [vmem:[%s25255_s3 + $0x1728] sm:$0xff]   ;;  %v24130_v51 = vld [vmem:[%s25255_s3 + $0x1760] sm:$0xff]  }
 0x2fe   : > { %v21707_v56 = vpop.f32.mrf.mxu1  ;;  %v21686_v57 = vpop.f32.mrf.mxu0  ;;  %21978 = vmatprep.subr.bf16.mxu0 %v24094_v47  ;;  %v4149_v14 = vrot.slane %v234_v12, %v25311_v42  ;;  %v4142_v15 = vcombine.high %v234_v12, %v234_v12  ;;  %v24129_v48 = vld [vmem:[%s25255_s3 + $0x17a8] sm:$0xff]   ;;  %v24153_v12 = vld [vmem:[%s25255_s3 + $0x1838] sm:$0xff]  }
 0x2ff   : > { %v26172_v59 = vadd.f32 %v21706_v54, %v16304_v53  ;;  %21999 = vmatpush3.bf16.msra.mxu1 %v24093_v44  ;;  %v24131_v53 = vld [vmem:[%s25255_s3 + $0x17e0] sm:$0xff]   ;;  %v24134_v57 = vld [vmem:[%s25255_s3 + $0x1758] sm:$0xff]  }
 0x300   : > { %v21708_v60 = vpop.f32.mrf.mxu1  ;;  %22000 = vmatprep.subr.bf16.mxu1 %v24095_v49  ;;  %v4157_v18 = vcombine.high %v4149_v14, %v4149_v14  ;;  %v26195_v19 = vrot.slane %v4142_v15, %v25311_v42  ;;  %v4165_v22 = vrot.slane %v4149_v14, %v25311_v42  ;;  %v24133_v56 = vld [vmem:[%s25255_s3 + $0x17a0] sm:$0xff]   ;;  %v24155_v15 = vld [vmem:[%s25255_s3 + $0x1870] sm:$0xff]  }
 0x301   : > { %21979 = vmatpush3.bf16.msra.mxu0 %v24096_v52  ;;  %v24138_v60 = vld [vmem:[%s25255_s3 + $0x1750] sm:$0xff]  }
 0x302   : > { %21980 = vmatprep.subr.bf16.mxu0 %v24098_v58  ;;  %v4179_v21 = vrot.slane %v4157_v18, %v25311_v42  ;;  %v4158_v24 = vcombine.high %v26195_v19, %v26195_v19  ;;  %v4187_v30 = vcombine.high %v4165_v22, %v4165_v22  ;;  %v24135_v58 = vld [vmem:[%s25255_s3 + $0x17d8] sm:$0xff]   ;;  %v24157_v18 = vld [vmem:[%s25255_s3 + $0x1830] sm:$0xff]  }
 0x303   : > { %22001 = vmatpush3.bf16.msra.mxu1 %v24097_v55  ;;  %v24132_v55 = vld [vmem:[%s25255_s3 + $0x1720] sm:$0xff]  }
 0x304   : > { %22002 = vmatprep.subr.bf16.mxu1 %v24099_v61  ;;  %16861 = vmatprep.mubr.bf16.mxu0 %v4179_v21  ;;  %v4189_v26 = vcombine.high %v4179_v21, %v4179_v21  ;;  %v4186_v28 = vrot.slane %v4158_v24, %v25311_v42  ;;  %v24137_v61 = vld [vmem:[%s25255_s3 + $0x1798] sm:$0xff]   ;;  %v24160_v24 = vld [vmem:[%s25255_s3 + $0x18e8] sm:$0xff]  }
 0x305   : > { %21981 = vmatpush3.bf16.msra.mxu0 %v24100_v62  ;;  %v24139_v62 = vld [vmem:[%s25255_s3 + $0x17d0] sm:$0xff]  }
 0x306   : > { %21982 = vmatprep.subr.bf16.mxu0 %v24102_v0  ;;  %16901 = vmatprep.mubr.bf16.mxu1 %v4189_v26  ;;  %v4190_v33 = vcombine.high %v4186_v28, %v4186_v28  ;;  %v24141_v0 = vld [vmem:[%s25255_s3 + $0x1790] sm:$0xff]  }
 0x307   : > { %22003 = vmatpush3.bf16.msra.mxu1 %v24101_v63  ;;  %v24140_v63 = vld [vmem:[%s25255_s3 + $0x1710] sm:$0xff]  }
 0x308   : > { %22004 = vmatprep.subr.bf16.mxu1 %v24103_v1  ;;  %v24142_v1 = vld [vmem:[%s25255_s3 + $0x1748] sm:$0xff]  }
 0x309   : > { %21983 = vmatpush3.bf16.msra.mxu0 %v24104_v2  ;;  %v24143_v2 = vld [vmem:[%s25255_s3 + $0x17c8] sm:$0xff]  }
 0x30a   : > { %21984 = vmatprep.subr.bf16.mxu0 %v24106_v4  ;;  %v24145_v4 = vld [vmem:[%s25255_s3 + $0x1788] sm:$0xff]  }
 0x30b   : > { %22005 = vmatpush3.bf16.msra.mxu1 %v24105_v3  ;;  %v24144_v3 = vld [vmem:[%s25255_s3 + $0x1708] sm:$0xff]  }
 0x30c   : > { %22006 = vmatprep.subr.bf16.mxu1 %v24107_v5  ;;  %v24146_v5 = vld [vmem:[%s25255_s3 + $0x1740] sm:$0xff]  }
 0x30d   : > { %21985 = vmatpush3.bf16.msra.mxu0 %v24108_v6  ;;  %v24147_v6 = vld [vmem:[%s25255_s3 + $0x17c0] sm:$0xff]  }
 0x30e   : > { %21986 = vmatprep.subr.bf16.mxu0 %v24110_v8  ;;  %v24149_v8 = vld [vmem:[%s25255_s3 + $0x1780] sm:$0xff]  }
 0x30f   : > { %22007 = vmatpush3.bf16.msra.mxu1 %v24109_v7  ;;  %v24148_v7 = vld [vmem:[%s25255_s3 + $0x1700] sm:$0xff]  }
 0x310   : > { %22008 = vmatprep.subr.bf16.mxu1 %v24111_v9  ;;  %v4172_v9 = vrot.slane %v26195_v19, %v25311_v42  ;;  %v24158_v19 = vld [vmem:[%s25255_s3 + $0x18b0] sm:$0xff]  }
 0x311   : > { %21987 = vmatpush3.bf16.msra.mxu0 %v24112_v10  ;;  %v24151_v10 = vld [vmem:[%s25255_s3 + $0x1878] sm:$0xff]  }
 0x312   : > { %21988 = vmatprep.subr.bf16.mxu0 %v24114_v13  ;;  %v24154_v13 = vld [vmem:[%s25255_s3 + $0x18b8] sm:$0xff]   ;;  %v4188_v14 = vcombine.high %v4172_v9, %v4172_v9 }
 0x313   : > { %22009 = vmatpush3.bf16.msra.mxu1 %v24113_v11  ;;  %v24152_v11 = vld [vmem:[%s25255_s3 + $0x18f8] sm:$0xff]  }
 0x314   : > { %22010 = vmatprep.subr.bf16.mxu1 %v24115_v16  ;;  %v24156_v16 = vld [vmem:[%s25255_s3 + $0x18f0] sm:$0xff]  }
 0x315   : > { %21989 = vmatpush3.bf16.msra.mxu0 %v24116_v17 }
 0x316   : > { %22018 = vmatprep.subr.bf16.mxu0 %v24118_v23 }
 0x317   : > { %22011 = vmatpush3.bf16.msra.mxu1 %v24117_v20 }
 0x318   : > { %v21726_v34 = vpop.f32.mrf.mxu0  ;;  %16862 = vmatmul.mubr.bf16.vlgmr.msra.gmra.mxu0 %v4165_v22  ;;  %22040 = vmatprep.subr.bf16.mxu1 %v24119_v25  ;;  %v24159_v22 = vld [vmem:[%s25255_s3 + $0x1868] sm:$0xff]  }
 0x319   : > { %22019 = vmatpush3.bf16.msra.mxu0 %v24120_v27  ;;  %16941 = vmatprep.mubr.bf16.mxu0 %v4186_v28  ;;  %v24161_v27 = vld [vmem:[%s25255_s3 + $0x1828] sm:$0xff]  }
 0x31a   : > { %v21748_v37 = vpop.f32.mrf.mxu1  ;;  %16902 = vmatmul.mubr.bf16.vlgmr.msra.gmra.mxu1 %v4187_v30  ;;  %v21727_v38 = vpop.f32.mrf.mxu0  ;;  %22020 = vmatprep.subr.bf16.mxu0 %v24122_v31  ;;  %v24162_v30 = vld [vmem:[%s25255_s3 + $0x18a8] sm:$0xff]  }
 0x31b   : > { %22041 = vmatpush3.bf16.msra.mxu1 %v24121_v29  ;;  %v21728_v40 = vadd.f32 %v21727_v38, %v21726_v34  ;;  %16981 = vmatprep.mubr.bf16.mxu1 %v4190_v33  ;;  %v24163_v33 = vld [vmem:[%s25255_s3 + $0x1860] sm:$0xff]  }
 0x31c   : > { %v21749_v43 = vpop.f32.mrf.mxu1  ;;  %v21729_v44 = vpop.f32.mrf.mxu0  ;;  %22042 = vmatprep.subr.bf16.mxu1 %v24123_v32  ;;  %v24166_v38 = vld [vmem:[%s25255_s3 + $0x18a0] sm:$0xff]  }
 0x31d   : > { %v16384_v46 = vadd.f32 %v21728_v40, %v26172_v59  ;;  %v21750_v47 = vadd.f32 %v21749_v43, %v21748_v37  ;;  %22021 = vmatpush3.bf16.msra.mxu0 %v24124_v36  ;;  %v24136_v59 = vld [vmem:[%s25255_s3 + $0x1718] sm:$0xff]   ;;  %v24164_v36 = vld [vmem:[%s25255_s3 + $0x18e0] sm:$0xff]   ;;  %v24171_v44 = vld [vmem:[%s25255_s3 + $0x1850] sm:$0xff]  }
 0x31e   : > { %v21751_v49 = vpop.f32.mrf.mxu1  ;;  %v21730_v50 = vpop.f32.mrf.mxu0  ;;  %22022 = vmatprep.subr.bf16.mxu0 %v24126_v39  ;;  %v24165_v37 = vld [vmem:[%s25255_s3 + $0x1820] sm:$0xff]   ;;  %v24167_v39 = vld [vmem:[%s25255_s3 + $0x1858] sm:$0xff]  }
 0x31f   : > { %v26217_v52 = vadd.f32 %v21750_v47, %v16384_v46  ;;  %22043 = vmatpush3.bf16.msra.mxu1 %v24125_v35  ;;  %v24168_v40 = vld [vmem:[%s25255_s3 + $0x18d8] sm:$0xff]   ;;  %v24173_v46 = vld [vmem:[%s25255_s3 + $0x1810] sm:$0xff]   ;;  %v24176_v49 = vld [vmem:[%s25255_s3 + $0x18c8] sm:$0xff]  }
 0x320   : > { %v21752_v54 = vpop.f32.mrf.mxu1  ;;  %22044 = vmatprep.subr.bf16.mxu1 %v24127_v41  ;;  %v24169_v41 = vld [vmem:[%s25255_s3 + $0x1818] sm:$0xff]   ;;  %v24174_v47 = vld [vmem:[%s25255_s3 + $0x1890] sm:$0xff]   ;;  %v24177_v50 = vld [vmem:[%s25255_s3 + $0x1808] sm:$0xff]  }
 0x321   : > { %22023 = vmatpush3.bf16.msra.mxu0 %v24128_v45  ;;  %v24170_v43 = vld [vmem:[%s25255_s3 + $0x1898] sm:$0xff]   ;;  %v24172_v45 = vld [vmem:[%s25255_s3 + $0x18d0] sm:$0xff]   ;;  %v24180_v54 = vld [vmem:[%s25255_s3 + $0x18c0] sm:$0xff]  }
 0x322   : > { %22024 = vmatprep.subr.bf16.mxu0 %v24130_v51  ;;  %v24178_v51 = vld [vmem:[%s25255_s3 + $0x1888] sm:$0xff]  }
 0x323   : > { %22045 = vmatpush3.bf16.msra.mxu1 %v24129_v48  ;;  %v24175_v48 = vld [vmem:[%s25255_s3 + $0x1848] sm:$0xff]  }
 0x324   : > { %22046 = vmatprep.subr.bf16.mxu1 %v24131_v53  ;;  %v235_v53 = vld [vmem:[%s25273_s20 + $0x60] sm:$0xff] }
 0x325   : > { %22025 = vmatpush3.bf16.msra.mxu0 %v24132_v55  ;;  %v4198_v55 = vrot.slane %v235_v53, %v25311_v42 }
 0x326   : > { %22026 = vmatprep.subr.bf16.mxu0 %v24134_v57  ;;  %v24181_v57 = vld [vmem:[%s25255_s3 + $0x1800] sm:$0xff]  }
 0x327   : > { %22047 = vmatpush3.bf16.msra.mxu1 %v24133_v56  ;;  %v4191_v56 = vcombine.high %v235_v53, %v235_v53  ;;  %v24219_v53 = vld [vmem:[%s25255_s3 + $0x1ab8] sm:$0xff]  }
 0x328   : > { %22048 = vmatprep.subr.bf16.mxu1 %v24135_v58  ;;  %v24182_v58 = vld [vmem:[%s25255_s3 + $0x1880] sm:$0xff]  }
 0x329   : > { %22027 = vmatpush3.bf16.msra.mxu0 %v24136_v59  ;;  %v4206_v59 = vcombine.high %v4198_v55, %v4198_v55 }
 0x32a   : > { %22028 = vmatprep.subr.bf16.mxu0 %v24138_v60  ;;  %v4214_v60 = vrot.slane %v4198_v55, %v25311_v42  ;;  %v24220_v55 = vld [vmem:[%s25255_s3 + $0x1a70] sm:$0xff]  }
 0x32b   : > { %22049 = vmatpush3.bf16.msra.mxu1 %v24137_v61  ;;  %v26278_v61 = vrot.slane %v4191_v56, %v25311_v42  ;;  %v24221_v56 = vld [vmem:[%s25255_s3 + $0x1af0] sm:$0xff]  }
 0x32c   : > { %22050 = vmatprep.subr.bf16.mxu1 %v24139_v62  ;;  %v24183_v62 = vld [vmem:[%s25255_s3 + $0x1978] sm:$0xff]  }
 0x32d   : > { %22029 = vmatpush3.bf16.msra.mxu0 %v24140_v63  ;;  %v4228_v63 = vrot.slane %v4206_v59, %v25311_v42  ;;  %v24223_v59 = vld [vmem:[%s25255_s3 + $0x1ab0] sm:$0xff]  }
 0x32e   : > { %22030 = vmatprep.subr.bf16.mxu0 %v24142_v1  ;;  %v4207_v1 = vcombine.high %v26278_v61, %v26278_v61 }
 0x32f   : > { %22051 = vmatpush3.bf16.msra.mxu1 %v24141_v0  ;;  %v24184_v0 = vld [vmem:[%s25255_s3 + $0x19f8] sm:$0xff]  }
 0x330   : > { %22052 = vmatprep.subr.bf16.mxu1 %v24143_v2  ;;  %v24185_v2 = vld [vmem:[%s25255_s3 + $0x1938] sm:$0xff]  }
 0x331   : > { %22031 = vmatpush3.bf16.msra.mxu0 %v24144_v3  ;;  %v4238_v3 = vcombine.high %v4228_v63, %v4228_v63 }
 0x332   : > { %22032 = vmatprep.subr.bf16.mxu0 %v24146_v5  ;;  %v4235_v5 = vrot.slane %v4207_v1, %v25311_v42 }
 0x333   : > { %22053 = vmatpush3.bf16.msra.mxu1 %v24145_v4  ;;  %v24186_v4 = vld [vmem:[%s25255_s3 + $0x19b8] sm:$0xff]  }
 0x334   : > { %22054 = vmatprep.subr.bf16.mxu1 %v24147_v6  ;;  %v4236_v6 = vcombine.high %v4214_v60, %v4214_v60 }
 0x335   : > { %22033 = vmatpush3.bf16.msra.mxu0 %v24148_v7  ;;  %v24187_v7 = vld [vmem:[%s25255_s3 + $0x1970] sm:$0xff]  }
 0x336   : > { %22062 = vmatprep.subr.bf16.mxu0 %v24151_v10 }
 0x337   : > { %22055 = vmatpush3.bf16.msra.mxu1 %v24149_v8  ;;  %v24188_v8 = vld [vmem:[%s25255_s3 + $0x19f0] sm:$0xff]  }
 0x338   : > { %v21770_v17 = vpop.f32.mrf.mxu0  ;;  %16942 = vmatmul.mubr.bf16.vlgmr.msra.gmra.mxu0 %v4172_v9  ;;  %22084 = vmatprep.subr.bf16.mxu1 %v24152_v11  ;;  %v4239_v9 = vcombine.high %v4235_v5, %v4235_v5  ;;  %v24189_v11 = vld [vmem:[%s25255_s3 + $0x1930] sm:$0xff]  }
 0x339   : > { %22063 = vmatpush3.bf16.msra.mxu0 %v24153_v12  ;;  %17021 = vmatprep.mubr.bf16.mxu0 %v4228_v63  ;;  %v24190_v12 = vld [vmem:[%s25255_s3 + $0x19b0] sm:$0xff]  }
 0x33a   : > { %v21792_v20 = vpop.f32.mrf.mxu1  ;;  %16982 = vmatmul.mubr.bf16.vlgmr.msra.gmra.mxu1 %v4188_v14  ;;  %v21771_v21 = vpop.f32.mrf.mxu0  ;;  %22064 = vmatprep.subr.bf16.mxu0 %v24155_v15  ;;  %v24191_v15 = vld [vmem:[%s25255_s3 + $0x1968] sm:$0xff]  }
 0x33b   : > { %22085 = vmatpush3.bf16.msra.mxu1 %v24154_v13  ;;  %v21772_v23 = vadd.f32 %v21771_v21, %v21770_v17  ;;  %17061 = vmatprep.mubr.bf16.mxu1 %v4238_v3  ;;  %v24192_v17 = vld [vmem:[%s25255_s3 + $0x19e8] sm:$0xff]  }
 0x33c   : > { %v21793_v25 = vpop.f32.mrf.mxu1  ;;  %v21773_v26 = vpop.f32.mrf.mxu0  ;;  %22086 = vmatprep.subr.bf16.mxu1 %v24156_v16  ;;  %v24226_v3 = vld [vmem:[%s25255_s3 + $0x1a28] sm:$0xff]  }
 0x33d   : > { %v16464_v28 = vadd.f32 %v21772_v23, %v26217_v52  ;;  %v21794_v29 = vadd.f32 %v21793_v25, %v21792_v20  ;;  %22065 = vmatpush3.bf16.msra.mxu0 %v24157_v18  ;;  %v24179_v52 = vld [vmem:[%s25255_s3 + $0x1840] sm:$0xff]   ;;  %v24193_v20 = vld [vmem:[%s25255_s3 + $0x1928] sm:$0xff]  }
 0x33e   : > { %v21795_v31 = vpop.f32.mrf.mxu1  ;;  %v21774_v32 = vpop.f32.mrf.mxu0  ;;  %22066 = vmatprep.subr.bf16.mxu0 %v24159_v22  ;;  %v24194_v23 = vld [vmem:[%s25255_s3 + $0x19a8] sm:$0xff]   ;;  %v24195_v26 = vld [vmem:[%s25255_s3 + $0x1960] sm:$0xff]  }
 0x33f   : > { %v26254_v34 = vadd.f32 %v21794_v29, %v16464_v28  ;;  %22087 = vmatpush3.bf16.msra.mxu1 %v24158_v19  ;;  %v24196_v28 = vld [vmem:[%s25255_s3 + $0x19e0] sm:$0xff]   ;;  %v24199_v32 = vld [vmem:[%s25255_s3 + $0x1958] sm:$0xff]  }
 0x340   : > { %v21796_v35 = vpop.f32.mrf.mxu1  ;;  %22088 = vmatprep.subr.bf16.mxu1 %v24160_v24  ;;  %v24198_v31 = vld [vmem:[%s25255_s3 + $0x19a0] sm:$0xff]  }
 0x341   : > { %22067 = vmatpush3.bf16.msra.mxu0 %v24161_v27  ;;  %v24203_v35 = vld [vmem:[%s25255_s3 + $0x1950] sm:$0xff]  }
 0x342   : > { %22068 = vmatprep.subr.bf16.mxu0 %v24163_v33  ;;  %v24200_v33 = vld [vmem:[%s25255_s3 + $0x19d8] sm:$0xff]  }
 0x343   : > { %22089 = vmatpush3.bf16.msra.mxu1 %v24162_v30  ;;  %v24197_v30 = vld [vmem:[%s25255_s3 + $0x1920] sm:$0xff]  }
 0x344   : > { %22090 = vmatprep.subr.bf16.mxu1 %v24164_v36  ;;  %v24202_v36 = vld [vmem:[%s25255_s3 + $0x1998] sm:$0xff]  }
 0x345   : > { %22069 = vmatpush3.bf16.msra.mxu0 %v24165_v37  ;;  %v24204_v37 = vld [vmem:[%s25255_s3 + $0x19d0] sm:$0xff]  }
 0x346   : > { %22070 = vmatprep.subr.bf16.mxu0 %v24167_v39  ;;  %v24206_v39 = vld [vmem:[%s25255_s3 + $0x1990] sm:$0xff]  }
 0x347   : > { %22091 = vmatpush3.bf16.msra.mxu1 %v24166_v38  ;;  %v24205_v38 = vld [vmem:[%s25255_s3 + $0x1910] sm:$0xff]  }
 0x348   : > { %22092 = vmatprep.subr.bf16.mxu1 %v24168_v40  ;;  %v24207_v40 = vld [vmem:[%s25255_s3 + $0x1948] sm:$0xff]  }
 0x349   : > { %22071 = vmatpush3.bf16.msra.mxu0 %v24169_v41  ;;  %v24208_v41 = vld [vmem:[%s25255_s3 + $0x19c8] sm:$0xff]  }
 0x34a   : > { %22072 = vmatprep.subr.bf16.mxu0 %v24171_v44  ;;  %v24210_v44 = vld [vmem:[%s25255_s3 + $0x1988] sm:$0xff]  }
 0x34b   : > { %22093 = vmatpush3.bf16.msra.mxu1 %v24170_v43  ;;  %v24209_v43 = vld [vmem:[%s25255_s3 + $0x1908] sm:$0xff]  }
 0x34c   : > { %22094 = vmatprep.subr.bf16.mxu1 %v24172_v45  ;;  %v24211_v45 = vld [vmem:[%s25255_s3 + $0x1940] sm:$0xff]  }
 0x34d   : > { %22073 = vmatpush3.bf16.msra.mxu0 %v24173_v46  ;;  %v24212_v46 = vld [vmem:[%s25255_s3 + $0x19c0] sm:$0xff]  }
 0x34e   : > { %22074 = vmatprep.subr.bf16.mxu0 %v24175_v48  ;;  %v24214_v48 = vld [vmem:[%s25255_s3 + $0x1980] sm:$0xff]  }
 0x34f   : > { %22095 = vmatpush3.bf16.msra.mxu1 %v24174_v47  ;;  %v24213_v47 = vld [vmem:[%s25255_s3 + $0x1900] sm:$0xff]  }
 0x350   : > { %22096 = vmatprep.subr.bf16.mxu1 %v24176_v49  ;;  %v4221_v49 = vrot.slane %v26278_v61, %v25311_v42 }
 0x351   : > { %22075 = vmatpush3.bf16.msra.mxu0 %v24177_v50  ;;  %v24216_v50 = vld [vmem:[%s25255_s3 + $0x1a78] sm:$0xff]  }
 0x352   : > { %22076 = vmatprep.subr.bf16.mxu0 %v24179_v52  ;;  %v24218_v52 = vld [vmem:[%s25255_s3 + $0x1a38] sm:$0xff]  }
 0x353   : > { %22097 = vmatpush3.bf16.msra.mxu1 %v24178_v51  ;;  %v24217_v51 = vld [vmem:[%s25255_s3 + $0x1af8] sm:$0xff]  }
 0x354   : > { %22098 = vmatprep.subr.bf16.mxu1 %v24180_v54  ;;  %v4237_v54 = vcombine.high %v4221_v49, %v4221_v49 }
 0x355   : > { %22077 = vmatpush3.bf16.msra.mxu0 %v24181_v57 }
 0x356   : > { %22106 = vmatprep.subr.bf16.mxu0 %v24183_v62  ;;  %v24224_v62 = vld [vmem:[%s25255_s3 + $0x1a68] sm:$0xff]  }
 0x357   : > { %22099 = vmatpush3.bf16.msra.mxu1 %v24182_v58  ;;  %v24222_v58 = vld [vmem:[%s25255_s3 + $0x1a30] sm:$0xff]  }
 0x358   : > { %v21814_v10 = vpop.f32.mrf.mxu0  ;;  %17022 = vmatmul.mubr.bf16.vlgmr.msra.gmra.mxu0 %v4214_v60  ;;  %22128 = vmatprep.subr.bf16.mxu1 %v24184_v0  ;;  %v24225_v0 = vld [vmem:[%s25255_s3 + $0x1ae8] sm:$0xff]  }
 0x359   : > { %22107 = vmatpush3.bf16.msra.mxu0 %v24185_v2  ;;  %17101 = vmatprep.mubr.bf16.mxu0 %v4235_v5 }
 0x35a   : > { %v21836_v13 = vpop.f32.mrf.mxu1  ;;  %17062 = vmatmul.mubr.bf16.vlgmr.msra.gmra.mxu1 %v4236_v6  ;;  %v21815_v14 = vpop.f32.mrf.mxu0  ;;  %22108 = vmatprep.subr.bf16.mxu0 %v24187_v7  ;;  %v24227_v6 = vld [vmem:[%s25255_s3 + $0x1aa8] sm:$0xff]  }
 0x35b   : > { %22129 = vmatpush3.bf16.msra.mxu1 %v24186_v4  ;;  %v21816_v16 = vadd.f32 %v21815_v14, %v21814_v10  ;;  %17141 = vmatprep.mubr.bf16.mxu1 %v4239_v9  ;;  %v24228_v9 = vld [vmem:[%s25255_s3 + $0x1a60] sm:$0xff]  }
 0x35c   : > { %v21837_v18 = vpop.f32.mrf.mxu1  ;;  %v21817_v19 = vpop.f32.mrf.mxu0  ;;  %22130 = vmatprep.subr.bf16.mxu1 %v24188_v8  ;;  %v24231_v14 = vld [vmem:[%s25255_s3 + $0x1aa0] sm:$0xff]  }
 0x35d   : > { %v16544_v21 = vadd.f32 %v21816_v16, %v26254_v34  ;;  %v21838_v22 = vadd.f32 %v21837_v18, %v21836_v13  ;;  %22109 = vmatpush3.bf16.msra.mxu0 %v24189_v11  ;;  %v24201_v34 = vld [vmem:[%s25255_s3 + $0x1918] sm:$0xff]   ;;  %v24229_v11 = vld [vmem:[%s25255_s3 + $0x1ae0] sm:$0xff]   ;;  %v24236_v19 = vld [vmem:[%s25255_s3 + $0x1a50] sm:$0xff]  }
 0x35e   : > { %v21839_v24 = vpop.f32.mrf.mxu1  ;;  %v21818_v25 = vpop.f32.mrf.mxu0  ;;  %22110 = vmatprep.subr.bf16.mxu0 %v24191_v15  ;;  %v24230_v13 = vld [vmem:[%s25255_s3 + $0x1a20] sm:$0xff]   ;;  %v24232_v15 = vld [vmem:[%s25255_s3 + $0x1a58] sm:$0xff]  }
 0x35f   : > { %v26299_v27 = vadd.f32 %v21838_v22, %v16544_v21  ;;  %22131 = vmatpush3.bf16.msra.mxu1 %v24190_v12  ;;  %v24233_v16 = vld [vmem:[%s25255_s3 + $0x1ad8] sm:$0xff]   ;;  %v24238_v21 = vld [vmem:[%s25255_s3 + $0x1a10] sm:$0xff]   ;;  %v24241_v24 = vld [vmem:[%s25255_s3 + $0x1ac8] sm:$0xff]  }
 0x360   : > { %v21840_v29 = vpop.f32.mrf.mxu1  ;;  %22132 = vmatprep.subr.bf16.mxu1 %v24192_v17  ;;  %v24234_v17 = vld [vmem:[%s25255_s3 + $0x1a18] sm:$0xff]   ;;  %v24239_v22 = vld [vmem:[%s25255_s3 + $0x1a90] sm:$0xff]   ;;  %v24242_v25 = vld [vmem:[%s25255_s3 + $0x1a08] sm:$0xff]  }
 0x361   : > { %22111 = vmatpush3.bf16.msra.mxu0 %v24193_v20  ;;  %v24235_v18 = vld [vmem:[%s25255_s3 + $0x1a98] sm:$0xff]   ;;  %v24237_v20 = vld [vmem:[%s25255_s3 + $0x1ad0] sm:$0xff]   ;;  %v24245_v29 = vld [vmem:[%s25255_s3 + $0x1ac0] sm:$0xff]  }
 0x362   : > { %22112 = vmatprep.subr.bf16.mxu0 %v24195_v26  ;;  %v24243_v26 = vld [vmem:[%s25255_s3 + $0x1a88] sm:$0xff]  }
 0x363   : > { %22133 = vmatpush3.bf16.msra.mxu1 %v24194_v23  ;;  %v24240_v23 = vld [vmem:[%s25255_s3 + $0x1a48] sm:$0xff]  }
 0x364   : > { %22134 = vmatprep.subr.bf16.mxu1 %v24196_v28  ;;  %v236_v28 = vld [vmem:[%s25273_s20 + $0x68] sm:$0xff] }
 0x365   : > { %22113 = vmatpush3.bf16.msra.mxu0 %v24197_v30  ;;  %v4247_v30 = vrot.slane %v236_v28, %v25311_v42 }
 0x366   : > { %22114 = vmatprep.subr.bf16.mxu0 %v24199_v32  ;;  %v24246_v32 = vld [vmem:[%s25255_s3 + $0x1a00] sm:$0xff]  }
 0x367   : > { %22135 = vmatpush3.bf16.msra.mxu1 %v24198_v31  ;;  %v4240_v31 = vcombine.high %v236_v28, %v236_v28  ;;  %v24284_v28 = vld [vmem:[%s25255_s3 + $0x1cb8] sm:$0xff]  }
 0x368   : > { %22136 = vmatprep.subr.bf16.mxu1 %v24200_v33  ;;  %v24247_v33 = vld [vmem:[%s25255_s3 + $0x1a80] sm:$0xff]  }
 0x369   : > { %22115 = vmatpush3.bf16.msra.mxu0 %v24201_v34  ;;  %v4255_v34 = vcombine.high %v4247_v30, %v4247_v30 }
 0x36a   : > { %22116 = vmatprep.subr.bf16.mxu0 %v24203_v35  ;;  %v4263_v35 = vrot.slane %v4247_v30, %v25311_v42  ;;  %v24285_v30 = vld [vmem:[%s25255_s3 + $0x1c70] sm:$0xff]  }
 0x36b   : > { %22137 = vmatpush3.bf16.msra.mxu1 %v24202_v36  ;;  %v26360_v36 = vrot.slane %v4240_v31, %v25311_v42  ;;  %v24286_v31 = vld [vmem:[%s25255_s3 + $0x1cf0] sm:$0xff]  }
 0x36c   : > { %22138 = vmatprep.subr.bf16.mxu1 %v24204_v37  ;;  %v24248_v37 = vld [vmem:[%s25255_s3 + $0x1b78] sm:$0xff]  }
 0x36d   : > { %22117 = vmatpush3.bf16.msra.mxu0 %v24205_v38  ;;  %v4277_v38 = vrot.slane %v4255_v34, %v25311_v42  ;;  %v24288_v34 = vld [vmem:[%s25255_s3 + $0x1cb0] sm:$0xff]  }
 0x36e   : > { %22118 = vmatprep.subr.bf16.mxu0 %v24207_v40  ;;  %v4256_v40 = vcombine.high %v26360_v36, %v26360_v36 }
 0x36f   : > { %22139 = vmatpush3.bf16.msra.mxu1 %v24206_v39  ;;  %v24249_v39 = vld [vmem:[%s25255_s3 + $0x1bf8] sm:$0xff]  }
 0x370   : > { %22140 = vmatprep.subr.bf16.mxu1 %v24208_v41  ;;  %v24250_v41 = vld [vmem:[%s25255_s3 + $0x1b38] sm:$0xff]  }
 0x371   : > { %22119 = vmatpush3.bf16.msra.mxu0 %v24209_v43  ;;  %v4287_v43 = vcombine.high %v4277_v38, %v4277_v38 }
 0x372   : > { %22120 = vmatprep.subr.bf16.mxu0 %v24211_v45  ;;  %v4284_v45 = vrot.slane %v4256_v40, %v25311_v42 }
 0x373   : > { %22141 = vmatpush3.bf16.msra.mxu1 %v24210_v44  ;;  %v24251_v44 = vld [vmem:[%s25255_s3 + $0x1bb8] sm:$0xff]  }
 0x374   : > { %22142 = vmatprep.subr.bf16.mxu1 %v24212_v46  ;;  %v4285_v46 = vcombine.high %v4263_v35, %v4263_v35 }
 0x375   : > { %22121 = vmatpush3.bf16.msra.mxu0 %v24213_v47  ;;  %v24252_v47 = vld [vmem:[%s25255_s3 + $0x1b70] sm:$0xff]  }
 0x376   : > { %22150 = vmatprep.subr.bf16.mxu0 %v24216_v50 }
 0x377   : > { %22143 = vmatpush3.bf16.msra.mxu1 %v24214_v48  ;;  %v24253_v48 = vld [vmem:[%s25255_s3 + $0x1bf0] sm:$0xff]  }
 0x378   : > { %v21858_v57 = vpop.f32.mrf.mxu0  ;;  %17102 = vmatmul.mubr.bf16.vlgmr.msra.gmra.mxu0 %v4221_v49  ;;  %22172 = vmatprep.subr.bf16.mxu1 %v24217_v51  ;;  %v4288_v49 = vcombine.high %v4284_v45, %v4284_v45  ;;  %v24254_v51 = vld [vmem:[%s25255_s3 + $0x1b30] sm:$0xff]  }
 0x379   : > { %22151 = vmatpush3.bf16.msra.mxu0 %v24218_v52  ;;  %17181 = vmatprep.mubr.bf16.mxu0 %v4277_v38  ;;  %v24255_v52 = vld [vmem:[%s25255_s3 + $0x1bb0] sm:$0xff]  }
 0x37a   : > { %v21880_v61 = vpop.f32.mrf.mxu1  ;;  %17142 = vmatmul.mubr.bf16.vlgmr.msra.gmra.mxu1 %v4237_v54  ;;  %v21859_v60 = vpop.f32.mrf.mxu0  ;;  %22152 = vmatprep.subr.bf16.mxu0 %v24220_v55  ;;  %v24256_v55 = vld [vmem:[%s25255_s3 + $0x1b68] sm:$0xff]  }
 0x37b   : > { %22173 = vmatpush3.bf16.msra.mxu1 %v24219_v53  ;;  %v21860_v63 = vadd.f32 %v21859_v60, %v21858_v57  ;;  %17221 = vmatprep.mubr.bf16.mxu1 %v4287_v43  ;;  %v24257_v57 = vld [vmem:[%s25255_s3 + $0x1be8] sm:$0xff]  }
 0x37c   : > { %v21881_v1 = vpop.f32.mrf.mxu1  ;;  %v21861_v2 = vpop.f32.mrf.mxu0  ;;  %22174 = vmatprep.subr.bf16.mxu1 %v24221_v56  ;;  %v24291_v43 = vld [vmem:[%s25255_s3 + $0x1c28] sm:$0xff]  }
 0x37d   : > { %v16624_v4 = vadd.f32 %v21860_v63, %v26299_v27  ;;  %v21882_v5 = vadd.f32 %v21881_v1, %v21880_v61  ;;  %22153 = vmatpush3.bf16.msra.mxu0 %v24222_v58  ;;  %v24244_v27 = vld [vmem:[%s25255_s3 + $0x1a40] sm:$0xff]   ;;  %v24258_v61 = vld [vmem:[%s25255_s3 + $0x1b28] sm:$0xff]  }
 0x37e   : > { %v21883_v7 = vpop.f32.mrf.mxu1  ;;  %v21862_v8 = vpop.f32.mrf.mxu0  ;;  %22154 = vmatprep.subr.bf16.mxu0 %v24224_v62  ;;  %v24259_v63 = vld [vmem:[%s25255_s3 + $0x1ba8] sm:$0xff]   ;;  %v24260_v2 = vld [vmem:[%s25255_s3 + $0x1b60] sm:$0xff]  }
 0x37f   : > { %v26336_v10 = vadd.f32 %v21882_v5, %v16624_v4  ;;  %22175 = vmatpush3.bf16.msra.mxu1 %v24223_v59  ;;  %v24261_v4 = vld [vmem:[%s25255_s3 + $0x1be0] sm:$0xff]   ;;  %v24264_v8 = vld [vmem:[%s25255_s3 + $0x1b58] sm:$0xff]  }
 0x380   : > { %v21884_v12 = vpop.f32.mrf.mxu1  ;;  %22176 = vmatprep.subr.bf16.mxu1 %v24225_v0  ;;  %v24263_v7 = vld [vmem:[%s25255_s3 + $0x1ba0] sm:$0xff]  }
 0x381   : > { %22155 = vmatpush3.bf16.msra.mxu0 %v24226_v3  ;;  %v24268_v12 = vld [vmem:[%s25255_s3 + $0x1b50] sm:$0xff]  }
 0x382   : > { %22156 = vmatprep.subr.bf16.mxu0 %v24228_v9  ;;  %v24265_v9 = vld [vmem:[%s25255_s3 + $0x1bd8] sm:$0xff]  }
 0x383   : > { %22177 = vmatpush3.bf16.msra.mxu1 %v24227_v6  ;;  %v24262_v6 = vld [vmem:[%s25255_s3 + $0x1b20] sm:$0xff]  }
 0x384   : > { %22178 = vmatprep.subr.bf16.mxu1 %v24229_v11  ;;  %v24267_v11 = vld [vmem:[%s25255_s3 + $0x1b98] sm:$0xff]  }
 0x385   : > { %22157 = vmatpush3.bf16.msra.mxu0 %v24230_v13  ;;  %v24269_v13 = vld [vmem:[%s25255_s3 + $0x1bd0] sm:$0xff]  }
 0x386   : > { %22158 = vmatprep.subr.bf16.mxu0 %v24232_v15  ;;  %v24271_v15 = vld [vmem:[%s25255_s3 + $0x1b90] sm:$0xff]  }
 0x387   : > { %22179 = vmatpush3.bf16.msra.mxu1 %v24231_v14  ;;  %v24270_v14 = vld [vmem:[%s25255_s3 + $0x1b10] sm:$0xff]  }
 0x388   : > { %22180 = vmatprep.subr.bf16.mxu1 %v24233_v16  ;;  %v24272_v16 = vld [vmem:[%s25255_s3 + $0x1b48] sm:$0xff]  }
 0x389   : > { %22159 = vmatpush3.bf16.msra.mxu0 %v24234_v17  ;;  %v24273_v17 = vld [vmem:[%s25255_s3 + $0x1bc8] sm:$0xff]  }
 0x38a   : > { %22160 = vmatprep.subr.bf16.mxu0 %v24236_v19  ;;  %v24275_v19 = vld [vmem:[%s25255_s3 + $0x1b88] sm:$0xff]  }
 0x38b   : > { %22181 = vmatpush3.bf16.msra.mxu1 %v24235_v18  ;;  %v24274_v18 = vld [vmem:[%s25255_s3 + $0x1b08] sm:$0xff]  }
 0x38c   : > { %22182 = vmatprep.subr.bf16.mxu1 %v24237_v20  ;;  %v24276_v20 = vld [vmem:[%s25255_s3 + $0x1b40] sm:$0xff]  }
 0x38d   : > { %22161 = vmatpush3.bf16.msra.mxu0 %v24238_v21  ;;  %v24277_v21 = vld [vmem:[%s25255_s3 + $0x1bc0] sm:$0xff]  }
 0x38e   : > { %22162 = vmatprep.subr.bf16.mxu0 %v24240_v23  ;;  %v24279_v23 = vld [vmem:[%s25255_s3 + $0x1b80] sm:$0xff]  }
 0x38f   : > { %22183 = vmatpush3.bf16.msra.mxu1 %v24239_v22  ;;  %v24278_v22 = vld [vmem:[%s25255_s3 + $0x1b00] sm:$0xff]  }
 0x390   : > { %22184 = vmatprep.subr.bf16.mxu1 %v24241_v24  ;;  %v4270_v24 = vrot.slane %v26360_v36, %v25311_v42 }
 0x391   : > { %22163 = vmatpush3.bf16.msra.mxu0 %v24242_v25  ;;  %v24281_v25 = vld [vmem:[%s25255_s3 + $0x1c78] sm:$0xff]  }
 0x392   : > { %22164 = vmatprep.subr.bf16.mxu0 %v24244_v27  ;;  %v24283_v27 = vld [vmem:[%s25255_s3 + $0x1c38] sm:$0xff]  }
 0x393   : > { %22185 = vmatpush3.bf16.msra.mxu1 %v24243_v26  ;;  %v24282_v26 = vld [vmem:[%s25255_s3 + $0x1cf8] sm:$0xff]  }
 0x394   : > { %22186 = vmatprep.subr.bf16.mxu1 %v24245_v29  ;;  %v4286_v29 = vcombine.high %v4270_v24, %v4270_v24 }
 0x395   : > { %22165 = vmatpush3.bf16.msra.mxu0 %v24246_v32 }
 0x396   : > { %22194 = vmatprep.subr.bf16.mxu0 %v24248_v37  ;;  %v24289_v37 = vld [vmem:[%s25255_s3 + $0x1c68] sm:$0xff]  }
 0x397   : > { %22187 = vmatpush3.bf16.msra.mxu1 %v24247_v33  ;;  %v24287_v33 = vld [vmem:[%s25255_s3 + $0x1c30] sm:$0xff]  }
 0x398   : > { %v21902_v50 = vpop.f32.mrf.mxu0  ;;  %17182 = vmatmul.mubr.bf16.vlgmr.msra.gmra.mxu0 %v4263_v35  ;;  %22216 = vmatprep.subr.bf16.mxu1 %v24249_v39  ;;  %v24290_v39 = vld [vmem:[%s25255_s3 + $0x1ce8] sm:$0xff]  }
 0x399   : > { %22195 = vmatpush3.bf16.msra.mxu0 %v24250_v41  ;;  %17261 = vmatprep.mubr.bf16.mxu0 %v4284_v45 }
 0x39a   : > { %v21924_v53 = vpop.f32.mrf.mxu1  ;;  %17222 = vmatmul.mubr.bf16.vlgmr.msra.gmra.mxu1 %v4285_v46  ;;  %v21903_v54 = vpop.f32.mrf.mxu0  ;;  %22196 = vmatprep.subr.bf16.mxu0 %v24252_v47  ;;  %v24292_v46 = vld [vmem:[%s25255_s3 + $0x1ca8] sm:$0xff]  }
 0x39b   : > { %22217 = vmatpush3.bf16.msra.mxu1 %v24251_v44  ;;  %v21904_v56 = vadd.f32 %v21903_v54, %v21902_v50  ;;  %17301 = vmatprep.mubr.bf16.mxu1 %v4288_v49  ;;  %v24293_v49 = vld [vmem:[%s25255_s3 + $0x1c60] sm:$0xff]  }
 0x39c   : > { %v21925_v58 = vpop.f32.mrf.mxu1  ;;  %v21905_v59 = vpop.f32.mrf.mxu0  ;;  %22218 = vmatprep.subr.bf16.mxu1 %v24253_v48  ;;  %v24296_v54 = vld [vmem:[%s25255_s3 + $0x1ca0] sm:$0xff]  }
 0x39d   : > { %v16704_v60 = vadd.f32 %v21904_v56, %v26336_v10  ;;  %v21926_v62 = vadd.f32 %v21925_v58, %v21924_v53  ;;  %22197 = vmatpush3.bf16.msra.mxu0 %v24254_v51  ;;  %v24266_v10 = vld [vmem:[%s25255_s3 + $0x1b18] sm:$0xff]   ;;  %v24294_v51 = vld [vmem:[%s25255_s3 + $0x1ce0] sm:$0xff]   ;;  %v24301_v59 = vld [vmem:[%s25255_s3 + $0x1c50] sm:$0xff]  }
 0x39e   : > { %v21927_v0 = vpop.f32.mrf.mxu1  ;;  %v21906_v1 = vpop.f32.mrf.mxu0  ;;  %22198 = vmatprep.subr.bf16.mxu0 %v24256_v55  ;;  %v24295_v53 = vld [vmem:[%s25255_s3 + $0x1c20] sm:$0xff]   ;;  %v24297_v55 = vld [vmem:[%s25255_s3 + $0x1c58] sm:$0xff]  }
 0x39f   : > { %v26381_v3 = vadd.f32 %v21926_v62, %v16704_v60  ;;  %22219 = vmatpush3.bf16.msra.mxu1 %v24255_v52  ;;  %v24298_v56 = vld [vmem:[%s25255_s3 + $0x1cd8] sm:$0xff]   ;;  %v24303_v60 = vld [vmem:[%s25255_s3 + $0x1c10] sm:$0xff]   ;;  %v24306_v0 = vld [vmem:[%s25255_s3 + $0x1cc8] sm:$0xff]  }
 0x3a0   : > { %v21928_v5 = vpop.f32.mrf.mxu1  ;;  %22220 = vmatprep.subr.bf16.mxu1 %v24257_v57  ;;  %v24299_v57 = vld [vmem:[%s25255_s3 + $0x1c18] sm:$0xff]   ;;  %v24304_v62 = vld [vmem:[%s25255_s3 + $0x1c90] sm:$0xff]   ;;  %v24307_v1 = vld [vmem:[%s25255_s3 + $0x1c08] sm:$0xff]  }
 0x3a1   : > { %22199 = vmatpush3.bf16.msra.mxu0 %v24258_v61  ;;  %v24300_v58 = vld [vmem:[%s25255_s3 + $0x1c98] sm:$0xff]   ;;  %v24302_v61 = vld [vmem:[%s25255_s3 + $0x1cd0] sm:$0xff]   ;;  %v24310_v5 = vld [vmem:[%s25255_s3 + $0x1cc0] sm:$0xff]  }
 0x3a2   : > { %22200 = vmatprep.subr.bf16.mxu0 %v24260_v2  ;;  %v24308_v2 = vld [vmem:[%s25255_s3 + $0x1c88] sm:$0xff]  }
 0x3a3   : > { %22221 = vmatpush3.bf16.msra.mxu1 %v24259_v63  ;;  %v24305_v63 = vld [vmem:[%s25255_s3 + $0x1c48] sm:$0xff]  }
 0x3a4   : > { %22222 = vmatprep.subr.bf16.mxu1 %v24261_v4  ;;  %v237_v4 = vld [vmem:[%s25273_s20 + $0x70] sm:$0xff] }
 0x3a5   : > { %22201 = vmatpush3.bf16.msra.mxu0 %v24262_v6  ;;  %v4296_v6 = vrot.slane %v237_v4, %v25311_v42 }
 0x3a6   : > { %22202 = vmatprep.subr.bf16.mxu0 %v24264_v8  ;;  %v24311_v8 = vld [vmem:[%s25255_s3 + $0x1c00] sm:$0xff]  }
 0x3a7   : > { %22223 = vmatpush3.bf16.msra.mxu1 %v24263_v7  ;;  %v4289_v7 = vcombine.high %v237_v4, %v237_v4  ;;  %v24349_v4 = vld [vmem:[%s25255_s3 + $0x1eb8] sm:$0xff]  }
 0x3a8   : > { %22224 = vmatprep.subr.bf16.mxu1 %v24265_v9  ;;  %v24312_v9 = vld [vmem:[%s25255_s3 + $0x1c80] sm:$0xff]  }
 0x3a9   : > { %22203 = vmatpush3.bf16.msra.mxu0 %v24266_v10  ;;  %v4304_v10 = vcombine.high %v4296_v6, %v4296_v6 }
 0x3aa   : > { %22204 = vmatprep.subr.bf16.mxu0 %v24268_v12  ;;  %v4312_v12 = vrot.slane %v4296_v6, %v25311_v42  ;;  %v24350_v6 = vld [vmem:[%s25255_s3 + $0x1e70] sm:$0xff]  }
 0x3ab   : > { %22225 = vmatpush3.bf16.msra.mxu1 %v24267_v11  ;;  %v26442_v11 = vrot.slane %v4289_v7, %v25311_v42  ;;  %v24351_v7 = vld [vmem:[%s25255_s3 + $0x1ef0] sm:$0xff]  }
 0x3ac   : > { %22226 = vmatprep.subr.bf16.mxu1 %v24269_v13  ;;  %v24313_v13 = vld [vmem:[%s25255_s3 + $0x1d78] sm:$0xff]  }
 0x3ad   : > { %22205 = vmatpush3.bf16.msra.mxu0 %v24270_v14  ;;  %v4326_v14 = vrot.slane %v4304_v10, %v25311_v42  ;;  %v24353_v10 = vld [vmem:[%s25255_s3 + $0x1eb0] sm:$0xff]  }
 0x3ae   : > { %22206 = vmatprep.subr.bf16.mxu0 %v24272_v16  ;;  %v4305_v16 = vcombine.high %v26442_v11, %v26442_v11 }
 0x3af   : > { %22227 = vmatpush3.bf16.msra.mxu1 %v24271_v15  ;;  %v24314_v15 = vld [vmem:[%s25255_s3 + $0x1df8] sm:$0xff]  }
 0x3b0   : > { %22228 = vmatprep.subr.bf16.mxu1 %v24273_v17  ;;  %v24315_v17 = vld [vmem:[%s25255_s3 + $0x1d38] sm:$0xff]  }
 0x3b1   : > { %22207 = vmatpush3.bf16.msra.mxu0 %v24274_v18  ;;  %v4336_v18 = vcombine.high %v4326_v14, %v4326_v14 }
 0x3b2   : > { %22208 = vmatprep.subr.bf16.mxu0 %v24276_v20  ;;  %v4333_v20 = vrot.slane %v4305_v16, %v25311_v42 }
 0x3b3   : > { %22229 = vmatpush3.bf16.msra.mxu1 %v24275_v19  ;;  %v24316_v19 = vld [vmem:[%s25255_s3 + $0x1db8] sm:$0xff]  }
 0x3b4   : > { %22230 = vmatprep.subr.bf16.mxu1 %v24277_v21  ;;  %v4334_v21 = vcombine.high %v4312_v12, %v4312_v12 }
 0x3b5   : > { %22209 = vmatpush3.bf16.msra.mxu0 %v24278_v22  ;;  %v24317_v22 = vld [vmem:[%s25255_s3 + $0x1d70] sm:$0xff]  }
 0x3b6   : > { %22238 = vmatprep.subr.bf16.mxu0 %v24281_v25 }
 0x3b7   : > { %22231 = vmatpush3.bf16.msra.mxu1 %v24279_v23  ;;  %v24318_v23 = vld [vmem:[%s25255_s3 + $0x1df0] sm:$0xff]  }
 0x3b8   : > { %v21946_v32 = vpop.f32.mrf.mxu0  ;;  %17262 = vmatmul.mubr.bf16.vlgmr.msra.gmra.mxu0 %v4270_v24  ;;  %22260 = vmatprep.subr.bf16.mxu1 %v24282_v26  ;;  %v4337_v24 = vcombine.high %v4333_v20, %v4333_v20  ;;  %v24319_v26 = vld [vmem:[%s25255_s3 + $0x1d30] sm:$0xff]  }
 0x3b9   : > { %22239 = vmatpush3.bf16.msra.mxu0 %v24283_v27  ;;  %17341 = vmatprep.mubr.bf16.mxu0 %v4326_v14  ;;  %v24320_v27 = vld [vmem:[%s25255_s3 + $0x1db0] sm:$0xff]  }
 0x3ba   : > { %v21968_v36 = vpop.f32.mrf.mxu1  ;;  %17302 = vmatmul.mubr.bf16.vlgmr.msra.gmra.mxu1 %v4286_v29  ;;  %v21947_v35 = vpop.f32.mrf.mxu0  ;;  %22240 = vmatprep.subr.bf16.mxu0 %v24285_v30  ;;  %v24321_v30 = vld [vmem:[%s25255_s3 + $0x1d68] sm:$0xff]  }
 0x3bb   : > { %22261 = vmatpush3.bf16.msra.mxu1 %v24284_v28  ;;  %v21948_v38 = vadd.f32 %v21947_v35, %v21946_v32  ;;  %17381 = vmatprep.mubr.bf16.mxu1 %v4336_v18  ;;  %v24322_v32 = vld [vmem:[%s25255_s3 + $0x1de8] sm:$0xff]  }
 0x3bc   : > { %v21969_v40 = vpop.f32.mrf.mxu1  ;;  %v21949_v41 = vpop.f32.mrf.mxu0  ;;  %22262 = vmatprep.subr.bf16.mxu1 %v24286_v31  ;;  %v24356_v18 = vld [vmem:[%s25255_s3 + $0x1e28] sm:$0xff]  }
 0x3bd   : > { %v16784_v44 = vadd.f32 %v21948_v38, %v26381_v3  ;;  %v21970_v45 = vadd.f32 %v21969_v40, %v21968_v36  ;;  %22241 = vmatpush3.bf16.msra.mxu0 %v24287_v33  ;;  %v24309_v3 = vld [vmem:[%s25255_s3 + $0x1c40] sm:$0xff]   ;;  %v24323_v36 = vld [vmem:[%s25255_s3 + $0x1d28] sm:$0xff]  }
 0x3be   : > { %v21971_v47 = vpop.f32.mrf.mxu1  ;;  %v21950_v48 = vpop.f32.mrf.mxu0  ;;  %22242 = vmatprep.subr.bf16.mxu0 %v24289_v37  ;;  %v24324_v38 = vld [vmem:[%s25255_s3 + $0x1da8] sm:$0xff]   ;;  %v24325_v41 = vld [vmem:[%s25255_s3 + $0x1d60] sm:$0xff]  }
 0x3bf   : > { %v26418_v50 = vadd.f32 %v21970_v45, %v16784_v44  ;;  %22263 = vmatpush3.bf16.msra.mxu1 %v24288_v34  ;;  %v24326_v44 = vld [vmem:[%s25255_s3 + $0x1de0] sm:$0xff]   ;;  %v24329_v48 = vld [vmem:[%s25255_s3 + $0x1d58] sm:$0xff]  }
 0x3c0   : > { %v21972_v52 = vpop.f32.mrf.mxu1  ;;  %22264 = vmatprep.subr.bf16.mxu1 %v24290_v39  ;;  %v24328_v47 = vld [vmem:[%s25255_s3 + $0x1da0] sm:$0xff]  }
 0x3c1   : > { %22243 = vmatpush3.bf16.msra.mxu0 %v24291_v43  ;;  %v24333_v52 = vld [vmem:[%s25255_s3 + $0x1d50] sm:$0xff]  }
 0x3c2   : > { %22244 = vmatprep.subr.bf16.mxu0 %v24293_v49  ;;  %v24330_v49 = vld [vmem:[%s25255_s3 + $0x1dd8] sm:$0xff]  }
 0x3c3   : > { %22265 = vmatpush3.bf16.msra.mxu1 %v24292_v46  ;;  %v24327_v46 = vld [vmem:[%s25255_s3 + $0x1d20] sm:$0xff]  }
 0x3c4   : > { %22266 = vmatprep.subr.bf16.mxu1 %v24294_v51  ;;  %v24332_v51 = vld [vmem:[%s25255_s3 + $0x1d98] sm:$0xff]  }
 0x3c5   : > { %22245 = vmatpush3.bf16.msra.mxu0 %v24295_v53  ;;  %v24334_v53 = vld [vmem:[%s25255_s3 + $0x1dd0] sm:$0xff]  }
 0x3c6   : > { %22246 = vmatprep.subr.bf16.mxu0 %v24297_v55  ;;  %v24336_v55 = vld [vmem:[%s25255_s3 + $0x1d90] sm:$0xff]  }
 0x3c7   : > { %22267 = vmatpush3.bf16.msra.mxu1 %v24296_v54  ;;  %v24335_v54 = vld [vmem:[%s25255_s3 + $0x1d10] sm:$0xff]  }
 0x3c8   : > { %22268 = vmatprep.subr.bf16.mxu1 %v24298_v56  ;;  %v24337_v56 = vld [vmem:[%s25255_s3 + $0x1d48] sm:$0xff]  }
 0x3c9   : > { %22247 = vmatpush3.bf16.msra.mxu0 %v24299_v57  ;;  %v24338_v57 = vld [vmem:[%s25255_s3 + $0x1dc8] sm:$0xff]  }
 0x3ca   : > { %22248 = vmatprep.subr.bf16.mxu0 %v24301_v59  ;;  %v24340_v59 = vld [vmem:[%s25255_s3 + $0x1d88] sm:$0xff]  }
 0x3cb   : > { %22269 = vmatpush3.bf16.msra.mxu1 %v24300_v58  ;;  %v24339_v58 = vld [vmem:[%s25255_s3 + $0x1d08] sm:$0xff]  }
 0x3cc   : > { %22270 = vmatprep.subr.bf16.mxu1 %v24302_v61  ;;  %v24341_v61 = vld [vmem:[%s25255_s3 + $0x1d40] sm:$0xff]  }
 0x3cd   : > { %22249 = vmatpush3.bf16.msra.mxu0 %v24303_v60  ;;  %v24342_v60 = vld [vmem:[%s25255_s3 + $0x1dc0] sm:$0xff]  }
 0x3ce   : > { %22250 = vmatprep.subr.bf16.mxu0 %v24305_v63  ;;  %v24344_v63 = vld [vmem:[%s25255_s3 + $0x1d80] sm:$0xff]  }
 0x3cf   : > { %22271 = vmatpush3.bf16.msra.mxu1 %v24304_v62  ;;  %v24343_v62 = vld [vmem:[%s25255_s3 + $0x1d00] sm:$0xff]  }
 0x3d0   : > { %22272 = vmatprep.subr.bf16.mxu1 %v24306_v0  ;;  %v4319_v0 = vrot.slane %v26442_v11, %v25311_v42 }
 0x3d1   : > { %22251 = vmatpush3.bf16.msra.mxu0 %v24307_v1  ;;  %v24346_v1 = vld [vmem:[%s25255_s3 + $0x1e78] sm:$0xff]  }
 0x3d2   : > { %22252 = vmatprep.subr.bf16.mxu0 %v24309_v3  ;;  %v24348_v3 = vld [vmem:[%s25255_s3 + $0x1e38] sm:$0xff]  }
 0x3d3   : > { %22273 = vmatpush3.bf16.msra.mxu1 %v24308_v2  ;;  %v24347_v2 = vld [vmem:[%s25255_s3 + $0x1ef8] sm:$0xff]  }
 0x3d4   : > { %22274 = vmatprep.subr.bf16.mxu1 %v24310_v5  ;;  %v4335_v5 = vcombine.high %v4319_v0, %v4319_v0 }
 0x3d5   : > { %22253 = vmatpush3.bf16.msra.mxu0 %v24311_v8 }
 0x3d6   : > { %22282 = vmatprep.subr.bf16.mxu0 %v24313_v13  ;;  %v24354_v13 = vld [vmem:[%s25255_s3 + $0x1e68] sm:$0xff]  }
 0x3d7   : > { %22275 = vmatpush3.bf16.msra.mxu1 %v24312_v9  ;;  %v24352_v9 = vld [vmem:[%s25255_s3 + $0x1e30] sm:$0xff]  }
 0x3d8   : > { %v21990_v25 = vpop.f32.mrf.mxu0  ;;  %17342 = vmatmul.mubr.bf16.vlgmr.msra.gmra.mxu0 %v4312_v12  ;;  %22304 = vmatprep.subr.bf16.mxu1 %v24314_v15  ;;  %v24355_v15 = vld [vmem:[%s25255_s3 + $0x1ee8] sm:$0xff]  }
 0x3d9   : > { %22283 = vmatpush3.bf16.msra.mxu0 %v24315_v17  ;;  %17421 = vmatprep.mubr.bf16.mxu0 %v4333_v20 }
 0x3da   : > { %v22012_v28 = vpop.f32.mrf.mxu1  ;;  %17382 = vmatmul.mubr.bf16.vlgmr.msra.gmra.mxu1 %v4334_v21  ;;  %v21991_v29 = vpop.f32.mrf.mxu0  ;;  %22284 = vmatprep.subr.bf16.mxu0 %v24317_v22  ;;  %v24357_v21 = vld [vmem:[%s25255_s3 + $0x1ea8] sm:$0xff]  }
 0x3db   : > { %22305 = vmatpush3.bf16.msra.mxu1 %v24316_v19  ;;  %v21992_v31 = vadd.f32 %v21991_v29, %v21990_v25  ;;  %17461 = vmatprep.mubr.bf16.mxu1 %v4337_v24  ;;  %v24358_v24 = vld [vmem:[%s25255_s3 + $0x1e60] sm:$0xff]  }
 0x3dc   : > { %v22013_v33 = vpop.f32.mrf.mxu1  ;;  %v21993_v34 = vpop.f32.mrf.mxu0  ;;  %22306 = vmatprep.subr.bf16.mxu1 %v24318_v23  ;;  %v24361_v29 = vld [vmem:[%s25255_s3 + $0x1ea0] sm:$0xff]  }
 0x3dd   : > { %v16864_v35 = vadd.f32 %v21992_v31, %v26418_v50  ;;  %v22014_v37 = vadd.f32 %v22013_v33, %v22012_v28  ;;  %22285 = vmatpush3.bf16.msra.mxu0 %v24319_v26  ;;  %v24331_v50 = vld [vmem:[%s25255_s3 + $0x1d18] sm:$0xff]   ;;  %v24359_v26 = vld [vmem:[%s25255_s3 + $0x1ee0] sm:$0xff]   ;;  %v24366_v34 = vld [vmem:[%s25255_s3 + $0x1e50] sm:$0xff]  }
 0x3de   : > { %v22015_v39 = vpop.f32.mrf.mxu1  ;;  %v21994_v40 = vpop.f32.mrf.mxu0  ;;  %22286 = vmatprep.subr.bf16.mxu0 %v24321_v30  ;;  %v24360_v28 = vld [vmem:[%s25255_s3 + $0x1e20] sm:$0xff]   ;;  %v24362_v30 = vld [vmem:[%s25255_s3 + $0x1e58] sm:$0xff]  }
 0x3df   : > { %v26463_v43 = vadd.f32 %v22014_v37, %v16864_v35  ;;  %22307 = vmatpush3.bf16.msra.mxu1 %v24320_v27  ;;  %v24363_v31 = vld [vmem:[%s25255_s3 + $0x1ed8] sm:$0xff]   ;;  %v24368_v35 = vld [vmem:[%s25255_s3 + $0x1e10] sm:$0xff]   ;;  %v24371_v39 = vld [vmem:[%s25255_s3 + $0x1ec8] sm:$0xff]  }
 0x3e0   : > { %v22016_v45 = vpop.f32.mrf.mxu1  ;;  %22308 = vmatprep.subr.bf16.mxu1 %v24322_v32  ;;  %v24364_v32 = vld [vmem:[%s25255_s3 + $0x1e18] sm:$0xff]   ;;  %v24369_v37 = vld [vmem:[%s25255_s3 + $0x1e90] sm:$0xff]   ;;  %v24372_v40 = vld [vmem:[%s25255_s3 + $0x1e08] sm:$0xff]  }
 0x3e1   : > { %22287 = vmatpush3.bf16.msra.mxu0 %v24323_v36  ;;  %v24365_v33 = vld [vmem:[%s25255_s3 + $0x1e98] sm:$0xff]   ;;  %v24367_v36 = vld [vmem:[%s25255_s3 + $0x1ed0] sm:$0xff]  }
 0x3e2   : > { %22288 = vmatprep.subr.bf16.mxu0 %v24325_v41  ;;  %v24373_v41 = vld [vmem:[%s25255_s3 + $0x1e88] sm:$0xff]   ;;  %v238_v45 = vld [vmem:[%s25273_s20 + $0x78] sm:$0xff] }
 0x3e3   : > { %22309 = vmatpush3.bf16.msra.mxu1 %v24324_v38  ;;  %v24370_v38 = vld [vmem:[%s25255_s3 + $0x1e48] sm:$0xff]  }
 0x3e4   : > { %22310 = vmatprep.subr.bf16.mxu1 %v24326_v44  ;;  %v24375_v44 = vld [vmem:[%s25255_s3 + $0x1ec0] sm:$0xff]  }
 0x3e5   : > { %22289 = vmatpush3.bf16.msra.mxu0 %v24327_v46  ;;  %v24376_v46 = vld [vmem:[%s25255_s3 + $0x1e00] sm:$0xff]  }
 0x3e6   : > { %22290 = vmatprep.subr.bf16.mxu0 %v24329_v48  ;;  %v4338_v48 = vcombine.high %v238_v45, %v238_v45 }
 0x3e7   : > { %22311 = vmatpush3.bf16.msra.mxu1 %v24328_v47  ;;  %v4345_v47 = vrot.slane %v238_v45, %v25311_v42 }
 0x3e8   : > { %22312 = vmatprep.subr.bf16.mxu1 %v24330_v49  ;;  %v24377_v49 = vld [vmem:[%s25255_s3 + $0x1e80] sm:$0xff]  }
 0x3e9   : > { %22291 = vmatpush3.bf16.msra.mxu0 %v24331_v50  ;;  %v4353_v50 = vcombine.high %v4345_v47, %v4345_v47 }
 0x3ea   : > { %22292 = vmatprep.subr.bf16.mxu0 %v24333_v52  ;;  %v24378_v52 = vld [vmem:[%s25255_s3 + $0x1f78] sm:$0xff]  }
 0x3eb   : > { %22313 = vmatpush3.bf16.msra.mxu1 %v24332_v51  ;;  %v4361_v51 = vrot.slane %v4345_v47, %v25311_v42  ;;  %v24416_v47 = vld [vmem:[%s25255_s3 + $0x20f0] sm:$0xff]  }
 0x3ec   : > { %22314 = vmatprep.subr.bf16.mxu1 %v24334_v53  ;;  %v26526_v53 = vrot.slane %v4338_v48, %v25311_v42 }
 0x3ed   : > { %22293 = vmatpush3.bf16.msra.mxu0 %v24335_v54  ;;  %v24379_v54 = vld [vmem:[%s25255_s3 + $0x1ff8] sm:$0xff]  }
 0x3ee   : > { %22294 = vmatprep.subr.bf16.mxu0 %v24337_v56  ;;  %v24380_v56 = vld [vmem:[%s25255_s3 + $0x1f38] sm:$0xff]  }
 0x3ef   : > { %22315 = vmatpush3.bf16.msra.mxu1 %v24336_v55  ;;  %v4375_v55 = vrot.slane %v4353_v50, %v25311_v42  ;;  %v24418_v50 = vld [vmem:[%s25255_s3 + $0x20b0] sm:$0xff]  }
 0x3f0   : > { %22316 = vmatprep.subr.bf16.mxu1 %v24338_v57  ;;  %v4354_v57 = vcombine.high %v26526_v53, %v26526_v53 }
 0x3f1   : > { %22295 = vmatpush3.bf16.msra.mxu0 %v24339_v58  ;;  %v24381_v58 = vld [vmem:[%s25255_s3 + $0x1fb8] sm:$0xff]  }
 0x3f2   : > { %22296 = vmatprep.subr.bf16.mxu0 %v24341_v61  ;;  %v4383_v61 = vcombine.high %v4361_v51, %v4361_v51 }
 0x3f3   : > { %22317 = vmatpush3.bf16.msra.mxu1 %v24340_v59  ;;  %v4385_v59 = vcombine.high %v4375_v55, %v4375_v55 }
 0x3f4   : > { %22318 = vmatprep.subr.bf16.mxu1 %v24342_v60  ;;  %v24382_v60 = vld [vmem:[%s25255_s3 + $0x1f70] sm:$0xff]  }
 0x3f5   : > { %22297 = vmatpush3.bf16.msra.mxu0 %v24343_v62  ;;  %v4382_v62 = vrot.slane %v4354_v57, %v25311_v42 }
 0x3f6   : > { %22326 = vmatprep.subr.bf16.mxu0 %v24346_v1  ;;  %v24384_v1 = vld [vmem:[%s25255_s3 + $0x1f30] sm:$0xff]  }
 0x3f7   : > { %22319 = vmatpush3.bf16.msra.mxu1 %v24344_v63  ;;  %v24383_v63 = vld [vmem:[%s25255_s3 + $0x1ff0] sm:$0xff]  }
 0x3f8   : > { %v22034_v8 = vpop.f32.mrf.mxu0  ;;  %17422 = vmatmul.mubr.bf16.vlgmr.msra.gmra.mxu0 %v4319_v0  ;;  %22348 = vmatprep.subr.bf16.mxu1 %v24347_v2  ;;  %v4386_v2 = vcombine.high %v4382_v62, %v4382_v62 }
 0x3f9   : > { %22327 = vmatpush3.bf16.msra.mxu0 %v24348_v3  ;;  %17501 = vmatprep.mubr.bf16.mxu0 %v4375_v55  ;;  %v24385_v3 = vld [vmem:[%s25255_s3 + $0x1fb0] sm:$0xff]   ;;  %v24420_v55 = vld [vmem:[%s25255_s3 + $0x20e8] sm:$0xff]  }
 0x3fa   : > { %v22056_v11 = vpop.f32.mrf.mxu1  ;;  %17462 = vmatmul.mubr.bf16.vlgmr.msra.gmra.mxu1 %v4335_v5  ;;  %v22035_v12 = vpop.f32.mrf.mxu0  ;;  %22328 = vmatprep.subr.bf16.mxu0 %v24350_v6  ;;  %v24386_v6 = vld [vmem:[%s25255_s3 + $0x1f68] sm:$0xff]  }
 0x3fb   : > { %22349 = vmatpush3.bf16.msra.mxu1 %v24349_v4  ;;  %v22036_v14 = vadd.f32 %v22035_v12, %v22034_v8  ;;  %17541 = vmatprep.mubr.bf16.mxu1 %v4385_v59  ;;  %v24387_v8 = vld [vmem:[%s25255_s3 + $0x1fe8] sm:$0xff]  }
 0x3fc   : > { %v22057_v16 = vpop.f32.mrf.mxu1  ;;  %v22037_v17 = vpop.f32.mrf.mxu0  ;;  %22350 = vmatprep.subr.bf16.mxu1 %v24351_v7 }
 0x3fd   : > { %v16944_v19 = vadd.f32 %v22036_v14, %v26463_v43  ;;  %v22058_v20 = vadd.f32 %v22057_v16, %v22056_v11  ;;  %22329 = vmatpush3.bf16.msra.mxu0 %v24352_v9  ;;  %v24374_v43 = vld [vmem:[%s25255_s3 + $0x1e40] sm:$0xff]   ;;  %v24388_v11 = vld [vmem:[%s25255_s3 + $0x1f28] sm:$0xff]  }
 0x3fe   : > { %v22059_v22 = vpop.f32.mrf.mxu1  ;;  %v22038_v23 = vpop.f32.mrf.mxu0  ;;  %22330 = vmatprep.subr.bf16.mxu0 %v24354_v13  ;;  %v24389_v14 = vld [vmem:[%s25255_s3 + $0x1fa8] sm:$0xff]   ;;  %v24390_v17 = vld [vmem:[%s25255_s3 + $0x1f60] sm:$0xff]  }
 0x3ff   : > { %v26500_v25 = vadd.f32 %v22058_v20, %v16944_v19  ;;  %22351 = vmatpush3.bf16.msra.mxu1 %v24353_v10  ;;  %v24391_v19 = vld [vmem:[%s25255_s3 + $0x1fe0] sm:$0xff]   ;;  %v24394_v23 = vld [vmem:[%s25255_s3 + $0x1f58] sm:$0xff]  }
 0x400   : > { %v22060_v27 = vpop.f32.mrf.mxu1  ;;  %22352 = vmatprep.subr.bf16.mxu1 %v24355_v15  ;;  %v24393_v22 = vld [vmem:[%s25255_s3 + $0x1fa0] sm:$0xff]  }
 0x401   : > { %22331 = vmatpush3.bf16.msra.mxu0 %v24356_v18  ;;  %v24398_v27 = vld [vmem:[%s25255_s3 + $0x1f50] sm:$0xff]  }
 0x402   : > { %22332 = vmatprep.subr.bf16.mxu0 %v24358_v24  ;;  %v24395_v24 = vld [vmem:[%s25255_s3 + $0x1fd8] sm:$0xff]  }
 0x403   : > { %22353 = vmatpush3.bf16.msra.mxu1 %v24357_v21  ;;  %v24392_v21 = vld [vmem:[%s25255_s3 + $0x1f20] sm:$0xff]  }
 0x404   : > { %22354 = vmatprep.subr.bf16.mxu1 %v24359_v26  ;;  %v24397_v26 = vld [vmem:[%s25255_s3 + $0x1f98] sm:$0xff]  }
 0x405   : > { %22333 = vmatpush3.bf16.msra.mxu0 %v24360_v28  ;;  %v24399_v28 = vld [vmem:[%s25255_s3 + $0x1fd0] sm:$0xff]  }
 0x406   : > { %22334 = vmatprep.subr.bf16.mxu0 %v24362_v30  ;;  %v24401_v30 = vld [vmem:[%s25255_s3 + $0x1f90] sm:$0xff]  }
 0x407   : > { %22355 = vmatpush3.bf16.msra.mxu1 %v24361_v29  ;;  %v24400_v29 = vld [vmem:[%s25255_s3 + $0x1f10] sm:$0xff]  }
 0x408   : > { %22356 = vmatprep.subr.bf16.mxu1 %v24363_v31  ;;  %v24402_v31 = vld [vmem:[%s25255_s3 + $0x1f48] sm:$0xff]  }
 0x409   : > { %22335 = vmatpush3.bf16.msra.mxu0 %v24364_v32  ;;  %v24403_v32 = vld [vmem:[%s25255_s3 + $0x1fc8] sm:$0xff]  }
 0x40a   : > { %22336 = vmatprep.subr.bf16.mxu0 %v24366_v34  ;;  %v24405_v34 = vld [vmem:[%s25255_s3 + $0x1f88] sm:$0xff]  }
 0x40b   : > { %22357 = vmatpush3.bf16.msra.mxu1 %v24365_v33  ;;  %v24404_v33 = vld [vmem:[%s25255_s3 + $0x1f08] sm:$0xff]  }
 0x40c   : > { %22358 = vmatprep.subr.bf16.mxu1 %v24367_v36  ;;  %v24406_v36 = vld [vmem:[%s25255_s3 + $0x1f40] sm:$0xff]  }
 0x40d   : > { %22337 = vmatpush3.bf16.msra.mxu0 %v24368_v35  ;;  %v24407_v35 = vld [vmem:[%s25255_s3 + $0x1fc0] sm:$0xff]  }
 0x40e   : > { %22338 = vmatprep.subr.bf16.mxu0 %v24370_v38  ;;  %v24409_v38 = vld [vmem:[%s25255_s3 + $0x1f80] sm:$0xff]  }
 0x40f   : > { %22359 = vmatpush3.bf16.msra.mxu1 %v24369_v37  ;;  %v24408_v37 = vld [vmem:[%s25255_s3 + $0x1f00] sm:$0xff]  }
 0x410   : > { %22360 = vmatprep.subr.bf16.mxu1 %v24371_v39  ;;  %v4368_v39 = vrot.slane %v26526_v53, %v25311_v42  ;;  %v24419_v53 = vld [vmem:[%s25255_s3 + $0x2068] sm:$0xff]  }
 0x411   : > { %22339 = vmatpush3.bf16.msra.mxu0 %v24372_v40  ;;  %v24411_v40 = vld [vmem:[%s25255_s3 + $0x2078] sm:$0xff]  }
 0x412   : > { %22340 = vmatprep.subr.bf16.mxu0 %v24374_v43  ;;  %v24413_v43 = vld [vmem:[%s25255_s3 + $0x2038] sm:$0xff]   ;;  %v4384_v45 = vcombine.high %v4368_v39, %v4368_v39 }
 0x413   : > { %22361 = vmatpush3.bf16.msra.mxu1 %v24373_v41  ;;  %v24412_v41 = vld [vmem:[%s25255_s3 + $0x20f8] sm:$0xff]  }
 0x414   : > { %22362 = vmatprep.subr.bf16.mxu1 %v24375_v44  ;;  %v24414_v44 = vld [vmem:[%s25255_s3 + $0x20b8] sm:$0xff]  }
 0x415   : > { %22341 = vmatpush3.bf16.msra.mxu0 %v24376_v46  ;;  %v24415_v46 = vld [vmem:[%s25255_s3 + $0x2070] sm:$0xff]  }
 0x416   : > { %22370 = vmatprep.subr.bf16.mxu0 %v24378_v52 }
 0x417   : > { %22363 = vmatpush3.bf16.msra.mxu1 %v24377_v49  ;;  %v24417_v49 = vld [vmem:[%s25255_s3 + $0x2030] sm:$0xff]  }
 0x418   : > { %v22078_v0 = vpop.f32.mrf.mxu0  ;;  %17502 = vmatmul.mubr.bf16.vlgmr.msra.gmra.mxu0 %v4361_v51  ;;  %22392 = vmatprep.subr.bf16.mxu1 %v24379_v54 }
 0x419   : > { %22371 = vmatpush3.bf16.msra.mxu0 %v24380_v56  ;;  %17581 = vmatprep.mubr.bf16.mxu0 %v4382_v62 }
 0x41a   : > { %v22100_v4 = vpop.f32.mrf.mxu1  ;;  %17542 = vmatmul.mubr.bf16.vlgmr.msra.gmra.mxu1 %v4383_v61  ;;  %v22079_v5 = vpop.f32.mrf.mxu0  ;;  %22372 = vmatprep.subr.bf16.mxu0 %v24382_v60  ;;  %v24422_v60 = vld [vmem:[%s25255_s3 + $0x20a8] sm:$0xff]  }
 0x41b   : > { %22393 = vmatpush3.bf16.msra.mxu1 %v24381_v58  ;;  %v22080_v7 = vadd.f32 %v22079_v5, %v22078_v0  ;;  %17621 = vmatprep.mubr.bf16.mxu1 %v4386_v2  ;;  %v24421_v58 = vld [vmem:[%s25255_s3 + $0x2028] sm:$0xff]   ;;  %v24423_v0 = vld [vmem:[%s25255_s3 + $0x2060] sm:$0xff]  }
 0x41c   : > { %v22101_v9 = vpop.f32.mrf.mxu1  ;;  %v22081_v10 = vpop.f32.mrf.mxu0  ;;  %22394 = vmatprep.subr.bf16.mxu1 %v24383_v63  ;;  %v24424_v2 = vld [vmem:[%s25255_s3 + $0x20e0] sm:$0xff]  }
 0x41d   : > { %v17024_v12 = vadd.f32 %v22080_v7, %v26500_v25  ;;  %v22102_v13 = vadd.f32 %v22101_v9, %v22100_v4  ;;  %22373 = vmatpush3.bf16.msra.mxu0 %v24384_v1  ;;  %v24396_v25 = vld [vmem:[%s25255_s3 + $0x1f18] sm:$0xff]   ;;  %v24425_v4 = vld [vmem:[%s25255_s3 + $0x2020] sm:$0xff]   ;;  %v24431_v10 = vld [vmem:[%s25255_s3 + $0x2050] sm:$0xff]  }
 0x41e   : > { %v22103_v15 = vpop.f32.mrf.mxu1  ;;  %v22082_v16 = vpop.f32.mrf.mxu0  ;;  %22374 = vmatprep.subr.bf16.mxu0 %v24386_v6  ;;  %v24426_v5 = vld [vmem:[%s25255_s3 + $0x20a0] sm:$0xff]   ;;  %v24427_v6 = vld [vmem:[%s25255_s3 + $0x2058] sm:$0xff]  }
 0x41f   : > { %v26545_v18 = vadd.f32 %v22102_v13, %v17024_v12  ;;  %22395 = vmatpush3.bf16.msra.mxu1 %v24385_v3  ;;  %v24428_v7 = vld [vmem:[%s25255_s3 + $0x20d8] sm:$0xff]   ;;  %v24433_v12 = vld [vmem:[%s25255_s3 + $0x2010] sm:$0xff]   ;;  %v24436_v15 = vld [vmem:[%s25255_s3 + $0x20c8] sm:$0xff]  }
 0x420   : > { %v22104_v20 = vpop.f32.mrf.mxu1  ;;  %22396 = vmatprep.subr.bf16.mxu1 %v24387_v8  ;;  %v24429_v8 = vld [vmem:[%s25255_s3 + $0x2018] sm:$0xff]   ;;  %v24434_v13 = vld [vmem:[%s25255_s3 + $0x2090] sm:$0xff]   ;;  %v24437_v16 = vld [vmem:[%s25255_s3 + $0x2008] sm:$0xff]  }
 0x421   : > { %22375 = vmatpush3.bf16.msra.mxu0 %v24388_v11  ;;  %v24430_v9 = vld [vmem:[%s25255_s3 + $0x2098] sm:$0xff]   ;;  %v24432_v11 = vld [vmem:[%s25255_s3 + $0x20d0] sm:$0xff]  }
 0x422   : > { %22376 = vmatprep.subr.bf16.mxu0 %v24390_v17  ;;  %v24438_v17 = vld [vmem:[%s25255_s3 + $0x2088] sm:$0xff]   ;;  %v239_v20 = vld [vmem:[%s25273_s20 + $0x80] sm:$0xff] }
 0x423   : > { %22397 = vmatpush3.bf16.msra.mxu1 %v24389_v14  ;;  %v24435_v14 = vld [vmem:[%s25255_s3 + $0x2048] sm:$0xff]  }
 0x424   : > { %22398 = vmatprep.subr.bf16.mxu1 %v24391_v19  ;;  %v24440_v19 = vld [vmem:[%s25255_s3 + $0x20c0] sm:$0xff]  }
 0x425   : > { %22377 = vmatpush3.bf16.msra.mxu0 %v24392_v21  ;;  %v24441_v21 = vld [vmem:[%s25255_s3 + $0x2000] sm:$0xff]  }
 0x426   : > { %22378 = vmatprep.subr.bf16.mxu0 %v24394_v23  ;;  %v4387_v23 = vcombine.high %v239_v20, %v239_v20 }
 0x427   : > { %22399 = vmatpush3.bf16.msra.mxu1 %v24393_v22  ;;  %v4394_v22 = vrot.slane %v239_v20, %v25311_v42 }
 0x428   : > { %22400 = vmatprep.subr.bf16.mxu1 %v24395_v24  ;;  %v24442_v24 = vld [vmem:[%s25255_s3 + $0x2080] sm:$0xff]  }
 0x429   : > { %22379 = vmatpush3.bf16.msra.mxu0 %v24396_v25  ;;  %v4402_v25 = vcombine.high %v4394_v22, %v4394_v22 }
 0x42a   : > { %22380 = vmatprep.subr.bf16.mxu0 %v24398_v27  ;;  %v24443_v27 = vld [vmem:[%s25255_s3 + $0x2178] sm:$0xff]  }
 0x42b   : > { %22401 = vmatpush3.bf16.msra.mxu1 %v24397_v26  ;;  %v4410_v26 = vrot.slane %v4394_v22, %v25311_v42  ;;  %v24481_v22 = vld [vmem:[%s25255_s3 + $0x22f0] sm:$0xff]  }
 0x42c   : > { %22402 = vmatprep.subr.bf16.mxu1 %v24399_v28  ;;  %v26608_v28 = vrot.slane %v4387_v23, %v25311_v42 }
 0x42d   : > { %22381 = vmatpush3.bf16.msra.mxu0 %v24400_v29  ;;  %v24444_v29 = vld [vmem:[%s25255_s3 + $0x21f8] sm:$0xff]  }
 0x42e   : > { %22382 = vmatprep.subr.bf16.mxu0 %v24402_v31  ;;  %v24445_v31 = vld [vmem:[%s25255_s3 + $0x2138] sm:$0xff]  }
 0x42f   : > { %22403 = vmatpush3.bf16.msra.mxu1 %v24401_v30  ;;  %v4424_v30 = vrot.slane %v4402_v25, %v25311_v42  ;;  %v24483_v25 = vld [vmem:[%s25255_s3 + $0x22b0] sm:$0xff]  }
 0x430   : > { %22404 = vmatprep.subr.bf16.mxu1 %v24403_v32  ;;  %v4403_v32 = vcombine.high %v26608_v28, %v26608_v28 }
 0x431   : > { %22383 = vmatpush3.bf16.msra.mxu0 %v24404_v33  ;;  %v24446_v33 = vld [vmem:[%s25255_s3 + $0x21b8] sm:$0xff]  }
 0x432   : > { %22384 = vmatprep.subr.bf16.mxu0 %v24406_v36  ;;  %v4432_v36 = vcombine.high %v4410_v26, %v4410_v26 }
 0x433   : > { %22405 = vmatpush3.bf16.msra.mxu1 %v24405_v34  ;;  %v4434_v34 = vcombine.high %v4424_v30, %v4424_v30 }
 0x434   : > { %22406 = vmatprep.subr.bf16.mxu1 %v24407_v35  ;;  %v24447_v35 = vld [vmem:[%s25255_s3 + $0x2170] sm:$0xff]  }
 0x435   : > { %22385 = vmatpush3.bf16.msra.mxu0 %v24408_v37  ;;  %v4431_v37 = vrot.slane %v4403_v32, %v25311_v42 }
 0x436   : > { %22414 = vmatprep.subr.bf16.mxu0 %v24411_v40  ;;  %v24449_v40 = vld [vmem:[%s25255_s3 + $0x2130] sm:$0xff]  }
 0x437   : > { %22407 = vmatpush3.bf16.msra.mxu1 %v24409_v38  ;;  %v24448_v38 = vld [vmem:[%s25255_s3 + $0x21f0] sm:$0xff]  }
 0x438   : > { %v22122_v48 = vpop.f32.mrf.mxu0  ;;  %17582 = vmatmul.mubr.bf16.vlgmr.msra.gmra.mxu0 %v4368_v39  ;;  %22436 = vmatprep.subr.bf16.mxu1 %v24412_v41  ;;  %v4435_v41 = vcombine.high %v4431_v37, %v4431_v37 }
 0x439   : > { %22415 = vmatpush3.bf16.msra.mxu0 %v24413_v43  ;;  %17661 = vmatprep.mubr.bf16.mxu0 %v4424_v30  ;;  %v24450_v43 = vld [vmem:[%s25255_s3 + $0x21b0] sm:$0xff]   ;;  %v24485_v30 = vld [vmem:[%s25255_s3 + $0x22e8] sm:$0xff]  }
 0x43a   : > { %v22144_v51 = vpop.f32.mrf.mxu1  ;;  %17622 = vmatmul.mubr.bf16.vlgmr.msra.gmra.mxu1 %v4384_v45  ;;  %v22123_v52 = vpop.f32.mrf.mxu0  ;;  %22416 = vmatprep.subr.bf16.mxu0 %v24415_v46  ;;  %v24451_v46 = vld [vmem:[%s25255_s3 + $0x2168] sm:$0xff]  }
 0x43b   : > { %22437 = vmatpush3.bf16.msra.mxu1 %v24414_v44  ;;  %v22124_v54 = vadd.f32 %v22123_v52, %v22122_v48  ;;  %17701 = vmatprep.mubr.bf16.mxu1 %v4434_v34  ;;  %v24452_v48 = vld [vmem:[%s25255_s3 + $0x21e8] sm:$0xff]  }
 0x43c   : > { %v22145_v56 = vpop.f32.mrf.mxu1  ;;  %v22125_v57 = vpop.f32.mrf.mxu0  ;;  %22438 = vmatprep.subr.bf16.mxu1 %v24416_v47 }
 0x43d   : > { %v17104_v59 = vadd.f32 %v22124_v54, %v26545_v18  ;;  %v22146_v61 = vadd.f32 %v22145_v56, %v22144_v51  ;;  %22417 = vmatpush3.bf16.msra.mxu0 %v24417_v49  ;;  %v24439_v18 = vld [vmem:[%s25255_s3 + $0x2040] sm:$0xff]   ;;  %v24453_v51 = vld [vmem:[%s25255_s3 + $0x2128] sm:$0xff]  }
 0x43e   : > { %v22147_v62 = vpop.f32.mrf.mxu1  ;;  %v22126_v63 = vpop.f32.mrf.mxu0  ;;  %22418 = vmatprep.subr.bf16.mxu0 %v24419_v53  ;;  %v24454_v54 = vld [vmem:[%s25255_s3 + $0x21a8] sm:$0xff]   ;;  %v24455_v57 = vld [vmem:[%s25255_s3 + $0x2160] sm:$0xff]  }
 0x43f   : > { %v26582_v1 = vadd.f32 %v22146_v61, %v17104_v59  ;;  %22439 = vmatpush3.bf16.msra.mxu1 %v24418_v50  ;;  %v24456_v59 = vld [vmem:[%s25255_s3 + $0x21e0] sm:$0xff]   ;;  %v24459_v63 = vld [vmem:[%s25255_s3 + $0x2158] sm:$0xff]  }
 0x440   : > { %v22148_v3 = vpop.f32.mrf.mxu1  ;;  %22440 = vmatprep.subr.bf16.mxu1 %v24420_v55  ;;  %v24458_v62 = vld [vmem:[%s25255_s3 + $0x21a0] sm:$0xff]  }
 0x441   : > { %22419 = vmatpush3.bf16.msra.mxu0 %v24421_v58  ;;  %v24463_v3 = vld [vmem:[%s25255_s3 + $0x2150] sm:$0xff]  }
 0x442   : > { %22420 = vmatprep.subr.bf16.mxu0 %v24423_v0  ;;  %v24460_v0 = vld [vmem:[%s25255_s3 + $0x21d8] sm:$0xff]  }
 0x443   : > { %22441 = vmatpush3.bf16.msra.mxu1 %v24422_v60  ;;  %v24457_v60 = vld [vmem:[%s25255_s3 + $0x2120] sm:$0xff]  }
 0x444   : > { %22442 = vmatprep.subr.bf16.mxu1 %v24424_v2  ;;  %v24462_v2 = vld [vmem:[%s25255_s3 + $0x2198] sm:$0xff]  }
 0x445   : > { %22421 = vmatpush3.bf16.msra.mxu0 %v24425_v4  ;;  %v24464_v4 = vld [vmem:[%s25255_s3 + $0x21d0] sm:$0xff]  }
 0x446   : > { %22422 = vmatprep.subr.bf16.mxu0 %v24427_v6  ;;  %v24466_v6 = vld [vmem:[%s25255_s3 + $0x2190] sm:$0xff]  }
 0x447   : > { %22443 = vmatpush3.bf16.msra.mxu1 %v24426_v5  ;;  %v24465_v5 = vld [vmem:[%s25255_s3 + $0x2110] sm:$0xff]  }
 0x448   : > { %22444 = vmatprep.subr.bf16.mxu1 %v24428_v7  ;;  %v24467_v7 = vld [vmem:[%s25255_s3 + $0x2148] sm:$0xff]  }
 0x449   : > { %22423 = vmatpush3.bf16.msra.mxu0 %v24429_v8  ;;  %v24468_v8 = vld [vmem:[%s25255_s3 + $0x21c8] sm:$0xff]  }
 0x44a   : > { %22424 = vmatprep.subr.bf16.mxu0 %v24431_v10  ;;  %v24470_v10 = vld [vmem:[%s25255_s3 + $0x2188] sm:$0xff]  }
 0x44b   : > { %22445 = vmatpush3.bf16.msra.mxu1 %v24430_v9  ;;  %v24469_v9 = vld [vmem:[%s25255_s3 + $0x2108] sm:$0xff]  }
 0x44c   : > { %22446 = vmatprep.subr.bf16.mxu1 %v24432_v11  ;;  %v24471_v11 = vld [vmem:[%s25255_s3 + $0x2140] sm:$0xff]  }
 0x44d   : > { %22425 = vmatpush3.bf16.msra.mxu0 %v24433_v12  ;;  %v24472_v12 = vld [vmem:[%s25255_s3 + $0x21c0] sm:$0xff]  }
 0x44e   : > { %22426 = vmatprep.subr.bf16.mxu0 %v24435_v14  ;;  %v24474_v14 = vld [vmem:[%s25255_s3 + $0x2180] sm:$0xff]  }
 0x44f   : > { %22447 = vmatpush3.bf16.msra.mxu1 %v24434_v13  ;;  %v24473_v13 = vld [vmem:[%s25255_s3 + $0x2100] sm:$0xff]  }
 0x450   : > { %22448 = vmatprep.subr.bf16.mxu1 %v24436_v15  ;;  %v4417_v15 = vrot.slane %v26608_v28, %v25311_v42  ;;  %v24484_v28 = vld [vmem:[%s25255_s3 + $0x2268] sm:$0xff]  }
 0x451   : > { %22427 = vmatpush3.bf16.msra.mxu0 %v24437_v16  ;;  %v24476_v16 = vld [vmem:[%s25255_s3 + $0x2278] sm:$0xff]  }
 0x452   : > { %22428 = vmatprep.subr.bf16.mxu0 %v24439_v18  ;;  %v24478_v18 = vld [vmem:[%s25255_s3 + $0x2238] sm:$0xff]   ;;  %v4433_v20 = vcombine.high %v4417_v15, %v4417_v15 }
 0x453   : > { %22449 = vmatpush3.bf16.msra.mxu1 %v24438_v17  ;;  %v24477_v17 = vld [vmem:[%s25255_s3 + $0x22f8] sm:$0xff]  }
 0x454   : > { %22450 = vmatprep.subr.bf16.mxu1 %v24440_v19  ;;  %v24479_v19 = vld [vmem:[%s25255_s3 + $0x22b8] sm:$0xff]  }
 0x455   : > { %22429 = vmatpush3.bf16.msra.mxu0 %v24441_v21  ;;  %v24480_v21 = vld [vmem:[%s25255_s3 + $0x2270] sm:$0xff]  }
 0x456   : > { %22458 = vmatprep.subr.bf16.mxu0 %v24443_v27 }
 0x457   : > { %22451 = vmatpush3.bf16.msra.mxu1 %v24442_v24  ;;  %v24482_v24 = vld [vmem:[%s25255_s3 + $0x2230] sm:$0xff]  }
 0x458   : > { %v22166_v39 = vpop.f32.mrf.mxu0  ;;  %17662 = vmatmul.mubr.bf16.vlgmr.msra.gmra.mxu0 %v4410_v26  ;;  %22480 = vmatprep.subr.bf16.mxu1 %v24444_v29 }
 0x459   : > { %22459 = vmatpush3.bf16.msra.mxu0 %v24445_v31  ;;  %17741 = vmatprep.mubr.bf16.mxu0 %v4431_v37 }
 0x45a   : > { %v22188_v44 = vpop.f32.mrf.mxu1  ;;  %17702 = vmatmul.mubr.bf16.vlgmr.msra.gmra.mxu1 %v4432_v36  ;;  %v22167_v45 = vpop.f32.mrf.mxu0  ;;  %22460 = vmatprep.subr.bf16.mxu0 %v24447_v35  ;;  %v24487_v35 = vld [vmem:[%s25255_s3 + $0x22a8] sm:$0xff]  }
 0x45b   : > { %22481 = vmatpush3.bf16.msra.mxu1 %v24446_v33  ;;  %v22168_v47 = vadd.f32 %v22167_v45, %v22166_v39  ;;  %17781 = vmatprep.mubr.bf16.mxu1 %v4435_v41  ;;  %v24486_v33 = vld [vmem:[%s25255_s3 + $0x2228] sm:$0xff]   ;;  %v24488_v39 = vld [vmem:[%s25255_s3 + $0x2260] sm:$0xff]  }
 0x45c   : > { %v22189_v49 = vpop.f32.mrf.mxu1  ;;  %v22169_v50 = vpop.f32.mrf.mxu0  ;;  %22482 = vmatprep.subr.bf16.mxu1 %v24448_v38  ;;  %v24489_v41 = vld [vmem:[%s25255_s3 + $0x22e0] sm:$0xff]  }
 0x45d   : > { %v17184_v52 = vadd.f32 %v22168_v47, %v26582_v1  ;;  %v22190_v53 = vadd.f32 %v22189_v49, %v22188_v44  ;;  %22461 = vmatpush3.bf16.msra.mxu0 %v24449_v40  ;;  %v24461_v1 = vld [vmem:[%s25255_s3 + $0x2118] sm:$0xff]   ;;  %v24490_v44 = vld [vmem:[%s25255_s3 + $0x2220] sm:$0xff]   ;;  %v24496_v50 = vld [vmem:[%s25255_s3 + $0x2250] sm:$0xff]  }
 0x45e   : > { %v22191_v55 = vpop.f32.mrf.mxu1  ;;  %v22170_v56 = vpop.f32.mrf.mxu0  ;;  %22462 = vmatprep.subr.bf16.mxu0 %v24451_v46  ;;  %v24491_v45 = vld [vmem:[%s25255_s3 + $0x22a0] sm:$0xff]   ;;  %v24492_v46 = vld [vmem:[%s25255_s3 + $0x2258] sm:$0xff]  }
 0x45f   : > { %v26627_v58 = vadd.f32 %v22190_v53, %v17184_v52  ;;  %22483 = vmatpush3.bf16.msra.mxu1 %v24450_v43  ;;  %v24493_v47 = vld [vmem:[%s25255_s3 + $0x22d8] sm:$0xff]   ;;  %v24498_v52 = vld [vmem:[%s25255_s3 + $0x2210] sm:$0xff]   ;;  %v24501_v55 = vld [vmem:[%s25255_s3 + $0x22c8] sm:$0xff]  }
 0x460   : > { %v22192_v61 = vpop.f32.mrf.mxu1  ;;  %22484 = vmatprep.subr.bf16.mxu1 %v24452_v48  ;;  %v24494_v48 = vld [vmem:[%s25255_s3 + $0x2218] sm:$0xff]   ;;  %v24499_v53 = vld [vmem:[%s25255_s3 + $0x2290] sm:$0xff]   ;;  %v24502_v56 = vld [vmem:[%s25255_s3 + $0x2208] sm:$0xff]  }
 0x461   : > { %22463 = vmatpush3.bf16.msra.mxu0 %v24453_v51  ;;  %v24495_v49 = vld [vmem:[%s25255_s3 + $0x2298] sm:$0xff]   ;;  %v24497_v51 = vld [vmem:[%s25255_s3 + $0x22d0] sm:$0xff]   ;;  %v240_v61 = vld [vmem:[%s25273_s20 + $0x88] sm:$0xff] }
 0x462   : > { %22464 = vmatprep.subr.bf16.mxu0 %v24455_v57  ;;  %v24503_v57 = vld [vmem:[%s25255_s3 + $0x2288] sm:$0xff]  }
 0x463   : > { %22485 = vmatpush3.bf16.msra.mxu1 %v24454_v54  ;;  %v24500_v54 = vld [vmem:[%s25255_s3 + $0x2248] sm:$0xff]  }
 0x464   : > { %22486 = vmatprep.subr.bf16.mxu1 %v24456_v59  ;;  %v24505_v59 = vld [vmem:[%s25255_s3 + $0x22c0] sm:$0xff]  }
 0x465   : > { %22465 = vmatpush3.bf16.msra.mxu0 %v24457_v60  ;;  %v24506_v60 = vld [vmem:[%s25255_s3 + $0x2200] sm:$0xff]  }
 0x466   : > { %22466 = vmatprep.subr.bf16.mxu0 %v24459_v63  ;;  %v4436_v63 = vcombine.high %v240_v61, %v240_v61 }
 0x467   : > { %22487 = vmatpush3.bf16.msra.mxu1 %v24458_v62  ;;  %v4443_v62 = vrot.slane %v240_v61, %v25311_v42 }
 0x468   : > { %22488 = vmatprep.subr.bf16.mxu1 %v24460_v0  ;;  %v24507_v0 = vld [vmem:[%s25255_s3 + $0x2280] sm:$0xff]  }
 0x469   : > { %22467 = vmatpush3.bf16.msra.mxu0 %v24461_v1  ;;  %v4451_v1 = vcombine.high %v4443_v62, %v4443_v62 }
 0x46a   : > { %22468 = vmatprep.subr.bf16.mxu0 %v24463_v3  ;;  %v24508_v3 = vld [vmem:[%s25255_s3 + $0x2378] sm:$0xff]  }
 0x46b   : > { %22489 = vmatpush3.bf16.msra.mxu1 %v24462_v2  ;;  %v4459_v2 = vrot.slane %v4443_v62, %v25311_v42  ;;  %v24546_v62 = vld [vmem:[%s25255_s3 + $0x24f0] sm:$0xff]  }
 0x46c   : > { %22490 = vmatprep.subr.bf16.mxu1 %v24464_v4  ;;  %v26690_v4 = vrot.slane %v4436_v63, %v25311_v42 }
 0x46d   : > { %22469 = vmatpush3.bf16.msra.mxu0 %v24465_v5  ;;  %v24509_v5 = vld [vmem:[%s25255_s3 + $0x23f8] sm:$0xff]  }
 0x46e   : > { %22470 = vmatprep.subr.bf16.mxu0 %v24467_v7  ;;  %v24510_v7 = vld [vmem:[%s25255_s3 + $0x2338] sm:$0xff]  }
 0x46f   : > { %22491 = vmatpush3.bf16.msra.mxu1 %v24466_v6  ;;  %v4473_v6 = vrot.slane %v4451_v1, %v25311_v42  ;;  %v24548_v1 = vld [vmem:[%s25255_s3 + $0x24b0] sm:$0xff]  }
 0x470   : > { %22492 = vmatprep.subr.bf16.mxu1 %v24468_v8  ;;  %v4452_v8 = vcombine.high %v26690_v4, %v26690_v4 }
 0x471   : > { %22471 = vmatpush3.bf16.msra.mxu0 %v24469_v9  ;;  %v24511_v9 = vld [vmem:[%s25255_s3 + $0x23b8] sm:$0xff]  }
 0x472   : > { %22472 = vmatprep.subr.bf16.mxu0 %v24471_v11  ;;  %v4481_v11 = vcombine.high %v4459_v2, %v4459_v2 }
 0x473   : > { %22493 = vmatpush3.bf16.msra.mxu1 %v24470_v10  ;;  %v4483_v10 = vcombine.high %v4473_v6, %v4473_v6 }
 0x474   : > { %22494 = vmatprep.subr.bf16.mxu1 %v24472_v12  ;;  %v24512_v12 = vld [vmem:[%s25255_s3 + $0x2370] sm:$0xff]  }
 0x475   : > { %22473 = vmatpush3.bf16.msra.mxu0 %v24473_v13  ;;  %v4480_v13 = vrot.slane %v4452_v8, %v25311_v42 }
 0x476   : > { %22502 = vmatprep.subr.bf16.mxu0 %v24476_v16  ;;  %v24514_v16 = vld [vmem:[%s25255_s3 + $0x2330] sm:$0xff]  }
 0x477   : > { %22495 = vmatpush3.bf16.msra.mxu1 %v24474_v14  ;;  %v24513_v14 = vld [vmem:[%s25255_s3 + $0x23f0] sm:$0xff]  }
 0x478   : > { %v22210_v23 = vpop.f32.mrf.mxu0  ;;  %17742 = vmatmul.mubr.bf16.vlgmr.msra.gmra.mxu0 %v4417_v15  ;;  %22524 = vmatprep.subr.bf16.mxu1 %v24477_v17  ;;  %v4484_v17 = vcombine.high %v4480_v13, %v4480_v13 }
 0x479   : > { %22503 = vmatpush3.bf16.msra.mxu0 %v24478_v18  ;;  %17821 = vmatprep.mubr.bf16.mxu0 %v4473_v6  ;;  %v24515_v18 = vld [vmem:[%s25255_s3 + $0x23b0] sm:$0xff]   ;;  %v24550_v6 = vld [vmem:[%s25255_s3 + $0x24e8] sm:$0xff]  }
 0x47a   : > { %v22232_v26 = vpop.f32.mrf.mxu1  ;;  %17782 = vmatmul.mubr.bf16.vlgmr.msra.gmra.mxu1 %v4433_v20  ;;  %v22211_v27 = vpop.f32.mrf.mxu0  ;;  %22504 = vmatprep.subr.bf16.mxu0 %v24480_v21  ;;  %v24516_v21 = vld [vmem:[%s25255_s3 + $0x2368] sm:$0xff]  }
 0x47b   : > { %22525 = vmatpush3.bf16.msra.mxu1 %v24479_v19  ;;  %v22212_v29 = vadd.f32 %v22211_v27, %v22210_v23  ;;  %17861 = vmatprep.mubr.bf16.mxu1 %v4483_v10  ;;  %v24517_v23 = vld [vmem:[%s25255_s3 + $0x23e8] sm:$0xff]  }
 0x47c   : > { %v22233_v31 = vpop.f32.mrf.mxu1  ;;  %v22213_v32 = vpop.f32.mrf.mxu0  ;;  %22526 = vmatprep.subr.bf16.mxu1 %v24481_v22 }
 0x47d   : > { %v17264_v34 = vadd.f32 %v22212_v29, %v26627_v58  ;;  %v22234_v36 = vadd.f32 %v22233_v31, %v22232_v26  ;;  %22505 = vmatpush3.bf16.msra.mxu0 %v24482_v24  ;;  %v24504_v58 = vld [vmem:[%s25255_s3 + $0x2240] sm:$0xff]   ;;  %v24518_v26 = vld [vmem:[%s25255_s3 + $0x2328] sm:$0xff]  }
 0x47e   : > { %v22235_v37 = vpop.f32.mrf.mxu1  ;;  %v22214_v38 = vpop.f32.mrf.mxu0  ;;  %22506 = vmatprep.subr.bf16.mxu0 %v24484_v28  ;;  %v24519_v29 = vld [vmem:[%s25255_s3 + $0x23a8] sm:$0xff]   ;;  %v24520_v32 = vld [vmem:[%s25255_s3 + $0x2360] sm:$0xff]  }
 0x47f   : > { %v26664_v40 = vadd.f32 %v22234_v36, %v17264_v34  ;;  %22527 = vmatpush3.bf16.msra.mxu1 %v24483_v25  ;;  %v24521_v34 = vld [vmem:[%s25255_s3 + $0x23e0] sm:$0xff]   ;;  %v24524_v38 = vld [vmem:[%s25255_s3 + $0x2358] sm:$0xff]  }
 0x480   : > { %v22236_v43 = vpop.f32.mrf.mxu1  ;;  %22528 = vmatprep.subr.bf16.mxu1 %v24485_v30  ;;  %v24523_v37 = vld [vmem:[%s25255_s3 + $0x23a0] sm:$0xff]  }
 0x481   : > { %22507 = vmatpush3.bf16.msra.mxu0 %v24486_v33  ;;  %v24528_v43 = vld [vmem:[%s25255_s3 + $0x2350] sm:$0xff]  }
 0x482   : > { %22508 = vmatprep.subr.bf16.mxu0 %v24488_v39  ;;  %v24525_v39 = vld [vmem:[%s25255_s3 + $0x23d8] sm:$0xff]  }
 0x483   : > { %22529 = vmatpush3.bf16.msra.mxu1 %v24487_v35  ;;  %v24522_v35 = vld [vmem:[%s25255_s3 + $0x2320] sm:$0xff]  }
 0x484   : > { %22530 = vmatprep.subr.bf16.mxu1 %v24489_v41  ;;  %v24527_v41 = vld [vmem:[%s25255_s3 + $0x2398] sm:$0xff]  }
 0x485   : > { %22509 = vmatpush3.bf16.msra.mxu0 %v24490_v44  ;;  %v24529_v44 = vld [vmem:[%s25255_s3 + $0x23d0] sm:$0xff]  }
 0x486   : > { %22510 = vmatprep.subr.bf16.mxu0 %v24492_v46  ;;  %v24531_v46 = vld [vmem:[%s25255_s3 + $0x2390] sm:$0xff]  }
 0x487   : > { %22531 = vmatpush3.bf16.msra.mxu1 %v24491_v45  ;;  %v24530_v45 = vld [vmem:[%s25255_s3 + $0x2310] sm:$0xff]  }
 0x488   : > { %22532 = vmatprep.subr.bf16.mxu1 %v24493_v47  ;;  %v24532_v47 = vld [vmem:[%s25255_s3 + $0x2348] sm:$0xff]  }
 0x489   : > { %22511 = vmatpush3.bf16.msra.mxu0 %v24494_v48  ;;  %v24533_v48 = vld [vmem:[%s25255_s3 + $0x23c8] sm:$0xff]  }
 0x48a   : > { %22512 = vmatprep.subr.bf16.mxu0 %v24496_v50  ;;  %v24535_v50 = vld [vmem:[%s25255_s3 + $0x2388] sm:$0xff]  }
 0x48b   : > { %22533 = vmatpush3.bf16.msra.mxu1 %v24495_v49  ;;  %v24534_v49 = vld [vmem:[%s25255_s3 + $0x2308] sm:$0xff]  }
 0x48c   : > { %22534 = vmatprep.subr.bf16.mxu1 %v24497_v51  ;;  %v24536_v51 = vld [vmem:[%s25255_s3 + $0x2340] sm:$0xff]  }
 0x48d   : > { %22513 = vmatpush3.bf16.msra.mxu0 %v24498_v52  ;;  %v24537_v52 = vld [vmem:[%s25255_s3 + $0x23c0] sm:$0xff]  }
 0x48e   : > { %22514 = vmatprep.subr.bf16.mxu0 %v24500_v54  ;;  %v24539_v54 = vld [vmem:[%s25255_s3 + $0x2380] sm:$0xff]  }
 0x48f   : > { %22535 = vmatpush3.bf16.msra.mxu1 %v24499_v53  ;;  %v24538_v53 = vld [vmem:[%s25255_s3 + $0x2300] sm:$0xff]  }
 0x490   : > { %22536 = vmatprep.subr.bf16.mxu1 %v24501_v55  ;;  %v4466_v55 = vrot.slane %v26690_v4, %v25311_v42  ;;  %v24549_v4 = vld [vmem:[%s25255_s3 + $0x2468] sm:$0xff]  }
 0x491   : > { %22515 = vmatpush3.bf16.msra.mxu0 %v24502_v56  ;;  %v24541_v56 = vld [vmem:[%s25255_s3 + $0x2478] sm:$0xff]  }
 0x492   : > { %22516 = vmatprep.subr.bf16.mxu0 %v24504_v58  ;;  %v24543_v58 = vld [vmem:[%s25255_s3 + $0x2438] sm:$0xff]   ;;  %v4482_v61 = vcombine.high %v4466_v55, %v4466_v55 }
 0x493   : > { %22537 = vmatpush3.bf16.msra.mxu1 %v24503_v57  ;;  %v24542_v57 = vld [vmem:[%s25255_s3 + $0x24f8] sm:$0xff]  }
 0x494   : > { %22538 = vmatprep.subr.bf16.mxu1 %v24505_v59  ;;  %v24544_v59 = vld [vmem:[%s25255_s3 + $0x24b8] sm:$0xff]  }
 0x495   : > { %22517 = vmatpush3.bf16.msra.mxu0 %v24506_v60  ;;  %v24545_v60 = vld [vmem:[%s25255_s3 + $0x2470] sm:$0xff]  }
 0x496   : > { %22546 = vmatprep.subr.bf16.mxu0 %v24508_v3 }
 0x497   : > { %22539 = vmatpush3.bf16.msra.mxu1 %v24507_v0  ;;  %v24547_v0 = vld [vmem:[%s25255_s3 + $0x2430] sm:$0xff]  }
 0x498   : > { %v22254_v15 = vpop.f32.mrf.mxu0  ;;  %17822 = vmatmul.mubr.bf16.vlgmr.msra.gmra.mxu0 %v4459_v2  ;;  %22568 = vmatprep.subr.bf16.mxu1 %v24509_v5 }
 0x499   : > { %22547 = vmatpush3.bf16.msra.mxu0 %v24510_v7  ;;  %17901 = vmatprep.mubr.bf16.mxu0 %v4480_v13 }
 0x49a   : > { %v22276_v19 = vpop.f32.mrf.mxu1  ;;  %17862 = vmatmul.mubr.bf16.vlgmr.msra.gmra.mxu1 %v4481_v11  ;;  %v22255_v20 = vpop.f32.mrf.mxu0  ;;  %22548 = vmatprep.subr.bf16.mxu0 %v24512_v12  ;;  %v24552_v12 = vld [vmem:[%s25255_s3 + $0x24a8] sm:$0xff]  }
 0x49b   : > { %22569 = vmatpush3.bf16.msra.mxu1 %v24511_v9  ;;  %v22256_v22 = vadd.f32 %v22255_v20, %v22254_v15  ;;  %17941 = vmatprep.mubr.bf16.mxu1 %v4484_v17  ;;  %v24551_v9 = vld [vmem:[%s25255_s3 + $0x2428] sm:$0xff]   ;;  %v24553_v15 = vld [vmem:[%s25255_s3 + $0x2460] sm:$0xff]  }
 0x49c   : > { %v22277_v24 = vpop.f32.mrf.mxu1  ;;  %v22257_v25 = vpop.f32.mrf.mxu0  ;;  %22570 = vmatprep.subr.bf16.mxu1 %v24513_v14  ;;  %v24554_v17 = vld [vmem:[%s25255_s3 + $0x24e0] sm:$0xff]  }
 0x49d   : > { %v17344_v27 = vadd.f32 %v22256_v22, %v26664_v40  ;;  %v22278_v28 = vadd.f32 %v22277_v24, %v22276_v19  ;;  %22549 = vmatpush3.bf16.msra.mxu0 %v24514_v16  ;;  %v24526_v40 = vld [vmem:[%s25255_s3 + $0x2318] sm:$0xff]   ;;  %v24555_v19 = vld [vmem:[%s25255_s3 + $0x2420] sm:$0xff]   ;;  %v24561_v25 = vld [vmem:[%s25255_s3 + $0x2450] sm:$0xff]  }
 0x49e   : > { %v22279_v30 = vpop.f32.mrf.mxu1  ;;  %v22258_v31 = vpop.f32.mrf.mxu0  ;;  %22550 = vmatprep.subr.bf16.mxu0 %v24516_v21  ;;  %v24556_v20 = vld [vmem:[%s25255_s3 + $0x24a0] sm:$0xff]   ;;  %v24557_v21 = vld [vmem:[%s25255_s3 + $0x2458] sm:$0xff]  }
 0x49f   : > { %v26709_v33 = vadd.f32 %v22278_v28, %v17344_v27  ;;  %22571 = vmatpush3.bf16.msra.mxu1 %v24515_v18  ;;  %v24558_v22 = vld [vmem:[%s25255_s3 + $0x24d8] sm:$0xff]   ;;  %v24563_v27 = vld [vmem:[%s25255_s3 + $0x2410] sm:$0xff]   ;;  %v24566_v30 = vld [vmem:[%s25255_s3 + $0x24c8] sm:$0xff]  }
 0x4a0   : > { %v22280_v36 = vpop.f32.mrf.mxu1  ;;  %22572 = vmatprep.subr.bf16.mxu1 %v24517_v23  ;;  %v24559_v23 = vld [vmem:[%s25255_s3 + $0x2418] sm:$0xff]   ;;  %v24564_v28 = vld [vmem:[%s25255_s3 + $0x2490] sm:$0xff]   ;;  %v24567_v31 = vld [vmem:[%s25255_s3 + $0x2408] sm:$0xff]  }
 0x4a1   : > { %22551 = vmatpush3.bf16.msra.mxu0 %v24518_v26  ;;  %v24560_v24 = vld [vmem:[%s25255_s3 + $0x2498] sm:$0xff]   ;;  %v24562_v26 = vld [vmem:[%s25255_s3 + $0x24d0] sm:$0xff]   ;;  %v24571_v36 = vld [vmem:[%s25255_s3 + $0x2400] sm:$0xff]  }
 0x4a2   : > { %22552 = vmatprep.subr.bf16.mxu0 %v24520_v32  ;;  %v24568_v32 = vld [vmem:[%s25255_s3 + $0x2488] sm:$0xff]  }
 0x4a3   : > { %22573 = vmatpush3.bf16.msra.mxu1 %v24519_v29  ;;  %v24565_v29 = vld [vmem:[%s25255_s3 + $0x2448] sm:$0xff]  }
 0x4a4   : > { %22574 = vmatprep.subr.bf16.mxu1 %v24521_v34  ;;  %v24570_v34 = vld [vmem:[%s25255_s3 + $0x24c0] sm:$0xff]  }
 0x4a5   : > { %22553 = vmatpush3.bf16.msra.mxu0 %v24522_v35  ;;  %v241_v35 = vld [vmem:[%s25273_s20 + $0x90] sm:$0xff] }
 0x4a6   : > { %22554 = vmatprep.subr.bf16.mxu0 %v24524_v38  ;;  %v4492_v38 = vrot.slane %v241_v35, %v25311_v42 }
 0x4a7   : > { %22575 = vmatpush3.bf16.msra.mxu1 %v24523_v37  ;;  %v24572_v37 = vld [vmem:[%s25255_s3 + $0x2480] sm:$0xff]  }
 0x4a8   : > { %22576 = vmatprep.subr.bf16.mxu1 %v24525_v39  ;;  %v4485_v39 = vcombine.high %v241_v35, %v241_v35  ;;  %v24610_v35 = vld [vmem:[%s25255_s3 + $0x2670] sm:$0xff]  }
 0x4a9   : > { %22555 = vmatpush3.bf16.msra.mxu0 %v24526_v40  ;;  %v24573_v40 = vld [vmem:[%s25255_s3 + $0x2578] sm:$0xff]  }
 0x4aa   : > { %22556 = vmatprep.subr.bf16.mxu0 %v24528_v43  ;;  %v4508_v43 = vrot.slane %v4492_v38, %v25311_v42 }
 0x4ab   : > { %22577 = vmatpush3.bf16.msra.mxu1 %v24527_v41  ;;  %v4500_v41 = vcombine.high %v4492_v38, %v4492_v38 }
 0x4ac   : > { %22578 = vmatprep.subr.bf16.mxu1 %v24529_v44  ;;  %v24574_v44 = vld [vmem:[%s25255_s3 + $0x25f8] sm:$0xff]  }
 0x4ad   : > { %22557 = vmatpush3.bf16.msra.mxu0 %v24530_v45  ;;  %v26773_v45 = vrot.slane %v4485_v39, %v25311_v42  ;;  %v24612_v39 = vld [vmem:[%s25255_s3 + $0x2630] sm:$0xff]  }
 0x4ae   : > { %22558 = vmatprep.subr.bf16.mxu0 %v24532_v47  ;;  %v4522_v47 = vrot.slane %v4500_v41, %v25311_v42 }
 0x4af   : > { %22579 = vmatpush3.bf16.msra.mxu1 %v24531_v46  ;;  %v24575_v46 = vld [vmem:[%s25255_s3 + $0x2538] sm:$0xff]  }
 0x4b0   : > { %22580 = vmatprep.subr.bf16.mxu1 %v24533_v48  ;;  %v24576_v48 = vld [vmem:[%s25255_s3 + $0x25b8] sm:$0xff]  }
 0x4b1   : > { %22559 = vmatpush3.bf16.msra.mxu0 %v24534_v49  ;;  %v4501_v49 = vcombine.high %v26773_v45, %v26773_v45 }
 0x4b2   : > { %22560 = vmatprep.subr.bf16.mxu0 %v24536_v51  ;;  %v24577_v51 = vld [vmem:[%s25255_s3 + $0x2570] sm:$0xff]  }
 0x4b3   : > { %22581 = vmatpush3.bf16.msra.mxu1 %v24535_v50  ;;  %v4530_v50 = vcombine.high %v4508_v43, %v4508_v43 }
 0x4b4   : > { %22582 = vmatprep.subr.bf16.mxu1 %v24537_v52  ;;  %v4532_v52 = vcombine.high %v4522_v47, %v4522_v47 }
 0x4b5   : > { %22561 = vmatpush3.bf16.msra.mxu0 %v24538_v53  ;;  %v24578_v53 = vld [vmem:[%s25255_s3 + $0x25f0] sm:$0xff]  }
 0x4b6   : > { %22590 = vmatprep.subr.bf16.mxu0 %v24541_v56  ;;  %v24579_v56 = vld [vmem:[%s25255_s3 + $0x2530] sm:$0xff]  }
 0x4b7   : > { %22583 = vmatpush3.bf16.msra.mxu1 %v24539_v54  ;;  %v4529_v54 = vrot.slane %v4501_v49, %v25311_v42  ;;  %v24616_v49 = vld [vmem:[%s25255_s3 + $0x2628] sm:$0xff]  }
 0x4b8   : > { %v22298_v63 = vpop.f32.mrf.mxu0  ;;  %17902 = vmatmul.mubr.bf16.vlgmr.msra.gmra.mxu0 %v4466_v55  ;;  %22612 = vmatprep.subr.bf16.mxu1 %v24542_v57  ;;  %v24580_v57 = vld [vmem:[%s25255_s3 + $0x25b0] sm:$0xff]  }
 0x4b9   : > { %22591 = vmatpush3.bf16.msra.mxu0 %v24543_v58  ;;  %17981 = vmatprep.mubr.bf16.mxu0 %v4522_v47  ;;  %v4533_v58 = vcombine.high %v4529_v54, %v4529_v54 }
 0x4ba   : > { %v22320_v2 = vpop.f32.mrf.mxu1  ;;  %17942 = vmatmul.mubr.bf16.vlgmr.msra.gmra.mxu1 %v4482_v61  ;;  %v22299_v3 = vpop.f32.mrf.mxu0  ;;  %22592 = vmatprep.subr.bf16.mxu0 %v24545_v60  ;;  %v24581_v60 = vld [vmem:[%s25255_s3 + $0x2568] sm:$0xff]  }
 0x4bb   : > { %22613 = vmatpush3.bf16.msra.mxu1 %v24544_v59  ;;  %v22300_v5 = vadd.f32 %v22299_v3, %v22298_v63  ;;  %18021 = vmatprep.mubr.bf16.mxu1 %v4532_v52  ;;  %v24582_v63 = vld [vmem:[%s25255_s3 + $0x25e8] sm:$0xff]  }
 0x4bc   : > { %v22321_v7 = vpop.f32.mrf.mxu1  ;;  %v22301_v8 = vpop.f32.mrf.mxu0  ;;  %22614 = vmatprep.subr.bf16.mxu1 %v24546_v62  ;;  %v24617_v52 = vld [vmem:[%s25255_s3 + $0x26a8] sm:$0xff]  }
 0x4bd   : > { %v17424_v10 = vadd.f32 %v22300_v5, %v26709_v33  ;;  %v22322_v11 = vadd.f32 %v22321_v7, %v22320_v2  ;;  %22593 = vmatpush3.bf16.msra.mxu0 %v24547_v0  ;;  %v24569_v33 = vld [vmem:[%s25255_s3 + $0x2440] sm:$0xff]   ;;  %v24583_v2 = vld [vmem:[%s25255_s3 + $0x2528] sm:$0xff]  }
 0x4be   : > { %v22323_v13 = vpop.f32.mrf.mxu1  ;;  %v22302_v14 = vpop.f32.mrf.mxu0  ;;  %22594 = vmatprep.subr.bf16.mxu0 %v24549_v4  ;;  %v24584_v5 = vld [vmem:[%s25255_s3 + $0x25a8] sm:$0xff]   ;;  %v24585_v8 = vld [vmem:[%s25255_s3 + $0x2560] sm:$0xff]  }
 0x4bf   : > { %v26746_v16 = vadd.f32 %v22322_v11, %v17424_v10  ;;  %22615 = vmatpush3.bf16.msra.mxu1 %v24548_v1  ;;  %v24586_v10 = vld [vmem:[%s25255_s3 + $0x25e0] sm:$0xff]   ;;  %v24589_v14 = vld [vmem:[%s25255_s3 + $0x2558] sm:$0xff]  }
 0x4c0   : > { %v22324_v18 = vpop.f32.mrf.mxu1  ;;  %22616 = vmatprep.subr.bf16.mxu1 %v24550_v6  ;;  %v24588_v13 = vld [vmem:[%s25255_s3 + $0x25a0] sm:$0xff]  }
 0x4c1   : > { %22595 = vmatpush3.bf16.msra.mxu0 %v24551_v9  ;;  %v24593_v18 = vld [vmem:[%s25255_s3 + $0x2550] sm:$0xff]  }
 0x4c2   : > { %22596 = vmatprep.subr.bf16.mxu0 %v24553_v15  ;;  %v24590_v15 = vld [vmem:[%s25255_s3 + $0x25d8] sm:$0xff]  }
 0x4c3   : > { %22617 = vmatpush3.bf16.msra.mxu1 %v24552_v12  ;;  %v24587_v12 = vld [vmem:[%s25255_s3 + $0x2520] sm:$0xff]  }
 0x4c4   : > { %22618 = vmatprep.subr.bf16.mxu1 %v24554_v17  ;;  %v24592_v17 = vld [vmem:[%s25255_s3 + $0x2598] sm:$0xff]  }
 0x4c5   : > { %22597 = vmatpush3.bf16.msra.mxu0 %v24555_v19  ;;  %v24594_v19 = vld [vmem:[%s25255_s3 + $0x25d0] sm:$0xff]  }
 0x4c6   : > { %22598 = vmatprep.subr.bf16.mxu0 %v24557_v21  ;;  %v24596_v21 = vld [vmem:[%s25255_s3 + $0x2590] sm:$0xff]  }
 0x4c7   : > { %22619 = vmatpush3.bf16.msra.mxu1 %v24556_v20  ;;  %v24595_v20 = vld [vmem:[%s25255_s3 + $0x2510] sm:$0xff]  }
 0x4c8   : > { %22620 = vmatprep.subr.bf16.mxu1 %v24558_v22  ;;  %v24597_v22 = vld [vmem:[%s25255_s3 + $0x2548] sm:$0xff]  }
 0x4c9   : > { %22599 = vmatpush3.bf16.msra.mxu0 %v24559_v23  ;;  %v24598_v23 = vld [vmem:[%s25255_s3 + $0x25c8] sm:$0xff]  }
 0x4ca   : > { %22600 = vmatprep.subr.bf16.mxu0 %v24561_v25  ;;  %v24600_v25 = vld [vmem:[%s25255_s3 + $0x2588] sm:$0xff]  }
 0x4cb   : > { %22621 = vmatpush3.bf16.msra.mxu1 %v24560_v24  ;;  %v24599_v24 = vld [vmem:[%s25255_s3 + $0x2508] sm:$0xff]  }
 0x4cc   : > { %22622 = vmatprep.subr.bf16.mxu1 %v24562_v26  ;;  %v24601_v26 = vld [vmem:[%s25255_s3 + $0x2540] sm:$0xff]  }
 0x4cd   : > { %22601 = vmatpush3.bf16.msra.mxu0 %v24563_v27  ;;  %v24602_v27 = vld [vmem:[%s25255_s3 + $0x25c0] sm:$0xff]  }
 0x4ce   : > { %22602 = vmatprep.subr.bf16.mxu0 %v24565_v29  ;;  %v24604_v29 = vld [vmem:[%s25255_s3 + $0x2580] sm:$0xff]  }
 0x4cf   : > { %22623 = vmatpush3.bf16.msra.mxu1 %v24564_v28  ;;  %v24603_v28 = vld [vmem:[%s25255_s3 + $0x2500] sm:$0xff]  }
 0x4d0   : > { %22624 = vmatprep.subr.bf16.mxu1 %v24566_v30  ;;  %v4515_v30 = vrot.slane %v26773_v45, %v25311_v42 }
 0x4d1   : > { %22603 = vmatpush3.bf16.msra.mxu0 %v24567_v31  ;;  %v24606_v31 = vld [vmem:[%s25255_s3 + $0x2678] sm:$0xff]  }
 0x4d2   : > { %22604 = vmatprep.subr.bf16.mxu0 %v24569_v33  ;;  %v24608_v33 = vld [vmem:[%s25255_s3 + $0x2638] sm:$0xff]  }
 0x4d3   : > { %22625 = vmatpush3.bf16.msra.mxu1 %v24568_v32  ;;  %v24607_v32 = vld [vmem:[%s25255_s3 + $0x26f8] sm:$0xff]  }
 0x4d4   : > { %22626 = vmatprep.subr.bf16.mxu1 %v24570_v34  ;;  %v24609_v34 = vld [vmem:[%s25255_s3 + $0x26b8] sm:$0xff]  }
 0x4d5   : > { %22605 = vmatpush3.bf16.msra.mxu0 %v24571_v36  ;;  %v4531_v36 = vcombine.high %v4515_v30, %v4515_v30 }
 0x4d6   : > { %22634 = vmatprep.subr.bf16.mxu0 %v24573_v40  ;;  %v24613_v40 = vld [vmem:[%s25255_s3 + $0x26b0] sm:$0xff]  }
 0x4d7   : > { %22627 = vmatpush3.bf16.msra.mxu1 %v24572_v37  ;;  %v24611_v37 = vld [vmem:[%s25255_s3 + $0x26f0] sm:$0xff]  }
 0x4d8   : > { %v22342_v55 = vpop.f32.mrf.mxu0  ;;  %17982 = vmatmul.mubr.bf16.vlgmr.msra.gmra.mxu0 %v4508_v43  ;;  %22656 = vmatprep.subr.bf16.mxu1 %v24574_v44  ;;  %v24614_v44 = vld [vmem:[%s25255_s3 + $0x2668] sm:$0xff]  }
 0x4d9   : > { %22635 = vmatpush3.bf16.msra.mxu0 %v24575_v46  ;;  %18061 = vmatprep.mubr.bf16.mxu0 %v4529_v54  ;;  %v24615_v46 = vld [vmem:[%s25255_s3 + $0x26e8] sm:$0xff]  }
 0x4da   : > { %v22364_v59 = vpop.f32.mrf.mxu1  ;;  %18022 = vmatmul.mubr.bf16.vlgmr.msra.gmra.mxu1 %v4530_v50  ;;  %v22343_v61 = vpop.f32.mrf.mxu0  ;;  %22636 = vmatprep.subr.bf16.mxu0 %v24577_v51 }
 0x4db   : > { %22657 = vmatpush3.bf16.msra.mxu1 %v24576_v48  ;;  %v22344_v62 = vadd.f32 %v22343_v61, %v22342_v55  ;;  %18101 = vmatprep.mubr.bf16.mxu1 %v4533_v58  ;;  %v24618_v55 = vld [vmem:[%s25255_s3 + $0x2660] sm:$0xff]  }
 0x4dc   : > { %v22365_v0 = vpop.f32.mrf.mxu1  ;;  %v22345_v1 = vpop.f32.mrf.mxu0  ;;  %22658 = vmatprep.subr.bf16.mxu1 %v24578_v53  ;;  %v24621_v61 = vld [vmem:[%s25255_s3 + $0x26a0] sm:$0xff]  }
 0x4dd   : > { %v17504_v3 = vadd.f32 %v22344_v62, %v26746_v16  ;;  %v22366_v4 = vadd.f32 %v22365_v0, %v22364_v59  ;;  %22637 = vmatpush3.bf16.msra.mxu0 %v24579_v56  ;;  %v24591_v16 = vld [vmem:[%s25255_s3 + $0x2518] sm:$0xff]   ;;  %v24620_v59 = vld [vmem:[%s25255_s3 + $0x2620] sm:$0xff]   ;;  %v24626_v1 = vld [vmem:[%s25255_s3 + $0x2650] sm:$0xff]  }
 0x4de   : > { %v22367_v6 = vpop.f32.mrf.mxu1  ;;  %v22346_v7 = vpop.f32.mrf.mxu0  ;;  %22638 = vmatprep.subr.bf16.mxu0 %v24581_v60  ;;  %v24622_v60 = vld [vmem:[%s25255_s3 + $0x2658] sm:$0xff]  }
 0x4df   : > { %v26791_v9 = vadd.f32 %v22366_v4, %v17504_v3  ;;  %22659 = vmatpush3.bf16.msra.mxu1 %v24580_v57  ;;  %v24619_v57 = vld [vmem:[%s25255_s3 + $0x26e0] sm:$0xff]   ;;  %v24623_v62 = vld [vmem:[%s25255_s3 + $0x26d8] sm:$0xff]   ;;  %v24628_v3 = vld [vmem:[%s25255_s3 + $0x2610] sm:$0xff]  }
 0x4e0   : > { %v22368_v11 = vpop.f32.mrf.mxu1  ;;  %22660 = vmatprep.subr.bf16.mxu1 %v24582_v63  ;;  %v24624_v63 = vld [vmem:[%s25255_s3 + $0x2618] sm:$0xff]   ;;  %v24629_v4 = vld [vmem:[%s25255_s3 + $0x2690] sm:$0xff]   ;;  %v24631_v6 = vld [vmem:[%s25255_s3 + $0x26c8] sm:$0xff]  }
 0x4e1   : > { %22639 = vmatpush3.bf16.msra.mxu0 %v24583_v2  ;;  %v24625_v0 = vld [vmem:[%s25255_s3 + $0x2698] sm:$0xff]   ;;  %v24627_v2 = vld [vmem:[%s25255_s3 + $0x26d0] sm:$0xff]   ;;  %v24632_v7 = vld [vmem:[%s25255_s3 + $0x2608] sm:$0xff]  }
 0x4e2   : > { %22640 = vmatprep.subr.bf16.mxu0 %v24585_v8  ;;  %v24633_v8 = vld [vmem:[%s25255_s3 + $0x2688] sm:$0xff]   ;;  %v24636_v11 = vld [vmem:[%s25255_s3 + $0x2600] sm:$0xff]  }
 0x4e3   : > { %22661 = vmatpush3.bf16.msra.mxu1 %v24584_v5  ;;  %v24630_v5 = vld [vmem:[%s25255_s3 + $0x2648] sm:$0xff]  }
 0x4e4   : > { %22662 = vmatprep.subr.bf16.mxu1 %v24586_v10  ;;  %v24635_v10 = vld [vmem:[%s25255_s3 + $0x26c0] sm:$0xff]  }
 0x4e5   : > { %22641 = vmatpush3.bf16.msra.mxu0 %v24587_v12  ;;  %v242_v12 = vld [vmem:[%s25273_s20 + $0x98] sm:$0xff] }
 0x4e6   : > { %22642 = vmatprep.subr.bf16.mxu0 %v24589_v14  ;;  %v4541_v14 = vrot.slane %v242_v12, %v25311_v42 }
 0x4e7   : > { %22663 = vmatpush3.bf16.msra.mxu1 %v24588_v13  ;;  %v24637_v13 = vld [vmem:[%s25255_s3 + $0x2680] sm:$0xff]  }
 0x4e8   : > { %22664 = vmatprep.subr.bf16.mxu1 %v24590_v15  ;;  %v4534_v15 = vcombine.high %v242_v12, %v242_v12  ;;  %v24675_v12 = vld [vmem:[%s25255_s3 + $0x2870] sm:$0xff]  }
 0x4e9   : > { %22643 = vmatpush3.bf16.msra.mxu0 %v24591_v16  ;;  %v24638_v16 = vld [vmem:[%s25255_s3 + $0x2778] sm:$0xff]  }
 0x4ea   : > { %22644 = vmatprep.subr.bf16.mxu0 %v24593_v18  ;;  %v4557_v18 = vrot.slane %v4541_v14, %v25311_v42 }
 0x4eb   : > { %22665 = vmatpush3.bf16.msra.mxu1 %v24592_v17  ;;  %v4549_v17 = vcombine.high %v4541_v14, %v4541_v14 }
 0x4ec   : > { %22666 = vmatprep.subr.bf16.mxu1 %v24594_v19  ;;  %v24639_v19 = vld [vmem:[%s25255_s3 + $0x27f8] sm:$0xff]  }
 0x4ed   : > { %22645 = vmatpush3.bf16.msra.mxu0 %v24595_v20  ;;  %v26855_v20 = vrot.slane %v4534_v15, %v25311_v42  ;;  %v24677_v15 = vld [vmem:[%s25255_s3 + $0x2830] sm:$0xff]  }
 0x4ee   : > { %22646 = vmatprep.subr.bf16.mxu0 %v24597_v22  ;;  %v4571_v22 = vrot.slane %v4549_v17, %v25311_v42 }
 0x4ef   : > { %22667 = vmatpush3.bf16.msra.mxu1 %v24596_v21  ;;  %v24640_v21 = vld [vmem:[%s25255_s3 + $0x2738] sm:$0xff]  }
 0x4f0   : > { %22668 = vmatprep.subr.bf16.mxu1 %v24598_v23  ;;  %v24641_v23 = vld [vmem:[%s25255_s3 + $0x27b8] sm:$0xff]  }
 0x4f1   : > { %22647 = vmatpush3.bf16.msra.mxu0 %v24599_v24  ;;  %v4550_v24 = vcombine.high %v26855_v20, %v26855_v20 }
 0x4f2   : > { %22648 = vmatprep.subr.bf16.mxu0 %v24601_v26  ;;  %v24642_v26 = vld [vmem:[%s25255_s3 + $0x2770] sm:$0xff]  }
 0x4f3   : > { %22669 = vmatpush3.bf16.msra.mxu1 %v24600_v25  ;;  %v4579_v25 = vcombine.high %v4557_v18, %v4557_v18 }
 0x4f4   : > { %22670 = vmatprep.subr.bf16.mxu1 %v24602_v27  ;;  %v4581_v27 = vcombine.high %v4571_v22, %v4571_v22 }
 0x4f5   : > { %22649 = vmatpush3.bf16.msra.mxu0 %v24603_v28  ;;  %v24643_v28 = vld [vmem:[%s25255_s3 + $0x27f0] sm:$0xff]  }
 0x4f6   : > { %22678 = vmatprep.subr.bf16.mxu0 %v24606_v31  ;;  %v24644_v31 = vld [vmem:[%s25255_s3 + $0x2730] sm:$0xff]  }
 0x4f7   : > { %22671 = vmatpush3.bf16.msra.mxu1 %v24604_v29  ;;  %v4578_v29 = vrot.slane %v4550_v24, %v25311_v42  ;;  %v24681_v24 = vld [vmem:[%s25255_s3 + $0x2828] sm:$0xff]  }
 0x4f8   : > { %v22386_v38 = vpop.f32.mrf.mxu0  ;;  %18062 = vmatmul.mubr.bf16.vlgmr.msra.gmra.mxu0 %v4515_v30  ;;  %22700 = vmatprep.subr.bf16.mxu1 %v24607_v32  ;;  %v24645_v32 = vld [vmem:[%s25255_s3 + $0x27b0] sm:$0xff]  }
 0x4f9   : > { %22679 = vmatpush3.bf16.msra.mxu0 %v24608_v33  ;;  %18141 = vmatprep.mubr.bf16.mxu0 %v4571_v22  ;;  %v4582_v33 = vcombine.high %v4578_v29, %v4578_v29 }
 0x4fa   : > { %v22408_v41 = vpop.f32.mrf.mxu1  ;;  %18102 = vmatmul.mubr.bf16.vlgmr.msra.gmra.mxu1 %v4531_v36  ;;  %v22387_v43 = vpop.f32.mrf.mxu0  ;;  %22680 = vmatprep.subr.bf16.mxu0 %v24610_v35  ;;  %v24646_v35 = vld [vmem:[%s25255_s3 + $0x2768] sm:$0xff]  }
 0x4fb   : > { %22701 = vmatpush3.bf16.msra.mxu1 %v24609_v34  ;;  %v22388_v45 = vadd.f32 %v22387_v43, %v22386_v38  ;;  %18181 = vmatprep.mubr.bf16.mxu1 %v4581_v27  ;;  %v24647_v38 = vld [vmem:[%s25255_s3 + $0x27e8] sm:$0xff]  }
 0x4fc   : > { %v22409_v47 = vpop.f32.mrf.mxu1  ;;  %v22389_v48 = vpop.f32.mrf.mxu0  ;;  %22702 = vmatprep.subr.bf16.mxu1 %v24611_v37  ;;  %v24682_v27 = vld [vmem:[%s25255_s3 + $0x28a8] sm:$0xff]  }
 0x4fd   : > { %v17584_v50 = vadd.f32 %v22388_v45, %v26791_v9  ;;  %v22410_v51 = vadd.f32 %v22409_v47, %v22408_v41  ;;  %22681 = vmatpush3.bf16.msra.mxu0 %v24612_v39  ;;  %v24634_v9 = vld [vmem:[%s25255_s3 + $0x2640] sm:$0xff]   ;;  %v24648_v41 = vld [vmem:[%s25255_s3 + $0x2728] sm:$0xff]  }
 0x4fe   : > { %v22411_v53 = vpop.f32.mrf.mxu1  ;;  %v22390_v54 = vpop.f32.mrf.mxu0  ;;  %22682 = vmatprep.subr.bf16.mxu0 %v24614_v44  ;;  %v24649_v45 = vld [vmem:[%s25255_s3 + $0x27a8] sm:$0xff]   ;;  %v24650_v48 = vld [vmem:[%s25255_s3 + $0x2760] sm:$0xff]  }
 0x4ff   : > { %v26828_v56 = vadd.f32 %v22410_v51, %v17584_v50  ;;  %22703 = vmatpush3.bf16.msra.mxu1 %v24613_v40  ;;  %v24651_v50 = vld [vmem:[%s25255_s3 + $0x27e0] sm:$0xff]   ;;  %v24654_v54 = vld [vmem:[%s25255_s3 + $0x2758] sm:$0xff]  }
 0x500   : > { %v22412_v58 = vpop.f32.mrf.mxu1  ;;  %22704 = vmatprep.subr.bf16.mxu1 %v24615_v46  ;;  %v24653_v53 = vld [vmem:[%s25255_s3 + $0x27a0] sm:$0xff]  }
 0x501   : > { %22683 = vmatpush3.bf16.msra.mxu0 %v24616_v49  ;;  %v24658_v58 = vld [vmem:[%s25255_s3 + $0x2750] sm:$0xff]  }
 0x502   : > { %22684 = vmatprep.subr.bf16.mxu0 %v24618_v55  ;;  %v24655_v55 = vld [vmem:[%s25255_s3 + $0x27d8] sm:$0xff]  }
 0x503   : > { %22705 = vmatpush3.bf16.msra.mxu1 %v24617_v52  ;;  %v24652_v52 = vld [vmem:[%s25255_s3 + $0x2720] sm:$0xff]  }
 0x504   : > { %22706 = vmatprep.subr.bf16.mxu1 %v24619_v57  ;;  %v24657_v57 = vld [vmem:[%s25255_s3 + $0x2798] sm:$0xff]  }
 0x505   : > { %22685 = vmatpush3.bf16.msra.mxu0 %v24620_v59  ;;  %v24659_v59 = vld [vmem:[%s25255_s3 + $0x27d0] sm:$0xff]  }
 0x506   : > { %22686 = vmatprep.subr.bf16.mxu0 %v24622_v60  ;;  %v24661_v60 = vld [vmem:[%s25255_s3 + $0x2790] sm:$0xff]  }
 0x507   : > { %22707 = vmatpush3.bf16.msra.mxu1 %v24621_v61  ;;  %v24660_v61 = vld [vmem:[%s25255_s3 + $0x2710] sm:$0xff]  }
 0x508   : > { %22708 = vmatprep.subr.bf16.mxu1 %v24623_v62  ;;  %v24662_v62 = vld [vmem:[%s25255_s3 + $0x2748] sm:$0xff]  }
 0x509   : > { %22687 = vmatpush3.bf16.msra.mxu0 %v24624_v63  ;;  %v24663_v63 = vld [vmem:[%s25255_s3 + $0x27c8] sm:$0xff]  }
 0x50a   : > { %22688 = vmatprep.subr.bf16.mxu0 %v24626_v1  ;;  %v24665_v1 = vld [vmem:[%s25255_s3 + $0x2788] sm:$0xff]  }
 0x50b   : > { %22709 = vmatpush3.bf16.msra.mxu1 %v24625_v0  ;;  %v24664_v0 = vld [vmem:[%s25255_s3 + $0x2708] sm:$0xff]  }
 0x50c   : > { %22710 = vmatprep.subr.bf16.mxu1 %v24627_v2  ;;  %v24666_v2 = vld [vmem:[%s25255_s3 + $0x2740] sm:$0xff]  }
 0x50d   : > { %22689 = vmatpush3.bf16.msra.mxu0 %v24628_v3  ;;  %v24667_v3 = vld [vmem:[%s25255_s3 + $0x27c0] sm:$0xff]  }
 0x50e   : > { %22690 = vmatprep.subr.bf16.mxu0 %v24630_v5  ;;  %v24669_v5 = vld [vmem:[%s25255_s3 + $0x2780] sm:$0xff]  }
 0x50f   : > { %22711 = vmatpush3.bf16.msra.mxu1 %v24629_v4  ;;  %v24668_v4 = vld [vmem:[%s25255_s3 + $0x2700] sm:$0xff]  }
 0x510   : > { %22712 = vmatprep.subr.bf16.mxu1 %v24631_v6  ;;  %v4564_v6 = vrot.slane %v26855_v20, %v25311_v42 }
 0x511   : > { %22691 = vmatpush3.bf16.msra.mxu0 %v24632_v7  ;;  %v24671_v7 = vld [vmem:[%s25255_s3 + $0x2878] sm:$0xff]  }
 0x512   : > { %22692 = vmatprep.subr.bf16.mxu0 %v24634_v9  ;;  %v24673_v9 = vld [vmem:[%s25255_s3 + $0x2838] sm:$0xff]  }
 0x513   : > { %22713 = vmatpush3.bf16.msra.mxu1 %v24633_v8  ;;  %v24672_v8 = vld [vmem:[%s25255_s3 + $0x28f8] sm:$0xff]  }
 0x514   : > { %22714 = vmatprep.subr.bf16.mxu1 %v24635_v10  ;;  %v24674_v10 = vld [vmem:[%s25255_s3 + $0x28b8] sm:$0xff]  }
 0x515   : > { %22693 = vmatpush3.bf16.msra.mxu0 %v24636_v11  ;;  %v4580_v11 = vcombine.high %v4564_v6, %v4564_v6 }
 0x516   : > { %22722 = vmatprep.subr.bf16.mxu0 %v24638_v16  ;;  %v24678_v16 = vld [vmem:[%s25255_s3 + $0x28b0] sm:$0xff]  }
 0x517   : > { %22715 = vmatpush3.bf16.msra.mxu1 %v24637_v13  ;;  %v24676_v13 = vld [vmem:[%s25255_s3 + $0x28f0] sm:$0xff]  }
 0x518   : > { %v22430_v30 = vpop.f32.mrf.mxu0  ;;  %18142 = vmatmul.mubr.bf16.vlgmr.msra.gmra.mxu0 %v4557_v18  ;;  %22744 = vmatprep.subr.bf16.mxu1 %v24639_v19  ;;  %v24679_v19 = vld [vmem:[%s25255_s3 + $0x2868] sm:$0xff]  }
 0x519   : > { %22723 = vmatpush3.bf16.msra.mxu0 %v24640_v21  ;;  %18221 = vmatprep.mubr.bf16.mxu0 %v4578_v29  ;;  %v24680_v21 = vld [vmem:[%s25255_s3 + $0x28e8] sm:$0xff]  }
 0x51a   : > { %v22452_v34 = vpop.f32.mrf.mxu1  ;;  %18182 = vmatmul.mubr.bf16.vlgmr.msra.gmra.mxu1 %v4579_v25  ;;  %v22431_v36 = vpop.f32.mrf.mxu0  ;;  %22724 = vmatprep.subr.bf16.mxu0 %v24642_v26 }
 0x51b   : > { %22745 = vmatpush3.bf16.msra.mxu1 %v24641_v23  ;;  %v22432_v37 = vadd.f32 %v22431_v36, %v22430_v30  ;;  %18261 = vmatprep.mubr.bf16.mxu1 %v4582_v33  ;;  %v24683_v30 = vld [vmem:[%s25255_s3 + $0x2860] sm:$0xff]  }
 0x51c   : > { %v22453_v39 = vpop.f32.mrf.mxu1  ;;  %v22433_v40 = vpop.f32.mrf.mxu0  ;;  %22746 = vmatprep.subr.bf16.mxu1 %v24643_v28  ;;  %v24686_v36 = vld [vmem:[%s25255_s3 + $0x28a0] sm:$0xff]  }
 0x51d   : > { %v17664_v43 = vadd.f32 %v22432_v37, %v26828_v56  ;;  %v22454_v44 = vadd.f32 %v22453_v39, %v22452_v34  ;;  %22725 = vmatpush3.bf16.msra.mxu0 %v24644_v31  ;;  %v24656_v56 = vld [vmem:[%s25255_s3 + $0x2718] sm:$0xff]   ;;  %v24685_v34 = vld [vmem:[%s25255_s3 + $0x2820] sm:$0xff]   ;;  %v24691_v40 = vld [vmem:[%s25255_s3 + $0x2850] sm:$0xff]  }
 0x51e   : > { %v22455_v46 = vpop.f32.mrf.mxu1  ;;  %v22434_v47 = vpop.f32.mrf.mxu0  ;;  %22726 = vmatprep.subr.bf16.mxu0 %v24646_v35  ;;  %v24687_v35 = vld [vmem:[%s25255_s3 + $0x2858] sm:$0xff]  }
 0x51f   : > { %v26873_v49 = vadd.f32 %v22454_v44, %v17664_v43  ;;  %22747 = vmatpush3.bf16.msra.mxu1 %v24645_v32  ;;  %v24684_v32 = vld [vmem:[%s25255_s3 + $0x28e0] sm:$0xff]   ;;  %v24688_v37 = vld [vmem:[%s25255_s3 + $0x28d8] sm:$0xff]   ;;  %v24693_v43 = vld [vmem:[%s25255_s3 + $0x2810] sm:$0xff]  }
 0x520   : > { %v22456_v51 = vpop.f32.mrf.mxu1  ;;  %22748 = vmatprep.subr.bf16.mxu1 %v24647_v38  ;;  %v24689_v38 = vld [vmem:[%s25255_s3 + $0x2818] sm:$0xff]   ;;  %v24694_v44 = vld [vmem:[%s25255_s3 + $0x2890] sm:$0xff]   ;;  %v24696_v46 = vld [vmem:[%s25255_s3 + $0x28c8] sm:$0xff]  }
 0x521   : > { %22727 = vmatpush3.bf16.msra.mxu0 %v24648_v41  ;;  %v24690_v39 = vld [vmem:[%s25255_s3 + $0x2898] sm:$0xff]   ;;  %v24692_v41 = vld [vmem:[%s25255_s3 + $0x28d0] sm:$0xff]   ;;  %v24697_v47 = vld [vmem:[%s25255_s3 + $0x2808] sm:$0xff]  }
 0x522   : > { %22728 = vmatprep.subr.bf16.mxu0 %v24650_v48  ;;  %v24698_v48 = vld [vmem:[%s25255_s3 + $0x2888] sm:$0xff]   ;;  %v24701_v51 = vld [vmem:[%s25255_s3 + $0x2800] sm:$0xff]  }
 0x523   : > { %22749 = vmatpush3.bf16.msra.mxu1 %v24649_v45  ;;  %v24695_v45 = vld [vmem:[%s25255_s3 + $0x2848] sm:$0xff]  }
 0x524   : > { %22750 = vmatprep.subr.bf16.mxu1 %v24651_v50  ;;  %v24700_v50 = vld [vmem:[%s25255_s3 + $0x28c0] sm:$0xff]  }
 0x525   : > { %22729 = vmatpush3.bf16.msra.mxu0 %v24652_v52  ;;  %v243_v52 = vld [vmem:[%s25273_s20 + $0xa0] sm:$0xff] }
 0x526   : > { %22730 = vmatprep.subr.bf16.mxu0 %v24654_v54  ;;  %v4590_v54 = vrot.slane %v243_v52, %v25311_v42 }
 0x527   : > { %22751 = vmatpush3.bf16.msra.mxu1 %v24653_v53  ;;  %v24702_v53 = vld [vmem:[%s25255_s3 + $0x2880] sm:$0xff]  }
 0x528   : > { %22752 = vmatprep.subr.bf16.mxu1 %v24655_v55  ;;  %v4583_v55 = vcombine.high %v243_v52, %v243_v52  ;;  %v24740_v52 = vld [vmem:[%s25255_s3 + $0x2a70] sm:$0xff]  }
 0x529   : > { %22731 = vmatpush3.bf16.msra.mxu0 %v24656_v56  ;;  %v24703_v56 = vld [vmem:[%s25255_s3 + $0x2978] sm:$0xff]  }
 0x52a   : > { %22732 = vmatprep.subr.bf16.mxu0 %v24658_v58  ;;  %v4606_v58 = vrot.slane %v4590_v54, %v25311_v42 }
 0x52b   : > { %22753 = vmatpush3.bf16.msra.mxu1 %v24657_v57  ;;  %v4598_v57 = vcombine.high %v4590_v54, %v4590_v54 }
 0x52c   : > { %22754 = vmatprep.subr.bf16.mxu1 %v24659_v59  ;;  %v24704_v59 = vld [vmem:[%s25255_s3 + $0x29f8] sm:$0xff]  }
 0x52d   : > { %22733 = vmatpush3.bf16.msra.mxu0 %v24660_v61  ;;  %v26937_v61 = vrot.slane %v4583_v55, %v25311_v42  ;;  %v24742_v55 = vld [vmem:[%s25255_s3 + $0x2a30] sm:$0xff]  }
 0x52e   : > { %22734 = vmatprep.subr.bf16.mxu0 %v24662_v62  ;;  %v4620_v62 = vrot.slane %v4598_v57, %v25311_v42 }
 0x52f   : > { %22755 = vmatpush3.bf16.msra.mxu1 %v24661_v60  ;;  %v24705_v60 = vld [vmem:[%s25255_s3 + $0x2938] sm:$0xff]  }
 0x530   : > { %22756 = vmatprep.subr.bf16.mxu1 %v24663_v63  ;;  %v24706_v63 = vld [vmem:[%s25255_s3 + $0x29b8] sm:$0xff]  }
 0x531   : > { %22735 = vmatpush3.bf16.msra.mxu0 %v24664_v0  ;;  %v4599_v0 = vcombine.high %v26937_v61, %v26937_v61 }
 0x532   : > { %22736 = vmatprep.subr.bf16.mxu0 %v24666_v2  ;;  %v24707_v2 = vld [vmem:[%s25255_s3 + $0x2970] sm:$0xff]  }
 0x533   : > { %22757 = vmatpush3.bf16.msra.mxu1 %v24665_v1  ;;  %v4628_v1 = vcombine.high %v4606_v58, %v4606_v58 }
 0x534   : > { %22758 = vmatprep.subr.bf16.mxu1 %v24667_v3  ;;  %v4630_v3 = vcombine.high %v4620_v62, %v4620_v62 }
 0x535   : > { %22737 = vmatpush3.bf16.msra.mxu0 %v24668_v4  ;;  %v24708_v4 = vld [vmem:[%s25255_s3 + $0x29f0] sm:$0xff]  }
 0x536   : > { %22766 = vmatprep.subr.bf16.mxu0 %v24671_v7  ;;  %v24709_v7 = vld [vmem:[%s25255_s3 + $0x2930] sm:$0xff]  }
 0x537   : > { %22759 = vmatpush3.bf16.msra.mxu1 %v24669_v5  ;;  %v4627_v5 = vrot.slane %v4599_v0, %v25311_v42  ;;  %v24746_v0 = vld [vmem:[%s25255_s3 + $0x2a28] sm:$0xff]  }
 0x538   : > { %v22474_v14 = vpop.f32.mrf.mxu0  ;;  %18222 = vmatmul.mubr.bf16.vlgmr.msra.gmra.mxu0 %v4564_v6  ;;  %22788 = vmatprep.subr.bf16.mxu1 %v24672_v8  ;;  %v24710_v8 = vld [vmem:[%s25255_s3 + $0x29b0] sm:$0xff]  }
 0x539   : > { %22767 = vmatpush3.bf16.msra.mxu0 %v24673_v9  ;;  %18301 = vmatprep.mubr.bf16.mxu0 %v4620_v62  ;;  %v4631_v9 = vcombine.high %v4627_v5, %v4627_v5 }
 0x53a   : > { %v22496_v17 = vpop.f32.mrf.mxu1  ;;  %18262 = vmatmul.mubr.bf16.vlgmr.msra.gmra.mxu1 %v4580_v11  ;;  %v22475_v18 = vpop.f32.mrf.mxu0  ;;  %22768 = vmatprep.subr.bf16.mxu0 %v24675_v12  ;;  %v24711_v12 = vld [vmem:[%s25255_s3 + $0x2968] sm:$0xff]  }
 0x53b   : > { %22789 = vmatpush3.bf16.msra.mxu1 %v24674_v10  ;;  %v22476_v20 = vadd.f32 %v22475_v18, %v22474_v14  ;;  %18341 = vmatprep.mubr.bf16.mxu1 %v4630_v3  ;;  %v24712_v14 = vld [vmem:[%s25255_s3 + $0x29e8] sm:$0xff]  }
 0x53c   : > { %v22497_v22 = vpop.f32.mrf.mxu1  ;;  %v22477_v23 = vpop.f32.mrf.mxu0  ;;  %22790 = vmatprep.subr.bf16.mxu1 %v24676_v13  ;;  %v24747_v3 = vld [vmem:[%s25255_s3 + $0x2aa8] sm:$0xff]  }
 0x53d   : > { %v17744_v25 = vadd.f32 %v22476_v20, %v26873_v49  ;;  %v22498_v26 = vadd.f32 %v22497_v22, %v22496_v17  ;;  %22769 = vmatpush3.bf16.msra.mxu0 %v24677_v15  ;;  %v24699_v49 = vld [vmem:[%s25255_s3 + $0x2840] sm:$0xff]   ;;  %v24713_v17 = vld [vmem:[%s25255_s3 + $0x2928] sm:$0xff]  }
 0x53e   : > { %v22499_v28 = vpop.f32.mrf.mxu1  ;;  %v22478_v29 = vpop.f32.mrf.mxu0  ;;  %22770 = vmatprep.subr.bf16.mxu0 %v24679_v19  ;;  %v24714_v20 = vld [vmem:[%s25255_s3 + $0x29a8] sm:$0xff]   ;;  %v24715_v23 = vld [vmem:[%s25255_s3 + $0x2960] sm:$0xff]  }
 0x53f   : > { %v26910_v31 = vadd.f32 %v22498_v26, %v17744_v25  ;;  %22791 = vmatpush3.bf16.msra.mxu1 %v24678_v16  ;;  %v24716_v25 = vld [vmem:[%s25255_s3 + $0x29e0] sm:$0xff]   ;;  %v24719_v29 = vld [vmem:[%s25255_s3 + $0x2958] sm:$0xff]  }
 0x540   : > { %v22500_v33 = vpop.f32.mrf.mxu1  ;;  %22792 = vmatprep.subr.bf16.mxu1 %v24680_v21  ;;  %v24718_v28 = vld [vmem:[%s25255_s3 + $0x29a0] sm:$0xff]  }
 0x541   : > { %22771 = vmatpush3.bf16.msra.mxu0 %v24681_v24  ;;  %v24723_v33 = vld [vmem:[%s25255_s3 + $0x2950] sm:$0xff]  }
 0x542   : > { %22772 = vmatprep.subr.bf16.mxu0 %v24683_v30  ;;  %v24720_v30 = vld [vmem:[%s25255_s3 + $0x29d8] sm:$0xff]  }
 0x543   : > { %22793 = vmatpush3.bf16.msra.mxu1 %v24682_v27  ;;  %v24717_v27 = vld [vmem:[%s25255_s3 + $0x2920] sm:$0xff]  }
 0x544   : > { %22794 = vmatprep.subr.bf16.mxu1 %v24684_v32  ;;  %v24722_v32 = vld [vmem:[%s25255_s3 + $0x2998] sm:$0xff]  }
 0x545   : > { %22773 = vmatpush3.bf16.msra.mxu0 %v24685_v34  ;;  %v24724_v34 = vld [vmem:[%s25255_s3 + $0x29d0] sm:$0xff]  }
 0x546   : > { %22774 = vmatprep.subr.bf16.mxu0 %v24687_v35  ;;  %v24726_v35 = vld [vmem:[%s25255_s3 + $0x2990] sm:$0xff]  }
 0x547   : > { %22795 = vmatpush3.bf16.msra.mxu1 %v24686_v36  ;;  %v24725_v36 = vld [vmem:[%s25255_s3 + $0x2910] sm:$0xff]  }
 0x548   : > { %22796 = vmatprep.subr.bf16.mxu1 %v24688_v37  ;;  %v24727_v37 = vld [vmem:[%s25255_s3 + $0x2948] sm:$0xff]  }
 0x549   : > { %22775 = vmatpush3.bf16.msra.mxu0 %v24689_v38  ;;  %v24728_v38 = vld [vmem:[%s25255_s3 + $0x29c8] sm:$0xff]  }
 0x54a   : > { %22776 = vmatprep.subr.bf16.mxu0 %v24691_v40  ;;  %v24730_v40 = vld [vmem:[%s25255_s3 + $0x2988] sm:$0xff]  }
 0x54b   : > { %22797 = vmatpush3.bf16.msra.mxu1 %v24690_v39  ;;  %v24729_v39 = vld [vmem:[%s25255_s3 + $0x2908] sm:$0xff]  }
 0x54c   : > { %22798 = vmatprep.subr.bf16.mxu1 %v24692_v41  ;;  %v24731_v41 = vld [vmem:[%s25255_s3 + $0x2940] sm:$0xff]  }
 0x54d   : > { %22777 = vmatpush3.bf16.msra.mxu0 %v24693_v43  ;;  %v24732_v43 = vld [vmem:[%s25255_s3 + $0x29c0] sm:$0xff]  }
 0x54e   : > { %22778 = vmatprep.subr.bf16.mxu0 %v24695_v45  ;;  %v24734_v45 = vld [vmem:[%s25255_s3 + $0x2980] sm:$0xff]  }
 0x54f   : > { %22799 = vmatpush3.bf16.msra.mxu1 %v24694_v44  ;;  %v24733_v44 = vld [vmem:[%s25255_s3 + $0x2900] sm:$0xff]  }
 0x550   : > { %22800 = vmatprep.subr.bf16.mxu1 %v24696_v46  ;;  %v4613_v46 = vrot.slane %v26937_v61, %v25311_v42 }
 0x551   : > { %22779 = vmatpush3.bf16.msra.mxu0 %v24697_v47  ;;  %v24736_v47 = vld [vmem:[%s25255_s3 + $0x2a78] sm:$0xff]  }
 0x552   : > { %22780 = vmatprep.subr.bf16.mxu0 %v24699_v49  ;;  %v24738_v49 = vld [vmem:[%s25255_s3 + $0x2a38] sm:$0xff]  }
 0x553   : > { %22801 = vmatpush3.bf16.msra.mxu1 %v24698_v48  ;;  %v24737_v48 = vld [vmem:[%s25255_s3 + $0x2af8] sm:$0xff]  }
 0x554   : > { %22802 = vmatprep.subr.bf16.mxu1 %v24700_v50  ;;  %v24739_v50 = vld [vmem:[%s25255_s3 + $0x2ab8] sm:$0xff]  }
 0x555   : > { %22781 = vmatpush3.bf16.msra.mxu0 %v24701_v51  ;;  %v4629_v51 = vcombine.high %v4613_v46, %v4613_v46 }
 0x556   : > { %22810 = vmatprep.subr.bf16.mxu0 %v24703_v56  ;;  %v24743_v56 = vld [vmem:[%s25255_s3 + $0x2ab0] sm:$0xff]  }
 0x557   : > { %22803 = vmatpush3.bf16.msra.mxu1 %v24702_v53  ;;  %v24741_v53 = vld [vmem:[%s25255_s3 + $0x2af0] sm:$0xff]  }
 0x558   : > { %v22518_v6 = vpop.f32.mrf.mxu0  ;;  %18302 = vmatmul.mubr.bf16.vlgmr.msra.gmra.mxu0 %v4606_v58  ;;  %22832 = vmatprep.subr.bf16.mxu1 %v24704_v59  ;;  %v24744_v59 = vld [vmem:[%s25255_s3 + $0x2a68] sm:$0xff]  }
 0x559   : > { %22811 = vmatpush3.bf16.msra.mxu0 %v24705_v60  ;;  %18381 = vmatprep.mubr.bf16.mxu0 %v4627_v5  ;;  %v24745_v60 = vld [vmem:[%s25255_s3 + $0x2ae8] sm:$0xff]  }
 0x55a   : > { %v22540_v10 = vpop.f32.mrf.mxu1  ;;  %18342 = vmatmul.mubr.bf16.vlgmr.msra.gmra.mxu1 %v4628_v1  ;;  %v22519_v11 = vpop.f32.mrf.mxu0  ;;  %22812 = vmatprep.subr.bf16.mxu0 %v24707_v2 }
 0x55b   : > { %22833 = vmatpush3.bf16.msra.mxu1 %v24706_v63  ;;  %v22520_v13 = vadd.f32 %v22519_v11, %v22518_v6  ;;  %18421 = vmatprep.mubr.bf16.mxu1 %v4631_v9  ;;  %v24748_v6 = vld [vmem:[%s25255_s3 + $0x2a60] sm:$0xff]  }
 0x55c   : > { %v22541_v15 = vpop.f32.mrf.mxu1  ;;  %v22521_v16 = vpop.f32.mrf.mxu0  ;;  %22834 = vmatprep.subr.bf16.mxu1 %v24708_v4  ;;  %v24751_v11 = vld [vmem:[%s25255_s3 + $0x2aa0] sm:$0xff]  }
 0x55d   : > { %v17824_v18 = vadd.f32 %v22520_v13, %v26910_v31  ;;  %v22542_v19 = vadd.f32 %v22541_v15, %v22540_v10  ;;  %22813 = vmatpush3.bf16.msra.mxu0 %v24709_v7  ;;  %v24721_v31 = vld [vmem:[%s25255_s3 + $0x2918] sm:$0xff]   ;;  %v24750_v10 = vld [vmem:[%s25255_s3 + $0x2a20] sm:$0xff]   ;;  %v24756_v16 = vld [vmem:[%s25255_s3 + $0x2a50] sm:$0xff]  }
 0x55e   : > { %v22543_v21 = vpop.f32.mrf.mxu1  ;;  %v22522_v22 = vpop.f32.mrf.mxu0  ;;  %22814 = vmatprep.subr.bf16.mxu0 %v24711_v12  ;;  %v24752_v12 = vld [vmem:[%s25255_s3 + $0x2a58] sm:$0xff]  }
 0x55f   : > { %v26955_v24 = vadd.f32 %v22542_v19, %v17824_v18  ;;  %22835 = vmatpush3.bf16.msra.mxu1 %v24710_v8  ;;  %v24749_v8 = vld [vmem:[%s25255_s3 + $0x2ae0] sm:$0xff]   ;;  %v24753_v13 = vld [vmem:[%s25255_s3 + $0x2ad8] sm:$0xff]   ;;  %v24758_v18 = vld [vmem:[%s25255_s3 + $0x2a10] sm:$0xff]  }
 0x560   : > { %v22544_v26 = vpop.f32.mrf.mxu1  ;;  %22836 = vmatprep.subr.bf16.mxu1 %v24712_v14  ;;  %v24754_v14 = vld [vmem:[%s25255_s3 + $0x2a18] sm:$0xff]   ;;  %v24759_v19 = vld [vmem:[%s25255_s3 + $0x2a90] sm:$0xff]   ;;  %v24761_v21 = vld [vmem:[%s25255_s3 + $0x2ac8] sm:$0xff]  }
 0x561   : > { %22815 = vmatpush3.bf16.msra.mxu0 %v24713_v17  ;;  %v24755_v15 = vld [vmem:[%s25255_s3 + $0x2a98] sm:$0xff]   ;;  %v24757_v17 = vld [vmem:[%s25255_s3 + $0x2ad0] sm:$0xff]   ;;  %v24762_v22 = vld [vmem:[%s25255_s3 + $0x2a08] sm:$0xff]  }
 0x562   : > { %22816 = vmatprep.subr.bf16.mxu0 %v24715_v23  ;;  %v24763_v23 = vld [vmem:[%s25255_s3 + $0x2a88] sm:$0xff]   ;;  %v24766_v26 = vld [vmem:[%s25255_s3 + $0x2a00] sm:$0xff]  }
 0x563   : > { %22837 = vmatpush3.bf16.msra.mxu1 %v24714_v20  ;;  %v24760_v20 = vld [vmem:[%s25255_s3 + $0x2a48] sm:$0xff]  }
 0x564   : > { %22838 = vmatprep.subr.bf16.mxu1 %v24716_v25  ;;  %v24765_v25 = vld [vmem:[%s25255_s3 + $0x2ac0] sm:$0xff]  }
 0x565   : > { %22817 = vmatpush3.bf16.msra.mxu0 %v24717_v27  ;;  %v244_v27 = vld [vmem:[%s25273_s20 + $0xa8] sm:$0xff] }
 0x566   : > { %22818 = vmatprep.subr.bf16.mxu0 %v24719_v29  ;;  %v24768_v29 = vld [vmem:[%s25255_s3 + $0x2b78] sm:$0xff]  }
 0x567   : > { %22839 = vmatpush3.bf16.msra.mxu1 %v24718_v28  ;;  %v4639_v28 = vrot.slane %v244_v27, %v25311_v42 }
 0x568   : > { %22840 = vmatprep.subr.bf16.mxu1 %v24720_v30  ;;  %v4632_v30 = vcombine.high %v244_v27, %v244_v27  ;;  %v24805_v27 = vld [vmem:[%s25255_s3 + $0x2c70] sm:$0xff]  }
 0x569   : > { %22819 = vmatpush3.bf16.msra.mxu0 %v24721_v31  ;;  %v24767_v31 = vld [vmem:[%s25255_s3 + $0x2a80] sm:$0xff]  }
 0x56a   : > { %22820 = vmatprep.subr.bf16.mxu0 %v24723_v33  ;;  %v4655_v33 = vrot.slane %v4639_v28, %v25311_v42 }
 0x56b   : > { %22841 = vmatpush3.bf16.msra.mxu1 %v24722_v32  ;;  %v4647_v32 = vcombine.high %v4639_v28, %v4639_v28 }
 0x56c   : > { %22842 = vmatprep.subr.bf16.mxu1 %v24724_v34  ;;  %v24769_v34 = vld [vmem:[%s25255_s3 + $0x2bf8] sm:$0xff]  }
 0x56d   : > { %22821 = vmatpush3.bf16.msra.mxu0 %v24725_v36  ;;  %v27019_v36 = vrot.slane %v4632_v30, %v25311_v42  ;;  %v24807_v30 = vld [vmem:[%s25255_s3 + $0x2c30] sm:$0xff]  }
 0x56e   : > { %22822 = vmatprep.subr.bf16.mxu0 %v24727_v37  ;;  %v4669_v37 = vrot.slane %v4647_v32, %v25311_v42 }
 0x56f   : > { %22843 = vmatpush3.bf16.msra.mxu1 %v24726_v35  ;;  %v24770_v35 = vld [vmem:[%s25255_s3 + $0x2b38] sm:$0xff]  }
 0x570   : > { %22844 = vmatprep.subr.bf16.mxu1 %v24728_v38  ;;  %v24771_v38 = vld [vmem:[%s25255_s3 + $0x2bb8] sm:$0xff]  }
 0x571   : > { %22823 = vmatpush3.bf16.msra.mxu0 %v24729_v39  ;;  %v4648_v39 = vcombine.high %v27019_v36, %v27019_v36 }
 0x572   : > { %22824 = vmatprep.subr.bf16.mxu0 %v24731_v41  ;;  %v24772_v41 = vld [vmem:[%s25255_s3 + $0x2b70] sm:$0xff]  }
 0x573   : > { %22845 = vmatpush3.bf16.msra.mxu1 %v24730_v40  ;;  %v4677_v40 = vcombine.high %v4655_v33, %v4655_v33 }
 0x574   : > { %22846 = vmatprep.subr.bf16.mxu1 %v24732_v43  ;;  %v4679_v43 = vcombine.high %v4669_v37, %v4669_v37 }
 0x575   : > { %22825 = vmatpush3.bf16.msra.mxu0 %v24733_v44 }
 0x576   : > { %22854 = vmatprep.subr.bf16.mxu0 %v24736_v47  ;;  %v24774_v47 = vld [vmem:[%s25255_s3 + $0x2b30] sm:$0xff]  }
 0x577   : > { %22847 = vmatpush3.bf16.msra.mxu1 %v24734_v45  ;;  %v24773_v45 = vld [vmem:[%s25255_s3 + $0x2bf0] sm:$0xff]  }
 0x578   : > { %v22562_v54 = vpop.f32.mrf.mxu0  ;;  %18382 = vmatmul.mubr.bf16.vlgmr.msra.gmra.mxu0 %v4613_v46  ;;  %22876 = vmatprep.subr.bf16.mxu1 %v24737_v48  ;;  %v4676_v46 = vrot.slane %v4648_v39, %v25311_v42 }
 0x579   : > { %22855 = vmatpush3.bf16.msra.mxu0 %v24738_v49  ;;  %18461 = vmatprep.mubr.bf16.mxu0 %v4669_v37 }
 0x57a   : > { %v22584_v57 = vpop.f32.mrf.mxu1  ;;  %18422 = vmatmul.mubr.bf16.vlgmr.msra.gmra.mxu1 %v4629_v51  ;;  %v22563_v58 = vpop.f32.mrf.mxu0  ;;  %22856 = vmatprep.subr.bf16.mxu0 %v24740_v52  ;;  %v4680_v51 = vcombine.high %v4676_v46, %v4676_v46 }
 0x57b   : > { %22877 = vmatpush3.bf16.msra.mxu1 %v24739_v50  ;;  %v22564_v61 = vadd.f32 %v22563_v58, %v22562_v54  ;;  %18501 = vmatprep.mubr.bf16.mxu1 %v4679_v43  ;;  %v24775_v50 = vld [vmem:[%s25255_s3 + $0x2bb0] sm:$0xff]  }
 0x57c   : > { %v22585_v62 = vpop.f32.mrf.mxu1  ;;  %v22565_v63 = vpop.f32.mrf.mxu0  ;;  %22878 = vmatprep.subr.bf16.mxu1 %v24741_v53  ;;  %v24776_v53 = vld [vmem:[%s25255_s3 + $0x2b68] sm:$0xff]  }
 0x57d   : > { %v17904_v1 = vadd.f32 %v22564_v61, %v26955_v24  ;;  %v22586_v2 = vadd.f32 %v22585_v62, %v22584_v57  ;;  %22857 = vmatpush3.bf16.msra.mxu0 %v24742_v55  ;;  %v24764_v24 = vld [vmem:[%s25255_s3 + $0x2a40] sm:$0xff]   ;;  %v24779_v62 = vld [vmem:[%s25255_s3 + $0x2ba8] sm:$0xff]  }
 0x57e   : > { %v22587_v4 = vpop.f32.mrf.mxu1  ;;  %v22566_v5 = vpop.f32.mrf.mxu0  ;;  %22858 = vmatprep.subr.bf16.mxu0 %v24744_v59  ;;  %v24778_v59 = vld [vmem:[%s25255_s3 + $0x2b28] sm:$0xff]  }
 0x57f   : > { %v26992_v7 = vadd.f32 %v22586_v2, %v17904_v1  ;;  %22879 = vmatpush3.bf16.msra.mxu1 %v24743_v56  ;;  %v24777_v56 = vld [vmem:[%s25255_s3 + $0x2be8] sm:$0xff]   ;;  %v24781_v2 = vld [vmem:[%s25255_s3 + $0x2be0] sm:$0xff]   ;;  %v24784_v5 = vld [vmem:[%s25255_s3 + $0x2b58] sm:$0xff]  }
 0x580   : > { %v22588_v9 = vpop.f32.mrf.mxu1  ;;  %22880 = vmatprep.subr.bf16.mxu1 %v24745_v60  ;;  %v24783_v4 = vld [vmem:[%s25255_s3 + $0x2ba0] sm:$0xff]  }
 0x581   : > { %22859 = vmatpush3.bf16.msra.mxu0 %v24746_v0  ;;  %v24780_v0 = vld [vmem:[%s25255_s3 + $0x2b60] sm:$0xff]   ;;  %v24788_v9 = vld [vmem:[%s25255_s3 + $0x2b50] sm:$0xff]  }
 0x582   : > { %22860 = vmatprep.subr.bf16.mxu0 %v24748_v6  ;;  %v24785_v6 = vld [vmem:[%s25255_s3 + $0x2bd8] sm:$0xff]  }
 0x583   : > { %22881 = vmatpush3.bf16.msra.mxu1 %v24747_v3  ;;  %v24782_v3 = vld [vmem:[%s25255_s3 + $0x2b20] sm:$0xff]  }
 0x584   : > { %22882 = vmatprep.subr.bf16.mxu1 %v24749_v8  ;;  %v24787_v8 = vld [vmem:[%s25255_s3 + $0x2b98] sm:$0xff]  }
 0x585   : > { %22861 = vmatpush3.bf16.msra.mxu0 %v24750_v10  ;;  %v24789_v10 = vld [vmem:[%s25255_s3 + $0x2bd0] sm:$0xff]  }
 0x586   : > { %22862 = vmatprep.subr.bf16.mxu0 %v24752_v12  ;;  %v24791_v12 = vld [vmem:[%s25255_s3 + $0x2b90] sm:$0xff]  }
 0x587   : > { %22883 = vmatpush3.bf16.msra.mxu1 %v24751_v11  ;;  %v24790_v11 = vld [vmem:[%s25255_s3 + $0x2b10] sm:$0xff]  }
 0x588   : > { %22884 = vmatprep.subr.bf16.mxu1 %v24753_v13  ;;  %v24792_v13 = vld [vmem:[%s25255_s3 + $0x2b48] sm:$0xff]  }
 0x589   : > { %22863 = vmatpush3.bf16.msra.mxu0 %v24754_v14  ;;  %v24793_v14 = vld [vmem:[%s25255_s3 + $0x2bc8] sm:$0xff]  }
 0x58a   : > { %22864 = vmatprep.subr.bf16.mxu0 %v24756_v16  ;;  %v24795_v16 = vld [vmem:[%s25255_s3 + $0x2b88] sm:$0xff]  }
 0x58b   : > { %22885 = vmatpush3.bf16.msra.mxu1 %v24755_v15  ;;  %v24794_v15 = vld [vmem:[%s25255_s3 + $0x2b08] sm:$0xff]  }
 0x58c   : > { %22886 = vmatprep.subr.bf16.mxu1 %v24757_v17  ;;  %v24796_v17 = vld [vmem:[%s25255_s3 + $0x2b40] sm:$0xff]  }
 0x58d   : > { %22865 = vmatpush3.bf16.msra.mxu0 %v24758_v18  ;;  %v24797_v18 = vld [vmem:[%s25255_s3 + $0x2bc0] sm:$0xff]  }
 0x58e   : > { %22866 = vmatprep.subr.bf16.mxu0 %v24760_v20  ;;  %v24799_v20 = vld [vmem:[%s25255_s3 + $0x2b80] sm:$0xff]  }
 0x58f   : > { %22887 = vmatpush3.bf16.msra.mxu1 %v24759_v19  ;;  %v24798_v19 = vld [vmem:[%s25255_s3 + $0x2b00] sm:$0xff]  }
 0x590   : > { %22888 = vmatprep.subr.bf16.mxu1 %v24761_v21  ;;  %v4662_v21 = vrot.slane %v27019_v36, %v25311_v42  ;;  %v24809_v36 = vld [vmem:[%s25255_s3 + $0x2c68] sm:$0xff]  }
 0x591   : > { %22867 = vmatpush3.bf16.msra.mxu0 %v24762_v22  ;;  %v24801_v22 = vld [vmem:[%s25255_s3 + $0x2c78] sm:$0xff]  }
 0x592   : > { %22868 = vmatprep.subr.bf16.mxu0 %v24764_v24  ;;  %v24803_v24 = vld [vmem:[%s25255_s3 + $0x2c38] sm:$0xff]  }
 0x593   : > { %22889 = vmatpush3.bf16.msra.mxu1 %v24763_v23  ;;  %v24802_v23 = vld [vmem:[%s25255_s3 + $0x2cf8] sm:$0xff]  }
 0x594   : > { %22890 = vmatprep.subr.bf16.mxu1 %v24765_v25  ;;  %v24804_v25 = vld [vmem:[%s25255_s3 + $0x2cb8] sm:$0xff]  }
 0x595   : > { %22869 = vmatpush3.bf16.msra.mxu0 %v24766_v26  ;;  %v4678_v26 = vcombine.high %v4662_v21, %v4662_v21 }
 0x596   : > { %22898 = vmatprep.subr.bf16.mxu0 %v24768_v29  ;;  %v24806_v29 = vld [vmem:[%s25255_s3 + $0x2cf0] sm:$0xff]  }
 0x597   : > { %22891 = vmatpush3.bf16.msra.mxu1 %v24767_v31 }
 0x598   : > { %v22606_v44 = vpop.f32.mrf.mxu0  ;;  %22920 = vmatprep.subr.bf16.mxu1 %v24769_v34  ;;  %18462 = vmatmul.mubr.bf16.vlgmr.msra.gmra.mxu0 %v4655_v33  ;;  %v24808_v33 = vld [vmem:[%s25255_s3 + $0x2cb0] sm:$0xff]  }
 0x599   : > { %22899 = vmatpush3.bf16.msra.mxu0 %v24770_v35  ;;  %18541 = vmatprep.mubr.bf16.mxu0 %v4676_v46 }
 0x59a   : > { %v22628_v48 = vpop.f32.mrf.mxu1  ;;  %v22607_v49 = vpop.f32.mrf.mxu0  ;;  %18502 = vmatmul.mubr.bf16.vlgmr.msra.gmra.mxu1 %v4677_v40  ;;  %22900 = vmatprep.subr.bf16.mxu0 %v24772_v41  ;;  %v24811_v41 = vld [vmem:[%s25255_s3 + $0x2c28] sm:$0xff]  }
 0x59b   : > { %v22608_v52 = vadd.f32 %v22607_v49, %v22606_v44  ;;  %22921 = vmatpush3.bf16.msra.mxu1 %v24771_v38  ;;  %18581 = vmatprep.mubr.bf16.mxu1 %v4680_v51  ;;  %v24810_v38 = vld [vmem:[%s25255_s3 + $0x2ce8] sm:$0xff]   ;;  %v24814_v49 = vld [vmem:[%s25255_s3 + $0x2ce0] sm:$0xff]  }
 0x59c   : > { %v22629_v54 = vpop.f32.mrf.mxu1  ;;  %v22609_v55 = vpop.f32.mrf.mxu0  ;;  %22922 = vmatprep.subr.bf16.mxu1 %v24773_v45  ;;  %v24812_v45 = vld [vmem:[%s25255_s3 + $0x2ca8] sm:$0xff]   ;;  %v24816_v51 = vld [vmem:[%s25255_s3 + $0x2ca0] sm:$0xff]  }
 0x59d   : > { %v17984_v57 = vadd.f32 %v22608_v52, %v26992_v7  ;;  %v22630_v58 = vadd.f32 %v22629_v54, %v22628_v48  ;;  %22901 = vmatpush3.bf16.msra.mxu0 %v24774_v47  ;;  %v24786_v7 = vld [vmem:[%s25255_s3 + $0x2b18] sm:$0xff]   ;;  %v24813_v47 = vld [vmem:[%s25255_s3 + $0x2c60] sm:$0xff]  }
 0x59e   : > { %v22631_v61 = vpop.f32.mrf.mxu1  ;;  %v22610_v60 = vpop.f32.mrf.mxu0  ;;  %22902 = vmatprep.subr.bf16.mxu0 %v24776_v53  ;;  %v24817_v52 = vld [vmem:[%s25255_s3 + $0x2c58] sm:$0xff]  }
 0x59f   : > { %v27036_v63 = vadd.f32 %v22630_v58, %v17984_v57  ;;  %22923 = vmatpush3.bf16.msra.mxu1 %v24775_v50  ;;  %v24815_v50 = vld [vmem:[%s25255_s3 + $0x2c20] sm:$0xff]   ;;  %v24818_v53 = vld [vmem:[%s25255_s3 + $0x2cd8] sm:$0xff]   ;;  %v24822_v57 = vld [vmem:[%s25255_s3 + $0x2cd0] sm:$0xff]  }
 0x5a0   : > { %v22632_v1 = vpop.f32.mrf.mxu1  ;;  %22924 = vmatprep.subr.bf16.mxu1 %v24777_v56  ;;  %v24819_v54 = vld [vmem:[%s25255_s3 + $0x2c18] sm:$0xff]   ;;  %v24821_v56 = vld [vmem:[%s25255_s3 + $0x2c50] sm:$0xff]   ;;  %v24825_v61 = vld [vmem:[%s25255_s3 + $0x2c48] sm:$0xff]  }
 0x5a1   : > { %22903 = vmatpush3.bf16.msra.mxu0 %v24778_v59  ;;  %v24820_v55 = vld [vmem:[%s25255_s3 + $0x2c98] sm:$0xff]   ;;  %v24823_v58 = vld [vmem:[%s25255_s3 + $0x2c10] sm:$0xff]   ;;  %v24826_v60 = vld [vmem:[%s25255_s3 + $0x2cc8] sm:$0xff]  }
 0x5a2   : > { %22904 = vmatprep.subr.bf16.mxu0 %v24780_v0  ;;  %v24824_v59 = vld [vmem:[%s25255_s3 + $0x2c90] sm:$0xff]   ;;  %v24829_v0 = vld [vmem:[%s25255_s3 + $0x2c40] sm:$0xff]  }
 0x5a3   : > { %22925 = vmatpush3.bf16.msra.mxu1 %v24779_v62  ;;  %v24827_v62 = vld [vmem:[%s25255_s3 + $0x2c08] sm:$0xff]   ;;  %v24830_v1 = vld [vmem:[%s25255_s3 + $0x2cc0] sm:$0xff]  }
 0x5a4   : > { %22926 = vmatprep.subr.bf16.mxu1 %v24781_v2  ;;  %v24831_v2 = vld [vmem:[%s25255_s3 + $0x2c00] sm:$0xff]  }
 0x5a5   : > { %22905 = vmatpush3.bf16.msra.mxu0 %v24782_v3  ;;  %v245_v3 = vld [vmem:[%s25273_s20 + $0xb0] sm:$0xff] }
 0x5a6   : > { %22906 = vmatprep.subr.bf16.mxu0 %v24784_v5  ;;  %v4688_v5 = vrot.slane %v245_v3, %v25311_v42 }
 0x5a7   : > { %22927 = vmatpush3.bf16.msra.mxu1 %v24783_v4  ;;  %v24832_v4 = vld [vmem:[%s25255_s3 + $0x2c80] sm:$0xff]  }
 0x5a8   : > { %22928 = vmatprep.subr.bf16.mxu1 %v24785_v6  ;;  %v4681_v6 = vcombine.high %v245_v3, %v245_v3  ;;  %v24870_v3 = vld [vmem:[%s25255_s3 + $0x2e70] sm:$0xff]  }
 0x5a9   : > { %22907 = vmatpush3.bf16.msra.mxu0 %v24786_v7  ;;  %v24833_v7 = vld [vmem:[%s25255_s3 + $0x2d78] sm:$0xff]  }
 0x5aa   : > { %22908 = vmatprep.subr.bf16.mxu0 %v24788_v9  ;;  %v4704_v9 = vrot.slane %v4688_v5, %v25311_v42 }
 0x5ab   : > { %22929 = vmatpush3.bf16.msra.mxu1 %v24787_v8  ;;  %v4696_v8 = vcombine.high %v4688_v5, %v4688_v5  ;;  %v24871_v5 = vld [vmem:[%s25255_s3 + $0x2ef0] sm:$0xff]  }
 0x5ac   : > { %22930 = vmatprep.subr.bf16.mxu1 %v24789_v10  ;;  %v24834_v10 = vld [vmem:[%s25255_s3 + $0x2df8] sm:$0xff]  }
 0x5ad   : > { %22909 = vmatpush3.bf16.msra.mxu0 %v24790_v11  ;;  %v27101_v11 = vrot.slane %v4681_v6, %v25311_v42  ;;  %v24872_v6 = vld [vmem:[%s25255_s3 + $0x2e30] sm:$0xff]  }
 0x5ae   : > { %22910 = vmatprep.subr.bf16.mxu0 %v24792_v13  ;;  %v4718_v13 = vrot.slane %v4696_v8, %v25311_v42 }
 0x5af   : > { %22931 = vmatpush3.bf16.msra.mxu1 %v24791_v12  ;;  %v24835_v12 = vld [vmem:[%s25255_s3 + $0x2d38] sm:$0xff]  }
 0x5b0   : > { %22932 = vmatprep.subr.bf16.mxu1 %v24793_v14  ;;  %v24836_v14 = vld [vmem:[%s25255_s3 + $0x2db8] sm:$0xff]  }
 0x5b1   : > { %22911 = vmatpush3.bf16.msra.mxu0 %v24794_v15  ;;  %v4697_v15 = vcombine.high %v27101_v11, %v27101_v11 }
 0x5b2   : > { %22912 = vmatprep.subr.bf16.mxu0 %v24796_v17  ;;  %v24837_v17 = vld [vmem:[%s25255_s3 + $0x2d70] sm:$0xff]  }
 0x5b3   : > { %22933 = vmatpush3.bf16.msra.mxu1 %v24795_v16  ;;  %v4726_v16 = vcombine.high %v4704_v9, %v4704_v9 }
 0x5b4   : > { %22934 = vmatprep.subr.bf16.mxu1 %v24797_v18  ;;  %v4728_v18 = vcombine.high %v4718_v13, %v4718_v13 }
 0x5b5   : > { %22913 = vmatpush3.bf16.msra.mxu0 %v24798_v19 }
 0x5b6   : > { %22942 = vmatprep.subr.bf16.mxu0 %v24801_v22  ;;  %v24839_v22 = vld [vmem:[%s25255_s3 + $0x2d30] sm:$0xff]  }
 0x5b7   : > { %22935 = vmatpush3.bf16.msra.mxu1 %v24799_v20  ;;  %v24838_v20 = vld [vmem:[%s25255_s3 + $0x2df0] sm:$0xff]  }
 0x5b8   : > { %v22650_v28 = vpop.f32.mrf.mxu0  ;;  %18542 = vmatmul.mubr.bf16.vlgmr.msra.gmra.mxu0 %v4662_v21  ;;  %22964 = vmatprep.subr.bf16.mxu1 %v24802_v23  ;;  %v4725_v21 = vrot.slane %v4697_v15, %v25311_v42 }
 0x5b9   : > { %22943 = vmatpush3.bf16.msra.mxu0 %v24803_v24  ;;  %18621 = vmatprep.mubr.bf16.mxu0 %v4718_v13 }
 0x5ba   : > { %v22672_v31 = vpop.f32.mrf.mxu1  ;;  %v22651_v32 = vpop.f32.mrf.mxu0  ;;  %18582 = vmatmul.mubr.bf16.vlgmr.msra.gmra.mxu1 %v4678_v26  ;;  %22944 = vmatprep.subr.bf16.mxu0 %v24805_v27  ;;  %v4729_v26 = vcombine.high %v4725_v21, %v4725_v21 }
 0x5bb   : > { %v22652_v34 = vadd.f32 %v22651_v32, %v22650_v28  ;;  %22965 = vmatpush3.bf16.msra.mxu1 %v24804_v25  ;;  %18661 = vmatprep.mubr.bf16.mxu1 %v4728_v18  ;;  %v24840_v25 = vld [vmem:[%s25255_s3 + $0x2db0] sm:$0xff]   ;;  %v24841_v28 = vld [vmem:[%s25255_s3 + $0x2d68] sm:$0xff]  }
 0x5bc   : > { %v22673_v35 = vpop.f32.mrf.mxu1  ;;  %v22653_v37 = vpop.f32.mrf.mxu0  ;;  %22966 = vmatprep.subr.bf16.mxu1 %v24806_v29 }
 0x5bd   : > { %v18064_v39 = vadd.f32 %v22652_v34, %v27036_v63  ;;  %v22674_v40 = vadd.f32 %v22673_v35, %v22672_v31  ;;  %22945 = vmatpush3.bf16.msra.mxu0 %v24807_v30  ;;  %v24828_v63 = vld [vmem:[%s25255_s3 + $0x2c88] sm:$0xff]  }
 0x5be   : > { %v22675_v43 = vpop.f32.mrf.mxu1  ;;  %v22654_v44 = vpop.f32.mrf.mxu0  ;;  %22946 = vmatprep.subr.bf16.mxu0 %v24809_v36  ;;  %v24842_v31 = vld [vmem:[%s25255_s3 + $0x2de8] sm:$0xff]  }
 0x5bf   : > { %v27073_v46 = vadd.f32 %v22674_v40, %v18064_v39  ;;  %22967 = vmatpush3.bf16.msra.mxu1 %v24808_v33  ;;  %v24843_v34 = vld [vmem:[%s25255_s3 + $0x2d28] sm:$0xff]   ;;  %v24845_v39 = vld [vmem:[%s25255_s3 + $0x2d60] sm:$0xff]  }
 0x5c0   : > { %v22676_v48 = vpop.f32.mrf.mxu1  ;;  %22968 = vmatprep.subr.bf16.mxu1 %v24810_v38  ;;  %v24844_v37 = vld [vmem:[%s25255_s3 + $0x2da8] sm:$0xff]   ;;  %v24847_v43 = vld [vmem:[%s25255_s3 + $0x2d20] sm:$0xff]  }
 0x5c1   : > { %22947 = vmatpush3.bf16.msra.mxu0 %v24811_v41  ;;  %v24846_v41 = vld [vmem:[%s25255_s3 + $0x2de0] sm:$0xff]   ;;  %v24852_v48 = vld [vmem:[%s25255_s3 + $0x2d98] sm:$0xff]  }
 0x5c2   : > { %22948 = vmatprep.subr.bf16.mxu0 %v24813_v47  ;;  %v24848_v44 = vld [vmem:[%s25255_s3 + $0x2da0] sm:$0xff]   ;;  %v24851_v47 = vld [vmem:[%s25255_s3 + $0x2d18] sm:$0xff]  }
 0x5c3   : > { %22969 = vmatpush3.bf16.msra.mxu1 %v24812_v45  ;;  %v24849_v45 = vld [vmem:[%s25255_s3 + $0x2d58] sm:$0xff]  }
 0x5c4   : > { %22970 = vmatprep.subr.bf16.mxu1 %v24814_v49  ;;  %v24853_v49 = vld [vmem:[%s25255_s3 + $0x2d50] sm:$0xff]  }
 0x5c5   : > { %22949 = vmatpush3.bf16.msra.mxu0 %v24815_v50  ;;  %v24854_v50 = vld [vmem:[%s25255_s3 + $0x2dd0] sm:$0xff]  }
 0x5c6   : > { %22950 = vmatprep.subr.bf16.mxu0 %v24817_v52  ;;  %v24856_v52 = vld [vmem:[%s25255_s3 + $0x2d90] sm:$0xff]  }
 0x5c7   : > { %22971 = vmatpush3.bf16.msra.mxu1 %v24816_v51  ;;  %v24855_v51 = vld [vmem:[%s25255_s3 + $0x2d10] sm:$0xff]  }
 0x5c8   : > { %22972 = vmatprep.subr.bf16.mxu1 %v24818_v53  ;;  %v24857_v53 = vld [vmem:[%s25255_s3 + $0x2d48] sm:$0xff]  }
 0x5c9   : > { %22951 = vmatpush3.bf16.msra.mxu0 %v24819_v54  ;;  %v24858_v54 = vld [vmem:[%s25255_s3 + $0x2dc8] sm:$0xff]  }
 0x5ca   : > { %22952 = vmatprep.subr.bf16.mxu0 %v24821_v56  ;;  %v24860_v56 = vld [vmem:[%s25255_s3 + $0x2d88] sm:$0xff]  }
 0x5cb   : > { %22973 = vmatpush3.bf16.msra.mxu1 %v24820_v55  ;;  %v24859_v55 = vld [vmem:[%s25255_s3 + $0x2d08] sm:$0xff]  }
 0x5cc   : > { %22974 = vmatprep.subr.bf16.mxu1 %v24822_v57  ;;  %v24861_v57 = vld [vmem:[%s25255_s3 + $0x2d40] sm:$0xff]  }
 0x5cd   : > { %22953 = vmatpush3.bf16.msra.mxu0 %v24823_v58  ;;  %v24862_v58 = vld [vmem:[%s25255_s3 + $0x2dc0] sm:$0xff]  }
 0x5ce   : > { %22954 = vmatprep.subr.bf16.mxu0 %v24825_v61  ;;  %v24864_v61 = vld [vmem:[%s25255_s3 + $0x2d80] sm:$0xff]  }
 0x5cf   : > { %22975 = vmatpush3.bf16.msra.mxu1 %v24824_v59  ;;  %v24863_v59 = vld [vmem:[%s25255_s3 + $0x2d00] sm:$0xff]  }
 0x5d0   : > { %22976 = vmatprep.subr.bf16.mxu1 %v24826_v60  ;;  %v4711_v60 = vrot.slane %v27101_v11, %v25311_v42  ;;  %v24874_v11 = vld [vmem:[%s25255_s3 + $0x2e68] sm:$0xff]  }
 0x5d1   : > { %22955 = vmatpush3.bf16.msra.mxu0 %v24827_v62  ;;  %v24866_v62 = vld [vmem:[%s25255_s3 + $0x2e78] sm:$0xff]  }
 0x5d2   : > { %22956 = vmatprep.subr.bf16.mxu0 %v24829_v0  ;;  %v24868_v0 = vld [vmem:[%s25255_s3 + $0x2e38] sm:$0xff]  }
 0x5d3   : > { %22977 = vmatpush3.bf16.msra.mxu1 %v24828_v63  ;;  %v24867_v63 = vld [vmem:[%s25255_s3 + $0x2ef8] sm:$0xff]  }
 0x5d4   : > { %22978 = vmatprep.subr.bf16.mxu1 %v24830_v1  ;;  %v24869_v1 = vld [vmem:[%s25255_s3 + $0x2eb8] sm:$0xff]  }
 0x5d5   : > { %22957 = vmatpush3.bf16.msra.mxu0 %v24831_v2  ;;  %v4727_v2 = vcombine.high %v4711_v60, %v4711_v60 }
 0x5d6   : > { %22986 = vmatprep.subr.bf16.mxu0 %v24833_v7 }
 0x5d7   : > { %22979 = vmatpush3.bf16.msra.mxu1 %v24832_v4 }
 0x5d8   : > { %v22694_v19 = vpop.f32.mrf.mxu0  ;;  %18622 = vmatmul.mubr.bf16.vlgmr.msra.gmra.mxu0 %v4704_v9  ;;  %23008 = vmatprep.subr.bf16.mxu1 %v24834_v10  ;;  %v24873_v9 = vld [vmem:[%s25255_s3 + $0x2eb0] sm:$0xff]  }
 0x5d9   : > { %22987 = vmatpush3.bf16.msra.mxu0 %v24835_v12  ;;  %18701 = vmatprep.mubr.bf16.mxu0 %v4725_v21 }
 0x5da   : > { %v22716_v23 = vpop.f32.mrf.mxu1  ;;  %v22695_v24 = vpop.f32.mrf.mxu0  ;;  %18662 = vmatmul.mubr.bf16.vlgmr.msra.gmra.mxu1 %v4726_v16  ;;  %22988 = vmatprep.subr.bf16.mxu0 %v24837_v17  ;;  %v24876_v17 = vld [vmem:[%s25255_s3 + $0x2e28] sm:$0xff]  }
 0x5db   : > { %v22696_v27 = vadd.f32 %v22695_v24, %v22694_v19  ;;  %23009 = vmatpush3.bf16.msra.mxu1 %v24836_v14  ;;  %18741 = vmatprep.mubr.bf16.mxu1 %v4729_v26  ;;  %v24875_v14 = vld [vmem:[%s25255_s3 + $0x2ee8] sm:$0xff]   ;;  %v24879_v24 = vld [vmem:[%s25255_s3 + $0x2ee0] sm:$0xff]  }
 0x5dc   : > { %v22717_v29 = vpop.f32.mrf.mxu1  ;;  %v22697_v30 = vpop.f32.mrf.mxu0  ;;  %23010 = vmatprep.subr.bf16.mxu1 %v24838_v20  ;;  %v24877_v20 = vld [vmem:[%s25255_s3 + $0x2ea8] sm:$0xff]   ;;  %v24881_v26 = vld [vmem:[%s25255_s3 + $0x2ea0] sm:$0xff]  }
 0x5dd   : > { %v18144_v32 = vadd.f32 %v22696_v27, %v27073_v46  ;;  %v22718_v33 = vadd.f32 %v22717_v29, %v22716_v23  ;;  %22989 = vmatpush3.bf16.msra.mxu0 %v24839_v22  ;;  %v24850_v46 = vld [vmem:[%s25255_s3 + $0x2dd8] sm:$0xff]   ;;  %v24878_v22 = vld [vmem:[%s25255_s3 + $0x2e60] sm:$0xff]  }
 0x5de   : > { %v22719_v36 = vpop.f32.mrf.mxu1  ;;  %v22698_v35 = vpop.f32.mrf.mxu0  ;;  %22990 = vmatprep.subr.bf16.mxu0 %v24841_v28  ;;  %v24882_v27 = vld [vmem:[%s25255_s3 + $0x2e58] sm:$0xff]  }
 0x5df   : > { %v27118_v38 = vadd.f32 %v22718_v33, %v18144_v32  ;;  %23011 = vmatpush3.bf16.msra.mxu1 %v24840_v25  ;;  %v24880_v25 = vld [vmem:[%s25255_s3 + $0x2e20] sm:$0xff]   ;;  %v24883_v28 = vld [vmem:[%s25255_s3 + $0x2ed8] sm:$0xff]   ;;  %v24887_v32 = vld [vmem:[%s25255_s3 + $0x2ed0] sm:$0xff]  }
 0x5e0   : > { %v22720_v40 = vpop.f32.mrf.mxu1  ;;  %23012 = vmatprep.subr.bf16.mxu1 %v24842_v31  ;;  %v24884_v29 = vld [vmem:[%s25255_s3 + $0x2e18] sm:$0xff]   ;;  %v24886_v31 = vld [vmem:[%s25255_s3 + $0x2e50] sm:$0xff]   ;;  %v24890_v36 = vld [vmem:[%s25255_s3 + $0x2e48] sm:$0xff]  }
 0x5e1   : > { %22991 = vmatpush3.bf16.msra.mxu0 %v24843_v34  ;;  %v24885_v30 = vld [vmem:[%s25255_s3 + $0x2e98] sm:$0xff]   ;;  %v24888_v33 = vld [vmem:[%s25255_s3 + $0x2e10] sm:$0xff]   ;;  %v24891_v35 = vld [vmem:[%s25255_s3 + $0x2ec8] sm:$0xff]  }
 0x5e2   : > { %22992 = vmatprep.subr.bf16.mxu0 %v24845_v39  ;;  %v24889_v34 = vld [vmem:[%s25255_s3 + $0x2e90] sm:$0xff]   ;;  %v24894_v39 = vld [vmem:[%s25255_s3 + $0x2e40] sm:$0xff]  }
 0x5e3   : > { %23013 = vmatpush3.bf16.msra.mxu1 %v24844_v37  ;;  %v24892_v37 = vld [vmem:[%s25255_s3 + $0x2e08] sm:$0xff]   ;;  %v24895_v40 = vld [vmem:[%s25255_s3 + $0x2ec0] sm:$0xff]  }
 0x5e4   : > { %23014 = vmatprep.subr.bf16.mxu1 %v24846_v41  ;;  %v24896_v41 = vld [vmem:[%s25255_s3 + $0x2e00] sm:$0xff]  }
 0x5e5   : > { %22993 = vmatpush3.bf16.msra.mxu0 %v24847_v43  ;;  %v246_v43 = vld [vmem:[%s25273_s20 + $0xb8] sm:$0xff] }
 0x5e6   : > { %22994 = vmatprep.subr.bf16.mxu0 %v24849_v45  ;;  %v4737_v45 = vrot.slane %v246_v43, %v25311_v42 }
 0x5e7   : > { %23015 = vmatpush3.bf16.msra.mxu1 %v24848_v44  ;;  %v24897_v44 = vld [vmem:[%s25255_s3 + $0x2e80] sm:$0xff]  }
 0x5e8   : > { %23016 = vmatprep.subr.bf16.mxu1 %v24850_v46  ;;  %v4730_v46 = vcombine.high %v246_v43, %v246_v43  ;;  %v24935_v43 = vld [vmem:[%s25255_s3 + $0x3070] sm:$0xff]  }
 0x5e9   : > { %22995 = vmatpush3.bf16.msra.mxu0 %v24851_v47  ;;  %v24898_v47 = vld [vmem:[%s25255_s3 + $0x2f78] sm:$0xff]  }
 0x5ea   : > { %22996 = vmatprep.subr.bf16.mxu0 %v24853_v49  ;;  %v4753_v49 = vrot.slane %v4737_v45, %v25311_v42 }
 0x5eb   : > { %23017 = vmatpush3.bf16.msra.mxu1 %v24852_v48  ;;  %v4745_v48 = vcombine.high %v4737_v45, %v4737_v45  ;;  %v24936_v45 = vld [vmem:[%s25255_s3 + $0x30f0] sm:$0xff]  }
 0x5ec   : > { %23018 = vmatprep.subr.bf16.mxu1 %v24854_v50  ;;  %v24899_v50 = vld [vmem:[%s25255_s3 + $0x2ff8] sm:$0xff]  }
 0x5ed   : > { %22997 = vmatpush3.bf16.msra.mxu0 %v24855_v51  ;;  %v27183_v51 = vrot.slane %v4730_v46, %v25311_v42  ;;  %v24937_v46 = vld [vmem:[%s25255_s3 + $0x3030] sm:$0xff]  }
 0x5ee   : > { %22998 = vmatprep.subr.bf16.mxu0 %v24857_v53  ;;  %v4767_v53 = vrot.slane %v4745_v48, %v25311_v42 }
 0x5ef   : > { %23019 = vmatpush3.bf16.msra.mxu1 %v24856_v52  ;;  %v24900_v52 = vld [vmem:[%s25255_s3 + $0x2f38] sm:$0xff]  }
 0x5f0   : > { %23020 = vmatprep.subr.bf16.mxu1 %v24858_v54  ;;  %v24901_v54 = vld [vmem:[%s25255_s3 + $0x2fb8] sm:$0xff]  }
 0x5f1   : > { %22999 = vmatpush3.bf16.msra.mxu0 %v24859_v55  ;;  %v4746_v55 = vcombine.high %v27183_v51, %v27183_v51 }
 0x5f2   : > { %23000 = vmatprep.subr.bf16.mxu0 %v24861_v57  ;;  %v24902_v57 = vld [vmem:[%s25255_s3 + $0x2f70] sm:$0xff]  }
 0x5f3   : > { %23021 = vmatpush3.bf16.msra.mxu1 %v24860_v56  ;;  %v4775_v56 = vcombine.high %v4753_v49, %v4753_v49 }
 0x5f4   : > { %23022 = vmatprep.subr.bf16.mxu1 %v24862_v58  ;;  %v4777_v58 = vcombine.high %v4767_v53, %v4767_v53 }
 0x5f5   : > { %23001 = vmatpush3.bf16.msra.mxu0 %v24863_v59 }
 0x5f6   : > { %23030 = vmatprep.subr.bf16.mxu0 %v24866_v62  ;;  %v24904_v62 = vld [vmem:[%s25255_s3 + $0x2f30] sm:$0xff]  }
 0x5f7   : > { %23023 = vmatpush3.bf16.msra.mxu1 %v24864_v61  ;;  %v24903_v61 = vld [vmem:[%s25255_s3 + $0x2ff0] sm:$0xff]  }
 0x5f8   : > { %v22738_v4 = vpop.f32.mrf.mxu0  ;;  %18702 = vmatmul.mubr.bf16.vlgmr.msra.gmra.mxu0 %v4711_v60  ;;  %23052 = vmatprep.subr.bf16.mxu1 %v24867_v63  ;;  %v4774_v60 = vrot.slane %v4746_v55, %v25311_v42 }
 0x5f9   : > { %23031 = vmatpush3.bf16.msra.mxu0 %v24868_v0  ;;  %18781 = vmatprep.mubr.bf16.mxu0 %v4767_v53 }
 0x5fa   : > { %v22760_v7 = vpop.f32.mrf.mxu1  ;;  %v22739_v8 = vpop.f32.mrf.mxu0  ;;  %18742 = vmatmul.mubr.bf16.vlgmr.msra.gmra.mxu1 %v4727_v2  ;;  %23032 = vmatprep.subr.bf16.mxu0 %v24870_v3  ;;  %v4778_v2 = vcombine.high %v4774_v60, %v4774_v60 }
 0x5fb   : > { %v22740_v10 = vadd.f32 %v22739_v8, %v22738_v4  ;;  %23053 = vmatpush3.bf16.msra.mxu1 %v24869_v1  ;;  %18821 = vmatprep.mubr.bf16.mxu1 %v4777_v58  ;;  %v24905_v1 = vld [vmem:[%s25255_s3 + $0x2fb0] sm:$0xff]   ;;  %v24906_v4 = vld [vmem:[%s25255_s3 + $0x2f68] sm:$0xff]  }
 0x5fc   : > { %v22761_v12 = vpop.f32.mrf.mxu1  ;;  %v22741_v13 = vpop.f32.mrf.mxu0  ;;  %23054 = vmatprep.subr.bf16.mxu1 %v24871_v5 }
 0x5fd   : > { %v18224_v15 = vadd.f32 %v22740_v10, %v27118_v38  ;;  %v22762_v16 = vadd.f32 %v22761_v12, %v22760_v7  ;;  %23033 = vmatpush3.bf16.msra.mxu0 %v24872_v6  ;;  %v24893_v38 = vld [vmem:[%s25255_s3 + $0x2e88] sm:$0xff]  }
 0x5fe   : > { %v22763_v18 = vpop.f32.mrf.mxu1  ;;  %v22742_v19 = vpop.f32.mrf.mxu0  ;;  %23034 = vmatprep.subr.bf16.mxu0 %v24874_v11  ;;  %v24907_v7 = vld [vmem:[%s25255_s3 + $0x2fe8] sm:$0xff]  }
 0x5ff   : > { %v27155_v21 = vadd.f32 %v22762_v16, %v18224_v15  ;;  %23055 = vmatpush3.bf16.msra.mxu1 %v24873_v9  ;;  %v24908_v10 = vld [vmem:[%s25255_s3 + $0x2f28] sm:$0xff]   ;;  %v24910_v15 = vld [vmem:[%s25255_s3 + $0x2f60] sm:$0xff]  }
 0x600   : > { %v22764_v23 = vpop.f32.mrf.mxu1  ;;  %23056 = vmatprep.subr.bf16.mxu1 %v24875_v14  ;;  %v24909_v13 = vld [vmem:[%s25255_s3 + $0x2fa8] sm:$0xff]   ;;  %v24912_v18 = vld [vmem:[%s25255_s3 + $0x2f20] sm:$0xff]  }
 0x601   : > { %23035 = vmatpush3.bf16.msra.mxu0 %v24876_v17  ;;  %v24911_v17 = vld [vmem:[%s25255_s3 + $0x2fe0] sm:$0xff]   ;;  %v24917_v23 = vld [vmem:[%s25255_s3 + $0x2f98] sm:$0xff]  }
 0x602   : > { %23036 = vmatprep.subr.bf16.mxu0 %v24878_v22  ;;  %v24913_v19 = vld [vmem:[%s25255_s3 + $0x2fa0] sm:$0xff]   ;;  %v24916_v22 = vld [vmem:[%s25255_s3 + $0x2f18] sm:$0xff]  }
 0x603   : > { %23057 = vmatpush3.bf16.msra.mxu1 %v24877_v20  ;;  %v24914_v20 = vld [vmem:[%s25255_s3 + $0x2f58] sm:$0xff]  }
 0x604   : > { %23058 = vmatprep.subr.bf16.mxu1 %v24879_v24  ;;  %v24918_v24 = vld [vmem:[%s25255_s3 + $0x2f50] sm:$0xff]  }
 0x605   : > { %23037 = vmatpush3.bf16.msra.mxu0 %v24880_v25  ;;  %v24919_v25 = vld [vmem:[%s25255_s3 + $0x2fd0] sm:$0xff]  }
 0x606   : > { %23038 = vmatprep.subr.bf16.mxu0 %v24882_v27  ;;  %v24921_v27 = vld [vmem:[%s25255_s3 + $0x2f90] sm:$0xff]  }
 0x607   : > { %23059 = vmatpush3.bf16.msra.mxu1 %v24881_v26  ;;  %v24920_v26 = vld [vmem:[%s25255_s3 + $0x2f10] sm:$0xff]  }
 0x608   : > { %23060 = vmatprep.subr.bf16.mxu1 %v24883_v28  ;;  %v24922_v28 = vld [vmem:[%s25255_s3 + $0x2f48] sm:$0xff]  }
 0x609   : > { %23039 = vmatpush3.bf16.msra.mxu0 %v24884_v29  ;;  %v24923_v29 = vld [vmem:[%s25255_s3 + $0x2fc8] sm:$0xff]  }
 0x60a   : > { %23040 = vmatprep.subr.bf16.mxu0 %v24886_v31  ;;  %v24925_v31 = vld [vmem:[%s25255_s3 + $0x2f88] sm:$0xff]  }
 0x60b   : > { %23061 = vmatpush3.bf16.msra.mxu1 %v24885_v30  ;;  %v24924_v30 = vld [vmem:[%s25255_s3 + $0x2f08] sm:$0xff]  }
 0x60c   : > { %23062 = vmatprep.subr.bf16.mxu1 %v24887_v32  ;;  %v24926_v32 = vld [vmem:[%s25255_s3 + $0x2f40] sm:$0xff]  }
 0x60d   : > { %23041 = vmatpush3.bf16.msra.mxu0 %v24888_v33  ;;  %v24927_v33 = vld [vmem:[%s25255_s3 + $0x2fc0] sm:$0xff]  }
 0x60e   : > { %23042 = vmatprep.subr.bf16.mxu0 %v24890_v36  ;;  %v24929_v36 = vld [vmem:[%s25255_s3 + $0x2f80] sm:$0xff]  }
 0x60f   : > { %23063 = vmatpush3.bf16.msra.mxu1 %v24889_v34  ;;  %v24928_v34 = vld [vmem:[%s25255_s3 + $0x2f00] sm:$0xff]  }
 0x610   : > { %23064 = vmatprep.subr.bf16.mxu1 %v24891_v35  ;;  %v4760_v35 = vrot.slane %v27183_v51, %v25311_v42  ;;  %v24939_v51 = vld [vmem:[%s25255_s3 + $0x3068] sm:$0xff]  }
 0x611   : > { %23043 = vmatpush3.bf16.msra.mxu0 %v24892_v37  ;;  %v24931_v37 = vld [vmem:[%s25255_s3 + $0x3078] sm:$0xff]  }
 0x612   : > { %23044 = vmatprep.subr.bf16.mxu0 %v24894_v39  ;;  %v24933_v39 = vld [vmem:[%s25255_s3 + $0x3038] sm:$0xff]  }
 0x613   : > { %23065 = vmatpush3.bf16.msra.mxu1 %v24893_v38  ;;  %v24932_v38 = vld [vmem:[%s25255_s3 + $0x30f8] sm:$0xff]  }
 0x614   : > { %23066 = vmatprep.subr.bf16.mxu1 %v24895_v40  ;;  %v24934_v40 = vld [vmem:[%s25255_s3 + $0x30b8] sm:$0xff]  }
 0x615   : > { %23045 = vmatpush3.bf16.msra.mxu0 %v24896_v41  ;;  %v4776_v41 = vcombine.high %v4760_v35, %v4760_v35 }
 0x616   : > { %23074 = vmatprep.subr.bf16.mxu0 %v24898_v47 }
 0x617   : > { %23067 = vmatpush3.bf16.msra.mxu1 %v24897_v44 }
 0x618   : > { %v22782_v59 = vpop.f32.mrf.mxu0  ;;  %18782 = vmatmul.mubr.bf16.vlgmr.msra.gmra.mxu0 %v4753_v49  ;;  %23096 = vmatprep.subr.bf16.mxu1 %v24899_v50  ;;  %v24938_v49 = vld [vmem:[%s25255_s3 + $0x30b0] sm:$0xff]  }
 0x619   : > { %23075 = vmatpush3.bf16.msra.mxu0 %v24900_v52  ;;  %18861 = vmatprep.mubr.bf16.mxu0 %v4774_v60 }
 0x61a   : > { %v22804_v63 = vpop.f32.mrf.mxu1  ;;  %v22783_v0 = vpop.f32.mrf.mxu0  ;;  %18822 = vmatmul.mubr.bf16.vlgmr.msra.gmra.mxu1 %v4775_v56  ;;  %23076 = vmatprep.subr.bf16.mxu0 %v24902_v57  ;;  %v24941_v57 = vld [vmem:[%s25255_s3 + $0x3028] sm:$0xff]  }
 0x61b   : > { %v22784_v3 = vadd.f32 %v22783_v0, %v22782_v59  ;;  %23097 = vmatpush3.bf16.msra.mxu1 %v24901_v54  ;;  %18901 = vmatprep.mubr.bf16.mxu1 %v4778_v2  ;;  %v24940_v54 = vld [vmem:[%s25255_s3 + $0x30e8] sm:$0xff]   ;;  %v24944_v0 = vld [vmem:[%s25255_s3 + $0x30e0] sm:$0xff]  }
 0x61c   : > { %v22805_v5 = vpop.f32.mrf.mxu1  ;;  %v22785_v6 = vpop.f32.mrf.mxu0  ;;  %23098 = vmatprep.subr.bf16.mxu1 %v24903_v61  ;;  %v24942_v61 = vld [vmem:[%s25255_s3 + $0x30a8] sm:$0xff]   ;;  %v24946_v2 = vld [vmem:[%s25255_s3 + $0x30a0] sm:$0xff]  }
 0x61d   : > { %v18304_v8 = vadd.f32 %v22784_v3, %v27155_v21  ;;  %v22806_v9 = vadd.f32 %v22805_v5, %v22804_v63  ;;  %23077 = vmatpush3.bf16.msra.mxu0 %v24904_v62  ;;  %v24915_v21 = vld [vmem:[%s25255_s3 + $0x2fd8] sm:$0xff]   ;;  %v24943_v62 = vld [vmem:[%s25255_s3 + $0x3060] sm:$0xff]  }
 0x61e   : > { %v22807_v11 = vpop.f32.mrf.mxu1  ;;  %v22786_v12 = vpop.f32.mrf.mxu0  ;;  %23078 = vmatprep.subr.bf16.mxu0 %v24906_v4  ;;  %v24947_v3 = vld [vmem:[%s25255_s3 + $0x3058] sm:$0xff]  }
 0x61f   : > { %v27200_v14 = vadd.f32 %v22806_v9, %v18304_v8  ;;  %23099 = vmatpush3.bf16.msra.mxu1 %v24905_v1  ;;  %v24945_v1 = vld [vmem:[%s25255_s3 + $0x3020] sm:$0xff]   ;;  %v24948_v4 = vld [vmem:[%s25255_s3 + $0x30d8] sm:$0xff]   ;;  %v24952_v8 = vld [vmem:[%s25255_s3 + $0x30d0] sm:$0xff]  }
 0x620   : > { %v22808_v16 = vpop.f32.mrf.mxu1  ;;  %23100 = vmatprep.subr.bf16.mxu1 %v24907_v7  ;;  %v24949_v5 = vld [vmem:[%s25255_s3 + $0x3018] sm:$0xff]   ;;  %v24951_v7 = vld [vmem:[%s25255_s3 + $0x3050] sm:$0xff]   ;;  %v24955_v11 = vld [vmem:[%s25255_s3 + $0x3048] sm:$0xff]  }
 0x621   : > { %23079 = vmatpush3.bf16.msra.mxu0 %v24908_v10  ;;  %v24950_v6 = vld [vmem:[%s25255_s3 + $0x3098] sm:$0xff]   ;;  %v24953_v9 = vld [vmem:[%s25255_s3 + $0x3010] sm:$0xff]   ;;  %v24956_v12 = vld [vmem:[%s25255_s3 + $0x30c8] sm:$0xff]  }
 0x622   : > { %23080 = vmatprep.subr.bf16.mxu0 %v24910_v15  ;;  %v24954_v10 = vld [vmem:[%s25255_s3 + $0x3090] sm:$0xff]   ;;  %v24959_v15 = vld [vmem:[%s25255_s3 + $0x3040] sm:$0xff]  }
 0x623   : > { %23101 = vmatpush3.bf16.msra.mxu1 %v24909_v13  ;;  %v24957_v13 = vld [vmem:[%s25255_s3 + $0x3008] sm:$0xff]   ;;  %v24960_v16 = vld [vmem:[%s25255_s3 + $0x30c0] sm:$0xff]  }
 0x624   : > { %23102 = vmatprep.subr.bf16.mxu1 %v24911_v17  ;;  %v24961_v17 = vld [vmem:[%s25255_s3 + $0x3000] sm:$0xff]  }
 0x625   : > { %23081 = vmatpush3.bf16.msra.mxu0 %v24912_v18  ;;  %v247_v18 = vld [vmem:[%s25273_s20 + $0xc0] sm:$0xff] }
 0x626   : > { %23082 = vmatprep.subr.bf16.mxu0 %v24914_v20  ;;  %v24963_v20 = vld [vmem:[%s25255_s3 + $0x3178] sm:$0xff]  }
 0x627   : > { %23103 = vmatpush3.bf16.msra.mxu1 %v24913_v19  ;;  %v4786_v19 = vrot.slane %v247_v18, %v25311_v42 }
 0x628   : > { %23104 = vmatprep.subr.bf16.mxu1 %v24915_v21  ;;  %v4779_v21 = vcombine.high %v247_v18, %v247_v18 }
 0x629   : > { %23083 = vmatpush3.bf16.msra.mxu0 %v24916_v22  ;;  %v24962_v22 = vld [vmem:[%s25255_s3 + $0x3080] sm:$0xff]  }
 0x62a   : > { %23084 = vmatprep.subr.bf16.mxu0 %v24918_v24  ;;  %v4802_v24 = vrot.slane %v4786_v19, %v25311_v42 }
 0x62b   : > { %23105 = vmatpush3.bf16.msra.mxu1 %v24917_v23  ;;  %v4794_v23 = vcombine.high %v4786_v19, %v4786_v19  ;;  %v24999_v19 = vld [vmem:[%s25255_s3 + $0x32b8] sm:$0xff]  }
 0x62c   : > { %23106 = vmatprep.subr.bf16.mxu1 %v24919_v25  ;;  %v24964_v25 = vld [vmem:[%s25255_s3 + $0x31f8] sm:$0xff]  }
 0x62d   : > { %23085 = vmatpush3.bf16.msra.mxu0 %v24920_v26  ;;  %v27265_v26 = vrot.slane %v4779_v21, %v25311_v42 }
 0x62e   : > { %23086 = vmatprep.subr.bf16.mxu0 %v24922_v28  ;;  %v24965_v28 = vld [vmem:[%s25255_s3 + $0x3138] sm:$0xff]  }
 0x62f   : > { %23107 = vmatpush3.bf16.msra.mxu1 %v24921_v27  ;;  %v4816_v27 = vrot.slane %v4794_v23, %v25311_v42  ;;  %v25002_v23 = vld [vmem:[%s25255_s3 + $0x3230] sm:$0xff]  }
 0x630   : > { %23108 = vmatprep.subr.bf16.mxu1 %v24923_v29  ;;  %v4795_v29 = vcombine.high %v27265_v26, %v27265_v26 }
 0x631   : > { %23087 = vmatpush3.bf16.msra.mxu0 %v24924_v30  ;;  %v4824_v30 = vcombine.high %v4802_v24, %v4802_v24 }
 0x632   : > { %23088 = vmatprep.subr.bf16.mxu0 %v24926_v32  ;;  %v4826_v32 = vcombine.high %v4816_v27, %v4816_v27 }
 0x633   : > { %23109 = vmatpush3.bf16.msra.mxu1 %v24925_v31  ;;  %v24967_v31 = vld [vmem:[%s25255_s3 + $0x3170] sm:$0xff]  }
 0x634   : > { %23110 = vmatprep.subr.bf16.mxu1 %v24927_v33 }
 0x635   : > { %23089 = vmatpush3.bf16.msra.mxu0 %v24928_v34  ;;  %v24966_v34 = vld [vmem:[%s25255_s3 + $0x31b8] sm:$0xff]  }
 0x636   : > { %23118 = vmatprep.subr.bf16.mxu0 %v24931_v37 }
 0x637   : > { %23111 = vmatpush3.bf16.msra.mxu1 %v24929_v36  ;;  %v4823_v36 = vrot.slane %v4795_v29, %v25311_v42 }
 0x638   : > { %v22826_v44 = vpop.f32.mrf.mxu0  ;;  %18862 = vmatmul.mubr.bf16.vlgmr.msra.gmra.mxu0 %v4760_v35  ;;  %23140 = vmatprep.subr.bf16.mxu1 %v24932_v38  ;;  %v24968_v35 = vld [vmem:[%s25255_s3 + $0x31f0] sm:$0xff]  }
 0x639   : > { %23119 = vmatpush3.bf16.msra.mxu0 %v24933_v39  ;;  %18941 = vmatprep.mubr.bf16.mxu0 %v4816_v27  ;;  %v24969_v39 = vld [vmem:[%s25255_s3 + $0x3130] sm:$0xff]  }
 0x63a   : > { %v22848_v47 = vpop.f32.mrf.mxu1  ;;  %v22827_v48 = vpop.f32.mrf.mxu0  ;;  %18902 = vmatmul.mubr.bf16.vlgmr.msra.gmra.mxu1 %v4776_v41  ;;  %23120 = vmatprep.subr.bf16.mxu0 %v24935_v43  ;;  %v24971_v43 = vld [vmem:[%s25255_s3 + $0x3168] sm:$0xff]  }
 0x63b   : > { %v22828_v50 = vadd.f32 %v22827_v48, %v22826_v44  ;;  %23141 = vmatpush3.bf16.msra.mxu1 %v24934_v40  ;;  %18981 = vmatprep.mubr.bf16.mxu1 %v4826_v32  ;;  %v4827_v40 = vcombine.high %v4823_v36, %v4823_v36 }
 0x63c   : > { %v22849_v52 = vpop.f32.mrf.mxu1  ;;  %v22829_v53 = vpop.f32.mrf.mxu0  ;;  %23142 = vmatprep.subr.bf16.mxu1 %v24936_v45 }
 0x63d   : > { %v18384_v55 = vadd.f32 %v22828_v50, %v27200_v14  ;;  %v22850_v56 = vadd.f32 %v22849_v52, %v22848_v47  ;;  %23121 = vmatpush3.bf16.msra.mxu0 %v24937_v46  ;;  %v24958_v14 = vld [vmem:[%s25255_s3 + $0x3088] sm:$0xff]   ;;  %v24970_v46 = vld [vmem:[%s25255_s3 + $0x31b0] sm:$0xff]  }
 0x63e   : > { %v22851_v58 = vpop.f32.mrf.mxu1  ;;  %v22830_v59 = vpop.f32.mrf.mxu0  ;;  %23122 = vmatprep.subr.bf16.mxu0 %v24939_v51  ;;  %v24973_v52 = vld [vmem:[%s25255_s3 + $0x3128] sm:$0xff]  }
 0x63f   : > { %v27237_v60 = vadd.f32 %v22850_v56, %v18384_v55  ;;  %23143 = vmatpush3.bf16.msra.mxu1 %v24938_v49  ;;  %v24972_v49 = vld [vmem:[%s25255_s3 + $0x31e8] sm:$0xff]   ;;  %v24977_v58 = vld [vmem:[%s25255_s3 + $0x3120] sm:$0xff]   ;;  %v24979_v59 = vld [vmem:[%s25255_s3 + $0x3158] sm:$0xff]  }
 0x640   : > { %v22852_v63 = vpop.f32.mrf.mxu1  ;;  %23144 = vmatprep.subr.bf16.mxu1 %v24940_v54  ;;  %v24975_v54 = vld [vmem:[%s25255_s3 + $0x3160] sm:$0xff]   ;;  %v24974_v56 = vld [vmem:[%s25255_s3 + $0x31a8] sm:$0xff]  }
 0x641   : > { %23123 = vmatpush3.bf16.msra.mxu0 %v24941_v57  ;;  %v24976_v57 = vld [vmem:[%s25255_s3 + $0x31e0] sm:$0xff]   ;;  %v24983_v63 = vld [vmem:[%s25255_s3 + $0x3150] sm:$0xff]  }
 0x642   : > { %23124 = vmatprep.subr.bf16.mxu0 %v24943_v62  ;;  %v24981_v62 = vld [vmem:[%s25255_s3 + $0x3118] sm:$0xff]  }
 0x643   : > { %23145 = vmatpush3.bf16.msra.mxu1 %v24942_v61  ;;  %v24978_v61 = vld [vmem:[%s25255_s3 + $0x31a0] sm:$0xff]  }
 0x644   : > { %23146 = vmatprep.subr.bf16.mxu1 %v24944_v0  ;;  %v24982_v0 = vld [vmem:[%s25255_s3 + $0x3198] sm:$0xff]  }
 0x645   : > { %23125 = vmatpush3.bf16.msra.mxu0 %v24945_v1  ;;  %v24984_v1 = vld [vmem:[%s25255_s3 + $0x31d0] sm:$0xff]  }
 0x646   : > { %23126 = vmatprep.subr.bf16.mxu0 %v24947_v3  ;;  %v24987_v3 = vld [vmem:[%s25255_s3 + $0x3148] sm:$0xff]  }
 0x647   : > { %23147 = vmatpush3.bf16.msra.mxu1 %v24946_v2  ;;  %v24985_v2 = vld [vmem:[%s25255_s3 + $0x3110] sm:$0xff]  }
 0x648   : > { %23148 = vmatprep.subr.bf16.mxu1 %v24948_v4  ;;  %v24986_v4 = vld [vmem:[%s25255_s3 + $0x3190] sm:$0xff]  }
 0x649   : > { %23127 = vmatpush3.bf16.msra.mxu0 %v24949_v5  ;;  %v24988_v5 = vld [vmem:[%s25255_s3 + $0x31c8] sm:$0xff]  }
 0x64a   : > { %23128 = vmatprep.subr.bf16.mxu0 %v24951_v7  ;;  %v24991_v7 = vld [vmem:[%s25255_s3 + $0x3140] sm:$0xff]  }
 0x64b   : > { %23149 = vmatpush3.bf16.msra.mxu1 %v24950_v6  ;;  %v24989_v6 = vld [vmem:[%s25255_s3 + $0x3108] sm:$0xff]  }
 0x64c   : > { %23150 = vmatprep.subr.bf16.mxu1 %v24952_v8  ;;  %v24990_v8 = vld [vmem:[%s25255_s3 + $0x3188] sm:$0xff]  }
 0x64d   : > { %23129 = vmatpush3.bf16.msra.mxu0 %v24953_v9  ;;  %v24992_v9 = vld [vmem:[%s25255_s3 + $0x31c0] sm:$0xff]  }
 0x64e   : > { %23130 = vmatprep.subr.bf16.mxu0 %v24955_v11  ;;  %v4809_v11 = vrot.slane %v27265_v26, %v25311_v42 }
 0x64f   : > { %23151 = vmatpush3.bf16.msra.mxu1 %v24954_v10  ;;  %v24993_v10 = vld [vmem:[%s25255_s3 + $0x3100] sm:$0xff]  }
 0x650   : > { %23152 = vmatprep.subr.bf16.mxu1 %v24956_v12  ;;  %v24996_v12 = vld [vmem:[%s25255_s3 + $0x3278] sm:$0xff]  }
 0x651   : > { %23131 = vmatpush3.bf16.msra.mxu0 %v24957_v13  ;;  %v24994_v13 = vld [vmem:[%s25255_s3 + $0x3180] sm:$0xff]  }
 0x652   : > { %23132 = vmatprep.subr.bf16.mxu0 %v24959_v15  ;;  %v24998_v15 = vld [vmem:[%s25255_s3 + $0x3238] sm:$0xff]  }
 0x653   : > { %23153 = vmatpush3.bf16.msra.mxu1 %v24958_v14  ;;  %v24997_v14 = vld [vmem:[%s25255_s3 + $0x32f8] sm:$0xff]  }
 0x654   : > { %23154 = vmatprep.subr.bf16.mxu1 %v24960_v16  ;;  %v4825_v16 = vcombine.high %v4809_v11, %v4809_v11 }
 0x655   : > { %23133 = vmatpush3.bf16.msra.mxu0 %v24961_v17  ;;  %v25000_v17 = vld [vmem:[%s25255_s3 + $0x3270] sm:$0xff]  }
 0x656   : > { %23162 = vmatprep.subr.bf16.mxu0 %v24963_v20  ;;  %v25001_v20 = vld [vmem:[%s25255_s3 + $0x32f0] sm:$0xff]  }
 0x657   : > { %23155 = vmatpush3.bf16.msra.mxu1 %v24962_v22 }
 0x658   : > { %v22870_v33 = vpop.f32.mrf.mxu0  ;;  %23184 = vmatprep.subr.bf16.mxu1 %v24964_v25  ;;  %18942 = vmatmul.mubr.bf16.vlgmr.msra.gmra.mxu0 %v4802_v24  ;;  %v25004_v25 = vld [vmem:[%s25255_s3 + $0x3268] sm:$0xff]  }
 0x659   : > { %23163 = vmatpush3.bf16.msra.mxu0 %v24965_v28  ;;  %19021 = vmatprep.mubr.bf16.mxu0 %v4823_v36  ;;  %v25003_v28 = vld [vmem:[%s25255_s3 + $0x32b0] sm:$0xff]  }
 0x65a   : > { %v22892_v37 = vpop.f32.mrf.mxu1  ;;  %v22871_v38 = vpop.f32.mrf.mxu0  ;;  %18982 = vmatmul.mubr.bf16.vlgmr.msra.gmra.mxu1 %v4824_v30  ;;  %23164 = vmatprep.subr.bf16.mxu0 %v24967_v31  ;;  %v25005_v31 = vld [vmem:[%s25255_s3 + $0x32e8] sm:$0xff]  }
 0x65b   : > { %v22872_v41 = vadd.f32 %v22871_v38, %v22870_v33  ;;  %23185 = vmatpush3.bf16.msra.mxu1 %v24966_v34  ;;  %19061 = vmatprep.mubr.bf16.mxu1 %v4827_v40  ;;  %v25006_v34 = vld [vmem:[%s25255_s3 + $0x3228] sm:$0xff]   ;;  %v25010_v40 = vld [vmem:[%s25255_s3 + $0x3220] sm:$0xff]  }
 0x65c   : > { %v22893_v44 = vpop.f32.mrf.mxu1  ;;  %v22873_v45 = vpop.f32.mrf.mxu0  ;;  %23186 = vmatprep.subr.bf16.mxu1 %v24968_v35  ;;  %v25008_v35 = vld [vmem:[%s25255_s3 + $0x3260] sm:$0xff]   ;;  %v25007_v38 = vld [vmem:[%s25255_s3 + $0x32a8] sm:$0xff]  }
 0x65d   : > { %v18464_v47 = vadd.f32 %v22872_v41, %v27237_v60  ;;  %v22894_v48 = vadd.f32 %v22893_v44, %v22892_v37  ;;  %23165 = vmatpush3.bf16.msra.mxu0 %v24969_v39  ;;  %v24980_v60 = vld [vmem:[%s25255_s3 + $0x31d8] sm:$0xff]   ;;  %v25009_v39 = vld [vmem:[%s25255_s3 + $0x32e0] sm:$0xff]  }
 0x65e   : > { %v22895_v50 = vpop.f32.mrf.mxu1  ;;  %v22874_v51 = vpop.f32.mrf.mxu0  ;;  %23166 = vmatprep.subr.bf16.mxu0 %v24971_v43  ;;  %v25012_v41 = vld [vmem:[%s25255_s3 + $0x3258] sm:$0xff]   ;;  %v25011_v43 = vld [vmem:[%s25255_s3 + $0x32a0] sm:$0xff]  }
 0x65f   : > { %v27281_v53 = vadd.f32 %v22894_v48, %v18464_v47  ;;  %23187 = vmatpush3.bf16.msra.mxu1 %v24970_v46  ;;  %v25013_v44 = vld [vmem:[%s25255_s3 + $0x32d8] sm:$0xff]   ;;  %v25016_v46 = vld [vmem:[%s25255_s3 + $0x3250] sm:$0xff]   ;;  %v25020_v50 = vld [vmem:[%s25255_s3 + $0x3248] sm:$0xff]  }
 0x660   : > { %v22896_v55 = vpop.f32.mrf.mxu1  ;;  %23188 = vmatprep.subr.bf16.mxu1 %v24972_v49  ;;  %v25014_v45 = vld [vmem:[%s25255_s3 + $0x3218] sm:$0xff]   ;;  %v25017_v48 = vld [vmem:[%s25255_s3 + $0x32d0] sm:$0xff]  }
 0x661   : > { %23167 = vmatpush3.bf16.msra.mxu0 %v24973_v52  ;;  %v25015_v47 = vld [vmem:[%s25255_s3 + $0x3298] sm:$0xff]   ;;  %v25018_v49 = vld [vmem:[%s25255_s3 + $0x3210] sm:$0xff]   ;;  %v25021_v52 = vld [vmem:[%s25255_s3 + $0x32c8] sm:$0xff]  }
 0x662   : > { %23168 = vmatprep.subr.bf16.mxu0 %v24975_v54  ;;  %v25019_v51 = vld [vmem:[%s25255_s3 + $0x3290] sm:$0xff]   ;;  %v25024_v54 = vld [vmem:[%s25255_s3 + $0x3240] sm:$0xff]   ;;  %v25023_v55 = vld [vmem:[%s25255_s3 + $0x3288] sm:$0xff]  }
 0x663   : > { %23189 = vmatpush3.bf16.msra.mxu1 %v24974_v56  ;;  %v25025_v56 = vld [vmem:[%s25255_s3 + $0x32c0] sm:$0xff]  }
 0x664   : > { %23190 = vmatprep.subr.bf16.mxu1 %v24976_v57  ;;  %v248_v57 = vld [vmem:[%s25273_s20 + $0xc8] sm:$0xff] }
 0x665   : > { %23169 = vmatpush3.bf16.msra.mxu0 %v24977_v58  ;;  %v25026_v58 = vld [vmem:[%s25255_s3 + $0x3200] sm:$0xff]  }
 0x666   : > { %23170 = vmatprep.subr.bf16.mxu0 %v24979_v59  ;;  %v4835_v59 = vrot.slane %v248_v57, %v25311_v42 }
 0x667   : > { %23191 = vmatpush3.bf16.msra.mxu1 %v24978_v61  ;;  %v4828_v61 = vcombine.high %v248_v57, %v248_v57 }
 0x668   : > { %23192 = vmatprep.subr.bf16.mxu1 %v24980_v60  ;;  %v25028_v60 = vld [vmem:[%s25255_s3 + $0x3378] sm:$0xff]  }
 0x669   : > { %23171 = vmatpush3.bf16.msra.mxu0 %v24981_v62  ;;  %v25027_v62 = vld [vmem:[%s25255_s3 + $0x3280] sm:$0xff]  }
 0x66a   : > { %23172 = vmatprep.subr.bf16.mxu0 %v24983_v63  ;;  %v4843_v63 = vcombine.high %v4835_v59, %v4835_v59 }
 0x66b   : > { %23193 = vmatpush3.bf16.msra.mxu1 %v24982_v0  ;;  %v4851_v0 = vrot.slane %v4835_v59, %v25311_v42 }
 0x66c   : > { %23194 = vmatprep.subr.bf16.mxu1 %v24984_v1  ;;  %v27346_v1 = vrot.slane %v4828_v61, %v25311_v42 }
 0x66d   : > { %23173 = vmatpush3.bf16.msra.mxu0 %v24985_v2  ;;  %v25029_v2 = vld [vmem:[%s25255_s3 + $0x33f8] sm:$0xff]  }
 0x66e   : > { %23174 = vmatprep.subr.bf16.mxu0 %v24987_v3  ;;  %v4865_v3 = vrot.slane %v4843_v63, %v25311_v42 }
 0x66f   : > { %23195 = vmatpush3.bf16.msra.mxu1 %v24986_v4  ;;  %v25030_v4 = vld [vmem:[%s25255_s3 + $0x3338] sm:$0xff]  }
 0x670   : > { %23196 = vmatprep.subr.bf16.mxu1 %v24988_v5  ;;  %v4844_v5 = vcombine.high %v27346_v1, %v27346_v1 }
 0x671   : > { %23175 = vmatpush3.bf16.msra.mxu0 %v24989_v6  ;;  %v4873_v6 = vcombine.high %v4851_v0, %v4851_v0 }
 0x672   : > { %23176 = vmatprep.subr.bf16.mxu0 %v24991_v7  ;;  %v25032_v7 = vld [vmem:[%s25255_s3 + $0x3370] sm:$0xff]  }
 0x673   : > { %23197 = vmatpush3.bf16.msra.mxu1 %v24990_v8  ;;  %v4875_v8 = vcombine.high %v4865_v3, %v4865_v3 }
 0x674   : > { %23198 = vmatprep.subr.bf16.mxu1 %v24992_v9 }
 0x675   : > { %23177 = vmatpush3.bf16.msra.mxu0 %v24993_v10  ;;  %v25031_v10 = vld [vmem:[%s25255_s3 + $0x33b8] sm:$0xff]  }
 0x676   : > { %23206 = vmatprep.subr.bf16.mxu0 %v24996_v12  ;;  %v25033_v12 = vld [vmem:[%s25255_s3 + $0x33f0] sm:$0xff]  }
 0x677   : > { %23199 = vmatpush3.bf16.msra.mxu1 %v24994_v13 }
 0x678   : > { %v22914_v18 = vpop.f32.mrf.mxu0  ;;  %19022 = vmatmul.mubr.bf16.vlgmr.msra.gmra.mxu0 %v4809_v11  ;;  %23228 = vmatprep.subr.bf16.mxu1 %v24997_v14  ;;  %v4872_v11 = vrot.slane %v4844_v5, %v25311_v42 }
 0x679   : > { %23207 = vmatpush3.bf16.msra.mxu0 %v24998_v15  ;;  %19101 = vmatprep.mubr.bf16.mxu0 %v4865_v3  ;;  %v25034_v15 = vld [vmem:[%s25255_s3 + $0x3330] sm:$0xff]  }
 0x67a   : > { %v22936_v21 = vpop.f32.mrf.mxu1  ;;  %v22915_v22 = vpop.f32.mrf.mxu0  ;;  %19062 = vmatmul.mubr.bf16.vlgmr.msra.gmra.mxu1 %v4825_v16  ;;  %23208 = vmatprep.subr.bf16.mxu0 %v25000_v17  ;;  %v4876_v16 = vcombine.high %v4872_v11, %v4872_v11 }
 0x67b   : > { %v22916_v24 = vadd.f32 %v22915_v22, %v22914_v18  ;;  %23229 = vmatpush3.bf16.msra.mxu1 %v24999_v19  ;;  %19141 = vmatprep.mubr.bf16.mxu1 %v4875_v8  ;;  %v25036_v18 = vld [vmem:[%s25255_s3 + $0x3368] sm:$0xff]  }
 0x67c   : > { %v22937_v26 = vpop.f32.mrf.mxu1  ;;  %v22917_v27 = vpop.f32.mrf.mxu0  ;;  %23230 = vmatprep.subr.bf16.mxu1 %v25001_v20 }
 0x67d   : > { %v18544_v29 = vadd.f32 %v22916_v24, %v27281_v53  ;;  %v22938_v30 = vadd.f32 %v22937_v26, %v22936_v21  ;;  %23209 = vmatpush3.bf16.msra.mxu0 %v25002_v23  ;;  %v25022_v53 = vld [vmem:[%s25255_s3 + $0x3208] sm:$0xff]   ;;  %v25035_v21 = vld [vmem:[%s25255_s3 + $0x33b0] sm:$0xff]  }
 0x67e   : > { %v22939_v32 = vpop.f32.mrf.mxu1  ;;  %v22918_v33 = vpop.f32.mrf.mxu0  ;;  %23210 = vmatprep.subr.bf16.mxu0 %v25004_v25  ;;  %v25037_v24 = vld [vmem:[%s25255_s3 + $0x33e8] sm:$0xff]  }
 0x67f   : > { %v27318_v36 = vadd.f32 %v22938_v30, %v18544_v29  ;;  %23231 = vmatpush3.bf16.msra.mxu1 %v25003_v28  ;;  %v25038_v27 = vld [vmem:[%s25255_s3 + $0x3328] sm:$0xff]   ;;  %v25040_v29 = vld [vmem:[%s25255_s3 + $0x3360] sm:$0xff]  }
 0x680   : > { %v22940_v37 = vpop.f32.mrf.mxu1  ;;  %23232 = vmatprep.subr.bf16.mxu1 %v25005_v31  ;;  %v25039_v31 = vld [vmem:[%s25255_s3 + $0x33a8] sm:$0xff]   ;;  %v25041_v32 = vld [vmem:[%s25255_s3 + $0x33e0] sm:$0xff]  }
 0x681   : > { %23211 = vmatpush3.bf16.msra.mxu0 %v25006_v34  ;;  %v25042_v33 = vld [vmem:[%s25255_s3 + $0x3320] sm:$0xff]   ;;  %v25044_v34 = vld [vmem:[%s25255_s3 + $0x3358] sm:$0xff]  }
 0x682   : > { %23212 = vmatprep.subr.bf16.mxu0 %v25008_v35  ;;  %v25045_v35 = vld [vmem:[%s25255_s3 + $0x33d8] sm:$0xff]  }
 0x683   : > { %23233 = vmatpush3.bf16.msra.mxu1 %v25007_v38  ;;  %v25046_v37 = vld [vmem:[%s25255_s3 + $0x3318] sm:$0xff]   ;;  %v25048_v38 = vld [vmem:[%s25255_s3 + $0x3350] sm:$0xff]  }
 0x684   : > { %23234 = vmatprep.subr.bf16.mxu1 %v25009_v39  ;;  %v25047_v39 = vld [vmem:[%s25255_s3 + $0x3398] sm:$0xff]  }
 0x685   : > { %23213 = vmatpush3.bf16.msra.mxu0 %v25010_v40  ;;  %v25049_v40 = vld [vmem:[%s25255_s3 + $0x33d0] sm:$0xff]  }
 0x686   : > { %23214 = vmatprep.subr.bf16.mxu0 %v25012_v41  ;;  %v25050_v41 = vld [vmem:[%s25255_s3 + $0x3310] sm:$0xff]  }
 0x687   : > { %23235 = vmatpush3.bf16.msra.mxu1 %v25011_v43  ;;  %v25052_v43 = vld [vmem:[%s25255_s3 + $0x3348] sm:$0xff]  }
 0x688   : > { %23236 = vmatprep.subr.bf16.mxu1 %v25013_v44  ;;  %v25051_v44 = vld [vmem:[%s25255_s3 + $0x3390] sm:$0xff]  }
 0x689   : > { %23215 = vmatpush3.bf16.msra.mxu0 %v25014_v45  ;;  %v25053_v45 = vld [vmem:[%s25255_s3 + $0x33c8] sm:$0xff]  }
 0x68a   : > { %23216 = vmatprep.subr.bf16.mxu0 %v25016_v46  ;;  %v25054_v46 = vld [vmem:[%s25255_s3 + $0x3308] sm:$0xff]  }
 0x68b   : > { %23237 = vmatpush3.bf16.msra.mxu1 %v25015_v47  ;;  %v25056_v47 = vld [vmem:[%s25255_s3 + $0x3340] sm:$0xff]  }
 0x68c   : > { %23238 = vmatprep.subr.bf16.mxu1 %v25017_v48  ;;  %v25055_v48 = vld [vmem:[%s25255_s3 + $0x3388] sm:$0xff]  }
 0x68d   : > { %23217 = vmatpush3.bf16.msra.mxu0 %v25018_v49  ;;  %v25057_v49 = vld [vmem:[%s25255_s3 + $0x33c0] sm:$0xff]  }
 0x68e   : > { %23218 = vmatprep.subr.bf16.mxu0 %v25020_v50  ;;  %v25058_v50 = vld [vmem:[%s25255_s3 + $0x3300] sm:$0xff]  }
 0x68f   : > { %23239 = vmatpush3.bf16.msra.mxu1 %v25019_v51  ;;  %v4858_v51 = vrot.slane %v27346_v1, %v25311_v42 }
 0x690   : > { %23240 = vmatprep.subr.bf16.mxu1 %v25021_v52  ;;  %v25059_v52 = vld [vmem:[%s25255_s3 + $0x3380] sm:$0xff]  }
 0x691   : > { %23219 = vmatpush3.bf16.msra.mxu0 %v25022_v53  ;;  %v4874_v53 = vcombine.high %v4858_v51, %v4858_v51 }
 0x692   : > { %23220 = vmatprep.subr.bf16.mxu0 %v25024_v54 }
 0x693   : > { %23241 = vmatpush3.bf16.msra.mxu1 %v25023_v55 }
 0x694   : > { %23242 = vmatprep.subr.bf16.mxu1 %v25025_v56 }
 0x695   : > { %23221 = vmatpush3.bf16.msra.mxu0 %v25026_v58 }
 0x696   : > { %23250 = vmatprep.subr.bf16.mxu0 %v25028_v60 }
 0x697   : > { %23243 = vmatpush3.bf16.msra.mxu1 %v25027_v62 }
 0x698   : > { %v22958_v9 = vpop.f32.mrf.mxu0  ;;  %19102 = vmatmul.mubr.bf16.vlgmr.msra.gmra.mxu0 %v4851_v0  ;;  %23272 = vmatprep.subr.bf16.mxu1 %v25029_v2 }
 0x699   : > { %23251 = vmatpush3.bf16.msra.mxu0 %v25030_v4  ;;  %19181 = vmatprep.mubr.bf16.mxu0 %v4872_v11 }
 0x69a   : > { %v22980_v13 = vpop.f32.mrf.mxu1  ;;  %v22959_v14 = vpop.f32.mrf.mxu0  ;;  %19142 = vmatmul.mubr.bf16.vlgmr.msra.gmra.mxu1 %v4873_v6  ;;  %23252 = vmatprep.subr.bf16.mxu0 %v25032_v7 }
 0x69b   : > { %v22960_v17 = vadd.f32 %v22959_v14, %v22958_v9  ;;  %23273 = vmatpush3.bf16.msra.mxu1 %v25031_v10  ;;  %19221 = vmatprep.mubr.bf16.mxu1 %v4876_v16 }
 0x69c   : > { %v22981_v19 = vpop.f32.mrf.mxu1  ;;  %v22961_v20 = vpop.f32.mrf.mxu0  ;;  %23274 = vmatprep.subr.bf16.mxu1 %v25033_v12 }
 0x69d   : > { %v18624_v22 = vadd.f32 %v22960_v17, %v27318_v36  ;;  %v22982_v23 = vadd.f32 %v22981_v19, %v22980_v13  ;;  %23253 = vmatpush3.bf16.msra.mxu0 %v25034_v15  ;;  %v25043_v36 = vld [vmem:[%s25255_s3 + $0x33a0] sm:$0xff]  }
 0x69e   : > { %v22983_v25 = vpop.f32.mrf.mxu1  ;;  %v22962_v26 = vpop.f32.mrf.mxu0  ;;  %23254 = vmatprep.subr.bf16.mxu0 %v25036_v18 }
 0x69f   : > { %v18664_v28 = vadd.f32 %v22982_v23, %v18624_v22  ;;  %23275 = vmatpush3.bf16.msra.mxu1 %v25035_v21 }
 0x6a0   : > { %v22984_v30 = vpop.f32.mrf.mxu1  ;;  %23276 = vmatprep.subr.bf16.mxu1 %v25037_v24 }
 0x6a1   : > { %23255 = vmatpush3.bf16.msra.mxu0 %v25038_v27 }
 0x6a2   : > { %23256 = vmatprep.subr.bf16.mxu0 %v25040_v29 }
 0x6a3   : > { %23277 = vmatpush3.bf16.msra.mxu1 %v25039_v31 }
 0x6a4   : > { %23278 = vmatprep.subr.bf16.mxu1 %v25041_v32 }
 0x6a5   : > { %23257 = vmatpush3.bf16.msra.mxu0 %v25042_v33 }
 0x6a6   : > { %23258 = vmatprep.subr.bf16.mxu0 %v25044_v34 }
 0x6a7   : > { %23279 = vmatpush3.bf16.msra.mxu1 %v25043_v36 }
 0x6a8   : > { %23280 = vmatprep.subr.bf16.mxu1 %v25045_v35 }
 0x6a9   : > { %23259 = vmatpush3.bf16.msra.mxu0 %v25046_v37 }
 0x6aa   : > { %23260 = vmatprep.subr.bf16.mxu0 %v25048_v38 }
 0x6ab   : > { %23281 = vmatpush3.bf16.msra.mxu1 %v25047_v39 }
 0x6ac   : > { %23282 = vmatprep.subr.bf16.mxu1 %v25049_v40 }
 0x6ad   : > { %23261 = vmatpush3.bf16.msra.mxu0 %v25050_v41 }
 0x6ae   : > { %23262 = vmatprep.subr.bf16.mxu0 %v25052_v43 }
 0x6af   : > { %23283 = vmatpush3.bf16.msra.mxu1 %v25051_v44 }
 0x6b0   : > { %23284 = vmatprep.subr.bf16.mxu1 %v25053_v45 }
 0x6b1   : > { %23263 = vmatpush3.bf16.msra.mxu0 %v25054_v46 }
 0x6b2   : > { %23264 = vmatprep.subr.bf16.mxu0 %v25056_v47 }
 0x6b3   : > { %23285 = vmatpush3.bf16.msra.mxu1 %v25055_v48 }
 0x6b4   : > { %23286 = vmatprep.subr.bf16.mxu1 %v25057_v49 }
 0x6b5   : > { %23265 = vmatpush3.bf16.msra.mxu0 %v25058_v50 }
 0x6b7   : > { %23287 = vmatpush3.bf16.msra.mxu1 %v25059_v52 }
 0x6b8   : > { %v23002_v54 = vpop.f32.mrf.mxu0  ;;  %19182 = vmatmul.mubr.bf16.vlgmr.msra.gmra.mxu0 %v4858_v51 }
 0x6ba   : > { %v23024_v55 = vpop.f32.mrf.mxu1  ;;  %v23003_v56 = vpop.f32.mrf.mxu0  ;;  %19222 = vmatmul.mubr.bf16.vlgmr.msra.gmra.mxu1 %v4874_v53 }
 0x6bb   : > { %v23004_v57 = vadd.f32 %v23003_v56, %v23002_v54 }
 0x6bc   : > { %v23025_v58 = vpop.f32.mrf.mxu1  ;;  %v23005_v59 = vpop.f32.mrf.mxu0 }
 0x6bd   : > { %v18704_v61 = vadd.f32 %v23004_v57, %v18664_v28  ;;  %v23026_v60 = vadd.f32 %v23025_v58, %v23024_v55 }
 0x6be   : > { %v23027_v62 = vpop.f32.mrf.mxu1  ;;  %v23006_v63 = vpop.f32.mrf.mxu0 }
 0x6bf   : > { %v18744_v0 = vadd.f32 %v23026_v60, %v18704_v61 }
 0x6c0   : > { %v23028_v42 = vpop.f32.mrf.mxu1 }
 0x6d8   : > { %v23046_v1 = vpop.f32.mrf.mxu0 }
 0x6da   : > { %v23068_v2 = vpop.f32.mrf.mxu1  ;;  %v23047_v3 = vpop.f32.mrf.mxu0 }
 0x6db   : > { %v23048_v4 = vadd.f32 %v23047_v3, %v23046_v1 }
 0x6dc   : > { %v23069_v5 = vpop.f32.mrf.mxu1  ;;  %v23049_v6 = vpop.f32.mrf.mxu0 }
 0x6dd   : > { %v18784_v7 = vadd.f32 %v23048_v4, %v18744_v0  ;;  %v23070_v8 = vadd.f32 %v23069_v5, %v23068_v2  ;;  %v222_v5 = vld [vmem:[#allocation2] sm:$0x3] }
 0x6de   : > { %v23071_v9 = vpop.f32.mrf.mxu1  ;;  %v23050_v10 = vpop.f32.mrf.mxu0 }
 0x6df   : > { %v18824_v11 = vadd.f32 %v23070_v8, %v18784_v7 }
 0x6e0   : > { %v23072_v12 = vpop.f32.mrf.mxu1 }
 0x6f8   : > { %v23090_v13 = vpop.f32.mrf.mxu0 }
 0x6fa   : > { %v23112_v14 = vpop.f32.mrf.mxu1  ;;  %v23091_v15 = vpop.f32.mrf.mxu0 }
 0x6fb   : > { %v23092_v16 = vadd.f32 %v23091_v15, %v23090_v13 }
 0x6fc   : > { %v23113_v17 = vpop.f32.mrf.mxu1  ;;  %v23093_v18 = vpop.f32.mrf.mxu0 }
 0x6fd   : > { %v18864_v19 = vadd.f32 %v23092_v16, %v18824_v11  ;;  %v23114_v20 = vadd.f32 %v23113_v17, %v23112_v14 }
 0x6fe   : > { %v23115_v21 = vpop.f32.mrf.mxu1  ;;  %v23094_v22 = vpop.f32.mrf.mxu0 }
 0x6ff   : > { %v18904_v23 = vadd.f32 %v23114_v20, %v18864_v19 }
 0x700   : > { %v23116_v24 = vpop.f32.mrf.mxu1 }
 0x718   : > { %v23134_v25 = vpop.f32.mrf.mxu0 }
 0x71a   : > { %v23156_v26 = vpop.f32.mrf.mxu1  ;;  %v23135_v27 = vpop.f32.mrf.mxu0 }
 0x71b   : > { %v23136_v28 = vadd.f32 %v23135_v27, %v23134_v25 }
 0x71c   : > { %v23157_v29 = vpop.f32.mrf.mxu1  ;;  %v23137_v30 = vpop.f32.mrf.mxu0 }
 0x71d   : > { %v18944_v31 = vadd.f32 %v23136_v28, %v18904_v23  ;;  %v23158_v32 = vadd.f32 %v23157_v29, %v23156_v26 }
 0x71e   : > { %v23159_v33 = vpop.f32.mrf.mxu1  ;;  %v23138_v34 = vpop.f32.mrf.mxu0 }
 0x71f   : > { %v18984_v36 = vadd.f32 %v23158_v32, %v18944_v31 }
 0x720   : > { %v23160_v35 = vpop.f32.mrf.mxu1 }
 0x738   : > { %v23178_v37 = vpop.f32.mrf.mxu0 }
 0x73a   : > { %v23200_v38 = vpop.f32.mrf.mxu1  ;;  %v23179_v39 = vpop.f32.mrf.mxu0 }
 0x73b   : > { %v23180_v54 = vadd.f32 %v23179_v39, %v23178_v37 }
 0x73c   : > { %v23201_v40 = vpop.f32.mrf.mxu1  ;;  %v23181_v41 = vpop.f32.mrf.mxu0 }
 0x73d   : > { %v19024_v55 = vadd.f32 %v23180_v54, %v18984_v36  ;;  %v23202_v56 = vadd.f32 %v23201_v40, %v23200_v38 }
 0x73e   : > { %v23203_v43 = vpop.f32.mrf.mxu1  ;;  %v23182_v44 = vpop.f32.mrf.mxu0 }
 0x73f   : > { %v19064_v58 = vadd.f32 %v23202_v56, %v19024_v55 }
 0x740   : > { %v23204_v45 = vpop.f32.mrf.mxu1 }
 0x758   : > { %v23222_v46 = vpop.f32.mrf.mxu0 }
 0x75a   : > { %v23244_v47 = vpop.f32.mrf.mxu1  ;;  %v23223_v48 = vpop.f32.mrf.mxu0 }
 0x75b   : > { %v23224_v57 = vadd.f32 %v23223_v48, %v23222_v46 }
 0x75c   : > { %v23245_v49 = vpop.f32.mrf.mxu1  ;;  %v23225_v50 = vpop.f32.mrf.mxu0 }
 0x75d   : > { %v19104_v59 = vadd.f32 %v23224_v57, %v19064_v58  ;;  %v23246_v61 = vadd.f32 %v23245_v49, %v23244_v47 }
 0x75e   : > { %v23247_v51 = vpop.f32.mrf.mxu1  ;;  %v23226_v52 = vpop.f32.mrf.mxu0 }
 0x75f   : > { %v19144_v0 = vadd.f32 %v23246_v61, %v19104_v59 }
 0x760   : > { %v23248_v53 = vpop.f32.mrf.mxu1 }
 0x778   : > { %v23266_v60 = vpop.f32.mrf.mxu0 }
 0x77a   : > { %v23288_v62 = vpop.f32.mrf.mxu1  ;;  %v23267_v63 = vpop.f32.mrf.mxu0 }
 0x77b   : > { %v23268_v42 = vadd.f32 %v23267_v63, %v23266_v60 }
 0x77c   : > { %v23289_v1 = vpop.f32.mrf.mxu1  ;;  %v23269_v2 = vpop.f32.mrf.mxu0 }
 0x77d   : > { %v19184_v3 = vadd.f32 %v23268_v42, %v19144_v0  ;;  %v23290_v4 = vadd.f32 %v23289_v1, %v23288_v62 }
 0x77e   : > { %v23291_v6 = vpop.f32.mrf.mxu1  ;;  %v23270_v7 = vpop.f32.mrf.mxu0 }
 0x77f   : > { %v19224_v8 = vadd.f32 %v23290_v4, %v19184_v3  ;;  %19234 = sbr.rel (%p21002_p11) target bundleno = 1932 (0x78c), region = 40 }
 0x780   : > { %v23292_v9 = vpop.f32.mrf.mxu1 }
 0x781   : > { %v19229_v10 = vadd.f32 %v19224_v8, %v222_v5 }
 0x783   : > { %19230 = vst [vmem:[#allocation2] sm:$0x3] %v19229_v10 }
 0x78a   : > { %v19235_v11 = vld [vmem:[#allocation2] sm:$0x3] }
 0x78b   : > { %19236 = vst [vmem:[%s25268_s9] sm:$0x3] %v19235_v11 }
 0x78c PF: > { %s15_s16 = sadd.s32 1, %s25155_s16   ;;  %s27417_s9 = smov %s25131_s10 }
 0x78d   : > { %p12_p12 = scmp.ge.s32.totalorder %s15_s16, 10   ;;  %s27418_s10 = smov %s25135_s11 }
 0x78e   : > { %s27419_s11 = smov %s25243_s30  ;;  %s27420_s12 = smov %s25147_s14 }
 0x78f   : > { %s27421_s13 = smov %s25151_s15  ;;  %s27422_s14 = smov %s27425_s18 }
 0x790   : > { %s27423_s15 = smov %s27429_s19  ;;  %14 = sbr.rel (!%p12_p12) target bundleno = 5 (0x5), region = 79 }
 0x795   :  { %19256 = vsyncpa [#allocation4], 1 }
 0x796   :  { %19258 = vsyncpa [#allocation4 + $0x1], 1 }

</bundles_post_ra>
